<compile_context>
chip_gen: v5e
topology: v5e:2x2
jax: 0.10.0
libtpu: 0.0.40
codegen_flags: <defaults>
</compile_context>

<pallas_src>
import math
from functools import partial

import numpy as np
import jax
import jax.numpy as jnp
from jax import lax
from jax.experimental import pallas as pl
from jax.experimental.pallas import tpu as pltpu

# ----------------------------- model config (scaled-down Swin) ----------------
IMG = 32          # input spatial size
PATCH = 4         # patch size -> 8x8 tokens after embed
IN_CH = 3
EMBED = 32        # stage-0 channel dim
DEPTHS = (2, 2)   # blocks per stage
HEADS = (2, 4)    # attention heads per stage
WINDOW = 4        # window size
MLP_RATIO = 4
NUM_CLASSES = 64  # timm backbone head dim (num_classes=64 in the reference)
NUM_OUT = 8       # 3 (mask) + 2 (gender) + 3 (age) -- fused classifier

_LN_EPS = 1e-5
_NEG = -1e9       # hard mask for cross-window pairs (exp underflows to exact 0)

_HP = IMG // PATCH            # 8   tokens per side, stage 0
_L0 = _HP * _HP               # 64  tokens per image, stage 0
_F0 = IN_CH * PATCH * PATCH   # 48  features per patch
_HM = _HP // 2                # 4   tokens per side, stage 1
_L1 = _HM * _HM               # 16  tokens per image, stage 1


# ----------------------------- in-kernel helpers ------------------------------
def _ln(x, g, b):
    mu = jnp.mean(x, axis=-1, keepdims=True)
    var = jnp.mean(jnp.square(x - mu), axis=-1, keepdims=True)
    return (x - mu) * lax.rsqrt(var + _LN_EPS) * g + b


def _erf(x):
    # Abramowitz & Stegun 7.1.26 polynomial (|err| < 1.5e-7): keeps torch's
    # exact-erf GELU semantics using only guaranteed-lowerable elementwise ops.
    a1, a2, a3 = 0.254829592, -0.284496736, 1.421413741
    a4, a5, p = -1.453152027, 1.061405429, 0.3275911
    sgn = jnp.where(x >= 0.0, 1.0, -1.0)
    ax = jnp.abs(x)
    t = 1.0 / (1.0 + p * ax)
    poly = ((((a5 * t + a4) * t + a3) * t + a2) * t + a1) * t
    return sgn * (1.0 - poly * jnp.exp(-ax * ax))


def _gelu(x):
    return 0.5 * x * (1.0 + _erf(x * (1.0 / math.sqrt(2.0))))


def _dot(a, w):
    # bf16 MXU matmul, f32 accumulation (weights stored bf16)
    return jnp.dot(a.astype(jnp.bfloat16), w, preferred_element_type=jnp.float32)


# ----------------------------- fused kernel body ------------------------------
def _swin_block(x, pr, pre, heads):
    """One Swin block on the full per-image token set x: (L, C) f32.

    Window structure / shift / rel-pos bias / shift mask are pre-folded into the
    dense (heads, L, L) bias table `pre + 'bias'`, so this is plain block-diag
    attention -- no partition, no roll, no per-window loop.
    """
    L, C = x.shape
    D = C // heads
    scale = float(D) ** -0.5
    ld = lambda n: pr[pre + n][...]

    xn = _ln(x, ld("n1g"), ld("n1b"))
    qkv = _dot(xn, ld("qkvw")) + ld("qkvb")                  # (L, 3C) f32

    head_out = []
    for h in range(heads):                                   # 2 or 4 iterations
        qh = qkv[:, h * D:(h + 1) * D].astype(jnp.bfloat16)              # (L, D)
        kh_t = qkv[:, C + h * D:C + (h + 1) * D].T.astype(jnp.bfloat16)  # (D, L)
        vh = qkv[:, 2 * C + h * D:2 * C + (h + 1) * D].astype(jnp.bfloat16)
        logits = jnp.dot(qh, kh_t, preferred_element_type=jnp.float32) * scale
        logits = logits + pr[pre + "bias"][h]                # (L, L) folded bias
        m = jnp.max(logits, axis=-1, keepdims=True)
        e = jnp.exp(logits - m)
        pmat = e / jnp.sum(e, axis=-1, keepdims=True)        # exact softmax
        head_out.append(jnp.dot(pmat.astype(jnp.bfloat16), vh,
                                preferred_element_type=jnp.float32))     # (L, D)
    attn = jnp.concatenate(head_out, axis=-1)                # (L, C)

    y = x + _dot(attn, ld("projw")) + ld("projb")
    yn = _ln(y, ld("n2g"), ld("n2b"))
    h1 = _gelu(_dot(yn, ld("fc1w")) + ld("fc1b"))
    return y + _dot(h1, ld("fc2w")) + ld("fc2b")


def _fused_forward_kernel(*refs, names):
    x_ref, out_ref = refs[0], refs[-1]
    pr = dict(zip(names, refs[1:-1]))
    ld = lambda n: pr[n][...]

    # ---- patch embed (stride-4 conv == per-patch linear) + LayerNorm ----
    t = _dot(x_ref[0], ld("pe_w")) + ld("pe_b")              # (64, 32)
    t = _ln(t, ld("pe_g"), ld("pe_bb"))

    # ---- stage 0: W-MSA then SW-MSA (shift folded into bias tables) ----
    for bi in range(DEPTHS[0]):
        t = _swin_block(t, pr, f"s0b{bi}_", HEADS[0])

    # ---- patch merging: token order makes x0..x3 contiguous row groups ----
    xc = jnp.concatenate(
        [t[0:_L1], t[_L1:2 * _L1], t[2 * _L1:3 * _L1], t[3 * _L1:4 * _L1]],
        axis=-1)                                             # (16, 128)
    xc = _ln(xc, ld("mg_w"), ld("mg_b"))
    t = _dot(xc, ld("mred_w"))                               # (16, 64)

    # ---- stage 1 (single window == whole 4x4 grid, no shift) ----
    for bi in range(DEPTHS[1]):
        t = _swin_block(t, pr, f"s1b{bi}_", HEADS[1])

    # ---- final LN -> token-mean pool -> head(C,64) -> fused 3-way classifier
    tn = _ln(t, ld("fn_w"), ld("fn_b"))                      # (16, 64)
    pooled = jnp.mean(tn, axis=0, keepdims=True)             # (1, 64)
    feat = _dot(pooled, ld("head_w")) + ld("head_b")         # (1, 64)
    logits = _dot(feat, ld("cls_w")) + ld("cls_b")           # (1, 8)
    out_ref[...] = logits.reshape(1, 1, NUM_OUT)


# ----------------------------- host-side bias / ordering ----------------------
def _stage0_token_coords():
    # Token order: merge-group major (x0 | x1 | x2 | x3), merged-raster minor,
    # so in-kernel patch merging is 4 contiguous row slices + a lane concat.
    coords = []
    for dw in range(2):
        for dh in range(2):
            for hh in range(_HM):
                for ww in range(_HM):
                    coords.append((2 * hh + dh, 2 * ww + dw))
    return coords


def _full_bias(coords, H, ws, shift, table):
    """Dense (heads, L, L) attention bias in the given token order.

    Folds window partitioning (cross-window pairs -> -1e9), the SW-MSA cyclic
    shift, the timm -100 shift mask and the relative-position bias into a single
    lane-dense table so the kernel needs no partition / roll / mask ops.
    """
    L = len(coords)
    heads = table.shape[1]
    bias = np.full((heads, L, L), _NEG, np.float32)

    def region(p):
        if p < H - ws:
            return 0
        if p < H - shift:
            return 1
        return 2

    shifted = [((h - shift) % H, (w - shift) % H) for (h, w) in coords]
    for i, (hi, wi) in enumerate(shifted):
        for j, (hj, wj) in enumerate(shifted):
            if (hi // ws != hj // ws) or (wi // ws != wj // ws):
                continue                       # different windows: never attend
            idx = (((hi % ws) - (hj % ws) + ws - 1) * (2 * ws - 1)
                   + ((wi % ws) - (wj % ws) + ws - 1))
            val = table[idx].astype(np.float32)
            if shift > 0:
                li = region(hi) * 3 + region(wi)
                lj = region(hj) * 3 + region(wj)
                if li != lj:
                    val = val - 100.0          # timm SW-MSA soft mask
            bias[:, i, j] = val
    return bias


# ----------------------------- parameter init ---------------------------------
def init_params(key):
    keys = iter(jax.random.split(key, 64))
    nk = lambda: next(keys)
    Wf = lambda s: jax.random.normal(nk(), s, jnp.float32) * 0.02
    Wb = lambda s: Wf(s).astype(jnp.bfloat16)          # bf16 MXU weights
    zeros = lambda s: jnp.zeros(s, jnp.float32)
    ones = lambda s: jnp.ones(s, jnp.float32)

    p = {}
    # patch embed (Conv2d k=4,s=4 == Linear over flattened (C, ph, pw)) + LN
    p["pe_w"] = Wb((_F0, EMBED))
    p["pe_b"] = zeros((1, EMBED))
    p["pe_g"] = ones((1, EMBED))
    p["pe_bb"] = zeros((1, EMBED))

    def add_block(pre, C, bias):
        p[pre + "n1g"] = ones((1, C)); p[pre + "n1b"] = zeros((1, C))
        p[pre + "qkvw"] = Wb((C, 3 * C)); p[pre + "qkvb"] = zeros((1, 3 * C))
        p[pre + "bias"] = jnp.asarray(bias, jnp.float32)
        p[pre + "projw"] = Wb((C, C)); p[pre + "projb"] = zeros((1, C))
        p[pre + "n2g"] = ones((1, C)); p[pre + "n2b"] = zeros((1, C))
        p[pre + "fc1w"] = Wb((C, MLP_RATIO * C))
        p[pre + "fc1b"] = zeros((1, MLP_RATIO * C))
        p[pre + "fc2w"] = Wb((MLP_RATIO * C, C))
        p[pre + "fc2b"] = zeros((1, C))

    # stage 0: H=8, window=4, heads=2; block 1 is shifted (SW-MSA)
    C = EMBED
    coords0 = _stage0_token_coords()
    for bi in range(DEPTHS[0]):
        shift = WINDOW // 2 if (bi % 2 == 1) else 0
        table = np.asarray(Wf(((2 * WINDOW - 1) ** 2, HEADS[0])))
        add_block(f"s0b{bi}_", C, _full_bias(coords0, _HP, WINDOW, shift, table))

    # patch merging: LN over 4C then bias-free reduction 4C -> 2C
    p["mg_w"] = ones((1, 4 * C)); p["mg_b"] = zeros((1, 4 * C))
    p["mred_w"] = Wb((4 * C, 2 * C))
    C *= 2

    # stage 1: H=4 == window, heads=4, no shift possible
    coords1 = [(hh, ww) for hh in range(_HM) for ww in range(_HM)]
    for bi in range(DEPTHS[1]):
        table = np.asarray(Wf(((2 * WINDOW - 1) ** 2, HEADS[1])))
        add_block(f"s1b{bi}_", C, _full_bias(coords1, _HM, WINDOW, 0, table))

    # final norm + backbone head (C -> 64) + fused mask/gender/age classifier
    p["fn_w"] = ones((1, C)); p["fn_b"] = zeros((1, C))
    p["head_w"] = Wb((C, NUM_CLASSES)); p["head_b"] = zeros((1, NUM_CLASSES))
    p["cls_w"] = Wb((NUM_CLASSES, NUM_OUT))   # [mask(3) | gender(2) | age(3)]
    p["cls_b"] = zeros((1, NUM_OUT))
    return p


# ----------------------------- full forward (one pallas_call) ------------------
def forward(params, x):
    # x: (B, 3, IMG, IMG) NCHW, matching the PyTorch module's input layout.
    B = x.shape[0]
    names = tuple(sorted(params.keys()))
    arrays = [params[n] for n in names]

    # Patch extraction in the merge-friendly token order, (C, ph, pw) features.
    # dims after reshape: (B, C, hh, dh, ph, ww, dw, pw); token = (dw, dh, hh, ww)
    xp = x.reshape(B, IN_CH, _HM, 2, PATCH, _HM, 2, PATCH)
    xp = xp.transpose(0, 6, 3, 2, 5, 1, 4, 7).reshape(B, _L0, _F0)

    in_specs = [pl.BlockSpec((1, _L0, _F0), lambda b: (b, 0, 0))]
    for a in arrays:
        in_specs.append(pl.BlockSpec(a.shape, lambda b, _n=a.ndim: (0,) * _n))

    out = pl.pallas_call(
        partial(_fused_forward_kernel, names=names),
        out_shape=jax.ShapeDtypeStruct((B, 1, NUM_OUT), jnp.float32),
        grid=(B,),
        in_specs=in_specs,
        out_specs=pl.BlockSpec((1, 1, NUM_OUT), lambda b: (b, 0, 0)),
        compiler_params=pltpu.CompilerParams(
            dimension_semantics=("parallel",)),   # v7x: one image per TensorCore
    )(xp, *arrays)

    out = out.reshape(B, NUM_OUT)
    return out[:, 0:3], out[:, 3:5], out[:, 5:8]


# ----------------------------- main --------------------------------------------
if __name__ == "__main__":
    key = jax.random.PRNGKey(0)
    pkey, xkey = jax.random.split(key)
    params = init_params(pkey)
    x = jax.random.normal(xkey, (2, IN_CH, IMG, IMG), jnp.float32)

    mask, gender, age = jax.jit(forward)(params, x)
    jax.block_until_ready((mask, gender, age))

    assert mask.shape == (2, 3)
    assert gender.shape == (2, 2)
    assert age.shape == (2, 3)
    assert bool(jnp.isfinite(mask).all()
                & jnp.isfinite(gender).all()
                & jnp.isfinite(age).all())
    print("KERNEL_OK")
</pallas_src>

<mosaic_0001>
module attributes {stable_mosaic.version = 11 : i64} {
  func.func @_fused_forward_kernel(%arg0: i32, %arg1: memref<1x64x48xf32, #tpu.memory_space<vmem>>, %arg2: memref<1x8xf32, #tpu.memory_space<vmem>>, %arg3: memref<64x8xbf16, #tpu.memory_space<vmem>>, %arg4: memref<1x64xf32, #tpu.memory_space<vmem>>, %arg5: memref<1x64xf32, #tpu.memory_space<vmem>>, %arg6: memref<1x64xf32, #tpu.memory_space<vmem>>, %arg7: memref<64x64xbf16, #tpu.memory_space<vmem>>, %arg8: memref<1x128xf32, #tpu.memory_space<vmem>>, %arg9: memref<1x128xf32, #tpu.memory_space<vmem>>, %arg10: memref<128x64xbf16, #tpu.memory_space<vmem>>, %arg11: memref<1x32xf32, #tpu.memory_space<vmem>>, %arg12: memref<1x32xf32, #tpu.memory_space<vmem>>, %arg13: memref<1x32xf32, #tpu.memory_space<vmem>>, %arg14: memref<48x32xbf16, #tpu.memory_space<vmem>>, %arg15: memref<2x64x64xf32, #tpu.memory_space<vmem>>, %arg16: memref<1x128xf32, #tpu.memory_space<vmem>>, %arg17: memref<32x128xbf16, #tpu.memory_space<vmem>>, %arg18: memref<1x32xf32, #tpu.memory_space<vmem>>, %arg19: memref<128x32xbf16, #tpu.memory_space<vmem>>, %arg20: memref<1x32xf32, #tpu.memory_space<vmem>>, %arg21: memref<1x32xf32, #tpu.memory_space<vmem>>, %arg22: memref<1x32xf32, #tpu.memory_space<vmem>>, %arg23: memref<1x32xf32, #tpu.memory_space<vmem>>, %arg24: memref<1x32xf32, #tpu.memory_space<vmem>>, %arg25: memref<32x32xbf16, #tpu.memory_space<vmem>>, %arg26: memref<1x96xf32, #tpu.memory_space<vmem>>, %arg27: memref<32x96xbf16, #tpu.memory_space<vmem>>, %arg28: memref<2x64x64xf32, #tpu.memory_space<vmem>>, %arg29: memref<1x128xf32, #tpu.memory_space<vmem>>, %arg30: memref<32x128xbf16, #tpu.memory_space<vmem>>, %arg31: memref<1x32xf32, #tpu.memory_space<vmem>>, %arg32: memref<128x32xbf16, #tpu.memory_space<vmem>>, %arg33: memref<1x32xf32, #tpu.memory_space<vmem>>, %arg34: memref<1x32xf32, #tpu.memory_space<vmem>>, %arg35: memref<1x32xf32, #tpu.memory_space<vmem>>, %arg36: memref<1x32xf32, #tpu.memory_space<vmem>>, %arg37: memref<1x32xf32, #tpu.memory_space<vmem>>, %arg38: memref<32x32xbf16, #tpu.memory_space<vmem>>, %arg39: memref<1x96xf32, #tpu.memory_space<vmem>>, %arg40: memref<32x96xbf16, #tpu.memory_space<vmem>>, %arg41: memref<4x16x16xf32, #tpu.memory_space<vmem>>, %arg42: memref<1x256xf32, #tpu.memory_space<vmem>>, %arg43: memref<64x256xbf16, #tpu.memory_space<vmem>>, %arg44: memref<1x64xf32, #tpu.memory_space<vmem>>, %arg45: memref<256x64xbf16, #tpu.memory_space<vmem>>, %arg46: memref<1x64xf32, #tpu.memory_space<vmem>>, %arg47: memref<1x64xf32, #tpu.memory_space<vmem>>, %arg48: memref<1x64xf32, #tpu.memory_space<vmem>>, %arg49: memref<1x64xf32, #tpu.memory_space<vmem>>, %arg50: memref<1x64xf32, #tpu.memory_space<vmem>>, %arg51: memref<64x64xbf16, #tpu.memory_space<vmem>>, %arg52: memref<1x192xf32, #tpu.memory_space<vmem>>, %arg53: memref<64x192xbf16, #tpu.memory_space<vmem>>, %arg54: memref<4x16x16xf32, #tpu.memory_space<vmem>>, %arg55: memref<1x256xf32, #tpu.memory_space<vmem>>, %arg56: memref<64x256xbf16, #tpu.memory_space<vmem>>, %arg57: memref<1x64xf32, #tpu.memory_space<vmem>>, %arg58: memref<256x64xbf16, #tpu.memory_space<vmem>>, %arg59: memref<1x64xf32, #tpu.memory_space<vmem>>, %arg60: memref<1x64xf32, #tpu.memory_space<vmem>>, %arg61: memref<1x64xf32, #tpu.memory_space<vmem>>, %arg62: memref<1x64xf32, #tpu.memory_space<vmem>>, %arg63: memref<1x64xf32, #tpu.memory_space<vmem>>, %arg64: memref<64x64xbf16, #tpu.memory_space<vmem>>, %arg65: memref<1x192xf32, #tpu.memory_space<vmem>>, %arg66: memref<64x192xbf16, #tpu.memory_space<vmem>>, %arg67: memref<1x1x8xf32, #tpu.memory_space<vmem>>) attributes {dimension_semantics = [#tpu.dimension_semantics<parallel>], iteration_bounds = array<i64: 2>, scalar_prefetch = 0 : i64, scratch_operands = 0 : i64, tpu.core_type = #tpu.core_type<tc>, window_params = [{transform_indices = @transform_0, window_bounds = array<i64: 1, 64, 48>}, {pipeline_mode = #tpu.pipeline_mode<synchronous>, transform_indices = @transform_1, window_bounds = array<i64: 1, 8>}, {pipeline_mode = #tpu.pipeline_mode<synchronous>, transform_indices = @transform_2, window_bounds = array<i64: 64, 8>}, {pipeline_mode = #tpu.pipeline_mode<synchronous>, transform_indices = @transform_3, window_bounds = array<i64: 1, 64>}, {pipeline_mode = #tpu.pipeline_mode<synchronous>, transform_indices = @transform_4, window_bounds = array<i64: 1, 64>}, {pipeline_mode = #tpu.pipeline_mode<synchronous>, transform_indices = @transform_5, window_bounds = array<i64: 1, 64>}, {pipeline_mode = #tpu.pipeline_mode<synchronous>, transform_indices = @transform_6, window_bounds = array<i64: 64, 64>}, {pipeline_mode = #tpu.pipeline_mode<synchronous>, transform_indices = @transform_7, window_bounds = array<i64: 1, 128>}, {pipeline_mode = #tpu.pipeline_mode<synchronous>, transform_indices = @transform_8, window_bounds = array<i64: 1, 128>}, {pipeline_mode = #tpu.pipeline_mode<synchronous>, transform_indices = @transform_9, window_bounds = array<i64: 128, 64>}, {pipeline_mode = #tpu.pipeline_mode<synchronous>, transform_indices = @transform_10, window_bounds = array<i64: 1, 32>}, {pipeline_mode = #tpu.pipeline_mode<synchronous>, transform_indices = @transform_11, window_bounds = array<i64: 1, 32>}, {pipeline_mode = #tpu.pipeline_mode<synchronous>, transform_indices = @transform_12, window_bounds = array<i64: 1, 32>}, {pipeline_mode = #tpu.pipeline_mode<synchronous>, transform_indices = @transform_13, window_bounds = array<i64: 48, 32>}, {pipeline_mode = #tpu.pipeline_mode<synchronous>, transform_indices = @transform_14, window_bounds = array<i64: 2, 64, 64>}, {pipeline_mode = #tpu.pipeline_mode<synchronous>, transform_indices = @transform_15, window_bounds = array<i64: 1, 128>}, {pipeline_mode = #tpu.pipeline_mode<synchronous>, transform_indices = @transform_16, window_bounds = array<i64: 32, 128>}, {pipeline_mode = #tpu.pipeline_mode<synchronous>, transform_indices = @transform_17, window_bounds = array<i64: 1, 32>}, {pipeline_mode = #tpu.pipeline_mode<synchronous>, transform_indices = @transform_18, window_bounds = array<i64: 128, 32>}, {pipeline_mode = #tpu.pipeline_mode<synchronous>, transform_indices = @transform_19, window_bounds = array<i64: 1, 32>}, {pipeline_mode = #tpu.pipeline_mode<synchronous>, transform_indices = @transform_20, window_bounds = array<i64: 1, 32>}, {pipeline_mode = #tpu.pipeline_mode<synchronous>, transform_indices = @transform_21, window_bounds = array<i64: 1, 32>}, {pipeline_mode = #tpu.pipeline_mode<synchronous>, transform_indices = @transform_22, window_bounds = array<i64: 1, 32>}, {pipeline_mode = #tpu.pipeline_mode<synchronous>, transform_indices = @transform_23, window_bounds = array<i64: 1, 32>}, {pipeline_mode = #tpu.pipeline_mode<synchronous>, transform_indices = @transform_24, window_bounds = array<i64: 32, 32>}, {pipeline_mode = #tpu.pipeline_mode<synchronous>, transform_indices = @transform_25, window_bounds = array<i64: 1, 96>}, {pipeline_mode = #tpu.pipeline_mode<synchronous>, transform_indices = @transform_26, window_bounds = array<i64: 32, 96>}, {pipeline_mode = #tpu.pipeline_mode<synchronous>, transform_indices = @transform_27, window_bounds = array<i64: 2, 64, 64>}, {pipeline_mode = #tpu.pipeline_mode<synchronous>, transform_indices = @transform_28, window_bounds = array<i64: 1, 128>}, {pipeline_mode = #tpu.pipeline_mode<synchronous>, transform_indices = @transform_29, window_bounds = array<i64: 32, 128>}, {pipeline_mode = #tpu.pipeline_mode<synchronous>, transform_indices = @transform_30, window_bounds = array<i64: 1, 32>}, {pipeline_mode = #tpu.pipeline_mode<synchronous>, transform_indices = @transform_31, window_bounds = array<i64: 128, 32>}, {pipeline_mode = #tpu.pipeline_mode<synchronous>, transform_indices = @transform_32, window_bounds = array<i64: 1, 32>}, {pipeline_mode = #tpu.pipeline_mode<synchronous>, transform_indices = @transform_33, window_bounds = array<i64: 1, 32>}, {pipeline_mode = #tpu.pipeline_mode<synchronous>, transform_indices = @transform_34, window_bounds = array<i64: 1, 32>}, {pipeline_mode = #tpu.pipeline_mode<synchronous>, transform_indices = @transform_35, window_bounds = array<i64: 1, 32>}, {pipeline_mode = #tpu.pipeline_mode<synchronous>, transform_indices = @transform_36, window_bounds = array<i64: 1, 32>}, {pipeline_mode = #tpu.pipeline_mode<synchronous>, transform_indices = @transform_37, window_bounds = array<i64: 32, 32>}, {pipeline_mode = #tpu.pipeline_mode<synchronous>, transform_indices = @transform_38, window_bounds = array<i64: 1, 96>}, {pipeline_mode = #tpu.pipeline_mode<synchronous>, transform_indices = @transform_39, window_bounds = array<i64: 32, 96>}, {pipeline_mode = #tpu.pipeline_mode<synchronous>, transform_indices = @transform_40, window_bounds = array<i64: 4, 16, 16>}, {pipeline_mode = #tpu.pipeline_mode<synchronous>, transform_indices = @transform_41, window_bounds = array<i64: 1, 256>}, {pipeline_mode = #tpu.pipeline_mode<synchronous>, transform_indices = @transform_42, window_bounds = array<i64: 64, 256>}, {pipeline_mode = #tpu.pipeline_mode<synchronous>, transform_indices = @transform_43, window_bounds = array<i64: 1, 64>}, {pipeline_mode = #tpu.pipeline_mode<synchronous>, transform_indices = @transform_44, window_bounds = array<i64: 256, 64>}, {pipeline_mode = #tpu.pipeline_mode<synchronous>, transform_indices = @transform_45, window_bounds = array<i64: 1, 64>}, {pipeline_mode = #tpu.pipeline_mode<synchronous>, transform_indices = @transform_46, window_bounds = array<i64: 1, 64>}, {pipeline_mode = #tpu.pipeline_mode<synchronous>, transform_indices = @transform_47, window_bounds = array<i64: 1, 64>}, {pipeline_mode = #tpu.pipeline_mode<synchronous>, transform_indices = @transform_48, window_bounds = array<i64: 1, 64>}, {pipeline_mode = #tpu.pipeline_mode<synchronous>, transform_indices = @transform_49, window_bounds = array<i64: 1, 64>}, {pipeline_mode = #tpu.pipeline_mode<synchronous>, transform_indices = @transform_50, window_bounds = array<i64: 64, 64>}, {pipeline_mode = #tpu.pipeline_mode<synchronous>, transform_indices = @transform_51, window_bounds = array<i64: 1, 192>}, {pipeline_mode = #tpu.pipeline_mode<synchronous>, transform_indices = @transform_52, window_bounds = array<i64: 64, 192>}, {pipeline_mode = #tpu.pipeline_mode<synchronous>, transform_indices = @transform_53, window_bounds = array<i64: 4, 16, 16>}, {pipeline_mode = #tpu.pipeline_mode<synchronous>, transform_indices = @transform_54, window_bounds = array<i64: 1, 256>}, {pipeline_mode = #tpu.pipeline_mode<synchronous>, transform_indices = @transform_55, window_bounds = array<i64: 64, 256>}, {pipeline_mode = #tpu.pipeline_mode<synchronous>, transform_indices = @transform_56, window_bounds = array<i64: 1, 64>}, {pipeline_mode = #tpu.pipeline_mode<synchronous>, transform_indices = @transform_57, window_bounds = array<i64: 256, 64>}, {pipeline_mode = #tpu.pipeline_mode<synchronous>, transform_indices = @transform_58, window_bounds = array<i64: 1, 64>}, {pipeline_mode = #tpu.pipeline_mode<synchronous>, transform_indices = @transform_59, window_bounds = array<i64: 1, 64>}, {pipeline_mode = #tpu.pipeline_mode<synchronous>, transform_indices = @transform_60, window_bounds = array<i64: 1, 64>}, {pipeline_mode = #tpu.pipeline_mode<synchronous>, transform_indices = @transform_61, window_bounds = array<i64: 1, 64>}, {pipeline_mode = #tpu.pipeline_mode<synchronous>, transform_indices = @transform_62, window_bounds = array<i64: 1, 64>}, {pipeline_mode = #tpu.pipeline_mode<synchronous>, transform_indices = @transform_63, window_bounds = array<i64: 64, 64>}, {pipeline_mode = #tpu.pipeline_mode<synchronous>, transform_indices = @transform_64, window_bounds = array<i64: 1, 192>}, {pipeline_mode = #tpu.pipeline_mode<synchronous>, transform_indices = @transform_65, window_bounds = array<i64: 64, 192>}, {transform_indices = @transform_66, window_bounds = array<i64: 1, 1, 8>}]} {
    %c0 = arith.constant 0 : index
    %c0_0 = arith.constant 0 : index
    %c0_1 = arith.constant 0 : index
    %0 = vector.load %arg1[%c0, %c0_0, %c0_1] : memref<1x64x48xf32, #tpu.memory_space<vmem>>, vector<1x64x48xf32>
    %1 = vector.shape_cast %0 : vector<1x64x48xf32> to vector<64x48xf32>
    %c0_2 = arith.constant 0 : index
    %c0_3 = arith.constant 0 : index
    %2 = vector.load %arg14[%c0_2, %c0_3] : memref<48x32xbf16, #tpu.memory_space<vmem>>, vector<48x32xbf16>
    %3 = arith.truncf %1 : vector<64x48xf32> to vector<64x48xbf16>
    %cst = arith.constant dense<0.000000e+00> : vector<64x32xf32>
    %4 = tpu.matmul %3, %2, %cst {dimension_numbers = #tpu.dot_dimension_numbers<[1], [0], [0], [1], [0, 0, 1, 1], [], []>} : vector<64x48xbf16>, vector<48x32xbf16>, vector<64x32xf32> -> vector<64x32xf32>
    %c0_4 = arith.constant 0 : index
    %c0_5 = arith.constant 0 : index
    %5 = vector.load %arg11[%c0_4, %c0_5] : memref<1x32xf32, #tpu.memory_space<vmem>>, vector<1x32xf32>
    %6 = vector.broadcast %5 : vector<1x32xf32> to vector<64x32xf32>
    %7 = arith.addf %4, %6 : vector<64x32xf32>
    %c0_6 = arith.constant 0 : index
    %c0_7 = arith.constant 0 : index
    %8 = vector.load %arg13[%c0_6, %c0_7] : memref<1x32xf32, #tpu.memory_space<vmem>>, vector<1x32xf32>
    %c0_8 = arith.constant 0 : index
    %c0_9 = arith.constant 0 : index
    %9 = vector.load %arg12[%c0_8, %c0_9] : memref<1x32xf32, #tpu.memory_space<vmem>>, vector<1x32xf32>
    %cst_10 = arith.constant dense<0.000000e+00> : vector<64xf32>
    %10 = vector.multi_reduction <add>, %7, %cst_10 [1] : vector<64x32xf32> to vector<64xf32>
    %11 = vector.shape_cast %10 : vector<64xf32> to vector<64x1xf32>
    %cst_11 = arith.constant 3.200000e+01 : f32
    %12 = vector.broadcast %cst_11 : f32 to vector<64x1xf32>
    %13 = arith.divf %11, %12 : vector<64x1xf32>
    %14 = vector.broadcast %13 : vector<64x1xf32> to vector<64x32xf32>
    %15 = arith.subf %7, %14 : vector<64x32xf32>
    %16 = arith.mulf %15, %15 : vector<64x32xf32>
    %cst_12 = arith.constant dense<0.000000e+00> : vector<64xf32>
    %17 = vector.multi_reduction <add>, %16, %cst_12 [1] : vector<64x32xf32> to vector<64xf32>
    %18 = vector.shape_cast %17 : vector<64xf32> to vector<64x1xf32>
    %cst_13 = arith.constant 3.200000e+01 : f32
    %19 = vector.broadcast %cst_13 : f32 to vector<64x1xf32>
    %20 = arith.divf %18, %19 : vector<64x1xf32>
    %21 = vector.broadcast %13 : vector<64x1xf32> to vector<64x32xf32>
    %22 = arith.subf %7, %21 : vector<64x32xf32>
    %cst_14 = arith.constant 9.99999974E-6 : f32
    %23 = vector.broadcast %cst_14 : f32 to vector<64x1xf32>
    %24 = arith.addf %20, %23 : vector<64x1xf32>
    %25 = math.rsqrt %24 : vector<64x1xf32>
    %26 = vector.broadcast %25 : vector<64x1xf32> to vector<64x32xf32>
    %27 = arith.mulf %22, %26 : vector<64x32xf32>
    %28 = vector.broadcast %8 : vector<1x32xf32> to vector<64x32xf32>
    %29 = arith.mulf %27, %28 : vector<64x32xf32>
    %30 = vector.broadcast %9 : vector<1x32xf32> to vector<64x32xf32>
    %31 = arith.addf %29, %30 : vector<64x32xf32>
    %c0_15 = arith.constant 0 : index
    %c0_16 = arith.constant 0 : index
    %32 = vector.load %arg21[%c0_15, %c0_16] : memref<1x32xf32, #tpu.memory_space<vmem>>, vector<1x32xf32>
    %c0_17 = arith.constant 0 : index
    %c0_18 = arith.constant 0 : index
    %33 = vector.load %arg20[%c0_17, %c0_18] : memref<1x32xf32, #tpu.memory_space<vmem>>, vector<1x32xf32>
    %cst_19 = arith.constant dense<0.000000e+00> : vector<64xf32>
    %34 = vector.multi_reduction <add>, %31, %cst_19 [1] : vector<64x32xf32> to vector<64xf32>
    %35 = vector.shape_cast %34 : vector<64xf32> to vector<64x1xf32>
    %cst_20 = arith.constant 3.200000e+01 : f32
    %36 = vector.broadcast %cst_20 : f32 to vector<64x1xf32>
    %37 = arith.divf %35, %36 : vector<64x1xf32>
    %38 = vector.broadcast %37 : vector<64x1xf32> to vector<64x32xf32>
    %39 = arith.subf %31, %38 : vector<64x32xf32>
    %40 = arith.mulf %39, %39 : vector<64x32xf32>
    %cst_21 = arith.constant dense<0.000000e+00> : vector<64xf32>
    %41 = vector.multi_reduction <add>, %40, %cst_21 [1] : vector<64x32xf32> to vector<64xf32>
    %42 = vector.shape_cast %41 : vector<64xf32> to vector<64x1xf32>
    %cst_22 = arith.constant 3.200000e+01 : f32
    %43 = vector.broadcast %cst_22 : f32 to vector<64x1xf32>
    %44 = arith.divf %42, %43 : vector<64x1xf32>
    %45 = vector.broadcast %37 : vector<64x1xf32> to vector<64x32xf32>
    %46 = arith.subf %31, %45 : vector<64x32xf32>
    %cst_23 = arith.constant 9.99999974E-6 : f32
    %47 = vector.broadcast %cst_23 : f32 to vector<64x1xf32>
    %48 = arith.addf %44, %47 : vector<64x1xf32>
    %49 = math.rsqrt %48 : vector<64x1xf32>
    %50 = vector.broadcast %49 : vector<64x1xf32> to vector<64x32xf32>
    %51 = arith.mulf %46, %50 : vector<64x32xf32>
    %52 = vector.broadcast %32 : vector<1x32xf32> to vector<64x32xf32>
    %53 = arith.mulf %51, %52 : vector<64x32xf32>
    %54 = vector.broadcast %33 : vector<1x32xf32> to vector<64x32xf32>
    %55 = arith.addf %53, %54 : vector<64x32xf32>
    %c0_24 = arith.constant 0 : index
    %c0_25 = arith.constant 0 : index
    %56 = vector.load %arg27[%c0_24, %c0_25] : memref<32x96xbf16, #tpu.memory_space<vmem>>, vector<32x96xbf16>
    %57 = arith.truncf %55 : vector<64x32xf32> to vector<64x32xbf16>
    %cst_26 = arith.constant dense<0.000000e+00> : vector<64x96xf32>
    %58 = tpu.matmul %57, %56, %cst_26 {dimension_numbers = #tpu.dot_dimension_numbers<[1], [0], [0], [1], [0, 0, 1, 1], [], []>} : vector<64x32xbf16>, vector<32x96xbf16>, vector<64x96xf32> -> vector<64x96xf32>
    %c0_27 = arith.constant 0 : index
    %c0_28 = arith.constant 0 : index
    %59 = vector.load %arg26[%c0_27, %c0_28] : memref<1x96xf32, #tpu.memory_space<vmem>>, vector<1x96xf32>
    %60 = vector.broadcast %59 : vector<1x96xf32> to vector<64x96xf32>
    %61 = arith.addf %58, %60 : vector<64x96xf32>
    %62 = vector.extract_strided_slice %61 {offsets = [0, 0], sizes = [64, 16], strides = [1, 1]} : vector<64x96xf32> to vector<64x16xf32>
    %63 = arith.truncf %62 : vector<64x16xf32> to vector<64x16xbf16>
    %64 = vector.extract_strided_slice %61 {offsets = [0, 32], sizes = [64, 16], strides = [1, 1]} : vector<64x96xf32> to vector<64x16xf32>
    %65 = tpu.transpose %64, [1, 0] : vector<64x16xf32> -> vector<16x64xf32>
    %66 = arith.truncf %65 : vector<16x64xf32> to vector<16x64xbf16>
    %67 = vector.extract_strided_slice %61 {offsets = [0, 64], sizes = [64, 16], strides = [1, 1]} : vector<64x96xf32> to vector<64x16xf32>
    %68 = arith.truncf %67 : vector<64x16xf32> to vector<64x16xbf16>
    %cst_29 = arith.constant dense<0.000000e+00> : vector<64x64xf32>
    %69 = tpu.matmul %63, %66, %cst_29 {dimension_numbers = #tpu.dot_dimension_numbers<[1], [0], [0], [1], [0, 0, 1, 1], [], []>} : vector<64x16xbf16>, vector<16x64xbf16>, vector<64x64xf32> -> vector<64x64xf32>
    %cst_30 = arith.constant 2.500000e-01 : f32
    %70 = vector.broadcast %cst_30 : f32 to vector<64x64xf32>
    %71 = arith.mulf %69, %70 : vector<64x64xf32>
    %c0_31 = arith.constant 0 : index
    %c0_32 = arith.constant 0 : index
    %c0_33 = arith.constant 0 : index
    %72 = vector.load %arg15[%c0_31, %c0_32, %c0_33] : memref<2x64x64xf32, #tpu.memory_space<vmem>>, vector<1x64x64xf32>
    %73 = vector.shape_cast %72 : vector<1x64x64xf32> to vector<64x64xf32>
    %74 = arith.addf %71, %73 : vector<64x64xf32>
    %cst_34 = arith.constant dense<0xFF800000> : vector<64xf32>
    %75 = vector.multi_reduction <maximumf>, %74, %cst_34 [1] : vector<64x64xf32> to vector<64xf32>
    %76 = vector.shape_cast %75 : vector<64xf32> to vector<64x1xf32>
    %77 = vector.broadcast %76 : vector<64x1xf32> to vector<64x64xf32>
    %78 = arith.subf %74, %77 : vector<64x64xf32>
    %79 = math.exp %78 : vector<64x64xf32>
    %cst_35 = arith.constant dense<0.000000e+00> : vector<64xf32>
    %80 = vector.multi_reduction <add>, %79, %cst_35 [1] : vector<64x64xf32> to vector<64xf32>
    %81 = vector.shape_cast %80 : vector<64xf32> to vector<64x1xf32>
    %82 = vector.broadcast %81 : vector<64x1xf32> to vector<64x64xf32>
    %83 = arith.divf %79, %82 : vector<64x64xf32>
    %84 = arith.truncf %83 : vector<64x64xf32> to vector<64x64xbf16>
    %cst_36 = arith.constant dense<0.000000e+00> : vector<64x16xf32>
    %85 = tpu.matmul %84, %68, %cst_36 {dimension_numbers = #tpu.dot_dimension_numbers<[1], [0], [0], [1], [0, 0, 1, 1], [], []>} : vector<64x64xbf16>, vector<64x16xbf16>, vector<64x16xf32> -> vector<64x16xf32>
    %86 = vector.extract_strided_slice %61 {offsets = [0, 16], sizes = [64, 16], strides = [1, 1]} : vector<64x96xf32> to vector<64x16xf32>
    %87 = arith.truncf %86 : vector<64x16xf32> to vector<64x16xbf16>
    %88 = vector.extract_strided_slice %61 {offsets = [0, 48], sizes = [64, 16], strides = [1, 1]} : vector<64x96xf32> to vector<64x16xf32>
    %89 = tpu.transpose %88, [1, 0] : vector<64x16xf32> -> vector<16x64xf32>
    %90 = arith.truncf %89 : vector<16x64xf32> to vector<16x64xbf16>
    %91 = vector.extract_strided_slice %61 {offsets = [0, 80], sizes = [64, 16], strides = [1, 1]} : vector<64x96xf32> to vector<64x16xf32>
    %92 = arith.truncf %91 : vector<64x16xf32> to vector<64x16xbf16>
    %cst_37 = arith.constant dense<0.000000e+00> : vector<64x64xf32>
    %93 = tpu.matmul %87, %90, %cst_37 {dimension_numbers = #tpu.dot_dimension_numbers<[1], [0], [0], [1], [0, 0, 1, 1], [], []>} : vector<64x16xbf16>, vector<16x64xbf16>, vector<64x64xf32> -> vector<64x64xf32>
    %cst_38 = arith.constant 2.500000e-01 : f32
    %94 = vector.broadcast %cst_38 : f32 to vector<64x64xf32>
    %95 = arith.mulf %93, %94 : vector<64x64xf32>
    %c1 = arith.constant 1 : index
    %c0_39 = arith.constant 0 : index
    %c0_40 = arith.constant 0 : index
    %96 = vector.load %arg15[%c1, %c0_39, %c0_40] : memref<2x64x64xf32, #tpu.memory_space<vmem>>, vector<1x64x64xf32>
    %97 = vector.shape_cast %96 : vector<1x64x64xf32> to vector<64x64xf32>
    %98 = arith.addf %95, %97 : vector<64x64xf32>
    %cst_41 = arith.constant dense<0xFF800000> : vector<64xf32>
    %99 = vector.multi_reduction <maximumf>, %98, %cst_41 [1] : vector<64x64xf32> to vector<64xf32>
    %100 = vector.shape_cast %99 : vector<64xf32> to vector<64x1xf32>
    %101 = vector.broadcast %100 : vector<64x1xf32> to vector<64x64xf32>
    %102 = arith.subf %98, %101 : vector<64x64xf32>
    %103 = math.exp %102 : vector<64x64xf32>
    %cst_42 = arith.constant dense<0.000000e+00> : vector<64xf32>
    %104 = vector.multi_reduction <add>, %103, %cst_42 [1] : vector<64x64xf32> to vector<64xf32>
    %105 = vector.shape_cast %104 : vector<64xf32> to vector<64x1xf32>
    %106 = vector.broadcast %105 : vector<64x1xf32> to vector<64x64xf32>
    %107 = arith.divf %103, %106 : vector<64x64xf32>
    %108 = arith.truncf %107 : vector<64x64xf32> to vector<64x64xbf16>
    %cst_43 = arith.constant dense<0.000000e+00> : vector<64x16xf32>
    %109 = tpu.matmul %108, %92, %cst_43 {dimension_numbers = #tpu.dot_dimension_numbers<[1], [0], [0], [1], [0, 0, 1, 1], [], []>} : vector<64x64xbf16>, vector<64x16xbf16>, vector<64x16xf32> -> vector<64x16xf32>
    %110 = tpu.concatenate %85, %109 in 1 : vector<64x16xf32>, vector<64x16xf32> -> vector<64x32xf32>
    %c0_44 = arith.constant 0 : index
    %c0_45 = arith.constant 0 : index
    %111 = vector.load %arg25[%c0_44, %c0_45] : memref<32x32xbf16, #tpu.memory_space<vmem>>, vector<32x32xbf16>
    %112 = arith.truncf %110 : vector<64x32xf32> to vector<64x32xbf16>
    %cst_46 = arith.constant dense<0.000000e+00> : vector<64x32xf32>
    %113 = tpu.matmul %112, %111, %cst_46 {dimension_numbers = #tpu.dot_dimension_numbers<[1], [0], [0], [1], [0, 0, 1, 1], [], []>} : vector<64x32xbf16>, vector<32x32xbf16>, vector<64x32xf32> -> vector<64x32xf32>
    %114 = arith.addf %31, %113 : vector<64x32xf32>
    %c0_47 = arith.constant 0 : index
    %c0_48 = arith.constant 0 : index
    %115 = vector.load %arg24[%c0_47, %c0_48] : memref<1x32xf32, #tpu.memory_space<vmem>>, vector<1x32xf32>
    %116 = vector.broadcast %115 : vector<1x32xf32> to vector<64x32xf32>
    %117 = arith.addf %114, %116 : vector<64x32xf32>
    %c0_49 = arith.constant 0 : index
    %c0_50 = arith.constant 0 : index
    %118 = vector.load %arg23[%c0_49, %c0_50] : memref<1x32xf32, #tpu.memory_space<vmem>>, vector<1x32xf32>
    %c0_51 = arith.constant 0 : index
    %c0_52 = arith.constant 0 : index
    %119 = vector.load %arg22[%c0_51, %c0_52] : memref<1x32xf32, #tpu.memory_space<vmem>>, vector<1x32xf32>
    %cst_53 = arith.constant dense<0.000000e+00> : vector<64xf32>
    %120 = vector.multi_reduction <add>, %117, %cst_53 [1] : vector<64x32xf32> to vector<64xf32>
    %121 = vector.shape_cast %120 : vector<64xf32> to vector<64x1xf32>
    %cst_54 = arith.constant 3.200000e+01 : f32
    %122 = vector.broadcast %cst_54 : f32 to vector<64x1xf32>
    %123 = arith.divf %121, %122 : vector<64x1xf32>
    %124 = vector.broadcast %123 : vector<64x1xf32> to vector<64x32xf32>
    %125 = arith.subf %117, %124 : vector<64x32xf32>
    %126 = arith.mulf %125, %125 : vector<64x32xf32>
    %cst_55 = arith.constant dense<0.000000e+00> : vector<64xf32>
    %127 = vector.multi_reduction <add>, %126, %cst_55 [1] : vector<64x32xf32> to vector<64xf32>
    %128 = vector.shape_cast %127 : vector<64xf32> to vector<64x1xf32>
    %cst_56 = arith.constant 3.200000e+01 : f32
    %129 = vector.broadcast %cst_56 : f32 to vector<64x1xf32>
    %130 = arith.divf %128, %129 : vector<64x1xf32>
    %131 = vector.broadcast %123 : vector<64x1xf32> to vector<64x32xf32>
    %132 = arith.subf %117, %131 : vector<64x32xf32>
    %cst_57 = arith.constant 9.99999974E-6 : f32
    %133 = vector.broadcast %cst_57 : f32 to vector<64x1xf32>
    %134 = arith.addf %130, %133 : vector<64x1xf32>
    %135 = math.rsqrt %134 : vector<64x1xf32>
    %136 = vector.broadcast %135 : vector<64x1xf32> to vector<64x32xf32>
    %137 = arith.mulf %132, %136 : vector<64x32xf32>
    %138 = vector.broadcast %118 : vector<1x32xf32> to vector<64x32xf32>
    %139 = arith.mulf %137, %138 : vector<64x32xf32>
    %140 = vector.broadcast %119 : vector<1x32xf32> to vector<64x32xf32>
    %141 = arith.addf %139, %140 : vector<64x32xf32>
    %c0_58 = arith.constant 0 : index
    %c0_59 = arith.constant 0 : index
    %142 = vector.load %arg17[%c0_58, %c0_59] : memref<32x128xbf16, #tpu.memory_space<vmem>>, vector<32x128xbf16>
    %143 = arith.truncf %141 : vector<64x32xf32> to vector<64x32xbf16>
    %cst_60 = arith.constant dense<0.000000e+00> : vector<64x128xf32>
    %144 = tpu.matmul %143, %142, %cst_60 {dimension_numbers = #tpu.dot_dimension_numbers<[1], [0], [0], [1], [0, 0, 1, 1], [], []>} : vector<64x32xbf16>, vector<32x128xbf16>, vector<64x128xf32> -> vector<64x128xf32>
    %c0_61 = arith.constant 0 : index
    %c0_62 = arith.constant 0 : index
    %145 = vector.load %arg16[%c0_61, %c0_62] : memref<1x128xf32, #tpu.memory_space<vmem>>, vector<1x128xf32>
    %146 = vector.broadcast %145 : vector<1x128xf32> to vector<64x128xf32>
    %147 = arith.addf %144, %146 : vector<64x128xf32>
    %cst_63 = arith.constant 5.000000e-01 : f32
    %148 = vector.broadcast %cst_63 : f32 to vector<64x128xf32>
    %149 = arith.mulf %148, %147 : vector<64x128xf32>
    %cst_64 = arith.constant 0.707106769 : f32
    %150 = vector.broadcast %cst_64 : f32 to vector<64x128xf32>
    %151 = arith.mulf %147, %150 : vector<64x128xf32>
    %cst_65 = arith.constant 0.000000e+00 : f32
    %152 = vector.broadcast %cst_65 : f32 to vector<64x128xf32>
    %153 = arith.cmpf oge, %151, %152 : vector<64x128xf32>
    %cst_66 = arith.constant 1.000000e+00 : f32
    %cst_67 = arith.constant -1.000000e+00 : f32
    %154 = vector.broadcast %cst_66 : f32 to vector<64x128xf32>
    %155 = vector.broadcast %cst_67 : f32 to vector<64x128xf32>
    %156 = arith.select %153, %154, %155 : vector<64x128xi1>, vector<64x128xf32>
    %157 = math.absf %151 : vector<64x128xf32>
    %cst_68 = arith.constant 0.327591091 : f32
    %158 = vector.broadcast %cst_68 : f32 to vector<64x128xf32>
    %159 = arith.mulf %158, %157 : vector<64x128xf32>
    %cst_69 = arith.constant 1.000000e+00 : f32
    %160 = vector.broadcast %cst_69 : f32 to vector<64x128xf32>
    %161 = arith.addf %160, %159 : vector<64x128xf32>
    %cst_70 = arith.constant 1.000000e+00 : f32
    %162 = vector.broadcast %cst_70 : f32 to vector<64x128xf32>
    %163 = arith.divf %162, %161 : vector<64x128xf32>
    %cst_71 = arith.constant 1.06140542 : f32
    %164 = vector.broadcast %cst_71 : f32 to vector<64x128xf32>
    %165 = arith.mulf %164, %163 : vector<64x128xf32>
    %cst_72 = arith.constant -1.45315206 : f32
    %166 = vector.broadcast %cst_72 : f32 to vector<64x128xf32>
    %167 = arith.addf %165, %166 : vector<64x128xf32>
    %168 = arith.mulf %167, %163 : vector<64x128xf32>
    %cst_73 = arith.constant 1.42141378 : f32
    %169 = vector.broadcast %cst_73 : f32 to vector<64x128xf32>
    %170 = arith.addf %168, %169 : vector<64x128xf32>
    %171 = arith.mulf %170, %163 : vector<64x128xf32>
    %cst_74 = arith.constant -0.284496725 : f32
    %172 = vector.broadcast %cst_74 : f32 to vector<64x128xf32>
    %173 = arith.addf %171, %172 : vector<64x128xf32>
    %174 = arith.mulf %173, %163 : vector<64x128xf32>
    %cst_75 = arith.constant 0.254829586 : f32
    %175 = vector.broadcast %cst_75 : f32 to vector<64x128xf32>
    %176 = arith.addf %174, %175 : vector<64x128xf32>
    %177 = arith.mulf %176, %163 : vector<64x128xf32>
    %cst_76 = arith.constant 0.000000e+00 : f32
    %178 = vector.broadcast %cst_76 : f32 to vector<64x128xf32>
    %179 = arith.subf %178, %157 : vector<64x128xf32>
    %180 = arith.mulf %179, %157 : vector<64x128xf32>
    %181 = math.exp %180 : vector<64x128xf32>
    %182 = arith.mulf %177, %181 : vector<64x128xf32>
    %cst_77 = arith.constant 1.000000e+00 : f32
    %183 = vector.broadcast %cst_77 : f32 to vector<64x128xf32>
    %184 = arith.subf %183, %182 : vector<64x128xf32>
    %185 = arith.mulf %156, %184 : vector<64x128xf32>
    %cst_78 = arith.constant 1.000000e+00 : f32
    %186 = vector.broadcast %cst_78 : f32 to vector<64x128xf32>
    %187 = arith.addf %186, %185 : vector<64x128xf32>
    %188 = arith.mulf %149, %187 : vector<64x128xf32>
    %c0_79 = arith.constant 0 : index
    %c0_80 = arith.constant 0 : index
    %189 = vector.load %arg19[%c0_79, %c0_80] : memref<128x32xbf16, #tpu.memory_space<vmem>>, vector<128x32xbf16>
    %190 = arith.truncf %188 : vector<64x128xf32> to vector<64x128xbf16>
    %cst_81 = arith.constant dense<0.000000e+00> : vector<64x32xf32>
    %191 = tpu.matmul %190, %189, %cst_81 {dimension_numbers = #tpu.dot_dimension_numbers<[1], [0], [0], [1], [0, 0, 1, 1], [], []>} : vector<64x128xbf16>, vector<128x32xbf16>, vector<64x32xf32> -> vector<64x32xf32>
    %192 = arith.addf %117, %191 : vector<64x32xf32>
    %c0_82 = arith.constant 0 : index
    %c0_83 = arith.constant 0 : index
    %193 = vector.load %arg18[%c0_82, %c0_83] : memref<1x32xf32, #tpu.memory_space<vmem>>, vector<1x32xf32>
    %194 = vector.broadcast %193 : vector<1x32xf32> to vector<64x32xf32>
    %195 = arith.addf %192, %194 : vector<64x32xf32>
    %c0_84 = arith.constant 0 : index
    %c0_85 = arith.constant 0 : index
    %196 = vector.load %arg34[%c0_84, %c0_85] : memref<1x32xf32, #tpu.memory_space<vmem>>, vector<1x32xf32>
    %c0_86 = arith.constant 0 : index
    %c0_87 = arith.constant 0 : index
    %197 = vector.load %arg33[%c0_86, %c0_87] : memref<1x32xf32, #tpu.memory_space<vmem>>, vector<1x32xf32>
    %cst_88 = arith.constant dense<0.000000e+00> : vector<64xf32>
    %198 = vector.multi_reduction <add>, %195, %cst_88 [1] : vector<64x32xf32> to vector<64xf32>
    %199 = vector.shape_cast %198 : vector<64xf32> to vector<64x1xf32>
    %cst_89 = arith.constant 3.200000e+01 : f32
    %200 = vector.broadcast %cst_89 : f32 to vector<64x1xf32>
    %201 = arith.divf %199, %200 : vector<64x1xf32>
    %202 = vector.broadcast %201 : vector<64x1xf32> to vector<64x32xf32>
    %203 = arith.subf %195, %202 : vector<64x32xf32>
    %204 = arith.mulf %203, %203 : vector<64x32xf32>
    %cst_90 = arith.constant dense<0.000000e+00> : vector<64xf32>
    %205 = vector.multi_reduction <add>, %204, %cst_90 [1] : vector<64x32xf32> to vector<64xf32>
    %206 = vector.shape_cast %205 : vector<64xf32> to vector<64x1xf32>
    %cst_91 = arith.constant 3.200000e+01 : f32
    %207 = vector.broadcast %cst_91 : f32 to vector<64x1xf32>
    %208 = arith.divf %206, %207 : vector<64x1xf32>
    %209 = vector.broadcast %201 : vector<64x1xf32> to vector<64x32xf32>
    %210 = arith.subf %195, %209 : vector<64x32xf32>
    %cst_92 = arith.constant 9.99999974E-6 : f32
    %211 = vector.broadcast %cst_92 : f32 to vector<64x1xf32>
    %212 = arith.addf %208, %211 : vector<64x1xf32>
    %213 = math.rsqrt %212 : vector<64x1xf32>
    %214 = vector.broadcast %213 : vector<64x1xf32> to vector<64x32xf32>
    %215 = arith.mulf %210, %214 : vector<64x32xf32>
    %216 = vector.broadcast %196 : vector<1x32xf32> to vector<64x32xf32>
    %217 = arith.mulf %215, %216 : vector<64x32xf32>
    %218 = vector.broadcast %197 : vector<1x32xf32> to vector<64x32xf32>
    %219 = arith.addf %217, %218 : vector<64x32xf32>
    %c0_93 = arith.constant 0 : index
    %c0_94 = arith.constant 0 : index
    %220 = vector.load %arg40[%c0_93, %c0_94] : memref<32x96xbf16, #tpu.memory_space<vmem>>, vector<32x96xbf16>
    %221 = arith.truncf %219 : vector<64x32xf32> to vector<64x32xbf16>
    %cst_95 = arith.constant dense<0.000000e+00> : vector<64x96xf32>
    %222 = tpu.matmul %221, %220, %cst_95 {dimension_numbers = #tpu.dot_dimension_numbers<[1], [0], [0], [1], [0, 0, 1, 1], [], []>} : vector<64x32xbf16>, vector<32x96xbf16>, vector<64x96xf32> -> vector<64x96xf32>
    %c0_96 = arith.constant 0 : index
    %c0_97 = arith.constant 0 : index
    %223 = vector.load %arg39[%c0_96, %c0_97] : memref<1x96xf32, #tpu.memory_space<vmem>>, vector<1x96xf32>
    %224 = vector.broadcast %223 : vector<1x96xf32> to vector<64x96xf32>
    %225 = arith.addf %222, %224 : vector<64x96xf32>
    %226 = vector.extract_strided_slice %225 {offsets = [0, 0], sizes = [64, 16], strides = [1, 1]} : vector<64x96xf32> to vector<64x16xf32>
    %227 = arith.truncf %226 : vector<64x16xf32> to vector<64x16xbf16>
    %228 = vector.extract_strided_slice %225 {offsets = [0, 32], sizes = [64, 16], strides = [1, 1]} : vector<64x96xf32> to vector<64x16xf32>
    %229 = tpu.transpose %228, [1, 0] : vector<64x16xf32> -> vector<16x64xf32>
    %230 = arith.truncf %229 : vector<16x64xf32> to vector<16x64xbf16>
    %231 = vector.extract_strided_slice %225 {offsets = [0, 64], sizes = [64, 16], strides = [1, 1]} : vector<64x96xf32> to vector<64x16xf32>
    %232 = arith.truncf %231 : vector<64x16xf32> to vector<64x16xbf16>
    %cst_98 = arith.constant dense<0.000000e+00> : vector<64x64xf32>
    %233 = tpu.matmul %227, %230, %cst_98 {dimension_numbers = #tpu.dot_dimension_numbers<[1], [0], [0], [1], [0, 0, 1, 1], [], []>} : vector<64x16xbf16>, vector<16x64xbf16>, vector<64x64xf32> -> vector<64x64xf32>
    %cst_99 = arith.constant 2.500000e-01 : f32
    %234 = vector.broadcast %cst_99 : f32 to vector<64x64xf32>
    %235 = arith.mulf %233, %234 : vector<64x64xf32>
    %c0_100 = arith.constant 0 : index
    %c0_101 = arith.constant 0 : index
    %c0_102 = arith.constant 0 : index
    %236 = vector.load %arg28[%c0_100, %c0_101, %c0_102] : memref<2x64x64xf32, #tpu.memory_space<vmem>>, vector<1x64x64xf32>
    %237 = vector.shape_cast %236 : vector<1x64x64xf32> to vector<64x64xf32>
    %238 = arith.addf %235, %237 : vector<64x64xf32>
    %cst_103 = arith.constant dense<0xFF800000> : vector<64xf32>
    %239 = vector.multi_reduction <maximumf>, %238, %cst_103 [1] : vector<64x64xf32> to vector<64xf32>
    %240 = vector.shape_cast %239 : vector<64xf32> to vector<64x1xf32>
    %241 = vector.broadcast %240 : vector<64x1xf32> to vector<64x64xf32>
    %242 = arith.subf %238, %241 : vector<64x64xf32>
    %243 = math.exp %242 : vector<64x64xf32>
    %cst_104 = arith.constant dense<0.000000e+00> : vector<64xf32>
    %244 = vector.multi_reduction <add>, %243, %cst_104 [1] : vector<64x64xf32> to vector<64xf32>
    %245 = vector.shape_cast %244 : vector<64xf32> to vector<64x1xf32>
    %246 = vector.broadcast %245 : vector<64x1xf32> to vector<64x64xf32>
    %247 = arith.divf %243, %246 : vector<64x64xf32>
    %248 = arith.truncf %247 : vector<64x64xf32> to vector<64x64xbf16>
    %cst_105 = arith.constant dense<0.000000e+00> : vector<64x16xf32>
    %249 = tpu.matmul %248, %232, %cst_105 {dimension_numbers = #tpu.dot_dimension_numbers<[1], [0], [0], [1], [0, 0, 1, 1], [], []>} : vector<64x64xbf16>, vector<64x16xbf16>, vector<64x16xf32> -> vector<64x16xf32>
    %250 = vector.extract_strided_slice %225 {offsets = [0, 16], sizes = [64, 16], strides = [1, 1]} : vector<64x96xf32> to vector<64x16xf32>
    %251 = arith.truncf %250 : vector<64x16xf32> to vector<64x16xbf16>
    %252 = vector.extract_strided_slice %225 {offsets = [0, 48], sizes = [64, 16], strides = [1, 1]} : vector<64x96xf32> to vector<64x16xf32>
    %253 = tpu.transpose %252, [1, 0] : vector<64x16xf32> -> vector<16x64xf32>
    %254 = arith.truncf %253 : vector<16x64xf32> to vector<16x64xbf16>
    %255 = vector.extract_strided_slice %225 {offsets = [0, 80], sizes = [64, 16], strides = [1, 1]} : vector<64x96xf32> to vector<64x16xf32>
    %256 = arith.truncf %255 : vector<64x16xf32> to vector<64x16xbf16>
    %cst_106 = arith.constant dense<0.000000e+00> : vector<64x64xf32>
    %257 = tpu.matmul %251, %254, %cst_106 {dimension_numbers = #tpu.dot_dimension_numbers<[1], [0], [0], [1], [0, 0, 1, 1], [], []>} : vector<64x16xbf16>, vector<16x64xbf16>, vector<64x64xf32> -> vector<64x64xf32>
    %cst_107 = arith.constant 2.500000e-01 : f32
    %258 = vector.broadcast %cst_107 : f32 to vector<64x64xf32>
    %259 = arith.mulf %257, %258 : vector<64x64xf32>
    %c1_108 = arith.constant 1 : index
    %c0_109 = arith.constant 0 : index
    %c0_110 = arith.constant 0 : index
    %260 = vector.load %arg28[%c1_108, %c0_109, %c0_110] : memref<2x64x64xf32, #tpu.memory_space<vmem>>, vector<1x64x64xf32>
    %261 = vector.shape_cast %260 : vector<1x64x64xf32> to vector<64x64xf32>
    %262 = arith.addf %259, %261 : vector<64x64xf32>
    %cst_111 = arith.constant dense<0xFF800000> : vector<64xf32>
    %263 = vector.multi_reduction <maximumf>, %262, %cst_111 [1] : vector<64x64xf32> to vector<64xf32>
    %264 = vector.shape_cast %263 : vector<64xf32> to vector<64x1xf32>
    %265 = vector.broadcast %264 : vector<64x1xf32> to vector<64x64xf32>
    %266 = arith.subf %262, %265 : vector<64x64xf32>
    %267 = math.exp %266 : vector<64x64xf32>
    %cst_112 = arith.constant dense<0.000000e+00> : vector<64xf32>
    %268 = vector.multi_reduction <add>, %267, %cst_112 [1] : vector<64x64xf32> to vector<64xf32>
    %269 = vector.shape_cast %268 : vector<64xf32> to vector<64x1xf32>
    %270 = vector.broadcast %269 : vector<64x1xf32> to vector<64x64xf32>
    %271 = arith.divf %267, %270 : vector<64x64xf32>
    %272 = arith.truncf %271 : vector<64x64xf32> to vector<64x64xbf16>
    %cst_113 = arith.constant dense<0.000000e+00> : vector<64x16xf32>
    %273 = tpu.matmul %272, %256, %cst_113 {dimension_numbers = #tpu.dot_dimension_numbers<[1], [0], [0], [1], [0, 0, 1, 1], [], []>} : vector<64x64xbf16>, vector<64x16xbf16>, vector<64x16xf32> -> vector<64x16xf32>
    %274 = tpu.concatenate %249, %273 in 1 : vector<64x16xf32>, vector<64x16xf32> -> vector<64x32xf32>
    %c0_114 = arith.constant 0 : index
    %c0_115 = arith.constant 0 : index
    %275 = vector.load %arg38[%c0_114, %c0_115] : memref<32x32xbf16, #tpu.memory_space<vmem>>, vector<32x32xbf16>
    %276 = arith.truncf %274 : vector<64x32xf32> to vector<64x32xbf16>
    %cst_116 = arith.constant dense<0.000000e+00> : vector<64x32xf32>
    %277 = tpu.matmul %276, %275, %cst_116 {dimension_numbers = #tpu.dot_dimension_numbers<[1], [0], [0], [1], [0, 0, 1, 1], [], []>} : vector<64x32xbf16>, vector<32x32xbf16>, vector<64x32xf32> -> vector<64x32xf32>
    %278 = arith.addf %195, %277 : vector<64x32xf32>
    %c0_117 = arith.constant 0 : index
    %c0_118 = arith.constant 0 : index
    %279 = vector.load %arg37[%c0_117, %c0_118] : memref<1x32xf32, #tpu.memory_space<vmem>>, vector<1x32xf32>
    %280 = vector.broadcast %279 : vector<1x32xf32> to vector<64x32xf32>
    %281 = arith.addf %278, %280 : vector<64x32xf32>
    %c0_119 = arith.constant 0 : index
    %c0_120 = arith.constant 0 : index
    %282 = vector.load %arg36[%c0_119, %c0_120] : memref<1x32xf32, #tpu.memory_space<vmem>>, vector<1x32xf32>
    %c0_121 = arith.constant 0 : index
    %c0_122 = arith.constant 0 : index
    %283 = vector.load %arg35[%c0_121, %c0_122] : memref<1x32xf32, #tpu.memory_space<vmem>>, vector<1x32xf32>
    %cst_123 = arith.constant dense<0.000000e+00> : vector<64xf32>
    %284 = vector.multi_reduction <add>, %281, %cst_123 [1] : vector<64x32xf32> to vector<64xf32>
    %285 = vector.shape_cast %284 : vector<64xf32> to vector<64x1xf32>
    %cst_124 = arith.constant 3.200000e+01 : f32
    %286 = vector.broadcast %cst_124 : f32 to vector<64x1xf32>
    %287 = arith.divf %285, %286 : vector<64x1xf32>
    %288 = vector.broadcast %287 : vector<64x1xf32> to vector<64x32xf32>
    %289 = arith.subf %281, %288 : vector<64x32xf32>
    %290 = arith.mulf %289, %289 : vector<64x32xf32>
    %cst_125 = arith.constant dense<0.000000e+00> : vector<64xf32>
    %291 = vector.multi_reduction <add>, %290, %cst_125 [1] : vector<64x32xf32> to vector<64xf32>
    %292 = vector.shape_cast %291 : vector<64xf32> to vector<64x1xf32>
    %cst_126 = arith.constant 3.200000e+01 : f32
    %293 = vector.broadcast %cst_126 : f32 to vector<64x1xf32>
    %294 = arith.divf %292, %293 : vector<64x1xf32>
    %295 = vector.broadcast %287 : vector<64x1xf32> to vector<64x32xf32>
    %296 = arith.subf %281, %295 : vector<64x32xf32>
    %cst_127 = arith.constant 9.99999974E-6 : f32
    %297 = vector.broadcast %cst_127 : f32 to vector<64x1xf32>
    %298 = arith.addf %294, %297 : vector<64x1xf32>
    %299 = math.rsqrt %298 : vector<64x1xf32>
    %300 = vector.broadcast %299 : vector<64x1xf32> to vector<64x32xf32>
    %301 = arith.mulf %296, %300 : vector<64x32xf32>
    %302 = vector.broadcast %282 : vector<1x32xf32> to vector<64x32xf32>
    %303 = arith.mulf %301, %302 : vector<64x32xf32>
    %304 = vector.broadcast %283 : vector<1x32xf32> to vector<64x32xf32>
    %305 = arith.addf %303, %304 : vector<64x32xf32>
    %c0_128 = arith.constant 0 : index
    %c0_129 = arith.constant 0 : index
    %306 = vector.load %arg30[%c0_128, %c0_129] : memref<32x128xbf16, #tpu.memory_space<vmem>>, vector<32x128xbf16>
    %307 = arith.truncf %305 : vector<64x32xf32> to vector<64x32xbf16>
    %cst_130 = arith.constant dense<0.000000e+00> : vector<64x128xf32>
    %308 = tpu.matmul %307, %306, %cst_130 {dimension_numbers = #tpu.dot_dimension_numbers<[1], [0], [0], [1], [0, 0, 1, 1], [], []>} : vector<64x32xbf16>, vector<32x128xbf16>, vector<64x128xf32> -> vector<64x128xf32>
    %c0_131 = arith.constant 0 : index
    %c0_132 = arith.constant 0 : index
    %309 = vector.load %arg29[%c0_131, %c0_132] : memref<1x128xf32, #tpu.memory_space<vmem>>, vector<1x128xf32>
    %310 = vector.broadcast %309 : vector<1x128xf32> to vector<64x128xf32>
    %311 = arith.addf %308, %310 : vector<64x128xf32>
    %cst_133 = arith.constant 5.000000e-01 : f32
    %312 = vector.broadcast %cst_133 : f32 to vector<64x128xf32>
    %313 = arith.mulf %312, %311 : vector<64x128xf32>
    %cst_134 = arith.constant 0.707106769 : f32
    %314 = vector.broadcast %cst_134 : f32 to vector<64x128xf32>
    %315 = arith.mulf %311, %314 : vector<64x128xf32>
    %cst_135 = arith.constant 0.000000e+00 : f32
    %316 = vector.broadcast %cst_135 : f32 to vector<64x128xf32>
    %317 = arith.cmpf oge, %315, %316 : vector<64x128xf32>
    %cst_136 = arith.constant 1.000000e+00 : f32
    %cst_137 = arith.constant -1.000000e+00 : f32
    %318 = vector.broadcast %cst_136 : f32 to vector<64x128xf32>
    %319 = vector.broadcast %cst_137 : f32 to vector<64x128xf32>
    %320 = arith.select %317, %318, %319 : vector<64x128xi1>, vector<64x128xf32>
    %321 = math.absf %315 : vector<64x128xf32>
    %cst_138 = arith.constant 0.327591091 : f32
    %322 = vector.broadcast %cst_138 : f32 to vector<64x128xf32>
    %323 = arith.mulf %322, %321 : vector<64x128xf32>
    %cst_139 = arith.constant 1.000000e+00 : f32
    %324 = vector.broadcast %cst_139 : f32 to vector<64x128xf32>
    %325 = arith.addf %324, %323 : vector<64x128xf32>
    %cst_140 = arith.constant 1.000000e+00 : f32
    %326 = vector.broadcast %cst_140 : f32 to vector<64x128xf32>
    %327 = arith.divf %326, %325 : vector<64x128xf32>
    %cst_141 = arith.constant 1.06140542 : f32
    %328 = vector.broadcast %cst_141 : f32 to vector<64x128xf32>
    %329 = arith.mulf %328, %327 : vector<64x128xf32>
    %cst_142 = arith.constant -1.45315206 : f32
    %330 = vector.broadcast %cst_142 : f32 to vector<64x128xf32>
    %331 = arith.addf %329, %330 : vector<64x128xf32>
    %332 = arith.mulf %331, %327 : vector<64x128xf32>
    %cst_143 = arith.constant 1.42141378 : f32
    %333 = vector.broadcast %cst_143 : f32 to vector<64x128xf32>
    %334 = arith.addf %332, %333 : vector<64x128xf32>
    %335 = arith.mulf %334, %327 : vector<64x128xf32>
    %cst_144 = arith.constant -0.284496725 : f32
    %336 = vector.broadcast %cst_144 : f32 to vector<64x128xf32>
    %337 = arith.addf %335, %336 : vector<64x128xf32>
    %338 = arith.mulf %337, %327 : vector<64x128xf32>
    %cst_145 = arith.constant 0.254829586 : f32
    %339 = vector.broadcast %cst_145 : f32 to vector<64x128xf32>
    %340 = arith.addf %338, %339 : vector<64x128xf32>
    %341 = arith.mulf %340, %327 : vector<64x128xf32>
    %cst_146 = arith.constant 0.000000e+00 : f32
    %342 = vector.broadcast %cst_146 : f32 to vector<64x128xf32>
    %343 = arith.subf %342, %321 : vector<64x128xf32>
    %344 = arith.mulf %343, %321 : vector<64x128xf32>
    %345 = math.exp %344 : vector<64x128xf32>
    %346 = arith.mulf %341, %345 : vector<64x128xf32>
    %cst_147 = arith.constant 1.000000e+00 : f32
    %347 = vector.broadcast %cst_147 : f32 to vector<64x128xf32>
    %348 = arith.subf %347, %346 : vector<64x128xf32>
    %349 = arith.mulf %320, %348 : vector<64x128xf32>
    %cst_148 = arith.constant 1.000000e+00 : f32
    %350 = vector.broadcast %cst_148 : f32 to vector<64x128xf32>
    %351 = arith.addf %350, %349 : vector<64x128xf32>
    %352 = arith.mulf %313, %351 : vector<64x128xf32>
    %c0_149 = arith.constant 0 : index
    %c0_150 = arith.constant 0 : index
    %353 = vector.load %arg32[%c0_149, %c0_150] : memref<128x32xbf16, #tpu.memory_space<vmem>>, vector<128x32xbf16>
    %354 = arith.truncf %352 : vector<64x128xf32> to vector<64x128xbf16>
    %cst_151 = arith.constant dense<0.000000e+00> : vector<64x32xf32>
    %355 = tpu.matmul %354, %353, %cst_151 {dimension_numbers = #tpu.dot_dimension_numbers<[1], [0], [0], [1], [0, 0, 1, 1], [], []>} : vector<64x128xbf16>, vector<128x32xbf16>, vector<64x32xf32> -> vector<64x32xf32>
    %356 = arith.addf %281, %355 : vector<64x32xf32>
    %c0_152 = arith.constant 0 : index
    %c0_153 = arith.constant 0 : index
    %357 = vector.load %arg31[%c0_152, %c0_153] : memref<1x32xf32, #tpu.memory_space<vmem>>, vector<1x32xf32>
    %358 = vector.broadcast %357 : vector<1x32xf32> to vector<64x32xf32>
    %359 = arith.addf %356, %358 : vector<64x32xf32>
    %360 = vector.extract_strided_slice %359 {offsets = [0, 0], sizes = [16, 32], strides = [1, 1]} : vector<64x32xf32> to vector<16x32xf32>
    %361 = vector.extract_strided_slice %359 {offsets = [16, 0], sizes = [16, 32], strides = [1, 1]} : vector<64x32xf32> to vector<16x32xf32>
    %362 = vector.extract_strided_slice %359 {offsets = [32, 0], sizes = [16, 32], strides = [1, 1]} : vector<64x32xf32> to vector<16x32xf32>
    %363 = vector.extract_strided_slice %359 {offsets = [48, 0], sizes = [16, 32], strides = [1, 1]} : vector<64x32xf32> to vector<16x32xf32>
    %364 = tpu.concatenate %360, %361, %362, %363 in 1 : vector<16x32xf32>, vector<16x32xf32>, vector<16x32xf32>, vector<16x32xf32> -> vector<16x128xf32>
    %c0_154 = arith.constant 0 : index
    %c0_155 = arith.constant 0 : index
    %365 = vector.load %arg9[%c0_154, %c0_155] : memref<1x128xf32, #tpu.memory_space<vmem>>, vector<1x128xf32>
    %c0_156 = arith.constant 0 : index
    %c0_157 = arith.constant 0 : index
    %366 = vector.load %arg8[%c0_156, %c0_157] : memref<1x128xf32, #tpu.memory_space<vmem>>, vector<1x128xf32>
    %cst_158 = arith.constant dense<0.000000e+00> : vector<16xf32>
    %367 = vector.multi_reduction <add>, %364, %cst_158 [1] : vector<16x128xf32> to vector<16xf32>
    %368 = vector.shape_cast %367 : vector<16xf32> to vector<16x1xf32>
    %cst_159 = arith.constant 1.280000e+02 : f32
    %369 = vector.broadcast %cst_159 : f32 to vector<16x1xf32>
    %370 = arith.divf %368, %369 : vector<16x1xf32>
    %371 = vector.broadcast %370 : vector<16x1xf32> to vector<16x128xf32>
    %372 = arith.subf %364, %371 : vector<16x128xf32>
    %373 = arith.mulf %372, %372 : vector<16x128xf32>
    %cst_160 = arith.constant dense<0.000000e+00> : vector<16xf32>
    %374 = vector.multi_reduction <add>, %373, %cst_160 [1] : vector<16x128xf32> to vector<16xf32>
    %375 = vector.shape_cast %374 : vector<16xf32> to vector<16x1xf32>
    %cst_161 = arith.constant 1.280000e+02 : f32
    %376 = vector.broadcast %cst_161 : f32 to vector<16x1xf32>
    %377 = arith.divf %375, %376 : vector<16x1xf32>
    %378 = vector.broadcast %370 : vector<16x1xf32> to vector<16x128xf32>
    %379 = arith.subf %364, %378 : vector<16x128xf32>
    %cst_162 = arith.constant 9.99999974E-6 : f32
    %380 = vector.broadcast %cst_162 : f32 to vector<16x1xf32>
    %381 = arith.addf %377, %380 : vector<16x1xf32>
    %382 = math.rsqrt %381 : vector<16x1xf32>
    %383 = vector.broadcast %382 : vector<16x1xf32> to vector<16x128xf32>
    %384 = arith.mulf %379, %383 : vector<16x128xf32>
    %385 = vector.broadcast %365 : vector<1x128xf32> to vector<16x128xf32>
    %386 = arith.mulf %384, %385 : vector<16x128xf32>
    %387 = vector.broadcast %366 : vector<1x128xf32> to vector<16x128xf32>
    %388 = arith.addf %386, %387 : vector<16x128xf32>
    %c0_163 = arith.constant 0 : index
    %c0_164 = arith.constant 0 : index
    %389 = vector.load %arg10[%c0_163, %c0_164] : memref<128x64xbf16, #tpu.memory_space<vmem>>, vector<128x64xbf16>
    %390 = arith.truncf %388 : vector<16x128xf32> to vector<16x128xbf16>
    %cst_165 = arith.constant dense<0.000000e+00> : vector<16x64xf32>
    %391 = tpu.matmul %390, %389, %cst_165 {dimension_numbers = #tpu.dot_dimension_numbers<[1], [0], [0], [1], [0, 0, 1, 1], [], []>} : vector<16x128xbf16>, vector<128x64xbf16>, vector<16x64xf32> -> vector<16x64xf32>
    %c0_166 = arith.constant 0 : index
    %c0_167 = arith.constant 0 : index
    %392 = vector.load %arg47[%c0_166, %c0_167] : memref<1x64xf32, #tpu.memory_space<vmem>>, vector<1x64xf32>
    %c0_168 = arith.constant 0 : index
    %c0_169 = arith.constant 0 : index
    %393 = vector.load %arg46[%c0_168, %c0_169] : memref<1x64xf32, #tpu.memory_space<vmem>>, vector<1x64xf32>
    %cst_170 = arith.constant dense<0.000000e+00> : vector<16xf32>
    %394 = vector.multi_reduction <add>, %391, %cst_170 [1] : vector<16x64xf32> to vector<16xf32>
    %395 = vector.shape_cast %394 : vector<16xf32> to vector<16x1xf32>
    %cst_171 = arith.constant 6.400000e+01 : f32
    %396 = vector.broadcast %cst_171 : f32 to vector<16x1xf32>
    %397 = arith.divf %395, %396 : vector<16x1xf32>
    %398 = vector.broadcast %397 : vector<16x1xf32> to vector<16x64xf32>
    %399 = arith.subf %391, %398 : vector<16x64xf32>
    %400 = arith.mulf %399, %399 : vector<16x64xf32>
    %cst_172 = arith.constant dense<0.000000e+00> : vector<16xf32>
    %401 = vector.multi_reduction <add>, %400, %cst_172 [1] : vector<16x64xf32> to vector<16xf32>
    %402 = vector.shape_cast %401 : vector<16xf32> to vector<16x1xf32>
    %cst_173 = arith.constant 6.400000e+01 : f32
    %403 = vector.broadcast %cst_173 : f32 to vector<16x1xf32>
    %404 = arith.divf %402, %403 : vector<16x1xf32>
    %405 = vector.broadcast %397 : vector<16x1xf32> to vector<16x64xf32>
    %406 = arith.subf %391, %405 : vector<16x64xf32>
    %cst_174 = arith.constant 9.99999974E-6 : f32
    %407 = vector.broadcast %cst_174 : f32 to vector<16x1xf32>
    %408 = arith.addf %404, %407 : vector<16x1xf32>
    %409 = math.rsqrt %408 : vector<16x1xf32>
    %410 = vector.broadcast %409 : vector<16x1xf32> to vector<16x64xf32>
    %411 = arith.mulf %406, %410 : vector<16x64xf32>
    %412 = vector.broadcast %392 : vector<1x64xf32> to vector<16x64xf32>
    %413 = arith.mulf %411, %412 : vector<16x64xf32>
    %414 = vector.broadcast %393 : vector<1x64xf32> to vector<16x64xf32>
    %415 = arith.addf %413, %414 : vector<16x64xf32>
    %c0_175 = arith.constant 0 : index
    %c0_176 = arith.constant 0 : index
    %416 = vector.load %arg53[%c0_175, %c0_176] : memref<64x192xbf16, #tpu.memory_space<vmem>>, vector<64x192xbf16>
    %417 = arith.truncf %415 : vector<16x64xf32> to vector<16x64xbf16>
    %cst_177 = arith.constant dense<0.000000e+00> : vector<16x192xf32>
    %418 = tpu.matmul %417, %416, %cst_177 {dimension_numbers = #tpu.dot_dimension_numbers<[1], [0], [0], [1], [0, 0, 1, 1], [], []>} : vector<16x64xbf16>, vector<64x192xbf16>, vector<16x192xf32> -> vector<16x192xf32>
    %c0_178 = arith.constant 0 : index
    %c0_179 = arith.constant 0 : index
    %419 = vector.load %arg52[%c0_178, %c0_179] : memref<1x192xf32, #tpu.memory_space<vmem>>, vector<1x192xf32>
    %420 = vector.broadcast %419 : vector<1x192xf32> to vector<16x192xf32>
    %421 = arith.addf %418, %420 : vector<16x192xf32>
    %422 = vector.extract_strided_slice %421 {offsets = [0, 0], sizes = [16, 16], strides = [1, 1]} : vector<16x192xf32> to vector<16x16xf32>
    %423 = arith.truncf %422 : vector<16x16xf32> to vector<16x16xbf16>
    %424 = vector.extract_strided_slice %421 {offsets = [0, 64], sizes = [16, 16], strides = [1, 1]} : vector<16x192xf32> to vector<16x16xf32>
    %425 = tpu.transpose %424, [1, 0] : vector<16x16xf32> -> vector<16x16xf32>
    %426 = arith.truncf %425 : vector<16x16xf32> to vector<16x16xbf16>
    %427 = vector.extract_strided_slice %421 {offsets = [0, 128], sizes = [16, 16], strides = [1, 1]} : vector<16x192xf32> to vector<16x16xf32>
    %428 = arith.truncf %427 : vector<16x16xf32> to vector<16x16xbf16>
    %cst_180 = arith.constant dense<0.000000e+00> : vector<16x16xf32>
    %429 = tpu.matmul %423, %426, %cst_180 {dimension_numbers = #tpu.dot_dimension_numbers<[1], [0], [0], [1], [0, 0, 1, 1], [], []>} : vector<16x16xbf16>, vector<16x16xbf16>, vector<16x16xf32> -> vector<16x16xf32>
    %cst_181 = arith.constant 2.500000e-01 : f32
    %430 = vector.broadcast %cst_181 : f32 to vector<16x16xf32>
    %431 = arith.mulf %429, %430 : vector<16x16xf32>
    %c0_182 = arith.constant 0 : index
    %c0_183 = arith.constant 0 : index
    %c0_184 = arith.constant 0 : index
    %432 = vector.load %arg41[%c0_182, %c0_183, %c0_184] : memref<4x16x16xf32, #tpu.memory_space<vmem>>, vector<1x16x16xf32>
    %433 = vector.shape_cast %432 : vector<1x16x16xf32> to vector<16x16xf32>
    %434 = arith.addf %431, %433 : vector<16x16xf32>
    %cst_185 = arith.constant dense<0xFF800000> : vector<16xf32>
    %435 = vector.multi_reduction <maximumf>, %434, %cst_185 [1] : vector<16x16xf32> to vector<16xf32>
    %436 = vector.shape_cast %435 : vector<16xf32> to vector<16x1xf32>
    %437 = vector.broadcast %436 : vector<16x1xf32> to vector<16x16xf32>
    %438 = arith.subf %434, %437 : vector<16x16xf32>
    %439 = math.exp %438 : vector<16x16xf32>
    %cst_186 = arith.constant dense<0.000000e+00> : vector<16xf32>
    %440 = vector.multi_reduction <add>, %439, %cst_186 [1] : vector<16x16xf32> to vector<16xf32>
    %441 = vector.shape_cast %440 : vector<16xf32> to vector<16x1xf32>
    %442 = vector.broadcast %441 : vector<16x1xf32> to vector<16x16xf32>
    %443 = arith.divf %439, %442 : vector<16x16xf32>
    %444 = arith.truncf %443 : vector<16x16xf32> to vector<16x16xbf16>
    %cst_187 = arith.constant dense<0.000000e+00> : vector<16x16xf32>
    %445 = tpu.matmul %444, %428, %cst_187 {dimension_numbers = #tpu.dot_dimension_numbers<[1], [0], [0], [1], [0, 0, 1, 1], [], []>} : vector<16x16xbf16>, vector<16x16xbf16>, vector<16x16xf32> -> vector<16x16xf32>
    %446 = vector.extract_strided_slice %421 {offsets = [0, 16], sizes = [16, 16], strides = [1, 1]} : vector<16x192xf32> to vector<16x16xf32>
    %447 = arith.truncf %446 : vector<16x16xf32> to vector<16x16xbf16>
    %448 = vector.extract_strided_slice %421 {offsets = [0, 80], sizes = [16, 16], strides = [1, 1]} : vector<16x192xf32> to vector<16x16xf32>
    %449 = tpu.transpose %448, [1, 0] : vector<16x16xf32> -> vector<16x16xf32>
    %450 = arith.truncf %449 : vector<16x16xf32> to vector<16x16xbf16>
    %451 = vector.extract_strided_slice %421 {offsets = [0, 144], sizes = [16, 16], strides = [1, 1]} : vector<16x192xf32> to vector<16x16xf32>
    %452 = arith.truncf %451 : vector<16x16xf32> to vector<16x16xbf16>
    %cst_188 = arith.constant dense<0.000000e+00> : vector<16x16xf32>
    %453 = tpu.matmul %447, %450, %cst_188 {dimension_numbers = #tpu.dot_dimension_numbers<[1], [0], [0], [1], [0, 0, 1, 1], [], []>} : vector<16x16xbf16>, vector<16x16xbf16>, vector<16x16xf32> -> vector<16x16xf32>
    %cst_189 = arith.constant 2.500000e-01 : f32
    %454 = vector.broadcast %cst_189 : f32 to vector<16x16xf32>
    %455 = arith.mulf %453, %454 : vector<16x16xf32>
    %c1_190 = arith.constant 1 : index
    %c0_191 = arith.constant 0 : index
    %c0_192 = arith.constant 0 : index
    %456 = vector.load %arg41[%c1_190, %c0_191, %c0_192] : memref<4x16x16xf32, #tpu.memory_space<vmem>>, vector<1x16x16xf32>
    %457 = vector.shape_cast %456 : vector<1x16x16xf32> to vector<16x16xf32>
    %458 = arith.addf %455, %457 : vector<16x16xf32>
    %cst_193 = arith.constant dense<0xFF800000> : vector<16xf32>
    %459 = vector.multi_reduction <maximumf>, %458, %cst_193 [1] : vector<16x16xf32> to vector<16xf32>
    %460 = vector.shape_cast %459 : vector<16xf32> to vector<16x1xf32>
    %461 = vector.broadcast %460 : vector<16x1xf32> to vector<16x16xf32>
    %462 = arith.subf %458, %461 : vector<16x16xf32>
    %463 = math.exp %462 : vector<16x16xf32>
    %cst_194 = arith.constant dense<0.000000e+00> : vector<16xf32>
    %464 = vector.multi_reduction <add>, %463, %cst_194 [1] : vector<16x16xf32> to vector<16xf32>
    %465 = vector.shape_cast %464 : vector<16xf32> to vector<16x1xf32>
    %466 = vector.broadcast %465 : vector<16x1xf32> to vector<16x16xf32>
    %467 = arith.divf %463, %466 : vector<16x16xf32>
    %468 = arith.truncf %467 : vector<16x16xf32> to vector<16x16xbf16>
    %cst_195 = arith.constant dense<0.000000e+00> : vector<16x16xf32>
    %469 = tpu.matmul %468, %452, %cst_195 {dimension_numbers = #tpu.dot_dimension_numbers<[1], [0], [0], [1], [0, 0, 1, 1], [], []>} : vector<16x16xbf16>, vector<16x16xbf16>, vector<16x16xf32> -> vector<16x16xf32>
    %470 = vector.extract_strided_slice %421 {offsets = [0, 32], sizes = [16, 16], strides = [1, 1]} : vector<16x192xf32> to vector<16x16xf32>
    %471 = arith.truncf %470 : vector<16x16xf32> to vector<16x16xbf16>
    %472 = vector.extract_strided_slice %421 {offsets = [0, 96], sizes = [16, 16], strides = [1, 1]} : vector<16x192xf32> to vector<16x16xf32>
    %473 = tpu.transpose %472, [1, 0] : vector<16x16xf32> -> vector<16x16xf32>
    %474 = arith.truncf %473 : vector<16x16xf32> to vector<16x16xbf16>
    %475 = vector.extract_strided_slice %421 {offsets = [0, 160], sizes = [16, 16], strides = [1, 1]} : vector<16x192xf32> to vector<16x16xf32>
    %476 = arith.truncf %475 : vector<16x16xf32> to vector<16x16xbf16>
    %cst_196 = arith.constant dense<0.000000e+00> : vector<16x16xf32>
    %477 = tpu.matmul %471, %474, %cst_196 {dimension_numbers = #tpu.dot_dimension_numbers<[1], [0], [0], [1], [0, 0, 1, 1], [], []>} : vector<16x16xbf16>, vector<16x16xbf16>, vector<16x16xf32> -> vector<16x16xf32>
    %cst_197 = arith.constant 2.500000e-01 : f32
    %478 = vector.broadcast %cst_197 : f32 to vector<16x16xf32>
    %479 = arith.mulf %477, %478 : vector<16x16xf32>
    %c2 = arith.constant 2 : index
    %c0_198 = arith.constant 0 : index
    %c0_199 = arith.constant 0 : index
    %480 = vector.load %arg41[%c2, %c0_198, %c0_199] : memref<4x16x16xf32, #tpu.memory_space<vmem>>, vector<1x16x16xf32>
    %481 = vector.shape_cast %480 : vector<1x16x16xf32> to vector<16x16xf32>
    %482 = arith.addf %479, %481 : vector<16x16xf32>
    %cst_200 = arith.constant dense<0xFF800000> : vector<16xf32>
    %483 = vector.multi_reduction <maximumf>, %482, %cst_200 [1] : vector<16x16xf32> to vector<16xf32>
    %484 = vector.shape_cast %483 : vector<16xf32> to vector<16x1xf32>
    %485 = vector.broadcast %484 : vector<16x1xf32> to vector<16x16xf32>
    %486 = arith.subf %482, %485 : vector<16x16xf32>
    %487 = math.exp %486 : vector<16x16xf32>
    %cst_201 = arith.constant dense<0.000000e+00> : vector<16xf32>
    %488 = vector.multi_reduction <add>, %487, %cst_201 [1] : vector<16x16xf32> to vector<16xf32>
    %489 = vector.shape_cast %488 : vector<16xf32> to vector<16x1xf32>
    %490 = vector.broadcast %489 : vector<16x1xf32> to vector<16x16xf32>
    %491 = arith.divf %487, %490 : vector<16x16xf32>
    %492 = arith.truncf %491 : vector<16x16xf32> to vector<16x16xbf16>
    %cst_202 = arith.constant dense<0.000000e+00> : vector<16x16xf32>
    %493 = tpu.matmul %492, %476, %cst_202 {dimension_numbers = #tpu.dot_dimension_numbers<[1], [0], [0], [1], [0, 0, 1, 1], [], []>} : vector<16x16xbf16>, vector<16x16xbf16>, vector<16x16xf32> -> vector<16x16xf32>
    %494 = vector.extract_strided_slice %421 {offsets = [0, 48], sizes = [16, 16], strides = [1, 1]} : vector<16x192xf32> to vector<16x16xf32>
    %495 = arith.truncf %494 : vector<16x16xf32> to vector<16x16xbf16>
    %496 = vector.extract_strided_slice %421 {offsets = [0, 112], sizes = [16, 16], strides = [1, 1]} : vector<16x192xf32> to vector<16x16xf32>
    %497 = tpu.transpose %496, [1, 0] : vector<16x16xf32> -> vector<16x16xf32>
    %498 = arith.truncf %497 : vector<16x16xf32> to vector<16x16xbf16>
    %499 = vector.extract_strided_slice %421 {offsets = [0, 176], sizes = [16, 16], strides = [1, 1]} : vector<16x192xf32> to vector<16x16xf32>
    %500 = arith.truncf %499 : vector<16x16xf32> to vector<16x16xbf16>
    %cst_203 = arith.constant dense<0.000000e+00> : vector<16x16xf32>
    %501 = tpu.matmul %495, %498, %cst_203 {dimension_numbers = #tpu.dot_dimension_numbers<[1], [0], [0], [1], [0, 0, 1, 1], [], []>} : vector<16x16xbf16>, vector<16x16xbf16>, vector<16x16xf32> -> vector<16x16xf32>
    %cst_204 = arith.constant 2.500000e-01 : f32
    %502 = vector.broadcast %cst_204 : f32 to vector<16x16xf32>
    %503 = arith.mulf %501, %502 : vector<16x16xf32>
    %c3 = arith.constant 3 : index
    %c0_205 = arith.constant 0 : index
    %c0_206 = arith.constant 0 : index
    %504 = vector.load %arg41[%c3, %c0_205, %c0_206] : memref<4x16x16xf32, #tpu.memory_space<vmem>>, vector<1x16x16xf32>
    %505 = vector.shape_cast %504 : vector<1x16x16xf32> to vector<16x16xf32>
    %506 = arith.addf %503, %505 : vector<16x16xf32>
    %cst_207 = arith.constant dense<0xFF800000> : vector<16xf32>
    %507 = vector.multi_reduction <maximumf>, %506, %cst_207 [1] : vector<16x16xf32> to vector<16xf32>
    %508 = vector.shape_cast %507 : vector<16xf32> to vector<16x1xf32>
    %509 = vector.broadcast %508 : vector<16x1xf32> to vector<16x16xf32>
    %510 = arith.subf %506, %509 : vector<16x16xf32>
    %511 = math.exp %510 : vector<16x16xf32>
    %cst_208 = arith.constant dense<0.000000e+00> : vector<16xf32>
    %512 = vector.multi_reduction <add>, %511, %cst_208 [1] : vector<16x16xf32> to vector<16xf32>
    %513 = vector.shape_cast %512 : vector<16xf32> to vector<16x1xf32>
    %514 = vector.broadcast %513 : vector<16x1xf32> to vector<16x16xf32>
    %515 = arith.divf %511, %514 : vector<16x16xf32>
    %516 = arith.truncf %515 : vector<16x16xf32> to vector<16x16xbf16>
    %cst_209 = arith.constant dense<0.000000e+00> : vector<16x16xf32>
    %517 = tpu.matmul %516, %500, %cst_209 {dimension_numbers = #tpu.dot_dimension_numbers<[1], [0], [0], [1], [0, 0, 1, 1], [], []>} : vector<16x16xbf16>, vector<16x16xbf16>, vector<16x16xf32> -> vector<16x16xf32>
    %518 = tpu.concatenate %445, %469, %493, %517 in 1 : vector<16x16xf32>, vector<16x16xf32>, vector<16x16xf32>, vector<16x16xf32> -> vector<16x64xf32>
    %c0_210 = arith.constant 0 : index
    %c0_211 = arith.constant 0 : index
    %519 = vector.load %arg51[%c0_210, %c0_211] : memref<64x64xbf16, #tpu.memory_space<vmem>>, vector<64x64xbf16>
    %520 = arith.truncf %518 : vector<16x64xf32> to vector<16x64xbf16>
    %cst_212 = arith.constant dense<0.000000e+00> : vector<16x64xf32>
    %521 = tpu.matmul %520, %519, %cst_212 {dimension_numbers = #tpu.dot_dimension_numbers<[1], [0], [0], [1], [0, 0, 1, 1], [], []>} : vector<16x64xbf16>, vector<64x64xbf16>, vector<16x64xf32> -> vector<16x64xf32>
    %522 = arith.addf %391, %521 : vector<16x64xf32>
    %c0_213 = arith.constant 0 : index
    %c0_214 = arith.constant 0 : index
    %523 = vector.load %arg50[%c0_213, %c0_214] : memref<1x64xf32, #tpu.memory_space<vmem>>, vector<1x64xf32>
    %524 = vector.broadcast %523 : vector<1x64xf32> to vector<16x64xf32>
    %525 = arith.addf %522, %524 : vector<16x64xf32>
    %c0_215 = arith.constant 0 : index
    %c0_216 = arith.constant 0 : index
    %526 = vector.load %arg49[%c0_215, %c0_216] : memref<1x64xf32, #tpu.memory_space<vmem>>, vector<1x64xf32>
    %c0_217 = arith.constant 0 : index
    %c0_218 = arith.constant 0 : index
    %527 = vector.load %arg48[%c0_217, %c0_218] : memref<1x64xf32, #tpu.memory_space<vmem>>, vector<1x64xf32>
    %cst_219 = arith.constant dense<0.000000e+00> : vector<16xf32>
    %528 = vector.multi_reduction <add>, %525, %cst_219 [1] : vector<16x64xf32> to vector<16xf32>
    %529 = vector.shape_cast %528 : vector<16xf32> to vector<16x1xf32>
    %cst_220 = arith.constant 6.400000e+01 : f32
    %530 = vector.broadcast %cst_220 : f32 to vector<16x1xf32>
    %531 = arith.divf %529, %530 : vector<16x1xf32>
    %532 = vector.broadcast %531 : vector<16x1xf32> to vector<16x64xf32>
    %533 = arith.subf %525, %532 : vector<16x64xf32>
    %534 = arith.mulf %533, %533 : vector<16x64xf32>
    %cst_221 = arith.constant dense<0.000000e+00> : vector<16xf32>
    %535 = vector.multi_reduction <add>, %534, %cst_221 [1] : vector<16x64xf32> to vector<16xf32>
    %536 = vector.shape_cast %535 : vector<16xf32> to vector<16x1xf32>
    %cst_222 = arith.constant 6.400000e+01 : f32
    %537 = vector.broadcast %cst_222 : f32 to vector<16x1xf32>
    %538 = arith.divf %536, %537 : vector<16x1xf32>
    %539 = vector.broadcast %531 : vector<16x1xf32> to vector<16x64xf32>
    %540 = arith.subf %525, %539 : vector<16x64xf32>
    %cst_223 = arith.constant 9.99999974E-6 : f32
    %541 = vector.broadcast %cst_223 : f32 to vector<16x1xf32>
    %542 = arith.addf %538, %541 : vector<16x1xf32>
    %543 = math.rsqrt %542 : vector<16x1xf32>
    %544 = vector.broadcast %543 : vector<16x1xf32> to vector<16x64xf32>
    %545 = arith.mulf %540, %544 : vector<16x64xf32>
    %546 = vector.broadcast %526 : vector<1x64xf32> to vector<16x64xf32>
    %547 = arith.mulf %545, %546 : vector<16x64xf32>
    %548 = vector.broadcast %527 : vector<1x64xf32> to vector<16x64xf32>
    %549 = arith.addf %547, %548 : vector<16x64xf32>
    %c0_224 = arith.constant 0 : index
    %c0_225 = arith.constant 0 : index
    %550 = vector.load %arg43[%c0_224, %c0_225] : memref<64x256xbf16, #tpu.memory_space<vmem>>, vector<64x256xbf16>
    %551 = arith.truncf %549 : vector<16x64xf32> to vector<16x64xbf16>
    %cst_226 = arith.constant dense<0.000000e+00> : vector<16x256xf32>
    %552 = tpu.matmul %551, %550, %cst_226 {dimension_numbers = #tpu.dot_dimension_numbers<[1], [0], [0], [1], [0, 0, 1, 1], [], []>} : vector<16x64xbf16>, vector<64x256xbf16>, vector<16x256xf32> -> vector<16x256xf32>
    %c0_227 = arith.constant 0 : index
    %c0_228 = arith.constant 0 : index
    %553 = vector.load %arg42[%c0_227, %c0_228] : memref<1x256xf32, #tpu.memory_space<vmem>>, vector<1x256xf32>
    %554 = vector.broadcast %553 : vector<1x256xf32> to vector<16x256xf32>
    %555 = arith.addf %552, %554 : vector<16x256xf32>
    %cst_229 = arith.constant 5.000000e-01 : f32
    %556 = vector.broadcast %cst_229 : f32 to vector<16x256xf32>
    %557 = arith.mulf %556, %555 : vector<16x256xf32>
    %cst_230 = arith.constant 0.707106769 : f32
    %558 = vector.broadcast %cst_230 : f32 to vector<16x256xf32>
    %559 = arith.mulf %555, %558 : vector<16x256xf32>
    %cst_231 = arith.constant 0.000000e+00 : f32
    %560 = vector.broadcast %cst_231 : f32 to vector<16x256xf32>
    %561 = arith.cmpf oge, %559, %560 : vector<16x256xf32>
    %cst_232 = arith.constant 1.000000e+00 : f32
    %cst_233 = arith.constant -1.000000e+00 : f32
    %562 = vector.broadcast %cst_232 : f32 to vector<16x256xf32>
    %563 = vector.broadcast %cst_233 : f32 to vector<16x256xf32>
    %564 = arith.select %561, %562, %563 : vector<16x256xi1>, vector<16x256xf32>
    %565 = math.absf %559 : vector<16x256xf32>
    %cst_234 = arith.constant 0.327591091 : f32
    %566 = vector.broadcast %cst_234 : f32 to vector<16x256xf32>
    %567 = arith.mulf %566, %565 : vector<16x256xf32>
    %cst_235 = arith.constant 1.000000e+00 : f32
    %568 = vector.broadcast %cst_235 : f32 to vector<16x256xf32>
    %569 = arith.addf %568, %567 : vector<16x256xf32>
    %cst_236 = arith.constant 1.000000e+00 : f32
    %570 = vector.broadcast %cst_236 : f32 to vector<16x256xf32>
    %571 = arith.divf %570, %569 : vector<16x256xf32>
    %cst_237 = arith.constant 1.06140542 : f32
    %572 = vector.broadcast %cst_237 : f32 to vector<16x256xf32>
    %573 = arith.mulf %572, %571 : vector<16x256xf32>
    %cst_238 = arith.constant -1.45315206 : f32
    %574 = vector.broadcast %cst_238 : f32 to vector<16x256xf32>
    %575 = arith.addf %573, %574 : vector<16x256xf32>
    %576 = arith.mulf %575, %571 : vector<16x256xf32>
    %cst_239 = arith.constant 1.42141378 : f32
    %577 = vector.broadcast %cst_239 : f32 to vector<16x256xf32>
    %578 = arith.addf %576, %577 : vector<16x256xf32>
    %579 = arith.mulf %578, %571 : vector<16x256xf32>
    %cst_240 = arith.constant -0.284496725 : f32
    %580 = vector.broadcast %cst_240 : f32 to vector<16x256xf32>
    %581 = arith.addf %579, %580 : vector<16x256xf32>
    %582 = arith.mulf %581, %571 : vector<16x256xf32>
    %cst_241 = arith.constant 0.254829586 : f32
    %583 = vector.broadcast %cst_241 : f32 to vector<16x256xf32>
    %584 = arith.addf %582, %583 : vector<16x256xf32>
    %585 = arith.mulf %584, %571 : vector<16x256xf32>
    %cst_242 = arith.constant 0.000000e+00 : f32
    %586 = vector.broadcast %cst_242 : f32 to vector<16x256xf32>
    %587 = arith.subf %586, %565 : vector<16x256xf32>
    %588 = arith.mulf %587, %565 : vector<16x256xf32>
    %589 = math.exp %588 : vector<16x256xf32>
    %590 = arith.mulf %585, %589 : vector<16x256xf32>
    %cst_243 = arith.constant 1.000000e+00 : f32
    %591 = vector.broadcast %cst_243 : f32 to vector<16x256xf32>
    %592 = arith.subf %591, %590 : vector<16x256xf32>
    %593 = arith.mulf %564, %592 : vector<16x256xf32>
    %cst_244 = arith.constant 1.000000e+00 : f32
    %594 = vector.broadcast %cst_244 : f32 to vector<16x256xf32>
    %595 = arith.addf %594, %593 : vector<16x256xf32>
    %596 = arith.mulf %557, %595 : vector<16x256xf32>
    %c0_245 = arith.constant 0 : index
    %c0_246 = arith.constant 0 : index
    %597 = vector.load %arg45[%c0_245, %c0_246] : memref<256x64xbf16, #tpu.memory_space<vmem>>, vector<256x64xbf16>
    %598 = arith.truncf %596 : vector<16x256xf32> to vector<16x256xbf16>
    %cst_247 = arith.constant dense<0.000000e+00> : vector<16x64xf32>
    %599 = tpu.matmul %598, %597, %cst_247 {dimension_numbers = #tpu.dot_dimension_numbers<[1], [0], [0], [1], [0, 0, 1, 1], [], []>} : vector<16x256xbf16>, vector<256x64xbf16>, vector<16x64xf32> -> vector<16x64xf32>
    %600 = arith.addf %525, %599 : vector<16x64xf32>
    %c0_248 = arith.constant 0 : index
    %c0_249 = arith.constant 0 : index
    %601 = vector.load %arg44[%c0_248, %c0_249] : memref<1x64xf32, #tpu.memory_space<vmem>>, vector<1x64xf32>
    %602 = vector.broadcast %601 : vector<1x64xf32> to vector<16x64xf32>
    %603 = arith.addf %600, %602 : vector<16x64xf32>
    %c0_250 = arith.constant 0 : index
    %c0_251 = arith.constant 0 : index
    %604 = vector.load %arg60[%c0_250, %c0_251] : memref<1x64xf32, #tpu.memory_space<vmem>>, vector<1x64xf32>
    %c0_252 = arith.constant 0 : index
    %c0_253 = arith.constant 0 : index
    %605 = vector.load %arg59[%c0_252, %c0_253] : memref<1x64xf32, #tpu.memory_space<vmem>>, vector<1x64xf32>
    %cst_254 = arith.constant dense<0.000000e+00> : vector<16xf32>
    %606 = vector.multi_reduction <add>, %603, %cst_254 [1] : vector<16x64xf32> to vector<16xf32>
    %607 = vector.shape_cast %606 : vector<16xf32> to vector<16x1xf32>
    %cst_255 = arith.constant 6.400000e+01 : f32
    %608 = vector.broadcast %cst_255 : f32 to vector<16x1xf32>
    %609 = arith.divf %607, %608 : vector<16x1xf32>
    %610 = vector.broadcast %609 : vector<16x1xf32> to vector<16x64xf32>
    %611 = arith.subf %603, %610 : vector<16x64xf32>
    %612 = arith.mulf %611, %611 : vector<16x64xf32>
    %cst_256 = arith.constant dense<0.000000e+00> : vector<16xf32>
    %613 = vector.multi_reduction <add>, %612, %cst_256 [1] : vector<16x64xf32> to vector<16xf32>
    %614 = vector.shape_cast %613 : vector<16xf32> to vector<16x1xf32>
    %cst_257 = arith.constant 6.400000e+01 : f32
    %615 = vector.broadcast %cst_257 : f32 to vector<16x1xf32>
    %616 = arith.divf %614, %615 : vector<16x1xf32>
    %617 = vector.broadcast %609 : vector<16x1xf32> to vector<16x64xf32>
    %618 = arith.subf %603, %617 : vector<16x64xf32>
    %cst_258 = arith.constant 9.99999974E-6 : f32
    %619 = vector.broadcast %cst_258 : f32 to vector<16x1xf32>
    %620 = arith.addf %616, %619 : vector<16x1xf32>
    %621 = math.rsqrt %620 : vector<16x1xf32>
    %622 = vector.broadcast %621 : vector<16x1xf32> to vector<16x64xf32>
    %623 = arith.mulf %618, %622 : vector<16x64xf32>
    %624 = vector.broadcast %604 : vector<1x64xf32> to vector<16x64xf32>
    %625 = arith.mulf %623, %624 : vector<16x64xf32>
    %626 = vector.broadcast %605 : vector<1x64xf32> to vector<16x64xf32>
    %627 = arith.addf %625, %626 : vector<16x64xf32>
    %c0_259 = arith.constant 0 : index
    %c0_260 = arith.constant 0 : index
    %628 = vector.load %arg66[%c0_259, %c0_260] : memref<64x192xbf16, #tpu.memory_space<vmem>>, vector<64x192xbf16>
    %629 = arith.truncf %627 : vector<16x64xf32> to vector<16x64xbf16>
    %cst_261 = arith.constant dense<0.000000e+00> : vector<16x192xf32>
    %630 = tpu.matmul %629, %628, %cst_261 {dimension_numbers = #tpu.dot_dimension_numbers<[1], [0], [0], [1], [0, 0, 1, 1], [], []>} : vector<16x64xbf16>, vector<64x192xbf16>, vector<16x192xf32> -> vector<16x192xf32>
    %c0_262 = arith.constant 0 : index
    %c0_263 = arith.constant 0 : index
    %631 = vector.load %arg65[%c0_262, %c0_263] : memref<1x192xf32, #tpu.memory_space<vmem>>, vector<1x192xf32>
    %632 = vector.broadcast %631 : vector<1x192xf32> to vector<16x192xf32>
    %633 = arith.addf %630, %632 : vector<16x192xf32>
    %634 = vector.extract_strided_slice %633 {offsets = [0, 0], sizes = [16, 16], strides = [1, 1]} : vector<16x192xf32> to vector<16x16xf32>
    %635 = arith.truncf %634 : vector<16x16xf32> to vector<16x16xbf16>
    %636 = vector.extract_strided_slice %633 {offsets = [0, 64], sizes = [16, 16], strides = [1, 1]} : vector<16x192xf32> to vector<16x16xf32>
    %637 = tpu.transpose %636, [1, 0] : vector<16x16xf32> -> vector<16x16xf32>
    %638 = arith.truncf %637 : vector<16x16xf32> to vector<16x16xbf16>
    %639 = vector.extract_strided_slice %633 {offsets = [0, 128], sizes = [16, 16], strides = [1, 1]} : vector<16x192xf32> to vector<16x16xf32>
    %640 = arith.truncf %639 : vector<16x16xf32> to vector<16x16xbf16>
    %cst_264 = arith.constant dense<0.000000e+00> : vector<16x16xf32>
    %641 = tpu.matmul %635, %638, %cst_264 {dimension_numbers = #tpu.dot_dimension_numbers<[1], [0], [0], [1], [0, 0, 1, 1], [], []>} : vector<16x16xbf16>, vector<16x16xbf16>, vector<16x16xf32> -> vector<16x16xf32>
    %cst_265 = arith.constant 2.500000e-01 : f32
    %642 = vector.broadcast %cst_265 : f32 to vector<16x16xf32>
    %643 = arith.mulf %641, %642 : vector<16x16xf32>
    %c0_266 = arith.constant 0 : index
    %c0_267 = arith.constant 0 : index
    %c0_268 = arith.constant 0 : index
    %644 = vector.load %arg54[%c0_266, %c0_267, %c0_268] : memref<4x16x16xf32, #tpu.memory_space<vmem>>, vector<1x16x16xf32>
    %645 = vector.shape_cast %644 : vector<1x16x16xf32> to vector<16x16xf32>
    %646 = arith.addf %643, %645 : vector<16x16xf32>
    %cst_269 = arith.constant dense<0xFF800000> : vector<16xf32>
    %647 = vector.multi_reduction <maximumf>, %646, %cst_269 [1] : vector<16x16xf32> to vector<16xf32>
    %648 = vector.shape_cast %647 : vector<16xf32> to vector<16x1xf32>
    %649 = vector.broadcast %648 : vector<16x1xf32> to vector<16x16xf32>
    %650 = arith.subf %646, %649 : vector<16x16xf32>
    %651 = math.exp %650 : vector<16x16xf32>
    %cst_270 = arith.constant dense<0.000000e+00> : vector<16xf32>
    %652 = vector.multi_reduction <add>, %651, %cst_270 [1] : vector<16x16xf32> to vector<16xf32>
    %653 = vector.shape_cast %652 : vector<16xf32> to vector<16x1xf32>
    %654 = vector.broadcast %653 : vector<16x1xf32> to vector<16x16xf32>
    %655 = arith.divf %651, %654 : vector<16x16xf32>
    %656 = arith.truncf %655 : vector<16x16xf32> to vector<16x16xbf16>
    %cst_271 = arith.constant dense<0.000000e+00> : vector<16x16xf32>
    %657 = tpu.matmul %656, %640, %cst_271 {dimension_numbers = #tpu.dot_dimension_numbers<[1], [0], [0], [1], [0, 0, 1, 1], [], []>} : vector<16x16xbf16>, vector<16x16xbf16>, vector<16x16xf32> -> vector<16x16xf32>
    %658 = vector.extract_strided_slice %633 {offsets = [0, 16], sizes = [16, 16], strides = [1, 1]} : vector<16x192xf32> to vector<16x16xf32>
    %659 = arith.truncf %658 : vector<16x16xf32> to vector<16x16xbf16>
    %660 = vector.extract_strided_slice %633 {offsets = [0, 80], sizes = [16, 16], strides = [1, 1]} : vector<16x192xf32> to vector<16x16xf32>
    %661 = tpu.transpose %660, [1, 0] : vector<16x16xf32> -> vector<16x16xf32>
    %662 = arith.truncf %661 : vector<16x16xf32> to vector<16x16xbf16>
    %663 = vector.extract_strided_slice %633 {offsets = [0, 144], sizes = [16, 16], strides = [1, 1]} : vector<16x192xf32> to vector<16x16xf32>
    %664 = arith.truncf %663 : vector<16x16xf32> to vector<16x16xbf16>
    %cst_272 = arith.constant dense<0.000000e+00> : vector<16x16xf32>
    %665 = tpu.matmul %659, %662, %cst_272 {dimension_numbers = #tpu.dot_dimension_numbers<[1], [0], [0], [1], [0, 0, 1, 1], [], []>} : vector<16x16xbf16>, vector<16x16xbf16>, vector<16x16xf32> -> vector<16x16xf32>
    %cst_273 = arith.constant 2.500000e-01 : f32
    %666 = vector.broadcast %cst_273 : f32 to vector<16x16xf32>
    %667 = arith.mulf %665, %666 : vector<16x16xf32>
    %c1_274 = arith.constant 1 : index
    %c0_275 = arith.constant 0 : index
    %c0_276 = arith.constant 0 : index
    %668 = vector.load %arg54[%c1_274, %c0_275, %c0_276] : memref<4x16x16xf32, #tpu.memory_space<vmem>>, vector<1x16x16xf32>
    %669 = vector.shape_cast %668 : vector<1x16x16xf32> to vector<16x16xf32>
    %670 = arith.addf %667, %669 : vector<16x16xf32>
    %cst_277 = arith.constant dense<0xFF800000> : vector<16xf32>
    %671 = vector.multi_reduction <maximumf>, %670, %cst_277 [1] : vector<16x16xf32> to vector<16xf32>
    %672 = vector.shape_cast %671 : vector<16xf32> to vector<16x1xf32>
    %673 = vector.broadcast %672 : vector<16x1xf32> to vector<16x16xf32>
    %674 = arith.subf %670, %673 : vector<16x16xf32>
    %675 = math.exp %674 : vector<16x16xf32>
    %cst_278 = arith.constant dense<0.000000e+00> : vector<16xf32>
    %676 = vector.multi_reduction <add>, %675, %cst_278 [1] : vector<16x16xf32> to vector<16xf32>
    %677 = vector.shape_cast %676 : vector<16xf32> to vector<16x1xf32>
    %678 = vector.broadcast %677 : vector<16x1xf32> to vector<16x16xf32>
    %679 = arith.divf %675, %678 : vector<16x16xf32>
    %680 = arith.truncf %679 : vector<16x16xf32> to vector<16x16xbf16>
    %cst_279 = arith.constant dense<0.000000e+00> : vector<16x16xf32>
    %681 = tpu.matmul %680, %664, %cst_279 {dimension_numbers = #tpu.dot_dimension_numbers<[1], [0], [0], [1], [0, 0, 1, 1], [], []>} : vector<16x16xbf16>, vector<16x16xbf16>, vector<16x16xf32> -> vector<16x16xf32>
    %682 = vector.extract_strided_slice %633 {offsets = [0, 32], sizes = [16, 16], strides = [1, 1]} : vector<16x192xf32> to vector<16x16xf32>
    %683 = arith.truncf %682 : vector<16x16xf32> to vector<16x16xbf16>
    %684 = vector.extract_strided_slice %633 {offsets = [0, 96], sizes = [16, 16], strides = [1, 1]} : vector<16x192xf32> to vector<16x16xf32>
    %685 = tpu.transpose %684, [1, 0] : vector<16x16xf32> -> vector<16x16xf32>
    %686 = arith.truncf %685 : vector<16x16xf32> to vector<16x16xbf16>
    %687 = vector.extract_strided_slice %633 {offsets = [0, 160], sizes = [16, 16], strides = [1, 1]} : vector<16x192xf32> to vector<16x16xf32>
    %688 = arith.truncf %687 : vector<16x16xf32> to vector<16x16xbf16>
    %cst_280 = arith.constant dense<0.000000e+00> : vector<16x16xf32>
    %689 = tpu.matmul %683, %686, %cst_280 {dimension_numbers = #tpu.dot_dimension_numbers<[1], [0], [0], [1], [0, 0, 1, 1], [], []>} : vector<16x16xbf16>, vector<16x16xbf16>, vector<16x16xf32> -> vector<16x16xf32>
    %cst_281 = arith.constant 2.500000e-01 : f32
    %690 = vector.broadcast %cst_281 : f32 to vector<16x16xf32>
    %691 = arith.mulf %689, %690 : vector<16x16xf32>
    %c2_282 = arith.constant 2 : index
    %c0_283 = arith.constant 0 : index
    %c0_284 = arith.constant 0 : index
    %692 = vector.load %arg54[%c2_282, %c0_283, %c0_284] : memref<4x16x16xf32, #tpu.memory_space<vmem>>, vector<1x16x16xf32>
    %693 = vector.shape_cast %692 : vector<1x16x16xf32> to vector<16x16xf32>
    %694 = arith.addf %691, %693 : vector<16x16xf32>
    %cst_285 = arith.constant dense<0xFF800000> : vector<16xf32>
    %695 = vector.multi_reduction <maximumf>, %694, %cst_285 [1] : vector<16x16xf32> to vector<16xf32>
    %696 = vector.shape_cast %695 : vector<16xf32> to vector<16x1xf32>
    %697 = vector.broadcast %696 : vector<16x1xf32> to vector<16x16xf32>
    %698 = arith.subf %694, %697 : vector<16x16xf32>
    %699 = math.exp %698 : vector<16x16xf32>
    %cst_286 = arith.constant dense<0.000000e+00> : vector<16xf32>
    %700 = vector.multi_reduction <add>, %699, %cst_286 [1] : vector<16x16xf32> to vector<16xf32>
    %701 = vector.shape_cast %700 : vector<16xf32> to vector<16x1xf32>
    %702 = vector.broadcast %701 : vector<16x1xf32> to vector<16x16xf32>
    %703 = arith.divf %699, %702 : vector<16x16xf32>
    %704 = arith.truncf %703 : vector<16x16xf32> to vector<16x16xbf16>
    %cst_287 = arith.constant dense<0.000000e+00> : vector<16x16xf32>
    %705 = tpu.matmul %704, %688, %cst_287 {dimension_numbers = #tpu.dot_dimension_numbers<[1], [0], [0], [1], [0, 0, 1, 1], [], []>} : vector<16x16xbf16>, vector<16x16xbf16>, vector<16x16xf32> -> vector<16x16xf32>
    %706 = vector.extract_strided_slice %633 {offsets = [0, 48], sizes = [16, 16], strides = [1, 1]} : vector<16x192xf32> to vector<16x16xf32>
    %707 = arith.truncf %706 : vector<16x16xf32> to vector<16x16xbf16>
    %708 = vector.extract_strided_slice %633 {offsets = [0, 112], sizes = [16, 16], strides = [1, 1]} : vector<16x192xf32> to vector<16x16xf32>
    %709 = tpu.transpose %708, [1, 0] : vector<16x16xf32> -> vector<16x16xf32>
    %710 = arith.truncf %709 : vector<16x16xf32> to vector<16x16xbf16>
    %711 = vector.extract_strided_slice %633 {offsets = [0, 176], sizes = [16, 16], strides = [1, 1]} : vector<16x192xf32> to vector<16x16xf32>
    %712 = arith.truncf %711 : vector<16x16xf32> to vector<16x16xbf16>
    %cst_288 = arith.constant dense<0.000000e+00> : vector<16x16xf32>
    %713 = tpu.matmul %707, %710, %cst_288 {dimension_numbers = #tpu.dot_dimension_numbers<[1], [0], [0], [1], [0, 0, 1, 1], [], []>} : vector<16x16xbf16>, vector<16x16xbf16>, vector<16x16xf32> -> vector<16x16xf32>
    %cst_289 = arith.constant 2.500000e-01 : f32
    %714 = vector.broadcast %cst_289 : f32 to vector<16x16xf32>
    %715 = arith.mulf %713, %714 : vector<16x16xf32>
    %c3_290 = arith.constant 3 : index
    %c0_291 = arith.constant 0 : index
    %c0_292 = arith.constant 0 : index
    %716 = vector.load %arg54[%c3_290, %c0_291, %c0_292] : memref<4x16x16xf32, #tpu.memory_space<vmem>>, vector<1x16x16xf32>
    %717 = vector.shape_cast %716 : vector<1x16x16xf32> to vector<16x16xf32>
    %718 = arith.addf %715, %717 : vector<16x16xf32>
    %cst_293 = arith.constant dense<0xFF800000> : vector<16xf32>
    %719 = vector.multi_reduction <maximumf>, %718, %cst_293 [1] : vector<16x16xf32> to vector<16xf32>
    %720 = vector.shape_cast %719 : vector<16xf32> to vector<16x1xf32>
    %721 = vector.broadcast %720 : vector<16x1xf32> to vector<16x16xf32>
    %722 = arith.subf %718, %721 : vector<16x16xf32>
    %723 = math.exp %722 : vector<16x16xf32>
    %cst_294 = arith.constant dense<0.000000e+00> : vector<16xf32>
    %724 = vector.multi_reduction <add>, %723, %cst_294 [1] : vector<16x16xf32> to vector<16xf32>
    %725 = vector.shape_cast %724 : vector<16xf32> to vector<16x1xf32>
    %726 = vector.broadcast %725 : vector<16x1xf32> to vector<16x16xf32>
    %727 = arith.divf %723, %726 : vector<16x16xf32>
    %728 = arith.truncf %727 : vector<16x16xf32> to vector<16x16xbf16>
    %cst_295 = arith.constant dense<0.000000e+00> : vector<16x16xf32>
    %729 = tpu.matmul %728, %712, %cst_295 {dimension_numbers = #tpu.dot_dimension_numbers<[1], [0], [0], [1], [0, 0, 1, 1], [], []>} : vector<16x16xbf16>, vector<16x16xbf16>, vector<16x16xf32> -> vector<16x16xf32>
    %730 = tpu.concatenate %657, %681, %705, %729 in 1 : vector<16x16xf32>, vector<16x16xf32>, vector<16x16xf32>, vector<16x16xf32> -> vector<16x64xf32>
    %c0_296 = arith.constant 0 : index
    %c0_297 = arith.constant 0 : index
    %731 = vector.load %arg64[%c0_296, %c0_297] : memref<64x64xbf16, #tpu.memory_space<vmem>>, vector<64x64xbf16>
    %732 = arith.truncf %730 : vector<16x64xf32> to vector<16x64xbf16>
    %cst_298 = arith.constant dense<0.000000e+00> : vector<16x64xf32>
    %733 = tpu.matmul %732, %731, %cst_298 {dimension_numbers = #tpu.dot_dimension_numbers<[1], [0], [0], [1], [0, 0, 1, 1], [], []>} : vector<16x64xbf16>, vector<64x64xbf16>, vector<16x64xf32> -> vector<16x64xf32>
    %734 = arith.addf %603, %733 : vector<16x64xf32>
    %c0_299 = arith.constant 0 : index
    %c0_300 = arith.constant 0 : index
    %735 = vector.load %arg63[%c0_299, %c0_300] : memref<1x64xf32, #tpu.memory_space<vmem>>, vector<1x64xf32>
    %736 = vector.broadcast %735 : vector<1x64xf32> to vector<16x64xf32>
    %737 = arith.addf %734, %736 : vector<16x64xf32>
    %c0_301 = arith.constant 0 : index
    %c0_302 = arith.constant 0 : index
    %738 = vector.load %arg62[%c0_301, %c0_302] : memref<1x64xf32, #tpu.memory_space<vmem>>, vector<1x64xf32>
    %c0_303 = arith.constant 0 : index
    %c0_304 = arith.constant 0 : index
    %739 = vector.load %arg61[%c0_303, %c0_304] : memref<1x64xf32, #tpu.memory_space<vmem>>, vector<1x64xf32>
    %cst_305 = arith.constant dense<0.000000e+00> : vector<16xf32>
    %740 = vector.multi_reduction <add>, %737, %cst_305 [1] : vector<16x64xf32> to vector<16xf32>
    %741 = vector.shape_cast %740 : vector<16xf32> to vector<16x1xf32>
    %cst_306 = arith.constant 6.400000e+01 : f32
    %742 = vector.broadcast %cst_306 : f32 to vector<16x1xf32>
    %743 = arith.divf %741, %742 : vector<16x1xf32>
    %744 = vector.broadcast %743 : vector<16x1xf32> to vector<16x64xf32>
    %745 = arith.subf %737, %744 : vector<16x64xf32>
    %746 = arith.mulf %745, %745 : vector<16x64xf32>
    %cst_307 = arith.constant dense<0.000000e+00> : vector<16xf32>
    %747 = vector.multi_reduction <add>, %746, %cst_307 [1] : vector<16x64xf32> to vector<16xf32>
    %748 = vector.shape_cast %747 : vector<16xf32> to vector<16x1xf32>
    %cst_308 = arith.constant 6.400000e+01 : f32
    %749 = vector.broadcast %cst_308 : f32 to vector<16x1xf32>
    %750 = arith.divf %748, %749 : vector<16x1xf32>
    %751 = vector.broadcast %743 : vector<16x1xf32> to vector<16x64xf32>
    %752 = arith.subf %737, %751 : vector<16x64xf32>
    %cst_309 = arith.constant 9.99999974E-6 : f32
    %753 = vector.broadcast %cst_309 : f32 to vector<16x1xf32>
    %754 = arith.addf %750, %753 : vector<16x1xf32>
    %755 = math.rsqrt %754 : vector<16x1xf32>
    %756 = vector.broadcast %755 : vector<16x1xf32> to vector<16x64xf32>
    %757 = arith.mulf %752, %756 : vector<16x64xf32>
    %758 = vector.broadcast %738 : vector<1x64xf32> to vector<16x64xf32>
    %759 = arith.mulf %757, %758 : vector<16x64xf32>
    %760 = vector.broadcast %739 : vector<1x64xf32> to vector<16x64xf32>
    %761 = arith.addf %759, %760 : vector<16x64xf32>
    %c0_310 = arith.constant 0 : index
    %c0_311 = arith.constant 0 : index
    %762 = vector.load %arg56[%c0_310, %c0_311] : memref<64x256xbf16, #tpu.memory_space<vmem>>, vector<64x256xbf16>
    %763 = arith.truncf %761 : vector<16x64xf32> to vector<16x64xbf16>
    %cst_312 = arith.constant dense<0.000000e+00> : vector<16x256xf32>
    %764 = tpu.matmul %763, %762, %cst_312 {dimension_numbers = #tpu.dot_dimension_numbers<[1], [0], [0], [1], [0, 0, 1, 1], [], []>} : vector<16x64xbf16>, vector<64x256xbf16>, vector<16x256xf32> -> vector<16x256xf32>
    %c0_313 = arith.constant 0 : index
    %c0_314 = arith.constant 0 : index
    %765 = vector.load %arg55[%c0_313, %c0_314] : memref<1x256xf32, #tpu.memory_space<vmem>>, vector<1x256xf32>
    %766 = vector.broadcast %765 : vector<1x256xf32> to vector<16x256xf32>
    %767 = arith.addf %764, %766 : vector<16x256xf32>
    %cst_315 = arith.constant 5.000000e-01 : f32
    %768 = vector.broadcast %cst_315 : f32 to vector<16x256xf32>
    %769 = arith.mulf %768, %767 : vector<16x256xf32>
    %cst_316 = arith.constant 0.707106769 : f32
    %770 = vector.broadcast %cst_316 : f32 to vector<16x256xf32>
    %771 = arith.mulf %767, %770 : vector<16x256xf32>
    %cst_317 = arith.constant 0.000000e+00 : f32
    %772 = vector.broadcast %cst_317 : f32 to vector<16x256xf32>
    %773 = arith.cmpf oge, %771, %772 : vector<16x256xf32>
    %cst_318 = arith.constant 1.000000e+00 : f32
    %cst_319 = arith.constant -1.000000e+00 : f32
    %774 = vector.broadcast %cst_318 : f32 to vector<16x256xf32>
    %775 = vector.broadcast %cst_319 : f32 to vector<16x256xf32>
    %776 = arith.select %773, %774, %775 : vector<16x256xi1>, vector<16x256xf32>
    %777 = math.absf %771 : vector<16x256xf32>
    %cst_320 = arith.constant 0.327591091 : f32
    %778 = vector.broadcast %cst_320 : f32 to vector<16x256xf32>
    %779 = arith.mulf %778, %777 : vector<16x256xf32>
    %cst_321 = arith.constant 1.000000e+00 : f32
    %780 = vector.broadcast %cst_321 : f32 to vector<16x256xf32>
    %781 = arith.addf %780, %779 : vector<16x256xf32>
    %cst_322 = arith.constant 1.000000e+00 : f32
    %782 = vector.broadcast %cst_322 : f32 to vector<16x256xf32>
    %783 = arith.divf %782, %781 : vector<16x256xf32>
    %cst_323 = arith.constant 1.06140542 : f32
    %784 = vector.broadcast %cst_323 : f32 to vector<16x256xf32>
    %785 = arith.mulf %784, %783 : vector<16x256xf32>
    %cst_324 = arith.constant -1.45315206 : f32
    %786 = vector.broadcast %cst_324 : f32 to vector<16x256xf32>
    %787 = arith.addf %785, %786 : vector<16x256xf32>
    %788 = arith.mulf %787, %783 : vector<16x256xf32>
    %cst_325 = arith.constant 1.42141378 : f32
    %789 = vector.broadcast %cst_325 : f32 to vector<16x256xf32>
    %790 = arith.addf %788, %789 : vector<16x256xf32>
    %791 = arith.mulf %790, %783 : vector<16x256xf32>
    %cst_326 = arith.constant -0.284496725 : f32
    %792 = vector.broadcast %cst_326 : f32 to vector<16x256xf32>
    %793 = arith.addf %791, %792 : vector<16x256xf32>
    %794 = arith.mulf %793, %783 : vector<16x256xf32>
    %cst_327 = arith.constant 0.254829586 : f32
    %795 = vector.broadcast %cst_327 : f32 to vector<16x256xf32>
    %796 = arith.addf %794, %795 : vector<16x256xf32>
    %797 = arith.mulf %796, %783 : vector<16x256xf32>
    %cst_328 = arith.constant 0.000000e+00 : f32
    %798 = vector.broadcast %cst_328 : f32 to vector<16x256xf32>
    %799 = arith.subf %798, %777 : vector<16x256xf32>
    %800 = arith.mulf %799, %777 : vector<16x256xf32>
    %801 = math.exp %800 : vector<16x256xf32>
    %802 = arith.mulf %797, %801 : vector<16x256xf32>
    %cst_329 = arith.constant 1.000000e+00 : f32
    %803 = vector.broadcast %cst_329 : f32 to vector<16x256xf32>
    %804 = arith.subf %803, %802 : vector<16x256xf32>
    %805 = arith.mulf %776, %804 : vector<16x256xf32>
    %cst_330 = arith.constant 1.000000e+00 : f32
    %806 = vector.broadcast %cst_330 : f32 to vector<16x256xf32>
    %807 = arith.addf %806, %805 : vector<16x256xf32>
    %808 = arith.mulf %769, %807 : vector<16x256xf32>
    %c0_331 = arith.constant 0 : index
    %c0_332 = arith.constant 0 : index
    %809 = vector.load %arg58[%c0_331, %c0_332] : memref<256x64xbf16, #tpu.memory_space<vmem>>, vector<256x64xbf16>
    %810 = arith.truncf %808 : vector<16x256xf32> to vector<16x256xbf16>
    %cst_333 = arith.constant dense<0.000000e+00> : vector<16x64xf32>
    %811 = tpu.matmul %810, %809, %cst_333 {dimension_numbers = #tpu.dot_dimension_numbers<[1], [0], [0], [1], [0, 0, 1, 1], [], []>} : vector<16x256xbf16>, vector<256x64xbf16>, vector<16x64xf32> -> vector<16x64xf32>
    %812 = arith.addf %737, %811 : vector<16x64xf32>
    %c0_334 = arith.constant 0 : index
    %c0_335 = arith.constant 0 : index
    %813 = vector.load %arg57[%c0_334, %c0_335] : memref<1x64xf32, #tpu.memory_space<vmem>>, vector<1x64xf32>
    %814 = vector.broadcast %813 : vector<1x64xf32> to vector<16x64xf32>
    %815 = arith.addf %812, %814 : vector<16x64xf32>
    %c0_336 = arith.constant 0 : index
    %c0_337 = arith.constant 0 : index
    %816 = vector.load %arg5[%c0_336, %c0_337] : memref<1x64xf32, #tpu.memory_space<vmem>>, vector<1x64xf32>
    %c0_338 = arith.constant 0 : index
    %c0_339 = arith.constant 0 : index
    %817 = vector.load %arg4[%c0_338, %c0_339] : memref<1x64xf32, #tpu.memory_space<vmem>>, vector<1x64xf32>
    %cst_340 = arith.constant dense<0.000000e+00> : vector<16xf32>
    %818 = vector.multi_reduction <add>, %815, %cst_340 [1] : vector<16x64xf32> to vector<16xf32>
    %819 = vector.shape_cast %818 : vector<16xf32> to vector<16x1xf32>
    %cst_341 = arith.constant 6.400000e+01 : f32
    %820 = vector.broadcast %cst_341 : f32 to vector<16x1xf32>
    %821 = arith.divf %819, %820 : vector<16x1xf32>
    %822 = vector.broadcast %821 : vector<16x1xf32> to vector<16x64xf32>
    %823 = arith.subf %815, %822 : vector<16x64xf32>
    %824 = arith.mulf %823, %823 : vector<16x64xf32>
    %cst_342 = arith.constant dense<0.000000e+00> : vector<16xf32>
    %825 = vector.multi_reduction <add>, %824, %cst_342 [1] : vector<16x64xf32> to vector<16xf32>
    %826 = vector.shape_cast %825 : vector<16xf32> to vector<16x1xf32>
    %cst_343 = arith.constant 6.400000e+01 : f32
    %827 = vector.broadcast %cst_343 : f32 to vector<16x1xf32>
    %828 = arith.divf %826, %827 : vector<16x1xf32>
    %829 = vector.broadcast %821 : vector<16x1xf32> to vector<16x64xf32>
    %830 = arith.subf %815, %829 : vector<16x64xf32>
    %cst_344 = arith.constant 9.99999974E-6 : f32
    %831 = vector.broadcast %cst_344 : f32 to vector<16x1xf32>
    %832 = arith.addf %828, %831 : vector<16x1xf32>
    %833 = math.rsqrt %832 : vector<16x1xf32>
    %834 = vector.broadcast %833 : vector<16x1xf32> to vector<16x64xf32>
    %835 = arith.mulf %830, %834 : vector<16x64xf32>
    %836 = vector.broadcast %816 : vector<1x64xf32> to vector<16x64xf32>
    %837 = arith.mulf %835, %836 : vector<16x64xf32>
    %838 = vector.broadcast %817 : vector<1x64xf32> to vector<16x64xf32>
    %839 = arith.addf %837, %838 : vector<16x64xf32>
    %cst_345 = arith.constant dense<0.000000e+00> : vector<64xf32>
    %840 = vector.multi_reduction <add>, %839, %cst_345 [0] : vector<16x64xf32> to vector<64xf32>
    %841 = vector.shape_cast %840 : vector<64xf32> to vector<1x64xf32>
    %cst_346 = arith.constant 1.600000e+01 : f32
    %842 = vector.broadcast %cst_346 : f32 to vector<1x64xf32>
    %843 = arith.divf %841, %842 : vector<1x64xf32>
    %c0_347 = arith.constant 0 : index
    %c0_348 = arith.constant 0 : index
    %844 = vector.load %arg7[%c0_347, %c0_348] : memref<64x64xbf16, #tpu.memory_space<vmem>>, vector<64x64xbf16>
    %845 = arith.truncf %843 : vector<1x64xf32> to vector<1x64xbf16>
    %cst_349 = arith.constant dense<0.000000e+00> : vector<1x64xf32>
    %846 = tpu.matmul %845, %844, %cst_349 {dimension_numbers = #tpu.dot_dimension_numbers<[1], [0], [0], [1], [0, 0, 1, 1], [], []>} : vector<1x64xbf16>, vector<64x64xbf16>, vector<1x64xf32> -> vector<1x64xf32>
    %c0_350 = arith.constant 0 : index
    %c0_351 = arith.constant 0 : index
    %847 = vector.load %arg6[%c0_350, %c0_351] : memref<1x64xf32, #tpu.memory_space<vmem>>, vector<1x64xf32>
    %848 = arith.addf %846, %847 : vector<1x64xf32>
    %c0_352 = arith.constant 0 : index
    %c0_353 = arith.constant 0 : index
    %849 = vector.load %arg3[%c0_352, %c0_353] : memref<64x8xbf16, #tpu.memory_space<vmem>>, vector<64x8xbf16>
    %850 = arith.truncf %848 : vector<1x64xf32> to vector<1x64xbf16>
    %cst_354 = arith.constant dense<0.000000e+00> : vector<1x8xf32>
    %851 = tpu.matmul %850, %849, %cst_354 {dimension_numbers = #tpu.dot_dimension_numbers<[1], [0], [0], [1], [0, 0, 1, 1], [], []>} : vector<1x64xbf16>, vector<64x8xbf16>, vector<1x8xf32> -> vector<1x8xf32>
    %c0_355 = arith.constant 0 : index
    %c0_356 = arith.constant 0 : index
    %852 = vector.load %arg2[%c0_355, %c0_356] : memref<1x8xf32, #tpu.memory_space<vmem>>, vector<1x8xf32>
    %853 = arith.addf %851, %852 : vector<1x8xf32>
    %854 = vector.shape_cast %853 : vector<1x8xf32> to vector<1x1x8xf32>
    %c0_357 = arith.constant 0 : index
    %c0_358 = arith.constant 0 : index
    %c0_359 = arith.constant 0 : index
    %855 = vector.load %arg67[%c0_357, %c0_358, %c0_359] : memref<1x1x8xf32, #tpu.memory_space<vmem>>, vector<1x1x8xf32>
    tpu.vector_store %arg67[%c0_357, %c0_358, %c0_359], %854 {strides = array<i32>} : memref<1x1x8xf32, #tpu.memory_space<vmem>>, vector<1x1x8xf32>,
    return
  }
  func.func @transform_0(%arg0: i32) -> (i32, i32, i32) {
    %c0_i32 = arith.constant 0 : i32
    %c0_i32_0 = arith.constant 0 : i32
    %c0_i32_1 = arith.constant 0 : i32
    return %arg0, %c0_i32, %c0_i32_0 : i32, i32, i32
  }
  func.func @transform_1(%arg0: i32) -> (i32, i32) {
    %c0_i32 = arith.constant 0 : i32
    %c0_i32_0 = arith.constant 0 : i32
    %c0_i32_1 = arith.constant 0 : i32
    return %c0_i32, %c0_i32_0 : i32, i32
  }
  func.func @transform_2(%arg0: i32) -> (i32, i32) {
    %c0_i32 = arith.constant 0 : i32
    %c0_i32_0 = arith.constant 0 : i32
    %c0_i32_1 = arith.constant 0 : i32
    return %c0_i32, %c0_i32_0 : i32, i32
  }
  func.func @transform_3(%arg0: i32) -> (i32, i32) {
    %c0_i32 = arith.constant 0 : i32
    %c0_i32_0 = arith.constant 0 : i32
    %c0_i32_1 = arith.constant 0 : i32
    return %c0_i32, %c0_i32_0 : i32, i32
  }
  func.func @transform_4(%arg0: i32) -> (i32, i32) {
    %c0_i32 = arith.constant 0 : i32
    %c0_i32_0 = arith.constant 0 : i32
    %c0_i32_1 = arith.constant 0 : i32
    return %c0_i32, %c0_i32_0 : i32, i32
  }
  func.func @transform_5(%arg0: i32) -> (i32, i32) {
    %c0_i32 = arith.constant 0 : i32
    %c0_i32_0 = arith.constant 0 : i32
    %c0_i32_1 = arith.constant 0 : i32
    return %c0_i32, %c0_i32_0 : i32, i32
  }
  func.func @transform_6(%arg0: i32) -> (i32, i32) {
    %c0_i32 = arith.constant 0 : i32
    %c0_i32_0 = arith.constant 0 : i32
    %c0_i32_1 = arith.constant 0 : i32
    return %c0_i32, %c0_i32_0 : i32, i32
  }
  func.func @transform_7(%arg0: i32) -> (i32, i32) {
    %c0_i32 = arith.constant 0 : i32
    %c0_i32_0 = arith.constant 0 : i32
    %c0_i32_1 = arith.constant 0 : i32
    return %c0_i32, %c0_i32_0 : i32, i32
  }
  func.func @transform_8(%arg0: i32) -> (i32, i32) {
    %c0_i32 = arith.constant 0 : i32
    %c0_i32_0 = arith.constant 0 : i32
    %c0_i32_1 = arith.constant 0 : i32
    return %c0_i32, %c0_i32_0 : i32, i32
  }
  func.func @transform_9(%arg0: i32) -> (i32, i32) {
    %c0_i32 = arith.constant 0 : i32
    %c0_i32_0 = arith.constant 0 : i32
    %c0_i32_1 = arith.constant 0 : i32
    return %c0_i32, %c0_i32_0 : i32, i32
  }
  func.func @transform_10(%arg0: i32) -> (i32, i32) {
    %c0_i32 = arith.constant 0 : i32
    %c0_i32_0 = arith.constant 0 : i32
    %c0_i32_1 = arith.constant 0 : i32
    return %c0_i32, %c0_i32_0 : i32, i32
  }
  func.func @transform_11(%arg0: i32) -> (i32, i32) {
    %c0_i32 = arith.constant 0 : i32
    %c0_i32_0 = arith.constant 0 : i32
    %c0_i32_1 = arith.constant 0 : i32
    return %c0_i32, %c0_i32_0 : i32, i32
  }
  func.func @transform_12(%arg0: i32) -> (i32, i32) {
    %c0_i32 = arith.constant 0 : i32
    %c0_i32_0 = arith.constant 0 : i32
    %c0_i32_1 = arith.constant 0 : i32
    return %c0_i32, %c0_i32_0 : i32, i32
  }
  func.func @transform_13(%arg0: i32) -> (i32, i32) {
    %c0_i32 = arith.constant 0 : i32
    %c0_i32_0 = arith.constant 0 : i32
    %c0_i32_1 = arith.constant 0 : i32
    return %c0_i32, %c0_i32_0 : i32, i32
  }
  func.func @transform_14(%arg0: i32) -> (i32, i32, i32) {
    %c0_i32 = arith.constant 0 : i32
    %c0_i32_0 = arith.constant 0 : i32
    %c0_i32_1 = arith.constant 0 : i32
    %c0_i32_2 = arith.constant 0 : i32
    return %c0_i32, %c0_i32_0, %c0_i32_1 : i32, i32, i32
  }
  func.func @transform_15(%arg0: i32) -> (i32, i32) {
    %c0_i32 = arith.constant 0 : i32
    %c0_i32_0 = arith.constant 0 : i32
    %c0_i32_1 = arith.constant 0 : i32
    return %c0_i32, %c0_i32_0 : i32, i32
  }
  func.func @transform_16(%arg0: i32) -> (i32, i32) {
    %c0_i32 = arith.constant 0 : i32
    %c0_i32_0 = arith.constant 0 : i32
    %c0_i32_1 = arith.constant 0 : i32
    return %c0_i32, %c0_i32_0 : i32, i32
  }
  func.func @transform_17(%arg0: i32) -> (i32, i32) {
    %c0_i32 = arith.constant 0 : i32
    %c0_i32_0 = arith.constant 0 : i32
    %c0_i32_1 = arith.constant 0 : i32
    return %c0_i32, %c0_i32_0 : i32, i32
  }
  func.func @transform_18(%arg0: i32) -> (i32, i32) {
    %c0_i32 = arith.constant 0 : i32
    %c0_i32_0 = arith.constant 0 : i32
    %c0_i32_1 = arith.constant 0 : i32
    return %c0_i32, %c0_i32_0 : i32, i32
  }
  func.func @transform_19(%arg0: i32) -> (i32, i32) {
    %c0_i32 = arith.constant 0 : i32
    %c0_i32_0 = arith.constant 0 : i32
    %c0_i32_1 = arith.constant 0 : i32
    return %c0_i32, %c0_i32_0 : i32, i32
  }
  func.func @transform_20(%arg0: i32) -> (i32, i32) {
    %c0_i32 = arith.constant 0 : i32
    %c0_i32_0 = arith.constant 0 : i32
    %c0_i32_1 = arith.constant 0 : i32
    return %c0_i32, %c0_i32_0 : i32, i32
  }
  func.func @transform_21(%arg0: i32) -> (i32, i32) {
    %c0_i32 = arith.constant 0 : i32
    %c0_i32_0 = arith.constant 0 : i32
    %c0_i32_1 = arith.constant 0 : i32
    return %c0_i32, %c0_i32_0 : i32, i32
  }
  func.func @transform_22(%arg0: i32) -> (i32, i32) {
    %c0_i32 = arith.constant 0 : i32
    %c0_i32_0 = arith.constant 0 : i32
    %c0_i32_1 = arith.constant 0 : i32
    return %c0_i32, %c0_i32_0 : i32, i32
  }
  func.func @transform_23(%arg0: i32) -> (i32, i32) {
    %c0_i32 = arith.constant 0 : i32
    %c0_i32_0 = arith.constant 0 : i32
    %c0_i32_1 = arith.constant 0 : i32
    return %c0_i32, %c0_i32_0 : i32, i32
  }
  func.func @transform_24(%arg0: i32) -> (i32, i32) {
    %c0_i32 = arith.constant 0 : i32
    %c0_i32_0 = arith.constant 0 : i32
    %c0_i32_1 = arith.constant 0 : i32
    return %c0_i32, %c0_i32_0 : i32, i32
  }
  func.func @transform_25(%arg0: i32) -> (i32, i32) {
    %c0_i32 = arith.constant 0 : i32
    %c0_i32_0 = arith.constant 0 : i32
    %c0_i32_1 = arith.constant 0 : i32
    return %c0_i32, %c0_i32_0 : i32, i32
  }
  func.func @transform_26(%arg0: i32) -> (i32, i32) {
    %c0_i32 = arith.constant 0 : i32
    %c0_i32_0 = arith.constant 0 : i32
    %c0_i32_1 = arith.constant 0 : i32
    return %c0_i32, %c0_i32_0 : i32, i32
  }
  func.func @transform_27(%arg0: i32) -> (i32, i32, i32) {
    %c0_i32 = arith.constant 0 : i32
    %c0_i32_0 = arith.constant 0 : i32
    %c0_i32_1 = arith.constant 0 : i32
    %c0_i32_2 = arith.constant 0 : i32
    return %c0_i32, %c0_i32_0, %c0_i32_1 : i32, i32, i32
  }
  func.func @transform_28(%arg0: i32) -> (i32, i32) {
    %c0_i32 = arith.constant 0 : i32
    %c0_i32_0 = arith.constant 0 : i32
    %c0_i32_1 = arith.constant 0 : i32
    return %c0_i32, %c0_i32_0 : i32, i32
  }
  func.func @transform_29(%arg0: i32) -> (i32, i32) {
    %c0_i32 = arith.constant 0 : i32
    %c0_i32_0 = arith.constant 0 : i32
    %c0_i32_1 = arith.constant 0 : i32
    return %c0_i32, %c0_i32_0 : i32, i32
  }
  func.func @transform_30(%arg0: i32) -> (i32, i32) {
    %c0_i32 = arith.constant 0 : i32
    %c0_i32_0 = arith.constant 0 : i32
    %c0_i32_1 = arith.constant 0 : i32
    return %c0_i32, %c0_i32_0 : i32, i32
  }
  func.func @transform_31(%arg0: i32) -> (i32, i32) {
    %c0_i32 = arith.constant 0 : i32
    %c0_i32_0 = arith.constant 0 : i32
    %c0_i32_1 = arith.constant 0 : i32
    return %c0_i32, %c0_i32_0 : i32, i32
  }
  func.func @transform_32(%arg0: i32) -> (i32, i32) {
    %c0_i32 = arith.constant 0 : i32
    %c0_i32_0 = arith.constant 0 : i32
    %c0_i32_1 = arith.constant 0 : i32
    return %c0_i32, %c0_i32_0 : i32, i32
  }
  func.func @transform_33(%arg0: i32) -> (i32, i32) {
    %c0_i32 = arith.constant 0 : i32
    %c0_i32_0 = arith.constant 0 : i32
    %c0_i32_1 = arith.constant 0 : i32
    return %c0_i32, %c0_i32_0 : i32, i32
  }
  func.func @transform_34(%arg0: i32) -> (i32, i32) {
    %c0_i32 = arith.constant 0 : i32
    %c0_i32_0 = arith.constant 0 : i32
    %c0_i32_1 = arith.constant 0 : i32
    return %c0_i32, %c0_i32_0 : i32, i32
  }
  func.func @transform_35(%arg0: i32) -> (i32, i32) {
    %c0_i32 = arith.constant 0 : i32
    %c0_i32_0 = arith.constant 0 : i32
    %c0_i32_1 = arith.constant 0 : i32
    return %c0_i32, %c0_i32_0 : i32, i32
  }
  func.func @transform_36(%arg0: i32) -> (i32, i32) {
    %c0_i32 = arith.constant 0 : i32
    %c0_i32_0 = arith.constant 0 : i32
    %c0_i32_1 = arith.constant 0 : i32
    return %c0_i32, %c0_i32_0 : i32, i32
  }
  func.func @transform_37(%arg0: i32) -> (i32, i32) {
    %c0_i32 = arith.constant 0 : i32
    %c0_i32_0 = arith.constant 0 : i32
    %c0_i32_1 = arith.constant 0 : i32
    return %c0_i32, %c0_i32_0 : i32, i32
  }
  func.func @transform_38(%arg0: i32) -> (i32, i32) {
    %c0_i32 = arith.constant 0 : i32
    %c0_i32_0 = arith.constant 0 : i32
    %c0_i32_1 = arith.constant 0 : i32
    return %c0_i32, %c0_i32_0 : i32, i32
  }
  func.func @transform_39(%arg0: i32) -> (i32, i32) {
    %c0_i32 = arith.constant 0 : i32
    %c0_i32_0 = arith.constant 0 : i32
    %c0_i32_1 = arith.constant 0 : i32
    return %c0_i32, %c0_i32_0 : i32, i32
  }
  func.func @transform_40(%arg0: i32) -> (i32, i32, i32) {
    %c0_i32 = arith.constant 0 : i32
    %c0_i32_0 = arith.constant 0 : i32
    %c0_i32_1 = arith.constant 0 : i32
    %c0_i32_2 = arith.constant 0 : i32
    return %c0_i32, %c0_i32_0, %c0_i32_1 : i32, i32, i32
  }
  func.func @transform_41(%arg0: i32) -> (i32, i32) {
    %c0_i32 = arith.constant 0 : i32
    %c0_i32_0 = arith.constant 0 : i32
    %c0_i32_1 = arith.constant 0 : i32
    return %c0_i32, %c0_i32_0 : i32, i32
  }
  func.func @transform_42(%arg0: i32) -> (i32, i32) {
    %c0_i32 = arith.constant 0 : i32
    %c0_i32_0 = arith.constant 0 : i32
    %c0_i32_1 = arith.constant 0 : i32
    return %c0_i32, %c0_i32_0 : i32, i32
  }
  func.func @transform_43(%arg0: i32) -> (i32, i32) {
    %c0_i32 = arith.constant 0 : i32
    %c0_i32_0 = arith.constant 0 : i32
    %c0_i32_1 = arith.constant 0 : i32
    return %c0_i32, %c0_i32_0 : i32, i32
  }
  func.func @transform_44(%arg0: i32) -> (i32, i32) {
    %c0_i32 = arith.constant 0 : i32
    %c0_i32_0 = arith.constant 0 : i32
    %c0_i32_1 = arith.constant 0 : i32
    return %c0_i32, %c0_i32_0 : i32, i32
  }
  func.func @transform_45(%arg0: i32) -> (i32, i32) {
    %c0_i32 = arith.constant 0 : i32
    %c0_i32_0 = arith.constant 0 : i32
    %c0_i32_1 = arith.constant 0 : i32
    return %c0_i32, %c0_i32_0 : i32, i32
  }
  func.func @transform_46(%arg0: i32) -> (i32, i32) {
    %c0_i32 = arith.constant 0 : i32
    %c0_i32_0 = arith.constant 0 : i32
    %c0_i32_1 = arith.constant 0 : i32
    return %c0_i32, %c0_i32_0 : i32, i32
  }
  func.func @transform_47(%arg0: i32) -> (i32, i32) {
    %c0_i32 = arith.constant 0 : i32
    %c0_i32_0 = arith.constant 0 : i32
    %c0_i32_1 = arith.constant 0 : i32
    return %c0_i32, %c0_i32_0 : i32, i32
  }
  func.func @transform_48(%arg0: i32) -> (i32, i32) {
    %c0_i32 = arith.constant 0 : i32
    %c0_i32_0 = arith.constant 0 : i32
    %c0_i32_1 = arith.constant 0 : i32
    return %c0_i32, %c0_i32_0 : i32, i32
  }
  func.func @transform_49(%arg0: i32) -> (i32, i32) {
    %c0_i32 = arith.constant 0 : i32
    %c0_i32_0 = arith.constant 0 : i32
    %c0_i32_1 = arith.constant 0 : i32
    return %c0_i32, %c0_i32_0 : i32, i32
  }
  func.func @transform_50(%arg0: i32) -> (i32, i32) {
    %c0_i32 = arith.constant 0 : i32
    %c0_i32_0 = arith.constant 0 : i32
    %c0_i32_1 = arith.constant 0 : i32
    return %c0_i32, %c0_i32_0 : i32, i32
  }
  func.func @transform_51(%arg0: i32) -> (i32, i32) {
    %c0_i32 = arith.constant 0 : i32
    %c0_i32_0 = arith.constant 0 : i32
    %c0_i32_1 = arith.constant 0 : i32
    return %c0_i32, %c0_i32_0 : i32, i32
  }
  func.func @transform_52(%arg0: i32) -> (i32, i32) {
    %c0_i32 = arith.constant 0 : i32
    %c0_i32_0 = arith.constant 0 : i32
    %c0_i32_1 = arith.constant 0 : i32
    return %c0_i32, %c0_i32_0 : i32, i32
  }
  func.func @transform_53(%arg0: i32) -> (i32, i32, i32) {
    %c0_i32 = arith.constant 0 : i32
    %c0_i32_0 = arith.constant 0 : i32
    %c0_i32_1 = arith.constant 0 : i32
    %c0_i32_2 = arith.constant 0 : i32
    return %c0_i32, %c0_i32_0, %c0_i32_1 : i32, i32, i32
  }
  func.func @transform_54(%arg0: i32) -> (i32, i32) {
    %c0_i32 = arith.constant 0 : i32
    %c0_i32_0 = arith.constant 0 : i32
    %c0_i32_1 = arith.constant 0 : i32
    return %c0_i32, %c0_i32_0 : i32, i32
  }
  func.func @transform_55(%arg0: i32) -> (i32, i32) {
    %c0_i32 = arith.constant 0 : i32
    %c0_i32_0 = arith.constant 0 : i32
    %c0_i32_1 = arith.constant 0 : i32
    return %c0_i32, %c0_i32_0 : i32, i32
  }
  func.func @transform_56(%arg0: i32) -> (i32, i32) {
    %c0_i32 = arith.constant 0 : i32
    %c0_i32_0 = arith.constant 0 : i32
    %c0_i32_1 = arith.constant 0 : i32
    return %c0_i32, %c0_i32_0 : i32, i32
  }
  func.func @transform_57(%arg0: i32) -> (i32, i32) {
    %c0_i32 = arith.constant 0 : i32
    %c0_i32_0 = arith.constant 0 : i32
    %c0_i32_1 = arith.constant 0 : i32
    return %c0_i32, %c0_i32_0 : i32, i32
  }
  func.func @transform_58(%arg0: i32) -> (i32, i32) {
    %c0_i32 = arith.constant 0 : i32
    %c0_i32_0 = arith.constant 0 : i32
    %c0_i32_1 = arith.constant 0 : i32
    return %c0_i32, %c0_i32_0 : i32, i32
  }
  func.func @transform_59(%arg0: i32) -> (i32, i32) {
    %c0_i32 = arith.constant 0 : i32
    %c0_i32_0 = arith.constant 0 : i32
    %c0_i32_1 = arith.constant 0 : i32
    return %c0_i32, %c0_i32_0 : i32, i32
  }
  func.func @transform_60(%arg0: i32) -> (i32, i32) {
    %c0_i32 = arith.constant 0 : i32
    %c0_i32_0 = arith.constant 0 : i32
    %c0_i32_1 = arith.constant 0 : i32
    return %c0_i32, %c0_i32_0 : i32, i32
  }
  func.func @transform_61(%arg0: i32) -> (i32, i32) {
    %c0_i32 = arith.constant 0 : i32
    %c0_i32_0 = arith.constant 0 : i32
    %c0_i32_1 = arith.constant 0 : i32
    return %c0_i32, %c0_i32_0 : i32, i32
  }
  func.func @transform_62(%arg0: i32) -> (i32, i32) {
    %c0_i32 = arith.constant 0 : i32
    %c0_i32_0 = arith.constant 0 : i32
    %c0_i32_1 = arith.constant 0 : i32
    return %c0_i32, %c0_i32_0 : i32, i32
  }
  func.func @transform_63(%arg0: i32) -> (i32, i32) {
    %c0_i32 = arith.constant 0 : i32
    %c0_i32_0 = arith.constant 0 : i32
    %c0_i32_1 = arith.constant 0 : i32
    return %c0_i32, %c0_i32_0 : i32, i32
  }
  func.func @transform_64(%arg0: i32) -> (i32, i32) {
    %c0_i32 = arith.constant 0 : i32
    %c0_i32_0 = arith.constant 0 : i32
    %c0_i32_1 = arith.constant 0 : i32
    return %c0_i32, %c0_i32_0 : i32, i32
  }
  func.func @transform_65(%arg0: i32) -> (i32, i32) {
    %c0_i32 = arith.constant 0 : i32
    %c0_i32_0 = arith.constant 0 : i32
    %c0_i32_1 = arith.constant 0 : i32
    return %c0_i32, %c0_i32_0 : i32, i32
  }
  func.func @transform_66(%arg0: i32) -> (i32, i32, i32) {
    %c0_i32 = arith.constant 0 : i32
    %c0_i32_0 = arith.constant 0 : i32
    %c0_i32_1 = arith.constant 0 : i32
    return %arg0, %c0_i32, %c0_i32_0 : i32, i32, i32
  }
}

</mosaic_0001>

<bundles_post_ra>
// kernel: forward.1
= control target key start
LH: loop header
LB: loop body
LE: loop exit
PB: predicated region body
PF: predicated region fallthrough
CT: control target
= control target key end

     0   :  { %s11918_s6 = smov 1   ;;  %s11919_s10 = smov 2   ;;  %s15009_s0 = inlined_call_operand.smem [shape: u32[67], index: -1, kind: input, shape index: {}] }
   0x1   :  { %s12029_s5 = sld [smem:[%s15009_s0]]   ;;  %s11920_s14 = smov 3  }
   0x2   :  { %s12034_s9 = sld [smem:[%s15009_s0 + %s11918_s6]]   ;;  %s11921_s18 = smov 4  }
   0x3   :  { %s12039_s13 = sld [smem:[%s15009_s0 + %s11919_s10]]   ;;  %s11922_s22 = smov 5  }
   0x4   :  { %s12044_s17 = sld [smem:[%s15009_s0 + %s11920_s14]]   ;;  %s11923_s26 = smov 6  }
   0x5   :  { %s12049_s21 = sld [smem:[%s15009_s0 + %s11921_s18]]   ;;  %s11924_s30 = smov 7  }
   0x6   :  { %s12054_s25 = sld [smem:[%s15009_s0 + %s11922_s22]]   ;;  %s11925_s4 = smov 8  }
   0x7   :  { %15082 = sst [smem:[#allocation53_spill]] %s12029_s5  ;;  %s11926_s10 = smov 9  }
   0x8   :  { %15083 = sst [smem:[#allocation54_spill]] %s12034_s9  ;;  %s11927_s15 = smov 10  }
   0x9   :  { %15084 = sst [smem:[#allocation55_spill]] %s12039_s13  ;;  %s11928_s20 = smov 11  }
   0xa   :  { %15085 = sst [smem:[#allocation56_spill]] %s12044_s17  ;;  %s11930_s1 = smov 13  }
   0xb   :  { %15086 = sst [smem:[#allocation57_spill]] %s12049_s21  ;;  %s11931_s7 = smov 14  }
   0xc   :  { %15087 = sst [smem:[#allocation58_spill]] %s12054_s25  ;;  %s11933_s22 = smov 16  }
   0xd   :  { %s12059_s29 = sld [smem:[%s15009_s0 + %s11923_s26]]   ;;  %s11929_s26 = smov 12  }
   0xe   :  { %s12064_s3 = sld [smem:[%s15009_s0 + %s11924_s30]]   ;;  %s11934_s28 = smov 17  }
   0xf   :  { %s12069_s8 = sld [smem:[%s15009_s0 + %s11925_s4]]  }
  0x10   :  { %s12074_s14 = sld [smem:[%s15009_s0 + %s11926_s10]]  }
  0x11   :  { %s12079_s19 = sld [smem:[%s15009_s0 + %s11927_s15]]   ;;  %s11932_s15 = smov 15  }
  0x12   :  { %s12084_s24 = sld [smem:[%s15009_s0 + %s11928_s20]]  }
  0x13   :  { %15088 = sst [smem:[#allocation59_spill]] %s12059_s29 }
  0x14   :  { %15089 = sst [smem:[#allocation60_spill]] %s12064_s3 }
  0x15   :  { %15090 = sst [smem:[#allocation61_spill]] %s12069_s8 }
  0x16   :  { %15091 = sst [smem:[#allocation62_spill]] %s12074_s14 }
  0x17   :  { %15092 = sst [smem:[#allocation63_spill]] %s12079_s19 }
  0x18   :  { %15093 = sst [smem:[#allocation64_spill]] %s12084_s24 }
  0x19   :  { %s12089_s30 = sld [smem:[%s15009_s0 + %s11929_s26]]  }
  0x1a   :  { %s12094_s6 = sld [smem:[%s15009_s0 + %s11930_s1]]  }
  0x1b   :  { %s12099_s12 = sld [smem:[%s15009_s0 + %s11931_s7]]   ;;  %s11935_s7 = smov 18  }
  0x1c   :  { %s12104_s20 = sld [smem:[%s15009_s0 + %s11932_s15]]   ;;  %s11936_s15 = smov 19  }
  0x1d   :  { %s12109_s27 = sld [smem:[%s15009_s0 + %s11933_s22]]   ;;  %s11937_s22 = smov 20  }
  0x1e   :  { %s12114_s4 = sld [smem:[%s15009_s0 + %s11934_s28]]   ;;  %s11938_s28 = smov 21  }
  0x1f   :  { %15094 = sst [smem:[#allocation65_spill]] %s12089_s30 }
  0x20   :  { %15095 = sst [smem:[#allocation66_spill]] %s12094_s6 }
  0x21   :  { %15096 = sst [smem:[#allocation67_spill]] %s12099_s12 }
  0x22   :  { %15097 = sst [smem:[#allocation68_spill]] %s12104_s20 }
  0x23   :  { %15098 = sst [smem:[#allocation69_spill]] %s12109_s27 }
  0x24   :  { %15099 = sst [smem:[#allocation70_spill]] %s12114_s4 }
  0x25   :  { %s12119_s9 = sld [smem:[%s15009_s0 + %s11935_s7]]   ;;  %s11939_s7 = smov 22  }
  0x26   :  { %s12124_s25 = sld [smem:[%s15009_s0 + %s11936_s15]]   ;;  %s11940_s15 = smov 23  }
  0x27   :  { %s12129_s17 = sld [smem:[%s15009_s0 + %s11937_s22]]   ;;  %s11941_s22 = smov 24  }
  0x28   :  { %s12134_s21 = sld [smem:[%s15009_s0 + %s11938_s28]]   ;;  %s11942_s28 = smov 25  }
  0x29   :  { %s12139_s13 = sld [smem:[%s15009_s0 + %s11939_s7]]   ;;  %s11943_s7 = smov 26  }
  0x2a   :  { %s12144_s29 = sld [smem:[%s15009_s0 + %s11940_s15]]   ;;  %s11944_s15 = smov 27  }
  0x2b   :  { %15100 = sst [smem:[#allocation71_spill]] %s12119_s9 }
  0x2c   :  { %15101 = sst [smem:[#allocation72_spill]] %s12124_s25 }
  0x2d   :  { %s12149_s3 = sld [smem:[%s15009_s0 + %s11941_s22]]   ;;  %s11945_s22 = smov 28  }
  0x2e   :  { %s12154_s8 = sld [smem:[%s15009_s0 + %s11942_s28]]   ;;  %s11946_s28 = smov 29  }
  0x2f   :  { %s12159_s14 = sld [smem:[%s15009_s0 + %s11943_s7]]   ;;  %s11947_s7 = smov 30  }
  0x30   :  { %s12164_s4 = sld [smem:[%s15009_s0 + %s11944_s15]]   ;;  %s11948_s15 = smov 31  }
  0x31   :  { %s12169_s9 = sld [smem:[%s15009_s0 + %s11945_s22]]   ;;  %s11949_s22 = smov 32  }
  0x32   :  { %s12174_s20 = sld [smem:[%s15009_s0 + %s11946_s28]]   ;;  %s11950_s28 = smov 33  }
  0x33   :  { %15102 = sst [smem:[#allocation73_spill]] %s12149_s3 }
  0x34   :  { %15103 = sst [smem:[#allocation74_spill]] %s12154_s8 }
  0x35   :  { %15104 = sst [smem:[#allocation75_spill]] %s12159_s14 }
  0x36   :  { %15105 = sst [smem:[#allocation76_spill]] %s12164_s4 }
  0x37   :  { %15106 = sst [smem:[#allocation77_spill]] %s12169_s9 }
  0x38   :  { %15107 = sst [smem:[#allocation78_spill]] %s12174_s20 }
  0x39   :  { %s12179_s27 = sld [smem:[%s15009_s0 + %s11947_s7]]   ;;  %s11951_s7 = smov 34  }
  0x3a   :  { %s12184_s4 = sld [smem:[%s15009_s0 + %s11948_s15]]   ;;  %s11952_s15 = smov 35  }
  0x3b   :  { %s12189_s3 = sld [smem:[%s15009_s0 + %s11949_s22]]   ;;  %s11953_s22 = smov 36  }
  0x3c   :  { %s12194_s20 = sld [smem:[%s15009_s0 + %s11950_s28]]   ;;  %s11954_s28 = smov 37  }
  0x3d   :  { %s12199_s12 = sld [smem:[%s15009_s0 + %s11951_s7]]   ;;  %s11955_s7 = smov 38  }
  0x3e   :  { %s12209_s25 = sld [smem:[%s15009_s0 + %s11953_s22]]   ;;  %s11957_s22 = smov 40  }
  0x3f   :  { %15108 = sst [smem:[#allocation79_spill]] %s12179_s27 }
  0x40   :  { %15109 = sst [smem:[#allocation80_spill]] %s12184_s4 }
  0x41   :  { %15110 = sst [smem:[#allocation81_spill]] %s12189_s3 }
  0x42   :  { %15111 = sst [smem:[#allocation82_spill]] %s12194_s20 }
  0x43   :  { %15112 = sst [smem:[#allocation83_spill]] %s12199_s12 }
  0x44   :  { %s12204_s4 = sld [smem:[%s15009_s0 + %s11952_s15]]   ;;  %s11956_s15 = smov 39  }
  0x45   :  { %s12214_s14 = sld [smem:[%s15009_s0 + %s11954_s28]]   ;;  %s11958_s28 = smov 41  }
  0x46   :  { %s12219_s24 = sld [smem:[%s15009_s0 + %s11955_s7]]   ;;  %s11959_s7 = smov 42  }
  0x47   :  { %s12224_s30 = sld [smem:[%s15009_s0 + %s11956_s15]]   ;;  %s11960_s15 = smov 43  }
  0x48   :  { %s12229_s19 = sld [smem:[%s15009_s0 + %s11957_s22]]   ;;  %s11961_s22 = smov 44  }
  0x49   :  { %s12239_s5 = sld [smem:[%s15009_s0 + %s11959_s7]]   ;;  %s11963_s7 = smov 46  }
  0x4a   :  { %15113 = sst [smem:[#allocation84_spill]] %s12204_s4 }
  0x4b   :  { %15114 = sst [smem:[#allocation85_spill]] %s12214_s14 }
  0x4c   :  { %15115 = sst [smem:[#allocation86_spill]] %s12219_s24 }
  0x4d   :  { %15116 = sst [smem:[#allocation87_spill]] %s12224_s30 }
  0x4e   :  { %15117 = sst [smem:[#allocation88_spill]] %s12229_s19 }
  0x4f   :  { %s12234_s14 = sld [smem:[%s15009_s0 + %s11958_s28]]   ;;  %s11962_s28 = smov 45  }
  0x50   :  { %15119 = sst [smem:[#allocation90_spill]] %s12239_s5 }
  0x51   :  { %s12244_s30 = sld [smem:[%s15009_s0 + %s11960_s15]]   ;;  %s11964_s15 = smov 47  }
  0x52   :  { %s12249_s19 = sld [smem:[%s15009_s0 + %s11961_s22]]   ;;  %s11965_s22 = smov 48  }
  0x53   :  { %s12259_s5 = sld [smem:[%s15009_s0 + %s11963_s7]]   ;;  %s11967_s7 = smov 50  }
  0x54   :  { %s12264_s6 = sld [smem:[%s15009_s0 + %s11964_s15]]   ;;  %s11968_s15 = smov 51  }
  0x55   :  { %15118 = sst [smem:[#allocation89_spill]] %s12234_s14 }
  0x56   :  { %s12254_s14 = sld [smem:[%s15009_s0 + %s11962_s28]]   ;;  %s11966_s28 = smov 49  }
  0x57   :  { %s12279_s24 = sld [smem:[%s15009_s0 + %s11967_s7]]   ;;  %s11971_s7 = smov 54  }
  0x58   :  { %15120 = sst [smem:[#allocation91_spill]] %s12249_s19 }
  0x59   :  { %15122 = sst [smem:[#allocation93_spill]] %s12259_s5 }
  0x5a   :  { %15123 = sst [smem:[#allocation94_spill]] %s12264_s6 }
  0x5b   :  { %s12269_s19 = sld [smem:[%s15009_s0 + %s11965_s22]]   ;;  %s11969_s22 = smov 52  }
  0x5c   :  { %15121 = sst [smem:[#allocation92_spill]] %s12254_s14 }
  0x5d   :  { %s12274_s14 = sld [smem:[%s15009_s0 + %s11966_s28]]   ;;  %s11970_s28 = smov 53  }
  0x5e   :  { %15125 = sst [smem:[#allocation96_spill]] %s12279_s24 }
  0x5f   :  { %s12284_s6 = sld [smem:[%s15009_s0 + %s11968_s15]]   ;;  %s11972_s15 = smov 55  }
  0x60   :  { %s12289_s4 = sld [smem:[%s15009_s0 + %s11969_s22]]   ;;  %s11973_s22 = smov 56  }
  0x61   :  { %s12299_s24 = sld [smem:[%s15009_s0 + %s11971_s7]]   ;;  %s11975_s7 = smov 58  }
  0x63   :  { %15124 = sst [smem:[#allocation95_spill]] %s12274_s14 }
  0x64   :  { %s12294_s14 = sld [smem:[%s15009_s0 + %s11970_s28]]   ;;  %s11974_s28 = smov 57  }
  0x65   :  { %15126 = sst [smem:[#allocation97_spill]] %s12284_s6 }
  0x66   :  { %15127 = sst [smem:[#allocation98_spill]] %s12289_s4 }
  0x67   :  { %15129 = sst [smem:[#allocation100_spill]] %s12299_s24 }
  0x68   :  { %s12304_s6 = sld [smem:[%s15009_s0 + %s11972_s15]]   ;;  %s11976_s15 = smov 59  }
  0x69   :  { %s12309_s4 = sld [smem:[%s15009_s0 + %s11973_s22]]   ;;  %s11977_s22 = smov 60  }
  0x6a   :  { %15128 = sst [smem:[#allocation99_spill]] %s12294_s14 }
  0x6b   :  { %s12314_s14 = sld [smem:[%s15009_s0 + %s11974_s28]]   ;;  %s11978_s28 = smov 61  }
  0x6c   :  { %s12319_s24 = sld [smem:[%s15009_s0 + %s11975_s7]]   ;;  %s11979_s7 = smov 62  }
  0x6d   :  { %s12329_s20 = sld [smem:[%s15009_s0 + %s11977_s22]]   ;;  %s11981_s22 = smov 64  }
  0x6e   :  { %15130 = sst [smem:[#allocation101_spill]] %s12304_s6 }
  0x6f   :  { %15131 = sst [smem:[#allocation102_spill]] %s12309_s4 }
  0x70   :  { %s12324_s6 = sld [smem:[%s15009_s0 + %s11976_s15]]   ;;  %s11980_s15 = smov 63  }
  0x71   :  { %15132 = sst [smem:[#allocation103_spill]] %s12314_s14 }
  0x72   :  { %15133 = sst [smem:[#allocation104_spill]] %s12319_s24 }
  0x73   :  { %15135 = sst [smem:[#allocation106_spill]] %s12329_s20 }
  0x74   :  { %s12334_s14 = sld [smem:[%s15009_s0 + %s11978_s28]]   ;;  %s11982_s28 = smov 65  }
  0x75   :  { %s12339_s24 = sld [smem:[%s15009_s0 + %s11979_s7]]   ;;  %s11983_s7 = smov 66  }
  0x76   :  { %15134 = sst [smem:[#allocation105_spill]] %s12324_s6 }
  0x77   :  { %s12344_s27 = sld [smem:[%s15009_s0 + %s11980_s15]]  }
  0x78   :  { %s12349_s20 = sld [smem:[%s15009_s0 + %s11981_s22]]  }
  0x79   :  { %s12354_s8 = sld [smem:[%s15009_s0 + %s11982_s28]]  }
  0x7b   :  { %15136 = sst [smem:[#allocation107_spill]] %s12339_s24 }
  0x7c   :  { %s12359_s24 = sld [smem:[%s15009_s0 + %s11983_s7]]  }
  0x7d   :  { %138 = vsyncpa [#allocation3], 0 }
  0x7e   :  { %139 = vsyncpa [#allocation5], 0 }
  0x7f   :  { %140 = vsyncpa [#allocation8], 0 }
  0x80   :  { %141 = vsyncpa [#allocation11], 0 }
  0x81   :  { %142 = vsyncpa [#allocation14], 0 }
  0x82   :  { %143 = vsyncpa [#allocation17], 0 }
  0x83   :  { %144 = vsyncpa [#allocation20], 0 }
  0x84   :  { %145 = vsyncpa [#allocation23], 0 }
  0x85   :  { %146 = vsyncpa [#allocation26], 0 }
  0x86   :  { %147 = vsyncpa [#allocation29], 0 }
  0x87   :  { %148 = vsyncpa [#allocation32], 0 }
  0x88   :  { %149 = vsyncpa [#allocation35], 0 }
  0x89   :  { %150 = vsyncpa [#allocation38], 0  ;;  %s12361_s15 = smov 0  }
  0x8a LB: > { %s15137_s12 = sld [smem:[#allocation83_spill]]  ;;  %s12367_s0 = sadd.s32 4294967295, %s11916_s15   ;;  %s11916_s15 = sphi %s12361_s15, %s156_s15  }
  0x8b   : > { %s15138_s9 = sld [smem:[#allocation77_spill]]  ;;  %p9475_p0 = scmp.ge.s32.totalorder %s11916_s15, 1 }
  0x8c   : > { %s15139_s6 = sld [smem:[#allocation105_spill]]  ;;  %p1578_p1 = scmp.lt.s32.totalorder %s11916_s15, 3 }
  0x8d   : > { %s15140_s5 = sld [smem:[#allocation93_spill]] }
  0x8e   : > { %s15141_s4 = sld [smem:[#allocation102_spill]]  ;;  %p12371_p2 = pnand %p9475_p0, %p1578_p1 }
  0x8f   : > { %s15142_s3 = sld [smem:[#allocation81_spill]]  ;;  %p10344_p3 = scmp.eq.s32.totalorder (!%p12371_p2), %s12367_s0, 0 }
  0x90   : > { %1582 = sbr.rel (%p12371_p2) target bundleno = 469 (0x1d5), region = 12  ;;  %s1659_s18 = sshll.u32 (!%p12371_p2), %s12134_s21, 4  ;;  %s1660_s18 = int_to_ptr.hbm [resolvable:$true] %s1659_s18 }
  0x91   : > { %s11984_s22 = smov (!%p12371_p2), [#allocation4]   ;;  %s1683_s26 = sshll.u32 (!%p12371_p2), %s12144_s29, 4  ;;  %s12380_s26 = int_to_ptr.hbm [resolvable:$true] %s1683_s26 }
  0x92   : > { %s1661_s23 = sshll.u32 (!%p12371_p2), %s11984_s22, 4  ;;  %s11158_s28 = sshra.s32 (!%p12371_p2), %s1660_s18, 4  ;;  %s1662_s23 = int_to_ptr.vmem [resolvable:$true] %s1661_s23  ;;  %s11159_s28 = int_to_ptr.hbm [resolvable:$true] %s11158_s28 }
  0x93   : > { %s11160_s1 = scalar_lea.hbm (!%p12371_p2), %s11159_s28, 1  ;;  %s11164_s2 = scalar_lea.hbm (!%p12371_p2), %s12134_s21, 1 }
  0x94   : > { %p11161_p4 = scmp.ne.s32.totalorder (!%p12371_p2), %s11159_s28, %s11160_s1  ;;  %p11165_p7 = scmp.lt.s32.totalorder (!%p12371_p2), %s11159_s28, %s12134_s21 }
  0x95   : > { %p11166_p8 = scmp.lt.s32.totalorder %s11164_s2, %s11160_s1 }
  0x96   : > { %p11162_p5 = pnand %p11161_p4, %p10344_p3 }
  0x97   : > { %p11167_p9 = por %p11166_p8, %p11165_p7 }
  0x98   : > { %p11163_p6 = pneg %p11162_p5 }
  0x9a   : > { %p11168_p10 = pnand %p11167_p9, %p11163_p6 }
  0x9c   : > { %11171 = shalt.err (!%p11168_p10)
}
  0x9d   : > { %10247 = dma.hbm_to_vmem [thread:$0]  (%p10344_p3), %s1660_s18, 16, %s1662_s23, [#allocation5]  }
  0x9e   : > { %s1716_s7 = sshll.u32 %s15138_s9, 4  ;;  %s11985_s10 = smov [#allocation7]   ;;  %s12389_s7 = int_to_ptr.hbm [resolvable:$true] %s1716_s7 }
  0x9f   : > { %s1685_s11 = sshll.u32 %s11985_s10, 4  ;;  %s11186_s22 = sshra.s32 %s12380_s26, 4  ;;  %s1686_s11 = int_to_ptr.vmem [resolvable:$true] %s1685_s11  ;;  %s11187_s22 = int_to_ptr.hbm [resolvable:$true] %s11186_s22 }
  0xa0   : > { %s11188_s28 = scalar_lea.hbm %s11187_s22, 1  ;;  %s11192_s1 = scalar_lea.hbm %s12144_s29, 1 }
  0xa1   : > { %p11189_p11 = scmp.ne.s32.totalorder %s11187_s22, %s11188_s28  ;;  %p11193_p0 = scmp.lt.s32.totalorder %s11187_s22, %s12144_s29 }
  0xa2   : > { %p11194_p1 = scmp.lt.s32.totalorder %s11192_s1, %s11188_s28 }
  0xa3   : > { %p11190_p12 = pnand %p11189_p11, %p10344_p3 }
  0xa4   : > { %p11195_p4 = por %p11194_p1, %p11193_p0 }
  0xa5   : > { %p11191_p13 = pneg %p11190_p12 }
  0xa7   : > { %p11196_p5 = pnand %p11195_p4, %p11191_p13 }
  0xa9   : > { %11199 = shalt.err (!%p11196_p5)
}
  0xaa   : > { %10251 = dma.hbm_to_vmem [thread:$0]  (%p10344_p3), %s12380_s26, 16, %s1686_s11, [#allocation8]  }
  0xab   : > { %s11986_s18 = smov [#allocation10]   ;;  %s1746_s2 = sshll.u32 %s15142_s3, 4  ;;  %s12400_s2 = int_to_ptr.hbm [resolvable:$true] %s1746_s2 }
  0xac   : > { %s1718_s23 = sshll.u32 %s11986_s18, 4  ;;  %s11214_s10 = sshra.s32 %s12389_s7, 4  ;;  %s1719_s23 = int_to_ptr.vmem [resolvable:$true] %s1718_s23  ;;  %s11215_s10 = int_to_ptr.hbm [resolvable:$true] %s11214_s10 }
  0xad   : > { %s11216_s22 = scalar_lea.hbm %s11215_s10, 1  ;;  %s11220_s28 = scalar_lea.hbm %s15138_s9, 1 }
  0xae   : > { %p11217_p6 = scmp.ne.s32.totalorder %s11215_s10, %s11216_s22  ;;  %p11221_p9 = scmp.lt.s32.totalorder %s11215_s10, %s15138_s9 }
  0xaf   : > { %p11222_p10 = scmp.lt.s32.totalorder %s11220_s28, %s11216_s22 }
  0xb0   : > { %p11218_p7 = pnand %p11217_p6, %p10344_p3 }
  0xb1   : > { %p11223_p11 = por %p11222_p10, %p11221_p9 }
  0xb2   : > { %p11219_p8 = pneg %p11218_p7 }
  0xb4   : > { %p11224_p12 = pnand %p11223_p11, %p11219_p8 }
  0xb6   : > { %11227 = shalt.err (!%p11224_p12)
}
  0xb7   : > { %10255 = dma.hbm_to_vmem [thread:$0]  (%p10344_p3), %s12389_s7, 16, %s1719_s23, [#allocation11]  }
  0xb8   : > { %s1770_s26 = sshll.u32 %s15137_s12, 4  ;;  %s11987_s11 = smov [#allocation13]   ;;  %s12411_s26 = int_to_ptr.hbm [resolvable:$true] %s1770_s26 }
  0xb9   : > { %s1748_s1 = sshll.u32 %s11987_s11, 4  ;;  %s11242_s18 = sshra.s32 %s12400_s2, 4  ;;  %s1749_s1 = int_to_ptr.vmem [resolvable:$true] %s1748_s1  ;;  %s11243_s18 = int_to_ptr.hbm [resolvable:$true] %s11242_s18 }
  0xba   : > { %s11244_s10 = scalar_lea.hbm %s11243_s18, 1  ;;  %s11248_s22 = scalar_lea.hbm %s15142_s3, 1 }
  0xbb   : > { %p11245_p13 = scmp.ne.s32.totalorder %s11243_s18, %s11244_s10  ;;  %p11249_p4 = scmp.lt.s32.totalorder %s11243_s18, %s15142_s3 }
  0xbc   : > { %p11250_p5 = scmp.lt.s32.totalorder %s11248_s22, %s11244_s10 }
  0xbd   : > { %p11246_p0 = pnand %p11245_p13, %p10344_p3 }
  0xbe   : > { %p11251_p6 = por %p11250_p5, %p11249_p4 }
  0xbf   : > { %p11247_p1 = pneg %p11246_p0 }
  0xc1   : > { %p11252_p7 = pnand %p11251_p6, %p11247_p1 }
  0xc3   : > { %11255 = shalt.err (!%p11252_p7)
}
  0xc4   : > { %10259 = dma.hbm_to_vmem [thread:$0]  (%p10344_p3), %s12400_s2, 16, %s1749_s1, [#allocation14]  }
  0xc5   : > { %s11988_s7 = smov [#allocation16]   ;;  %s1794_s28 = sshll.u32 %s12209_s25, 4  ;;  %s12422_s28 = int_to_ptr.hbm [resolvable:$true] %s1794_s28 }
  0xc6   : > { %s1772_s23 = sshll.u32 %s11988_s7, 4  ;;  %s11270_s11 = sshra.s32 %s12411_s26, 4  ;;  %s1773_s23 = int_to_ptr.vmem [resolvable:$true] %s1772_s23  ;;  %s11271_s11 = int_to_ptr.hbm [resolvable:$true] %s11270_s11 }
  0xc7   : > { %s11272_s18 = scalar_lea.hbm %s11271_s11, 1  ;;  %s11276_s10 = scalar_lea.hbm %s15137_s12, 1 }
  0xc8   : > { %p11273_p8 = scmp.ne.s32.totalorder %s11271_s11, %s11272_s18  ;;  %p11277_p11 = scmp.lt.s32.totalorder %s11271_s11, %s15137_s12 }
  0xc9   : > { %p11278_p12 = scmp.lt.s32.totalorder %s11276_s10, %s11272_s18 }
  0xca   : > { %p11274_p9 = pnand %p11273_p8, %p10344_p3 }
  0xcb   : > { %p11279_p13 = por %p11278_p12, %p11277_p11 }
  0xcc   : > { %p11275_p10 = pneg %p11274_p9 }
  0xce   : > { %p11280_p0 = pnand %p11279_p13, %p11275_p10 }
  0xd0   : > { %11283 = shalt.err (!%p11280_p0)
}
  0xd1   : > { %10263 = dma.hbm_to_vmem [thread:$0]  (%p10344_p3), %s12411_s26, 16, %s1773_s23, [#allocation17]  }
  0xd2   : > { %s1833_s2 = sshll.u32 %s12244_s30, 4  ;;  %s11989_s1 = smov [#allocation19]   ;;  %s12433_s2 = int_to_ptr.hbm [resolvable:$true] %s1833_s2 }
  0xd3   : > { %s1796_s22 = sshll.u32 %s11989_s1, 4  ;;  %s11298_s7 = sshra.s32 %s12422_s28, 4  ;;  %s1797_s22 = int_to_ptr.vmem [resolvable:$true] %s1796_s22  ;;  %s11299_s7 = int_to_ptr.hbm [resolvable:$true] %s11298_s7 }
  0xd4   : > { %s11300_s11 = scalar_lea.hbm %s11299_s7, 1  ;;  %s11304_s18 = scalar_lea.hbm %s12209_s25, 1 }
  0xd5   : > { %p11301_p1 = scmp.ne.s32.totalorder %s11299_s7, %s11300_s11  ;;  %p11305_p6 = scmp.lt.s32.totalorder %s11299_s7, %s12209_s25 }
  0xd6   : > { %p11306_p7 = scmp.lt.s32.totalorder %s11304_s18, %s11300_s11 }
  0xd7   : > { %p11302_p4 = pnand %p11301_p1, %p10344_p3 }
  0xd8   : > { %p11307_p8 = por %p11306_p7, %p11305_p6 }
  0xd9   : > { %p11303_p5 = pneg %p11302_p4 }
  0xdb   : > { %p11308_p9 = pnand %p11307_p8, %p11303_p5 }
  0xdd   : > { %11311 = shalt.err (!%p11308_p9)
}
  0xde   : > { %10267 = dma.hbm_to_vmem [thread:$0]  (%p10344_p3), %s12422_s28, 16, %s1797_s22, [#allocation20]  }
  0xdf   : > { %s11990_s26 = smov [#allocation22]   ;;  %s1860_s10 = sshll.u32 %s15140_s5, 4  ;;  %s12444_s10 = int_to_ptr.hbm [resolvable:$true] %s1860_s10 }
  0xe0   : > { %s1835_s23 = sshll.u32 %s11990_s26, 4  ;;  %s11326_s1 = sshra.s32 %s12433_s2, 4  ;;  %s1836_s23 = int_to_ptr.vmem [resolvable:$true] %s1835_s23  ;;  %s11327_s1 = int_to_ptr.hbm [resolvable:$true] %s11326_s1 }
  0xe1   : > { %s11328_s7 = scalar_lea.hbm %s11327_s1, 1  ;;  %s11332_s11 = scalar_lea.hbm %s12244_s30, 1 }
  0xe2   : > { %p11329_p10 = scmp.ne.s32.totalorder %s11327_s1, %s11328_s7  ;;  %p11333_p13 = scmp.lt.s32.totalorder %s11327_s1, %s12244_s30 }
  0xe3   : > { %p11334_p0 = scmp.lt.s32.totalorder %s11332_s11, %s11328_s7 }
  0xe4   : > { %p11330_p11 = pnand %p11329_p10, %p10344_p3 }
  0xe5   : > { %p11335_p1 = por %p11334_p0, %p11333_p13 }
  0xe6   : > { %p11331_p12 = pneg %p11330_p11 }
  0xe8   : > { %p11336_p4 = pnand %p11335_p1, %p11331_p12 }
  0xea   : > { %11339 = shalt.err (!%p11336_p4)
}
  0xeb   : > { %10271 = dma.hbm_to_vmem [thread:$0]  (%p10344_p3), %s12433_s2, 16, %s1836_s23, [#allocation23]  }
  0xec   : > { %s1884_s28 = sshll.u32 %s12269_s19, 4  ;;  %s11991_s22 = smov [#allocation25]   ;;  %s12455_s28 = int_to_ptr.hbm [resolvable:$true] %s1884_s28 }
  0xed   : > { %s1862_s18 = sshll.u32 %s11991_s22, 4  ;;  %s11354_s26 = sshra.s32 %s12444_s10, 4  ;;  %s1863_s18 = int_to_ptr.vmem [resolvable:$true] %s1862_s18  ;;  %s11355_s26 = int_to_ptr.hbm [resolvable:$true] %s11354_s26 }
  0xee   : > { %s11356_s1 = scalar_lea.hbm %s11355_s26, 1  ;;  %s11360_s7 = scalar_lea.hbm %s15140_s5, 1 }
  0xef   : > { %p11357_p5 = scmp.ne.s32.totalorder %s11355_s26, %s11356_s1  ;;  %p11361_p8 = scmp.lt.s32.totalorder %s11355_s26, %s15140_s5 }
  0xf0   : > { %p11362_p9 = scmp.lt.s32.totalorder %s11360_s7, %s11356_s1 }
  0xf1   : > { %p11358_p6 = pnand %p11357_p5, %p10344_p3 }
  0xf2   : > { %p11363_p10 = por %p11362_p9, %p11361_p8 }
  0xf3   : > { %p11359_p7 = pneg %p11358_p6 }
  0xf5   : > { %p11364_p11 = pnand %p11363_p10, %p11359_p7 }
  0xf7   : > { %11367 = shalt.err (!%p11364_p11)
}
  0xf8   : > { %10275 = dma.hbm_to_vmem [thread:$0]  (%p10344_p3), %s12444_s10, 16, %s1863_s18, [#allocation26]  }
  0xf9   : > { %s11992_s2 = smov [#allocation28]   ;;  %s1926_s11 = sshll.u32 %s15141_s4, 4  ;;  %s12466_s11 = int_to_ptr.hbm [resolvable:$true] %s1926_s11 }
  0xfa   : > { %s1886_s23 = sshll.u32 %s11992_s2, 4  ;;  %s11382_s22 = sshra.s32 %s12455_s28, 4  ;;  %s1887_s23 = int_to_ptr.vmem [resolvable:$true] %s1886_s23  ;;  %s11383_s22 = int_to_ptr.hbm [resolvable:$true] %s11382_s22 }
  0xfb   : > { %s11384_s26 = scalar_lea.hbm %s11383_s22, 1  ;;  %s11388_s1 = scalar_lea.hbm %s12269_s19, 1 }
  0xfc   : > { %p11385_p12 = scmp.ne.s32.totalorder %s11383_s22, %s11384_s26  ;;  %p11389_p1 = scmp.lt.s32.totalorder %s11383_s22, %s12269_s19 }
  0xfd   : > { %p11390_p4 = scmp.lt.s32.totalorder %s11388_s1, %s11384_s26 }
  0xfe   : > { %p11386_p13 = pnand %p11385_p12, %p10344_p3 }
  0xff   : > { %p11391_p5 = por %p11390_p4, %p11389_p1 }
 0x100   : > { %p11387_p0 = pneg %p11386_p13 }
 0x102   : > { %p11392_p6 = pnand %p11391_p5, %p11387_p0 }
 0x104   : > { %11395 = shalt.err (!%p11392_p6)
}
 0x105   : > { %10279 = dma.hbm_to_vmem [thread:$0]  (%p10344_p3), %s12455_s28, 16, %s1887_s23, [#allocation29]  }
 0x106   : > { %s1953_s10 = sshll.u32 %s15139_s6, 4  ;;  %s11993_s18 = smov [#allocation31]   ;;  %s12477_s10 = int_to_ptr.hbm [resolvable:$true] %s1953_s10 }
 0x107   : > { %s1928_s7 = sshll.u32 %s11993_s18, 4  ;;  %s11410_s2 = sshra.s32 %s12466_s11, 4  ;;  %s1929_s7 = int_to_ptr.vmem [resolvable:$true] %s1928_s7  ;;  %s11411_s2 = int_to_ptr.hbm [resolvable:$true] %s11410_s2 }
 0x108   : > { %s11412_s22 = scalar_lea.hbm %s11411_s2, 1  ;;  %s11416_s26 = scalar_lea.hbm %s15141_s4, 1 }
 0x109   : > { %p11413_p7 = scmp.ne.s32.totalorder %s11411_s2, %s11412_s22  ;;  %p11417_p10 = scmp.lt.s32.totalorder %s11411_s2, %s15141_s4 }
 0x10a   : > { %p11418_p11 = scmp.lt.s32.totalorder %s11416_s26, %s11412_s22 }
 0x10b   : > { %p11414_p8 = pnand %p11413_p7, %p10344_p3 }
 0x10c   : > { %p11419_p12 = por %p11418_p11, %p11417_p10 }
 0x10d   : > { %p11415_p9 = pneg %p11414_p8 }
 0x10f   : > { %p11420_p13 = pnand %p11419_p12, %p11415_p9 }
 0x111   : > { %11423 = shalt.err (!%p11420_p13)
}
 0x112   : > { %10283 = dma.hbm_to_vmem [thread:$0]  (%p10344_p3), %s12466_s11, 16, %s1929_s7, [#allocation32]  }
 0x113   : > { %s11994_s28 = smov [#allocation34]   ;;  %s1977_s1 = sshll.u32 %s12334_s14, 4  ;;  %s12488_s1 = int_to_ptr.hbm [resolvable:$true] %s1977_s1 }
 0x114   : > { %s1955_s23 = sshll.u32 %s11994_s28, 4  ;;  %s11438_s18 = sshra.s32 %s12477_s10, 4  ;;  %s1956_s23 = int_to_ptr.vmem [resolvable:$true] %s1955_s23  ;;  %s11439_s18 = int_to_ptr.hbm [resolvable:$true] %s11438_s18 }
 0x115   : > { %s11440_s2 = scalar_lea.hbm %s11439_s18, 1  ;;  %s11444_s22 = scalar_lea.hbm %s15139_s6, 1 }
 0x116   : > { %p11441_p0 = scmp.ne.s32.totalorder %s11439_s18, %s11440_s2  ;;  %p11445_p5 = scmp.lt.s32.totalorder %s11439_s18, %s15139_s6 }
 0x117   : > { %p11446_p6 = scmp.lt.s32.totalorder %s11444_s22, %s11440_s2 }
 0x118   : > { %p11442_p1 = pnand %p11441_p0, %p10344_p3 }
 0x119   : > { %p11447_p7 = por %p11446_p6, %p11445_p5 }
 0x11a   : > { %p11443_p4 = pneg %p11442_p1 }
 0x11c   : > { %p11448_p8 = pnand %p11447_p7, %p11443_p4 }
 0x11e   : > { %11451 = shalt.err (!%p11448_p8)
}
 0x11f   : > { %10287 = dma.hbm_to_vmem [thread:$0]  (%p10344_p3), %s12477_s10, 16, %s1956_s23, [#allocation35]  }
 0x120   : > { %s11995_s11 = smov [#allocation37]   ;;  %s1647_s26 = sshll.u32 %s12129_s17, 4  ;;  %s12499_s26 = int_to_ptr.hbm [resolvable:$true] %s1647_s26 }
 0x121   : > { %s1979_s7 = sshll.u32 %s11995_s11, 4  ;;  %s11466_s28 = sshra.s32 %s12488_s1, 4  ;;  %s1980_s7 = int_to_ptr.vmem [resolvable:$true] %s1979_s7  ;;  %s11467_s28 = int_to_ptr.hbm [resolvable:$true] %s11466_s28 }
 0x122   : > { %s11468_s18 = scalar_lea.hbm %s11467_s28, 1  ;;  %s11472_s2 = scalar_lea.hbm %s12334_s14, 1 }
 0x123   : > { %p11469_p9 = scmp.ne.s32.totalorder %s11467_s28, %s11468_s18  ;;  %p11473_p12 = scmp.lt.s32.totalorder %s11467_s28, %s12334_s14 }
 0x124   : > { %p11474_p13 = scmp.lt.s32.totalorder %s11472_s2, %s11468_s18 }
 0x125   : > { %p11470_p10 = pnand %p11469_p9, %p10344_p3 }
 0x126   : > { %p11475_p0 = por %p11474_p13, %p11473_p12 }
 0x127   : > { %p11471_p11 = pneg %p11470_p10 }
 0x129   : > { %p11476_p1 = pnand %p11475_p0, %p11471_p11 }
 0x12b   : > { %11479 = shalt.err (!%p11476_p1)
}
 0x12c   : > { %10291 = dma.hbm_to_vmem [thread:$0]  (%p10344_p3), %s12488_s1, 16, %s1980_s7, [#allocation38]  }
 0x12d   : > { %s1671_s10 = sshll.u32 %s12139_s13, 4  ;;  %s11996_s23 = smov [#allocation2]   ;;  %s12510_s10 = int_to_ptr.hbm [resolvable:$true] %s1671_s10 }
 0x12e   : > { %s1649_s22 = sshll.u32 %s11996_s23, 4  ;;  %s11494_s11 = sshra.s32 %s12499_s26, 4  ;;  %s1650_s22 = int_to_ptr.vmem [resolvable:$true] %s1649_s22  ;;  %s11495_s11 = int_to_ptr.hbm [resolvable:$true] %s11494_s11 }
 0x12f   : > { %s11496_s28 = scalar_lea.hbm %s11495_s11, 1  ;;  %s11500_s18 = scalar_lea.hbm %s12129_s17, 1 }
 0x130   : > { %p11497_p4 = scmp.ne.s32.totalorder %s11495_s11, %s11496_s28  ;;  %p11501_p7 = scmp.lt.s32.totalorder %s11495_s11, %s12129_s17 }
 0x131   : > { %p11502_p8 = scmp.lt.s32.totalorder %s11500_s18, %s11496_s28 }
 0x132   : > { %p11498_p5 = pnand %p11497_p4, %p10344_p3 }
 0x133   : > { %p11503_p9 = por %p11502_p8, %p11501_p7 }
 0x134   : > { %p11499_p6 = pneg %p11498_p5 }
 0x136   : > { %p11504_p10 = pnand %p11503_p9, %p11499_p6 }
 0x138   : > { %11507 = shalt.err (!%p11504_p10)
}
 0x139   : > { %s15144_s1 = sld [smem:[#allocation74_spill]]  ;;  %s11997_s7 = smov [#allocation6]  }
 0x13a   : > { %10245 = dma.hbm_to_vmem [thread:$0]  (%p10344_p3), %s12499_s26, 16, %s1650_s22, [#allocation3]  }
 0x13b   : > { %s1673_s2 = sshll.u32 %s11997_s7, 4  ;;  %s11522_s11 = sshra.s32 %s12510_s10, 4  ;;  %s1674_s2 = int_to_ptr.vmem [resolvable:$true] %s1673_s2  ;;  %s11523_s11 = int_to_ptr.hbm [resolvable:$true] %s11522_s11 }
 0x13c   : > { %s11524_s28 = scalar_lea.hbm %s11523_s11, 1  ;;  %s11528_s18 = scalar_lea.hbm %s12139_s13, 1 }
 0x13d   : > { %p11525_p11 = scmp.ne.s32.totalorder %s11523_s11, %s11524_s28  ;;  %p11529_p0 = scmp.lt.s32.totalorder %s11523_s11, %s12139_s13 }
 0x13e   : > { %p11530_p1 = scmp.lt.s32.totalorder %s11528_s18, %s11524_s28 }
 0x13f   : > { %s1698_s23 = sshll.u32 %s15144_s1, 4  ;;  %p11526_p12 = pnand %p11525_p11, %p10344_p3  ;;  %s12521_s23 = int_to_ptr.hbm [resolvable:$true] %s1698_s23 }
 0x140   : > { %p11531_p4 = por %p11530_p1, %p11529_p0 }
 0x141   : > { %p11527_p13 = pneg %p11526_p12 }
 0x143   : > { %p11532_p5 = pnand %p11531_p4, %p11527_p13 }
 0x145   : > { %11535 = shalt.err (!%p11532_p5)
}
 0x146   : > { %s15145_s26 = sld [smem:[#allocation79_spill]]  ;;  %s11998_s7 = smov [#allocation9]  }
 0x147   : > { %10249 = dma.hbm_to_vmem [thread:$0]  (%p10344_p3), %s12510_s10, 16, %s1674_s2, [#allocation5]  }
 0x148   : > { %s1700_s3 = sshll.u32 %s11998_s7, 4  ;;  %s11550_s11 = sshra.s32 %s12521_s23, 4  ;;  %s1701_s3 = int_to_ptr.vmem [resolvable:$true] %s1700_s3  ;;  %s11551_s11 = int_to_ptr.hbm [resolvable:$true] %s11550_s11 }
 0x149   : > { %s11552_s28 = scalar_lea.hbm %s11551_s11, 1  ;;  %s11556_s18 = scalar_lea.hbm %s15144_s1, 1 }
 0x14a   : > { %p11553_p6 = scmp.ne.s32.totalorder %s11551_s11, %s11552_s28  ;;  %p11557_p9 = scmp.lt.s32.totalorder %s11551_s11, %s15144_s1 }
 0x14b   : > { %p11558_p10 = scmp.lt.s32.totalorder %s11556_s18, %s11552_s28 }
 0x14c   : > { %s1731_s22 = sshll.u32 %s15145_s26, 4  ;;  %p11554_p7 = pnand %p11553_p6, %p10344_p3  ;;  %s12532_s22 = int_to_ptr.hbm [resolvable:$true] %s1731_s22 }
 0x14d   : > { %p11559_p11 = por %p11558_p10, %p11557_p9 }
 0x14e   : > { %p11555_p8 = pneg %p11554_p7 }
 0x150   : > { %p11560_p12 = pnand %p11559_p11, %p11555_p8 }
 0x152   : > { %11563 = shalt.err (!%p11560_p12)
}
 0x153   : > { %s15146_s10 = sld [smem:[#allocation82_spill]]  ;;  %s11999_s2 = smov [#allocation12]  }
 0x154   : > { %10253 = dma.hbm_to_vmem [thread:$0]  (%p10344_p3), %s12521_s23, 16, %s1701_s3, [#allocation8]  }
 0x155   : > { %s1733_s7 = sshll.u32 %s11999_s2, 4  ;;  %s11578_s11 = sshra.s32 %s12532_s22, 4  ;;  %s1734_s7 = int_to_ptr.vmem [resolvable:$true] %s1733_s7  ;;  %s11579_s11 = int_to_ptr.hbm [resolvable:$true] %s11578_s11 }
 0x156   : > { %s11580_s28 = scalar_lea.hbm %s11579_s11, 1  ;;  %s11584_s18 = scalar_lea.hbm %s15145_s26, 1 }
 0x157   : > { %p11581_p13 = scmp.ne.s32.totalorder %s11579_s11, %s11580_s28  ;;  %p11585_p4 = scmp.lt.s32.totalorder %s11579_s11, %s15145_s26 }
 0x158   : > { %p11586_p5 = scmp.lt.s32.totalorder %s11584_s18, %s11580_s28 }
 0x159   : > { %s1758_s4 = sshll.u32 %s15146_s10, 4  ;;  %p11582_p0 = pnand %p11581_p13, %p10344_p3  ;;  %s12543_s4 = int_to_ptr.hbm [resolvable:$true] %s1758_s4 }
 0x15a   : > { %p11587_p6 = por %p11586_p5, %p11585_p4 }
 0x15b   : > { %p11583_p1 = pneg %p11582_p0 }
 0x15d   : > { %p11588_p7 = pnand %p11587_p6, %p11583_p1 }
 0x15f   : > { %11591 = shalt.err (!%p11588_p7)
}
 0x160   : > { %s15147_s3 = sld [smem:[#allocation84_spill]]  ;;  %s12000_s2 = smov [#allocation15]  }
 0x161   : > { %10257 = dma.hbm_to_vmem [thread:$0]  (%p10344_p3), %s12532_s22, 16, %s1734_s7, [#allocation11]  }
 0x162   : > { %s1760_s1 = sshll.u32 %s12000_s2, 4  ;;  %s11606_s11 = sshra.s32 %s12543_s4, 4  ;;  %s1761_s1 = int_to_ptr.vmem [resolvable:$true] %s1760_s1  ;;  %s11607_s11 = int_to_ptr.hbm [resolvable:$true] %s11606_s11 }
 0x163   : > { %s11608_s28 = scalar_lea.hbm %s11607_s11, 1  ;;  %s11612_s18 = scalar_lea.hbm %s15146_s10, 1 }
 0x164   : > { %p11609_p8 = scmp.ne.s32.totalorder %s11607_s11, %s11608_s28  ;;  %p11613_p11 = scmp.lt.s32.totalorder %s11607_s11, %s15146_s10 }
 0x165   : > { %p11614_p12 = scmp.lt.s32.totalorder %s11612_s18, %s11608_s28 }
 0x166   : > { %s1782_s23 = sshll.u32 %s15147_s3, 4  ;;  %p11610_p9 = pnand %p11609_p8, %p10344_p3  ;;  %s12554_s23 = int_to_ptr.hbm [resolvable:$true] %s1782_s23 }
 0x167   : > { %p11615_p13 = por %p11614_p12, %p11613_p11 }
 0x168   : > { %p11611_p10 = pneg %p11610_p9 }
 0x16a   : > { %p11616_p0 = pnand %p11615_p13, %p11611_p10 }
 0x16c   : > { %11619 = shalt.err (!%p11616_p0)
}
 0x16d   : > { %s15148_s22 = sld [smem:[#allocation86_spill]]  ;;  %s12001_s7 = smov [#allocation18]  }
 0x16e   : > { %10261 = dma.hbm_to_vmem [thread:$0]  (%p10344_p3), %s12543_s4, 16, %s1761_s1, [#allocation14]  }
 0x16f   : > { %s1784_s2 = sshll.u32 %s12001_s7, 4  ;;  %s11634_s11 = sshra.s32 %s12554_s23, 4  ;;  %s1785_s2 = int_to_ptr.vmem [resolvable:$true] %s1784_s2  ;;  %s11635_s11 = int_to_ptr.hbm [resolvable:$true] %s11634_s11 }
 0x170   : > { %s11636_s28 = scalar_lea.hbm %s11635_s11, 1  ;;  %s11640_s18 = scalar_lea.hbm %s15147_s3, 1 }
 0x171   : > { %p11637_p1 = scmp.ne.s32.totalorder %s11635_s11, %s11636_s28  ;;  %p11641_p6 = scmp.lt.s32.totalorder %s11635_s11, %s15147_s3 }
 0x172   : > { %p11642_p7 = scmp.lt.s32.totalorder %s11640_s18, %s11636_s28 }
 0x173   : > { %s1809_s5 = sshll.u32 %s15148_s22, 4  ;;  %p11638_p4 = pnand %p11637_p1, %p10344_p3  ;;  %s12565_s5 = int_to_ptr.hbm [resolvable:$true] %s1809_s5 }
 0x174   : > { %p11643_p8 = por %p11642_p7, %p11641_p6 }
 0x175   : > { %p11639_p5 = pneg %p11638_p4 }
 0x177   : > { %p11644_p9 = pnand %p11643_p8, %p11639_p5 }
 0x179   : > { %11647 = shalt.err (!%p11644_p9)
}
 0x17a   : > { %s15149_s4 = sld [smem:[#allocation92_spill]]  ;;  %s12002_s7 = smov [#allocation21]  }
 0x17b   : > { %10265 = dma.hbm_to_vmem [thread:$0]  (%p10344_p3), %s12554_s23, 16, %s1785_s2, [#allocation17]  }
 0x17c   : > { %s1811_s6 = sshll.u32 %s12002_s7, 4  ;;  %s11662_s11 = sshra.s32 %s12565_s5, 4  ;;  %s1812_s6 = int_to_ptr.vmem [resolvable:$true] %s1811_s6  ;;  %s11663_s11 = int_to_ptr.hbm [resolvable:$true] %s11662_s11 }
 0x17d   : > { %s11664_s28 = scalar_lea.hbm %s11663_s11, 1  ;;  %s11668_s18 = scalar_lea.hbm %s15148_s22, 1 }
 0x17e   : > { %p11665_p10 = scmp.ne.s32.totalorder %s11663_s11, %s11664_s28  ;;  %p11669_p13 = scmp.lt.s32.totalorder %s11663_s11, %s15148_s22 }
 0x17f   : > { %p11670_p0 = scmp.lt.s32.totalorder %s11668_s18, %s11664_s28 }
 0x180   : > { %s1848_s1 = sshll.u32 %s15149_s4, 4  ;;  %p11666_p11 = pnand %p11665_p10, %p10344_p3  ;;  %s12576_s1 = int_to_ptr.hbm [resolvable:$true] %s1848_s1 }
 0x181   : > { %p11671_p1 = por %p11670_p0, %p11669_p13 }
 0x182   : > { %p11667_p12 = pneg %p11666_p11 }
 0x184   : > { %p11672_p4 = pnand %p11671_p1, %p11667_p12 }
 0x186   : > { %11675 = shalt.err (!%p11672_p4)
}
 0x187   : > { %s15150_s23 = sld [smem:[#allocation94_spill]]  ;;  %s12003_s2 = smov [#allocation24]  }
 0x188   : > { %10269 = dma.hbm_to_vmem [thread:$0]  (%p10344_p3), %s12565_s5, 16, %s1812_s6, [#allocation20]  }
 0x189   : > { %s1850_s7 = sshll.u32 %s12003_s2, 4  ;;  %s11690_s11 = sshra.s32 %s12576_s1, 4  ;;  %s1851_s7 = int_to_ptr.vmem [resolvable:$true] %s1850_s7  ;;  %s11691_s11 = int_to_ptr.hbm [resolvable:$true] %s11690_s11 }
 0x18a   : > { %s11692_s28 = scalar_lea.hbm %s11691_s11, 1  ;;  %s11696_s18 = scalar_lea.hbm %s15149_s4, 1 }
 0x18b   : > { %p11693_p5 = scmp.ne.s32.totalorder %s11691_s11, %s11692_s28  ;;  %p11697_p8 = scmp.lt.s32.totalorder %s11691_s11, %s15149_s4 }
 0x18c   : > { %p11698_p9 = scmp.lt.s32.totalorder %s11696_s18, %s11692_s28 }
 0x18d   : > { %s1872_s3 = sshll.u32 %s15150_s23, 4  ;;  %p11694_p6 = pnand %p11693_p5, %p10344_p3  ;;  %s12587_s3 = int_to_ptr.hbm [resolvable:$true] %s1872_s3 }
 0x18e   : > { %p11699_p10 = por %p11698_p9, %p11697_p8 }
 0x18f   : > { %p11695_p7 = pneg %p11694_p6 }
 0x191   : > { %p11700_p11 = pnand %p11699_p10, %p11695_p7 }
 0x193   : > { %11703 = shalt.err (!%p11700_p11)
}
 0x194   : > { %s15151_s5 = sld [smem:[#allocation95_spill]]  ;;  %s12004_s2 = smov [#allocation27]  }
 0x195   : > { %10273 = dma.hbm_to_vmem [thread:$0]  (%p10344_p3), %s12576_s1, 16, %s1851_s7, [#allocation23]  }
 0x196   : > { %s1874_s9 = sshll.u32 %s12004_s2, 4  ;;  %s11718_s11 = sshra.s32 %s12587_s3, 4  ;;  %s1875_s9 = int_to_ptr.vmem [resolvable:$true] %s1874_s9  ;;  %s11719_s11 = int_to_ptr.hbm [resolvable:$true] %s11718_s11 }
 0x197   : > { %s11720_s28 = scalar_lea.hbm %s11719_s11, 1  ;;  %s11724_s18 = scalar_lea.hbm %s15150_s23, 1 }
 0x198   : > { %p11721_p12 = scmp.ne.s32.totalorder %s11719_s11, %s11720_s28  ;;  %p11725_p1 = scmp.lt.s32.totalorder %s11719_s11, %s15150_s23 }
 0x199   : > { %p11726_p4 = scmp.lt.s32.totalorder %s11724_s18, %s11720_s28 }
 0x19a   : > { %s1896_s6 = sshll.u32 %s15151_s5, 4  ;;  %p11722_p13 = pnand %p11721_p12, %p10344_p3  ;;  %s12598_s6 = int_to_ptr.hbm [resolvable:$true] %s1896_s6 }
 0x19b   : > { %p11727_p5 = por %p11726_p4, %p11725_p1 }
 0x19c   : > { %p11723_p0 = pneg %p11722_p13 }
 0x19e   : > { %p11728_p6 = pnand %p11727_p5, %p11723_p0 }
 0x1a0   : > { %11731 = shalt.err (!%p11728_p6)
}
 0x1a1   : > { %s15152_s1 = sld [smem:[#allocation104_spill]]  ;;  %s12005_s7 = smov [#allocation30]  }
 0x1a2   : > { %10277 = dma.hbm_to_vmem [thread:$0]  (%p10344_p3), %s12587_s3, 16, %s1875_s9, [#allocation26]  }
 0x1a3   : > { %s1898_s2 = sshll.u32 %s12005_s7, 4  ;;  %s11746_s11 = sshra.s32 %s12598_s6, 4  ;;  %s1899_s2 = int_to_ptr.vmem [resolvable:$true] %s1898_s2  ;;  %s11747_s11 = int_to_ptr.hbm [resolvable:$true] %s11746_s11 }
 0x1a4   : > { %s11748_s28 = scalar_lea.hbm %s11747_s11, 1  ;;  %s11752_s18 = scalar_lea.hbm %s15151_s5, 1 }
 0x1a5   : > { %p11749_p7 = scmp.ne.s32.totalorder %s11747_s11, %s11748_s28  ;;  %p11753_p10 = scmp.lt.s32.totalorder %s11747_s11, %s15151_s5 }
 0x1a6   : > { %p11754_p11 = scmp.lt.s32.totalorder %s11752_s18, %s11748_s28 }
 0x1a7   : > { %s1941_s4 = sshll.u32 %s15152_s1, 4  ;;  %p11750_p8 = pnand %p11749_p7, %p10344_p3  ;;  %s12609_s4 = int_to_ptr.hbm [resolvable:$true] %s1941_s4 }
 0x1a8   : > { %p11755_p12 = por %p11754_p11, %p11753_p10 }
 0x1a9   : > { %p11751_p9 = pneg %p11750_p8 }
 0x1ab   : > { %p11756_p13 = pnand %p11755_p12, %p11751_p9 }
 0x1ad   : > { %11759 = shalt.err (!%p11756_p13)
}
 0x1ae   : > { %s15153_s9 = sld [smem:[#allocation106_spill]]  ;;  %s12006_s7 = smov [#allocation33]  }
 0x1af   : > { %10281 = dma.hbm_to_vmem [thread:$0]  (%p10344_p3), %s12598_s6, 16, %s1899_s2, [#allocation29]  }
 0x1b0   : > { %s1943_s10 = sshll.u32 %s12006_s7, 4  ;;  %s11774_s11 = sshra.s32 %s12609_s4, 4  ;;  %s1944_s10 = int_to_ptr.vmem [resolvable:$true] %s1943_s10  ;;  %s11775_s11 = int_to_ptr.hbm [resolvable:$true] %s11774_s11 }
 0x1b1   : > { %s11776_s28 = scalar_lea.hbm %s11775_s11, 1  ;;  %s11780_s18 = scalar_lea.hbm %s15152_s1, 1 }
 0x1b2   : > { %p11777_p0 = scmp.ne.s32.totalorder %s11775_s11, %s11776_s28  ;;  %p11781_p5 = scmp.lt.s32.totalorder %s11775_s11, %s15152_s1 }
 0x1b3   : > { %p11782_p6 = scmp.lt.s32.totalorder %s11780_s18, %s11776_s28 }
 0x1b4   : > { %s1965_s3 = sshll.u32 %s15153_s9, 4  ;;  %p11778_p1 = pnand %p11777_p0, %p10344_p3  ;;  %s12620_s3 = int_to_ptr.hbm [resolvable:$true] %s1965_s3 }
 0x1b5   : > { %p11783_p7 = por %p11782_p6, %p11781_p5 }
 0x1b6   : > { %p11779_p4 = pneg %p11778_p1 }
 0x1b8   : > { %p11784_p8 = pnand %p11783_p7, %p11779_p4 }
 0x1ba   : > { %11787 = shalt.err (!%p11784_p8)
}
 0x1bb   : > { %s15154_s6 = sld [smem:[#allocation107_spill]]  ;;  %s12007_s2 = smov [#allocation36]  }
 0x1bc   : > { %10285 = dma.hbm_to_vmem [thread:$0]  (%p10344_p3), %s12609_s4, 16, %s1944_s10, [#allocation32]  }
 0x1bd   : > { %s1967_s7 = sshll.u32 %s12007_s2, 4  ;;  %s11802_s12 = sshra.s32 %s12620_s3, 4  ;;  %s1968_s7 = int_to_ptr.vmem [resolvable:$true] %s1967_s7  ;;  %s11803_s12 = int_to_ptr.hbm [resolvable:$true] %s11802_s12 }
 0x1be   : > { %s11804_s11 = scalar_lea.hbm %s11803_s12, 1  ;;  %s11808_s28 = scalar_lea.hbm %s15153_s9, 1 }
 0x1bf   : > { %p11805_p9 = scmp.ne.s32.totalorder %s11803_s12, %s11804_s11  ;;  %p11809_p12 = scmp.lt.s32.totalorder %s11803_s12, %s15153_s9 }
 0x1c0   : > { %p11810_p13 = scmp.lt.s32.totalorder %s11808_s28, %s11804_s11 }
 0x1c1   : > { %s1989_s5 = sshll.u32 %s15154_s6, 4  ;;  %p11806_p10 = pnand %p11805_p9, %p10344_p3  ;;  %s1990_s5 = int_to_ptr.hbm [resolvable:$true] %s1989_s5 }
 0x1c2   : > { %p11811_p0 = por %p11810_p13, %p11809_p12 }
 0x1c3   : > { %p11807_p11 = pneg %p11806_p10 }
 0x1c5   : > { %p11812_p1 = pnand %p11811_p0, %p11807_p11 }
 0x1c7   : > { %11815 = shalt.err (!%p11812_p1)
}
 0x1c8   : > { %10289 = dma.hbm_to_vmem [thread:$0]  (%p10344_p3), %s12620_s3, 16, %s1968_s7, [#allocation35]  }
 0x1c9   : > { %s12008_s10 = smov [#allocation39]   ;;  %s11830_s18 = sshra.s32 %s1990_s5, 4  ;;  %s11831_s18 = int_to_ptr.hbm [resolvable:$true] %s11830_s18 }
 0x1ca   : > { %s1991_s4 = sshll.u32 %s12008_s10, 4  ;;  %s11832_s2 = scalar_lea.hbm %s11831_s18, 1  ;;  %s1992_s4 = int_to_ptr.vmem [resolvable:$true] %s1991_s4 }
 0x1cb   : > { %p11833_p4 = scmp.ne.s32.totalorder %s11831_s18, %s11832_s2  ;;  %s11836_s12 = scalar_lea.hbm %s15154_s6, 1 }
 0x1cc   : > { %p11837_p7 = scmp.lt.s32.totalorder %s11831_s18, %s15154_s6  ;;  %p11838_p8 = scmp.lt.s32.totalorder %s11836_s12, %s11832_s2 }
 0x1cd   : > { %p11834_p5 = pnand %p11833_p4, %p10344_p3 }
 0x1ce   : > { %p11839_p9 = por %p11838_p8, %p11837_p7 }
 0x1cf   : > { %p11835_p6 = pneg %p11834_p5 }
 0x1d1   : > { %p11840_p10 = pnand %p11839_p9, %p11835_p6 }
 0x1d3   : > { %11843 = shalt.err (!%p11840_p10)
}
 0x1d4   : > { %10293 = dma.hbm_to_vmem [thread:$0]  (%p10344_p3), %s1990_s5, 16, %s1992_s4, [#allocation38]  }
 0x1d5 PF: > { %2021 = sbr.rel (%p12371_p2) target bundleno = 11363 (0x2c63), region = 284  ;;  %p10369_p11 = scmp.eq.s32.totalorder (!%p12371_p2), %s12367_s0, 0 }
 0x1da   : > { %11863 = dma.done.wait (%p10369_p11), [#allocation3], 16  }
 0x1db   : > { %11865 = vsyncadd (%p10369_p11), [#allocation3], 4294967280 }
 0x1dc   : > { %11867 = dma.done.wait (%p10369_p11), [#allocation5], 32  }
 0x1dd   : > { %11869 = vsyncadd (%p10369_p11), [#allocation5], 4294967264 }
 0x1de   : > { %11871 = dma.done.wait (%p10369_p11), [#allocation8], 32  }
 0x1df   : > { %11873 = vsyncadd (%p10369_p11), [#allocation8], 4294967264 }
 0x1e0   : > { %11875 = dma.done.wait (%p10369_p11), [#allocation11], 32  }
 0x1e1   : > { %11877 = vsyncadd (%p10369_p11), [#allocation11], 4294967264 }
 0x1e2   : > { %11879 = dma.done.wait (%p10369_p11), [#allocation14], 32  }
 0x1e3   : > { %11881 = vsyncadd (%p10369_p11), [#allocation14], 4294967264 }
 0x1e4   : > { %11883 = dma.done.wait (%p10369_p11), [#allocation17], 32  }
 0x1e5   : > { %11885 = vsyncadd (%p10369_p11), [#allocation17], 4294967264 }
 0x1e6   : > { %11887 = dma.done.wait (%p10369_p11), [#allocation20], 32  }
 0x1e7   : > { %11889 = vsyncadd (%p10369_p11), [#allocation20], 4294967264 }
 0x1e8   : > { %11891 = dma.done.wait (%p10369_p11), [#allocation23], 32  }
 0x1e9   : > { %11893 = vsyncadd (%p10369_p11), [#allocation23], 4294967264 }
 0x1ea   : > { %11895 = dma.done.wait (%p10369_p11), [#allocation26], 32  }
 0x1eb   : > { %11897 = vsyncadd (%p10369_p11), [#allocation26], 4294967264 }
 0x1ec   : > { %11899 = dma.done.wait (%p10369_p11), [#allocation29], 32  }
 0x1ed   : > { %11901 = vsyncadd (%p10369_p11), [#allocation29], 4294967264 }
 0x1ee   : > { %11903 = dma.done.wait (%p10369_p11), [#allocation32], 32  }
 0x1ef   : > { %11905 = vsyncadd (%p10369_p11), [#allocation32], 4294967264 }
 0x1f0   : > { %11907 = dma.done.wait (%p10369_p11), [#allocation35], 32  }
 0x1f1   : > { %11909 = vsyncadd (%p10369_p11), [#allocation35], 4294967264 }
 0x1f2   : > { %11911 = dma.done.wait (%p10369_p11), [#allocation38], 32  }
 0x1f3   : > { %11913 = vsyncadd (%p10369_p11), [#allocation38], 4294967264  ;;  %s15155_s16 = sld [smem:[#allocation66_spill]]  ;;  %p2290_p2 = scmp.lt.s32.totalorder %s12367_s0, 1  ;;  %vm2339_vm0 = vcmask 392192   ;;  %vm2383_vm1 = vcmask 261120  }
 0x1f4   : > { %s15156_s5 = sld [smem:[#allocation53_spill]]  ;;  %v12009_v37 = vmov 32.0   ;;  %s15065_s2 = smov 96  }
 0x1f5   : > { %s15213_s0 = smov (!%p2290_p2, %s12367_s0), 1  ;;  %s15157_s11 = sld [smem:[#allocation63_spill]]  ;;  %10758 = vrcp.f32 %v12009_v37 }
 0x1f6   : > { %s10124_s3 = sshll.u32 %s15213_s0, 6  ;;  %s15158_s28 = sld [smem:[#allocation65_spill]] }
 0x1f7   : > { %s15159_s10 = sld [smem:[#allocation64_spill]]  ;;  %s15059_s12 = smov 80  }
 0x1f8   : > { %s15160_s4 = sld [smem:[#allocation75_spill]]  ;;  %s15175_s1 = smov 64  }
 0x1f9   : > { %v10127_v0 = vld [vmem:[%s15155_s16 + $0x10] sm:$0xff]  ;;  %v10126_v1 = vld [vmem:[%s15155_s16 + $0x8] sm:$0xff]  ;;  %v10125_v2 = vld [vmem:[%s15155_s16] sm:$0xff]  ;;  %s15161_s18 = sld [smem:[#allocation72_spill]]  ;;  %s15193_s9 = smov 80  }
 0x1fa   : > { %s2294_s7 = scalar_lea.vmem %s15156_s5, %s10124_s3  ;;  %2357 = vmatpush.bf16.msra.mxu0 %v10127_v0  ;;  %s15061_s5 = smov 112  }
 0x1fb   : > { %v2299_v3 = vld [vmem:[%s2294_s7] sm:$0xff]  ;;  %v2300_v4 = vld [vmem:[%s2294_s7 + $0x8] sm:$0xff]  ;;  %v2301_v6 = vld [vmem:[%s2294_s7 + $0x10] sm:$0xff]  ;;  %v10759_v38 = vpop.eup %10758  ;;  %s15063_s3 = smov 48   ;;  %s15186_s6 = sld [smem:[#allocation60_spill]] }
 0x1fc   : > { %v2313_v5 = vpack.c.bf16 %v2300_v4, %v2299_v3  ;;  %v2302_v7 = vld [vmem:[%s2294_s7 + $0x18] sm:$0xff]  ;;  %v2303_v9 = vld [vmem:[%s2294_s7 + $0x20] sm:$0xff]  ;;  %v2304_v10 = vld [vmem:[%s2294_s7 + $0x28] sm:$0xff]  ;;  %v2409_v39 = vmul.f32 32.0, %v10759_v38  ;;  %vm2413_vm2 = vweird.f32 %v10759_v38 }
 0x1fd   : > { %v2314_v8 = vpack.c.bf16 %v2302_v7, %v2301_v6  ;;  %v2315_v11 = vpack.c.bf16 %v2304_v10, %v2303_v9  ;;  %v2305_v12 = vld [vmem:[%s2294_s7 + $0x30] sm:$0xff]  ;;  %v2306_v13 = vld [vmem:[%s2294_s7 + $0x38] sm:$0xff]  ;;  %v10723_v15 = vld [vmem:[%s15157_s11] ss:$0 sm:$0xff]  ;;  %s15162_s7 = sld [smem:[#allocation67_spill]]  ;;  %s15056_s11 = smov 64  }
 0x1fe   : > { %2358 = vmatpush.bf16.msra.mxu0 %v10126_v1  ;;  %v2316_v14 = vpack.c.bf16 %v2306_v13, %v2305_v12  ;;  %v2410_v40 = vsub.f32 1.0, %v2409_v39 }
 0x200   : > { %v2411_v41 = vmul.f32 %v10759_v38, %v2410_v40  ;;  %v12776_v40 = vld [vmem:[%s15158_s28] ss:$0 sm:$0xff]  ;;  %s15167_s28 = sld [smem:[#allocation73_spill]] }
 0x202   : > { %2359 = vmatpush.bf16.msra.mxu0 %v10125_v2  ;;  %v2412_v42 = vadd.f32 %v10759_v38, %v2411_v41 }
 0x204   : > { %v12721_v43 = vsel %vm2413_vm2, %v10759_v38, %v2412_v42 }
 0x205   : > { %9542 = vmatmul.msk.bf16.vlgmr.msra.gmra.mxu0 %vm2339_vm0, %v2313_v5 }
 0x215   : > { %9543 = vmatmul.msk.bf16.gmra.mxu0 %vm2339_vm0, %v2314_v8 }
 0x225   : > { %9544 = vmatmul.msk.bf16.gmra.mxu0 %vm2339_vm0, %v2315_v11 }
 0x235   : > { %9545 = vmatmul.msk.bf16.gmra.mxu0 %vm2339_vm0, %v2316_v14 }
 0x282   : > { %v2361_v16 = vpop.f32.mrf.mxu0 }
 0x283   : > { %v2362_v17 = vadd.f32 %v10723_v15, %v2361_v16 }
 0x285   : > { %v2384_v18 = vsel %vm2383_vm1, %v2362_v17, 0.0 }
 0x286   : > { %2385 = vadd.xlane.f32.xlu0 %v2384_v18 }
 0x28a   : > { %v2363_v19 = vpop.f32.mrf.mxu0 }
 0x28b   : > { %v2364_v20 = vadd.f32 %v10723_v15, %v2363_v19 }
 0x28d   : > { %v2387_v21 = vsel %vm2383_vm1, %v2364_v20, 0.0 }
 0x28e   : > { %2388 = vadd.xlane.f32.xlu0 %v2387_v21 }
 0x292   : > { %v2366_v22 = vpop.f32.mrf.mxu0 }
 0x293   : > { %v2367_v23 = vadd.f32 %v10723_v15, %v2366_v22 }
 0x295   : > { %v2390_v24 = vsel %vm2383_vm1, %v2367_v23, 0.0 }
 0x296   : > { %2391 = vadd.xlane.f32.xlu1 %v2390_v24 }
 0x29a   : > { %v2368_v25 = vpop.f32.mrf.mxu0 }
 0x29b   : > { %v2369_v26 = vadd.f32 %v10723_v15, %v2368_v25 }
 0x29d   : > { %v2393_v27 = vsel %vm2383_vm1, %v2369_v26, 0.0 }
 0x29e   : > { %2394 = vadd.xlane.f32.xlu1 %v2393_v27 }
 0x2a2   : > { %v2371_v28 = vpop.f32.mrf.mxu0 }
 0x2a3   : > { %v2372_v29 = vadd.f32 %v10723_v15, %v2371_v28 }
 0x2a5   : > { %v2396_v30 = vsel %vm2383_vm1, %v2372_v29, 0.0 }
 0x2a6   : > { %2397 = vadd.xlane.f32.xlu2 %v2396_v30 }
 0x2aa   : > { %v2373_v31 = vpop.f32.mrf.mxu0 }
 0x2ab   : > { %v2374_v32 = vadd.f32 %v10723_v15, %v2373_v31 }
 0x2ad   : > { %v2399_v33 = vsel %vm2383_vm1, %v2374_v32, 0.0 }
 0x2ae   : > { %2400 = vadd.xlane.f32.xlu2 %v2399_v33 }
 0x2b2   : > { %v2376_v34 = vpop.f32.mrf.mxu0 }
 0x2b3   : > { %v2377_v35 = vadd.f32 %v10723_v15, %v2376_v34 }
 0x2b5   : > { %v2402_v36 = vsel %vm2383_vm1, %v2377_v35, 0.0 }
 0x2b6   : > { %2403 = vadd.xlane.f32.xlu2 %v2402_v36 }
 0x2ba   : > { %v2378_v49 = vpop.f32.mrf.mxu0 }
 0x2bb   : > { %v2379_v52 = vadd.f32 %v10723_v15, %v2378_v49 }
 0x2bd   : > { %v2405_v55 = vsel %vm2383_vm1, %v2379_v52, 0.0 }
 0x2f9   : > { %v2386_v44 = vpop.xlane.xlu0 %2385 }
 0x2fa   : > { %v2415_v45 = vmul.f32 %v12721_v43, %v2386_v44 }
 0x2fc   : > { %v12724_v46 = vsub.f32 %v2362_v17, %v2415_v45  ;;  %v12780_v45 = vld [vmem:[%s15159_s10] ss:$0 sm:$0xff]  ;;  %s15054_s10 = smov 16  }
 0x2fe   : > { %v2431_v47 = vmul.f32 %v12724_v46, %v12724_v46 }
 0x300   : > { %v2439_v48 = vsel %vm2383_vm1, %v2431_v47, 0.0 }
 0x301   : > { %2440 = vadd.xlane.f32.xlu0 %v2439_v48  ;;  %v2389_v50 = vpop.xlane.xlu0 %2388 }
 0x302   : > { %v2416_v51 = vmul.f32 %v12721_v43, %v2389_v50 }
 0x304   : > { %v12730_v53 = vsub.f32 %v2364_v20, %v2416_v51 }
 0x306   : > { %v2432_v54 = vmul.f32 %v12730_v53, %v12730_v53 }
 0x308   : > { %v2442_v56 = vsel %vm2383_vm1, %v2432_v54, 0.0 }
 0x309   : > { %v2392_v57 = vpop.xlane.xlu1 %2391  ;;  %2406 = vadd.xlane.f32.xlu0 %v2405_v55  ;;  %2443 = vadd.xlane.f32.xlu1 %v2442_v56 }
 0x30a   : > { %v2417_v58 = vmul.f32 %v12721_v43, %v2392_v57 }
 0x30c   : > { %v12737_v59 = vsub.f32 %v2367_v23, %v2417_v58 }
 0x30e   : > { %v2433_v60 = vmul.f32 %v12737_v59, %v12737_v59 }
 0x310   : > { %v2445_v61 = vsel %vm2383_vm1, %v2433_v60, 0.0 }
 0x311   : > { %v2395_v62 = vpop.xlane.xlu1 %2394  ;;  %2446 = vadd.xlane.f32.xlu1 %v2445_v61 }
 0x312   : > { %v2418_v63 = vmul.f32 %v12721_v43, %v2395_v62 }
 0x314   : > { %v12743_v0 = vsub.f32 %v2369_v26, %v2418_v63 }
 0x316   : > { %v2434_v1 = vmul.f32 %v12743_v0, %v12743_v0 }
 0x318   : > { %v2448_v2 = vsel %vm2383_vm1, %v2434_v1, 0.0 }
 0x319   : > { %v2398_v3 = vpop.xlane.xlu2 %2397  ;;  %2449 = vadd.xlane.f32.xlu2 %v2448_v2 }
 0x31a   : > { %v2419_v4 = vmul.f32 %v12721_v43, %v2398_v3 }
 0x31c   : > { %v12749_v5 = vsub.f32 %v2372_v29, %v2419_v4 }
 0x31e   : > { %v2435_v6 = vmul.f32 %v12749_v5, %v12749_v5 }
 0x320   : > { %v2451_v7 = vsel %vm2383_vm1, %v2435_v6, 0.0 }
 0x321   : > { %v2401_v8 = vpop.xlane.xlu2 %2400  ;;  %2452 = vadd.xlane.f32.xlu0 %v2451_v7 }
 0x322   : > { %v2420_v9 = vmul.f32 %v12721_v43, %v2401_v8 }
 0x324   : > { %v12755_v10 = vsub.f32 %v2374_v32, %v2420_v9 }
 0x326   : > { %v2436_v11 = vmul.f32 %v12755_v10, %v12755_v10 }
 0x328   : > { %v2454_v12 = vsel %vm2383_vm1, %v2436_v11, 0.0 }
 0x329   : > { %v2404_v13 = vpop.xlane.xlu2 %2403  ;;  %2455 = vadd.xlane.f32.xlu1 %v2454_v12 }
 0x32a   : > { %v2421_v14 = vmul.f32 %v12721_v43, %v2404_v13 }
 0x32c   : > { %v12761_v15 = vsub.f32 %v2377_v35, %v2421_v14 }
 0x32e   : > { %v2437_v16 = vmul.f32 %v12761_v15, %v12761_v15 }
 0x330   : > { %v2457_v17 = vsel %vm2383_vm1, %v2437_v16, 0.0 }
 0x331   : > { %2458 = vadd.xlane.f32.xlu2 %v2457_v17 }
 0x374   : > { %v2441_v18 = vpop.xlane.xlu0 %2440 }
 0x375   : > { %v2463_v19 = vmul.f32 %v2441_v18, %v12721_v43 }
 0x377   : > { %v2471_v20 = vadd.f32 1e-05, %v2463_v19 }
 0x379   : > { %10760 = vrsqrt.f32 %v2471_v20  ;;  %vm2485_vm4 = vweird.f32 %v2471_v20 }
 0x37c   : > { %v2444_v21 = vpop.xlane.xlu1 %2443  ;;  %v2407_v22 = vpop.xlane.xlu0 %2406 }
 0x37d   : > { %v2464_v23 = vmul.f32 %v2444_v21, %v12721_v43  ;;  %v2422_v24 = vmul.f32 %v12721_v43, %v2407_v22 }
 0x37f   : > { %v10761_v25 = vpop.eup %10760  ;;  %v2472_v26 = vadd.f32 1e-05, %v2464_v23  ;;  %v12769_v27 = vsub.f32 %v2379_v52, %v2422_v24 }
 0x380   : > { %v2480_v28 = vmul.f32 %v10761_v25, %v2471_v20  ;;  %vm2486_vm3 = vweird.f32 %v10761_v25 }
 0x381   : > { %10762 = vrsqrt.f32 %v2472_v26  ;;  %v2438_v29 = vmul.f32 %v12769_v27, %v12769_v27  ;;  %vm2487_vm5 = vmor %vm2485_vm4, %vm2486_vm3  ;;  %vm2495_vm7 = vweird.f32 %v2472_v26 }
 0x382   : > { %v2481_v30 = vmul.f32 %v10761_v25, %v2480_v28 }
 0x383   : > { %v2460_v31 = vsel %vm2383_vm1, %v2438_v29, 0.0 }
 0x384   : > { %v2482_v32 = vmul.f32 0.5, %v2481_v30  ;;  %v2447_v33 = vpop.xlane.xlu1 %2446  ;;  %2461 = vadd.xlane.f32.xlu0 %v2460_v31 }
 0x385   : > { %v2465_v34 = vmul.f32 %v2447_v33, %v12721_v43 }
 0x386   : > { %v2483_v35 = vsub.f32 1.5, %v2482_v32 }
 0x387   : > { %v10763_v36 = vpop.eup %10762  ;;  %v2473_v37 = vadd.f32 1e-05, %v2465_v34 }
 0x388   : > { %v2484_v38 = vmul.f32 %v10761_v25, %v2483_v35  ;;  %v2490_v39 = vmul.f32 %v10763_v36, %v2472_v26  ;;  %vm2496_vm6 = vweird.f32 %v10763_v36 }
 0x389   : > { %10764 = vrsqrt.f32 %v2473_v37  ;;  %vm2497_vm8 = vmor %vm2495_vm7, %vm2496_vm6  ;;  %vm2505_vm10 = vweird.f32 %v2473_v37 }
 0x38a   : > { %v2491_v41 = vmul.f32 %v10763_v36, %v2490_v39  ;;  %v2488_v42 = vsel %vm2487_vm5, %v10761_v25, %v2484_v38 }
 0x38b   : > { %v2559_v44 = vmul.f32 %v2488_v42, %v12724_v46 }
 0x38c   : > { %v2492_v47 = vmul.f32 0.5, %v2491_v41  ;;  %v2450_v48 = vpop.xlane.xlu2 %2449 }
 0x38d   : > { %v2466_v49 = vmul.f32 %v2450_v48, %v12721_v43  ;;  %v2570_v50 = vmul.f32 %v12776_v40, %v2559_v44 }
 0x38e   : > { %v2493_v51 = vsub.f32 1.5, %v2492_v47 }
 0x38f   : > { %v10765_v52 = vpop.eup %10764  ;;  %v2474_v54 = vadd.f32 1e-05, %v2466_v49  ;;  %v12785_v55 = vadd.f32 %v12780_v45, %v2570_v50 }
 0x390   : > { %v2494_v56 = vmul.f32 %v10763_v36, %v2493_v51  ;;  %v2500_v57 = vmul.f32 %v10765_v52, %v2473_v37  ;;  %vm2506_vm9 = vweird.f32 %v10765_v52 }
 0x391   : > { %10766 = vrsqrt.f32 %v2474_v54  ;;  %v2591_v46 = vsel %vm2383_vm1, %v12785_v55, 0.0  ;;  %vm2507_vm11 = vmor %vm2505_vm10, %vm2506_vm9  ;;  %vm2515_vm13 = vweird.f32 %v2474_v54 }
 0x392   : > { %v2501_v58 = vmul.f32 %v10765_v52, %v2500_v57  ;;  %2592 = vadd.xlane.f32.xlu1 %v2591_v46  ;;  %v2498_v60 = vsel %vm2497_vm8, %v10763_v36, %v2494_v56 }
 0x393   : > { %v2560_v61 = vmul.f32 %v2498_v60, %v12730_v53 }
 0x394   : > { %v2502_v62 = vmul.f32 0.5, %v2501_v58  ;;  %v2453_v63 = vpop.xlane.xlu0 %2452 }
 0x395   : > { %v2467_v1 = vmul.f32 %v2453_v63, %v12721_v43  ;;  %v2571_v2 = vmul.f32 %v12776_v40, %v2560_v61 }
 0x396   : > { %v2503_v3 = vsub.f32 1.5, %v2502_v62 }
 0x397   : > { %v10767_v4 = vpop.eup %10766  ;;  %v2475_v6 = vadd.f32 1e-05, %v2467_v1  ;;  %v12793_v7 = vadd.f32 %v12780_v45, %v2571_v2 }
 0x398   : > { %v2504_v8 = vmul.f32 %v10765_v52, %v2503_v3  ;;  %v2510_v9 = vmul.f32 %v10767_v4, %v2474_v54  ;;  %vm2516_vm12 = vweird.f32 %v10767_v4 }
 0x399   : > { %10768 = vrsqrt.f32 %v2475_v6  ;;  %v2594_v53 = vsel %vm2383_vm1, %v12793_v7, 0.0  ;;  %vm2517_vm14 = vmor %vm2515_vm13, %vm2516_vm12  ;;  %vm2525_vm2 = vweird.f32 %v2475_v6 }
 0x39a   : > { %v2511_v11 = vmul.f32 %v10767_v4, %v2510_v9  ;;  %2595 = vadd.xlane.f32.xlu2 %v2594_v53  ;;  %v2508_v12 = vsel %vm2507_vm11, %v10765_v52, %v2504_v8 }
 0x39b   : > { %v2561_v13 = vmul.f32 %v2508_v12, %v12737_v59 }
 0x39c   : > { %v2512_v14 = vmul.f32 0.5, %v2511_v11  ;;  %v2456_v16 = vpop.xlane.xlu1 %2455 }
 0x39d   : > { %v2468_v17 = vmul.f32 %v2456_v16, %v12721_v43  ;;  %v2572_v18 = vmul.f32 %v12776_v40, %v2561_v13 }
 0x39e   : > { %v2513_v19 = vsub.f32 1.5, %v2512_v14 }
 0x39f   : > { %v10769_v20 = vpop.eup %10768  ;;  %v2476_v21 = vadd.f32 1e-05, %v2468_v17  ;;  %v12801_v22 = vadd.f32 %v12780_v45, %v2572_v18 }
 0x3a0   : > { %v2514_v23 = vmul.f32 %v10767_v4, %v2513_v19  ;;  %v2520_v24 = vmul.f32 %v10769_v20, %v2475_v6  ;;  %vm2526_vm15 = vweird.f32 %v10769_v20 }
 0x3a1   : > { %10770 = vrsqrt.f32 %v2476_v21  ;;  %v2597_v59 = vsel %vm2383_vm1, %v12801_v22, 0.0  ;;  %vm2527_vm3 = vmor %vm2525_vm2, %vm2526_vm15  ;;  %vm2535_vm5 = vweird.f32 %v2476_v21 }
 0x3a2   : > { %v2521_v25 = vmul.f32 %v10769_v20, %v2520_v24  ;;  %2598 = vadd.xlane.f32.xlu0 %v2597_v59  ;;  %v2518_v26 = vsel %vm2517_vm14, %v10767_v4, %v2514_v23 }
 0x3a3   : > { %v2562_v28 = vmul.f32 %v2518_v26, %v12743_v0 }
 0x3a4   : > { %v2522_v29 = vmul.f32 0.5, %v2521_v25  ;;  %v2459_v30 = vpop.xlane.xlu2 %2458 }
 0x3a5   : > { %v2469_v31 = vmul.f32 %v2459_v30, %v12721_v43  ;;  %v2573_v32 = vmul.f32 %v12776_v40, %v2562_v28 }
 0x3a6   : > { %v2523_v33 = vsub.f32 1.5, %v2522_v29 }
 0x3a7   : > { %v10771_v34 = vpop.eup %10770  ;;  %v2477_v35 = vadd.f32 1e-05, %v2469_v31  ;;  %v12809_v36 = vadd.f32 %v12780_v45, %v2573_v32 }
 0x3a8   : > { %v2524_v37 = vmul.f32 %v10769_v20, %v2523_v33  ;;  %v2530_v38 = vmul.f32 %v10771_v34, %v2476_v21  ;;  %vm2536_vm4 = vweird.f32 %v10771_v34 }
 0x3a9   : > { %10772 = vrsqrt.f32 %v2477_v35  ;;  %v2600_v0 = vsel %vm2383_vm1, %v12809_v36, 0.0  ;;  %vm2537_vm6 = vmor %vm2535_vm5, %vm2536_vm4  ;;  %vm2545_vm8 = vweird.f32 %v2477_v35 }
 0x3aa   : > { %v2531_v39 = vmul.f32 %v10771_v34, %v2530_v38  ;;  %2601 = vadd.xlane.f32.xlu1 %v2600_v0  ;;  %v2528_v41 = vsel %vm2527_vm3, %v10769_v20, %v2524_v37 }
 0x3ab   : > { %v2563_v42 = vmul.f32 %v2528_v41, %v12749_v5 }
 0x3ac   : > { %v2532_v44 = vmul.f32 0.5, %v2531_v39 }
 0x3ad   : > { %v2574_v47 = vmul.f32 %v12776_v40, %v2563_v42 }
 0x3ae   : > { %v2533_v48 = vsub.f32 1.5, %v2532_v44 }
 0x3af   : > { %v10773_v49 = vpop.eup %10772  ;;  %v12816_v50 = vadd.f32 %v12780_v45, %v2574_v47 }
 0x3b0   : > { %v2534_v51 = vmul.f32 %v10771_v34, %v2533_v48  ;;  %v2540_v52 = vmul.f32 %v10773_v49, %v2477_v35  ;;  %vm2546_vm7 = vweird.f32 %v10773_v49 }
 0x3b1   : > { %v2603_v54 = vsel %vm2383_vm1, %v12816_v50, 0.0  ;;  %vm2547_vm9 = vmor %vm2545_vm8, %vm2546_vm7 }
 0x3b2   : > { %v2541_v56 = vmul.f32 %v10773_v49, %v2540_v52  ;;  %2604 = vadd.xlane.f32.xlu2 %v2603_v54  ;;  %v2538_v57 = vsel %vm2537_vm6, %v10771_v34, %v2534_v51 }
 0x3b3   : > { %v2564_v5 = vmul.f32 %v2538_v57, %v12755_v10 }
 0x3b4   : > { %v2542_v46 = vmul.f32 0.5, %v2541_v56 }
 0x3b5   : > { %v2575_v58 = vmul.f32 %v12776_v40, %v2564_v5 }
 0x3b6   : > { %v2543_v60 = vsub.f32 1.5, %v2542_v46 }
 0x3b7   : > { %v12823_v61 = vadd.f32 %v12780_v45, %v2575_v58 }
 0x3b8   : > { %v2544_v62 = vmul.f32 %v10773_v49, %v2543_v60  ;;  %v10129_v60 = vld [vmem:[%s15160_s4 + $0x8] sm:$0xff] }
 0x3b9   : > { %v2606_v63 = vsel %vm2383_vm1, %v12823_v61, 0.0  ;;  %2831 = vmatpush.bf16.msra.mxu1 %v10129_v60 }
 0x3ba   : > { %2607 = vadd.xlane.f32.xlu0 %v2606_v63  ;;  %v2548_v1 = vsel %vm2547_vm9, %v10773_v49, %v2544_v62 }
 0x3bb   : > { %v2565_v2 = vmul.f32 %v2548_v1, %v12761_v15  ;;  %v10128_v1 = vld [vmem:[%s15160_s4] sm:$0xff]  ;;  %s15185_s4 = sld [smem:[#allocation61_spill]] }
 0x3bd   : > { %v2576_v10 = vmul.f32 %v12776_v40, %v2565_v2  ;;  %2832 = vmatpush.bf16.msra.mxu1 %v10128_v1 }
 0x3bf   : > { %v12830_v3 = vadd.f32 %v12780_v45, %v2576_v10 }
 0x3c1   : > { %v2609_v4 = vsel %vm2383_vm1, %v12830_v3, 0.0 }
 0x3c2   : > { %2610 = vadd.xlane.f32.xlu0 %v2609_v4 }
 0x3f7   : > { %v2462_v6 = vpop.xlane.xlu0 %2461 }
 0x3f8   : > { %v2470_v8 = vmul.f32 %v2462_v6, %v12721_v43 }
 0x3fa   : > { %v2478_v9 = vadd.f32 1e-05, %v2470_v8 }
 0x3fc   : > { %10774 = vrsqrt.f32 %v2478_v9  ;;  %vm2555_vm11 = vweird.f32 %v2478_v9 }
 0x402   : > { %v10775_v53 = vpop.eup %10774 }
 0x403   : > { %v2550_v11 = vmul.f32 %v10775_v53, %v2478_v9  ;;  %vm2556_vm10 = vweird.f32 %v10775_v53 }
 0x404   : > { %vm2557_vm12 = vmor %vm2555_vm11, %vm2556_vm10 }
 0x405   : > { %v2551_v12 = vmul.f32 %v10775_v53, %v2550_v11  ;;  %v2593_v13 = vpop.xlane.xlu1 %2592 }
 0x406   : > { %v2615_v15 = vmul.f32 %v2593_v13, %v12721_v43 }
 0x407   : > { %v2552_v14 = vmul.f32 0.5, %v2551_v12 }
 0x408   : > { %v12837_v16 = vsub.f32 %v12785_v55, %v2615_v15 }
 0x409   : > { %v2553_v17 = vsub.f32 1.5, %v2552_v14 }
 0x40a   : > { %v2631_v18 = vmul.f32 %v12837_v16, %v12837_v16 }
 0x40b   : > { %v2554_v19 = vmul.f32 %v10775_v53, %v2553_v17 }
 0x40c   : > { %v2639_v20 = vsel %vm2383_vm1, %v2631_v18, 0.0 }
 0x40d   : > { %v2596_v21 = vpop.xlane.xlu2 %2595  ;;  %2640 = vadd.xlane.f32.xlu1 %v2639_v20  ;;  %v2558_v23 = vsel %vm2557_vm12, %v10775_v53, %v2554_v19 }
 0x40e   : > { %v2616_v24 = vmul.f32 %v2596_v21, %v12721_v43  ;;  %v2566_v59 = vmul.f32 %v2558_v23, %v12769_v27 }
 0x410   : > { %v12845_v25 = vsub.f32 %v12793_v7, %v2616_v24  ;;  %v2577_v26 = vmul.f32 %v12776_v40, %v2566_v59 }
 0x412   : > { %v2632_v28 = vmul.f32 %v12845_v25, %v12845_v25  ;;  %v12851_v29 = vadd.f32 %v12780_v45, %v2577_v26 }
 0x414   : > { %v2642_v30 = vsel %vm2383_vm1, %v2632_v28, 0.0  ;;  %v2612_v31 = vsel %vm2383_vm1, %v12851_v29, 0.0 }
 0x415   : > { %2643 = vadd.xlane.f32.xlu2 %v2642_v30  ;;  %2613 = vadd.xlane.f32.xlu1 %v2612_v31  ;;  %v2599_v32 = vpop.xlane.xlu0 %2598 }
 0x416   : > { %v2617_v27 = vmul.f32 %v2599_v32, %v12721_v43 }
 0x418   : > { %v12858_v33 = vsub.f32 %v12801_v22, %v2617_v27 }
 0x41a   : > { %v2633_v40 = vmul.f32 %v12858_v33, %v12858_v33 }
 0x41c   : > { %v2645_v34 = vsel %vm2383_vm1, %v2633_v40, 0.0 }
 0x41d   : > { %v2602_v45 = vpop.xlane.xlu1 %2601  ;;  %2646 = vadd.xlane.f32.xlu2 %v2645_v34 }
 0x41e   : > { %v2618_v35 = vmul.f32 %v2602_v45, %v12721_v43 }
 0x420   : > { %v12865_v37 = vsub.f32 %v12809_v36, %v2618_v35  ;;  %v12905_v35 = vld [vmem:[#allocation2] ss:$0 sm:$0xff] }
 0x422   : > { %v2634_v38 = vmul.f32 %v12865_v37, %v12865_v37 }
 0x424   : > { %v2648_v0 = vsel %vm2383_vm1, %v2634_v38, 0.0 }
 0x425   : > { %2649 = vadd.xlane.f32.xlu0 %v2648_v0  ;;  %v2605_v39 = vpop.xlane.xlu2 %2604 }
 0x426   : > { %v2619_v41 = vmul.f32 %v2605_v39, %v12721_v43 }
 0x428   : > { %v12872_v42 = vsub.f32 %v12816_v50, %v2619_v41 }
 0x42a   : > { %v2635_v44 = vmul.f32 %v12872_v42, %v12872_v42 }
 0x42c   : > { %v2651_v47 = vsel %vm2383_vm1, %v2635_v44, 0.0 }
 0x42d   : > { %2652 = vadd.xlane.f32.xlu1 %v2651_v47  ;;  %v2608_v48 = vpop.xlane.xlu0 %2607 }
 0x42e   : > { %v2620_v49 = vmul.f32 %v2608_v48, %v12721_v43  ;;  %v12910_v48 = vld [vmem:[%s15161_s18] ss:$0 sm:$0xff]  ;;  %s15168_s18 = sld [smem:[#allocation69_spill]] }
 0x430   : > { %v12879_v51 = vsub.f32 %v12823_v61, %v2620_v49 }
 0x432   : > { %v2636_v52 = vmul.f32 %v12879_v51, %v12879_v51 }
 0x434   : > { %v2654_v54 = vsel %vm2383_vm1, %v2636_v52, 0.0 }
 0x435   : > { %2655 = vadd.xlane.f32.xlu2 %v2654_v54  ;;  %v2611_v56 = vpop.xlane.xlu0 %2610 }
 0x436   : > { %v2621_v57 = vmul.f32 %v2611_v56, %v12721_v43 }
 0x438   : > { %v12886_v5 = vsub.f32 %v12830_v3, %v2621_v57 }
 0x43a   : > { %v2637_v46 = vmul.f32 %v12886_v5, %v12886_v5 }
 0x43c   : > { %v2657_v58 = vsel %vm2383_vm1, %v2637_v46, 0.0 }
 0x43d   : > { %2658 = vadd.xlane.f32.xlu0 %v2657_v58 }
 0x480   : > { %v2641_v62 = vpop.xlane.xlu1 %2640 }
 0x481   : > { %v2663_v63 = vmul.f32 %v2641_v62, %v12721_v43 }
 0x483   : > { %v2671_v2 = vadd.f32 1e-05, %v2663_v63 }
 0x485   : > { %10776 = vrsqrt.f32 %v2671_v2  ;;  %vm2685_vm14 = vweird.f32 %v2671_v2 }
 0x488   : > { %v2644_v10 = vpop.xlane.xlu2 %2643  ;;  %v2614_v4 = vpop.xlane.xlu1 %2613 }
 0x489   : > { %v2664_v6 = vmul.f32 %v2644_v10, %v12721_v43  ;;  %v2622_v8 = vmul.f32 %v2614_v4, %v12721_v43 }
 0x48b   : > { %v10777_v9 = vpop.eup %10776  ;;  %v2672_v53 = vadd.f32 1e-05, %v2664_v6  ;;  %v12897_v11 = vsub.f32 %v12851_v29, %v2622_v8 }
 0x48c   : > { %v2680_v12 = vmul.f32 %v10777_v9, %v2671_v2  ;;  %vm2686_vm13 = vweird.f32 %v10777_v9 }
 0x48d   : > { %10778 = vrsqrt.f32 %v2672_v53  ;;  %v2638_v13 = vmul.f32 %v12897_v11, %v12897_v11  ;;  %vm2687_vm15 = vmor %vm2685_vm14, %vm2686_vm13  ;;  %vm2695_vm3 = vweird.f32 %v2672_v53 }
 0x48e   : > { %v2681_v15 = vmul.f32 %v10777_v9, %v2680_v12 }
 0x48f   : > { %v2660_v14 = vsel %vm2383_vm1, %v2638_v13, 0.0 }
 0x490   : > { %v2682_v17 = vmul.f32 0.5, %v2681_v15  ;;  %2661 = vadd.xlane.f32.xlu1 %v2660_v14  ;;  %v2647_v18 = vpop.xlane.xlu2 %2646 }
 0x491   : > { %v2665_v19 = vmul.f32 %v2647_v18, %v12721_v43 }
 0x492   : > { %v2683_v20 = vsub.f32 1.5, %v2682_v17 }
 0x493   : > { %v10779_v21 = vpop.eup %10778  ;;  %v2673_v23 = vadd.f32 1e-05, %v2665_v19 }
 0x494   : > { %v2684_v24 = vmul.f32 %v10777_v9, %v2683_v20  ;;  %v2690_v59 = vmul.f32 %v10779_v21, %v2672_v53  ;;  %vm2696_vm2 = vweird.f32 %v10779_v21 }
 0x495   : > { %10780 = vrsqrt.f32 %v2673_v23  ;;  %vm2697_vm4 = vmor %vm2695_vm3, %vm2696_vm2  ;;  %vm2705_vm6 = vweird.f32 %v2673_v23 }
 0x496   : > { %v2691_v26 = vmul.f32 %v10779_v21, %v2690_v59  ;;  %v2688_v28 = vsel %vm2687_vm15, %v10777_v9, %v2684_v24 }
 0x497   : > { %v2759_v45 = vmul.f32 %v2688_v28, %v12837_v16 }
 0x498   : > { %v2692_v30 = vmul.f32 0.5, %v2691_v26  ;;  %v2650_v31 = vpop.xlane.xlu0 %2649 }
 0x499   : > { %v2666_v32 = vmul.f32 %v2650_v31, %v12721_v43  ;;  %v2770_v47 = vmul.f32 %v12905_v35, %v2759_v45 }
 0x49a   : > { %v2693_v27 = vsub.f32 1.5, %v2692_v30 }
 0x49b   : > { %v10781_v40 = vpop.eup %10780  ;;  %v2674_v34 = vadd.f32 1e-05, %v2666_v32  ;;  %v2781_v58 = vadd.f32 %v12910_v48, %v2770_v47 }
 0x49c   : > { %v2694_v38 = vmul.f32 %v10779_v21, %v2693_v27  ;;  %v2700_v0 = vmul.f32 %v10781_v40, %v2673_v23  ;;  %vm2706_vm5 = vweird.f32 %v10781_v40 }
 0x49d   : > { %10782 = vrsqrt.f32 %v2674_v34  ;;  %vm2707_vm7 = vmor %vm2705_vm6, %vm2706_vm5  ;;  %vm2715_vm9 = vweird.f32 %v2674_v34 }
 0x49e   : > { %v2698_v39 = vsel %vm2697_vm4, %v10779_v21, %v2694_v38  ;;  %v2701_v41 = vmul.f32 %v10781_v40, %v2700_v0 }
 0x49f   : > { %v2760_v44 = vmul.f32 %v2698_v39, %v12845_v25 }
 0x4a0   : > { %v2702_v49 = vmul.f32 0.5, %v2701_v41  ;;  %v2653_v52 = vpop.xlane.xlu1 %2652 }
 0x4a1   : > { %v2667_v54 = vmul.f32 %v2653_v52, %v12721_v43  ;;  %v2771_v16 = vmul.f32 %v12905_v35, %v2760_v44 }
 0x4a2   : > { %v2703_v56 = vsub.f32 1.5, %v2702_v49 }
 0x4a3   : > { %v10783_v57 = vpop.eup %10782  ;;  %v2675_v46 = vadd.f32 1e-05, %v2667_v54  ;;  %v2782_v60 = vadd.f32 %v12910_v48, %v2771_v16 }
 0x4a4   : > { %v2704_v62 = vmul.f32 %v10781_v40, %v2703_v56  ;;  %v2710_v25 = vmul.f32 %v10783_v57, %v2674_v34  ;;  %vm2716_vm8 = vweird.f32 %v10783_v57 }
 0x4a5   : > { %10784 = vrsqrt.f32 %v2675_v46  ;;  %v2793_v63 = vpack.c.bf16 %v2782_v60, %v2781_v58  ;;  %vm2717_vm10 = vmor %vm2715_vm9, %vm2716_vm8  ;;  %vm2725_vm12 = vweird.f32 %v2675_v46  ;;  %vm2923_vm9 = vcmask 130048  }
 0x4a6   : > { %v2711_v1 = vmul.f32 %v10783_v57, %v2710_v25  ;;  %v2708_v2 = vsel %vm2707_vm7, %v10781_v40, %v2704_v62 }
 0x4a7   : > { %9554 = vmatmul.msk.bf16.vlgmr.msra.gmra.mxu1 %vm2383_vm1, %v2793_v63  ;;  %v2761_v12 = vmul.f32 %v2708_v2, %v12858_v33 }
 0x4a8   : > { %v2712_v10 = vmul.f32 0.5, %v2711_v1  ;;  %v2656_v4 = vpop.xlane.xlu2 %2655 }
 0x4a9   : > { %v2668_v6 = vmul.f32 %v2656_v4, %v12721_v43  ;;  %v2772_v19 = vmul.f32 %v12905_v35, %v2761_v12 }
 0x4aa   : > { %v2713_v8 = vsub.f32 1.5, %v2712_v10 }
 0x4ab   : > { %v10785_v9 = vpop.eup %10784  ;;  %v2676_v53 = vadd.f32 1e-05, %v2668_v6  ;;  %v2783_v59 = vadd.f32 %v12910_v48, %v2772_v19  ;;  %v10728_v19 = vld [vmem:[#allocation9] ss:$0 sm:$0xff] }
 0x4ac   : > { %v2714_v13 = vmul.f32 %v10783_v57, %v2713_v8  ;;  %v2720_v15 = vmul.f32 %v10785_v9, %v2675_v46  ;;  %vm2726_vm11 = vweird.f32 %v10785_v9 }
 0x4ad   : > { %10786 = vrsqrt.f32 %v2676_v53  ;;  %vm2727_vm13 = vmor %vm2725_vm12, %vm2726_vm11  ;;  %vm2735_vm15 = vweird.f32 %v2676_v53 }
 0x4ae   : > { %v2718_v14 = vsel %vm2717_vm10, %v10783_v57, %v2714_v13  ;;  %v2721_v17 = vmul.f32 %v10785_v9, %v2720_v15  ;;  %vm2989_vm10 = vcmask 523264  }
 0x4af   : > { %v2762_v18 = vmul.f32 %v2718_v14, %v12865_v37 }
 0x4b0   : > { %v2722_v20 = vmul.f32 0.5, %v2721_v17  ;;  %v2659_v49 = vpop.xlane.xlu0 %2658 }
 0x4b1   : > { %v2773_v21 = vmul.f32 %v12905_v35, %v2762_v18 }
 0x4b2   : > { %v2723_v23 = vsub.f32 1.5, %v2722_v20 }
 0x4b3   : > { %v10787_v24 = vpop.eup %10786  ;;  %v2784_v33 = vadd.f32 %v12910_v48, %v2773_v21 }
 0x4b4   : > { %v2724_v26 = vmul.f32 %v10785_v9, %v2723_v23  ;;  %v2730_v28 = vmul.f32 %v10787_v24, %v2676_v53  ;;  %vm2736_vm14 = vweird.f32 %v10787_v24 }
 0x4b5   : > { %v2794_v30 = vpack.c.bf16 %v2784_v33, %v2783_v59  ;;  %vm2737_vm2 = vmor %vm2735_vm15, %vm2736_vm14 }
 0x4b6   : > { %v2731_v31 = vmul.f32 %v10787_v24, %v2730_v28  ;;  %v2728_v37 = vsel %vm2727_vm13, %v10785_v9, %v2724_v26 }
 0x4b7   : > { %9555 = vmatmul.msk.bf16.gmra.mxu1 %vm2383_vm1, %v2794_v30  ;;  %v2763_v40 = vmul.f32 %v2728_v37, %v12872_v42  ;;  %v2669_v42 = vmul.f32 %v2659_v49, %v12721_v43 }
 0x4b8   : > { %v2732_v32 = vmul.f32 0.5, %v2731_v31 }
 0x4b9   : > { %v2774_v0 = vmul.f32 %v12905_v35, %v2763_v40  ;;  %v2677_v52 = vadd.f32 1e-05, %v2669_v42 }
 0x4ba   : > { %v2733_v27 = vsub.f32 1.5, %v2732_v32 }
 0x4bb   : > { %v2785_v41 = vadd.f32 %v12910_v48, %v2774_v0  ;;  %10788 = vrsqrt.f32 %v2677_v52  ;;  %vm2745_vm4 = vweird.f32 %v2677_v52 }
 0x4bc   : > { %v2734_v34 = vmul.f32 %v10787_v24, %v2733_v27 }
 0x4be   : > { %v2738_v45 = vsel %vm2737_vm2, %v10787_v24, %v2734_v34 }
 0x4bf   : > { %v2764_v38 = vmul.f32 %v2738_v45, %v12879_v51 }
 0x4c1   : > { %v2775_v39 = vmul.f32 %v12905_v35, %v2764_v38  ;;  %v10789_v54 = vpop.eup %10788 }
 0x4c2   : > { %v2740_v16 = vmul.f32 %v10789_v54, %v2677_v52  ;;  %vm2746_vm3 = vweird.f32 %v10789_v54 }
 0x4c3   : > { %v2786_v44 = vadd.f32 %v12910_v48, %v2775_v39  ;;  %vm2747_vm5 = vmor %vm2745_vm4, %vm2746_vm3 }
 0x4c4   : > { %v2741_v56 = vmul.f32 %v10789_v54, %v2740_v16 }
 0x4c5   : > { %v2795_v47 = vpack.c.bf16 %v2786_v44, %v2785_v41 }
 0x4c6   : > { %v2742_v58 = vmul.f32 0.5, %v2741_v56 }
 0x4c7   : > { %9556 = vmatmul.msk.bf16.gmra.mxu1 %vm2383_vm1, %v2795_v47 }
 0x4c8   : > { %v2743_v60 = vsub.f32 1.5, %v2742_v58 }
 0x4ca   : > { %v2744_v25 = vmul.f32 %v10789_v54, %v2743_v60 }
 0x4cc   : > { %v2748_v2 = vsel %vm2747_vm5, %v10789_v54, %v2744_v25 }
 0x4cd   : > { %v2765_v6 = vmul.f32 %v2748_v2, %v12886_v5 }
 0x4cf   : > { %v2776_v12 = vmul.f32 %v12905_v35, %v2765_v6 }
 0x4d1   : > { %v2787_v15 = vadd.f32 %v12910_v48, %v2776_v12 }
 0x503   : > { %v2662_v51 = vpop.xlane.xlu1 %2661 }
 0x504   : > { %v2670_v57 = vmul.f32 %v2662_v51, %v12721_v43 }
 0x506   : > { %v2678_v46 = vadd.f32 1e-05, %v2670_v57 }
 0x508   : > { %10790 = vrsqrt.f32 %v2678_v46  ;;  %vm2755_vm7 = vweird.f32 %v2678_v46 }
 0x50e   : > { %v10791_v62 = vpop.eup %10790 }
 0x50f   : > { %v2750_v63 = vmul.f32 %v10791_v62, %v2678_v46  ;;  %vm2756_vm6 = vweird.f32 %v10791_v62 }
 0x510   : > { %vm2757_vm8 = vmor %vm2755_vm7, %vm2756_vm6 }
 0x511   : > { %v2751_v1 = vmul.f32 %v10791_v62, %v2750_v63 }
 0x513   : > { %v2752_v10 = vmul.f32 0.5, %v2751_v1 }
 0x515   : > { %v2753_v4 = vsub.f32 1.5, %v2752_v10 }
 0x517   : > { %v2754_v8 = vmul.f32 %v10791_v62, %v2753_v4 }
 0x519   : > { %v2758_v9 = vsel %vm2757_vm8, %v10791_v62, %v2754_v8 }
 0x51a   : > { %v2766_v53 = vmul.f32 %v2758_v9, %v12897_v11 }
 0x51c   : > { %v2777_v13 = vmul.f32 %v12905_v35, %v2766_v53 }
 0x51e   : > { %v2788_v14 = vadd.f32 %v12910_v48, %v2777_v13 }
 0x520   : > { %v2796_v17 = vpack.c.bf16 %v2788_v14, %v2787_v15 }
 0x522   : > { %9557 = vmatmul.msk.bf16.gmra.mxu1 %vm2383_vm1, %v2796_v17 }
 0x524   : > { %v2834_v18 = vpop.f32.mrf.mxu1 }
 0x525   : > { %v2835_v20 = vadd.f32 %v10728_v19, %v2834_v18 }
 0x52c   : > { %v2836_v5 = vpop.f32.mrf.mxu1 }
 0x52d   : > { %v2837_v21 = vadd.f32 %v10728_v19, %v2836_v5 }
 0x52f   : > { %v12941_v23 = vpack.c.bf16 %v2837_v21, %v2835_v20  ;;  %v10506_v24 = vpack.i.bf16 %v2837_v21, %v2835_v20 }
 0x531   : > { %10507 = vrot.lane.b32.xlu2 %v10506_v24, %s15065_s2 }
 0x534   : > { %v2839_v11 = vpop.f32.mrf.mxu1 }
 0x535   : > { %v2840_v59 = vadd.f32 %v10728_v19, %v2839_v11 }
 0x53c   : > { %v2841_v35 = vpop.f32.mrf.mxu1 }
 0x53d   : > { %v2842_v33 = vadd.f32 %v10728_v19, %v2841_v35  ;;  %v2973_v35 = vld [vmem:[%s15162_s7] sm:$0xff] }
 0x53f   : > { %v12944_v26 = vpack.c.bf16 %v2842_v33, %v2840_v59  ;;  %v10511_v48 = vpack.i.bf16 %v2842_v33, %v2840_v59 }
 0x541   : > { %10512 = vrot.lane.b32.xlu0 %v10511_v48, %s15065_s2 }
 0x544   : > { %v2844_v28 = vpop.f32.mrf.mxu1 }
 0x545   : > { %v2845_v31 = vadd.f32 %v10728_v19, %v2844_v28 }
 0x54c   : > { %v2846_v30 = vpop.f32.mrf.mxu1 }
 0x54d   : > { %v2847_v37 = vadd.f32 %v10728_v19, %v2846_v30 }
 0x54f   : > { %v12947_v32 = vpack.c.bf16 %v2847_v37, %v2845_v31  ;;  %v10516_v27 = vpack.i.bf16 %v2847_v37, %v2845_v31  ;;  %v2974_v31 = vld [vmem:[%s15162_s7 + $0x8] sm:$0xff] }
 0x551   : > { %10517 = vrot.lane.b32.xlu1 %v10516_v27, %s15065_s2 }
 0x559   : > { %10532 = vrot.lane.b32.xlu1 %v10511_v48, %s15059_s12 }
 0x58b   : > { %v10508_v40 = vpop.permute.xlu2 %10507 }
 0x58c   : > { %v10509_v34 = vunpack.i.l.bf16 %v10508_v40  ;;  %v10510_v45 = vunpack.i.h.bf16 %v10508_v40 }
 0x58e   : > { %2890 = vxpose.xlu0.b32.start [1/8] (short) (narrow) %v10509_v34, 16 }
 0x596   : > { %2891 = vxpose.xlu0.b32.cont [2/8] (short) (narrow) %v10510_v45, 16 }
 0x59f   : > { %v2849_v38 = vpop.f32.mrf.mxu1 }
 0x5a0   : > { %v2850_v39 = vadd.f32 %v10728_v19, %v2849_v38  ;;  %v2975_v38 = vld [vmem:[%s15162_s7 + $0x10] sm:$0xff] }
 0x5a7   : > { %v2851_v0 = vpop.f32.mrf.mxu1 }
 0x5a8   : > { %v2852_v41 = vadd.f32 %v10728_v19, %v2851_v0 }
 0x5aa   : > { %v10541_v44 = vpack.i.bf16 %v2852_v41, %v2850_v39  ;;  %v12961_v56 = vpack.c.bf16 %v2852_v41, %v2850_v39 }
 0x5ac   : > { %10542 = vrot.lane.b32.xlu1 %v10541_v44, %s15059_s12  ;;  %10522 = vrot.lane.b32.xlu2 %v10541_v44, %s15065_s2 }
 0x5b3   : > { %v10513_v47 = vpop.permute.xlu0 %10512 }
 0x5b4   : > { %v10514_v49 = vunpack.i.l.bf16 %v10513_v47  ;;  %10527 = vrot.lane.b32.xlu2 %v10506_v24, %s15059_s12  ;;  %v10515_v42 = vunpack.i.h.bf16 %v10513_v47  ;;  %v2976_v47 = vld [vmem:[%s15162_s7 + $0x18] sm:$0xff] }
 0x5b6   : > { %2892 = vxpose.xlu0.b32.cont [3/8] (short) (narrow) %v10514_v49, 16 }
 0x5bc   : > { %10537 = vrot.lane.b32.xlu2 %v10516_v27, %s15059_s12 }
 0x5be   : > { %2893 = vxpose.xlu0.b32.cont [4/8] (short) (narrow) %v10515_v42, 16 }
 0x5c3   : > { %v10518_v52 = vpop.permute.xlu1 %10517 }
 0x5c4   : > { %v10519_v54 = vunpack.i.l.bf16 %v10518_v52  ;;  %3300 = vrot.lane.b32.xlu2 %v12941_v23, %s15061_s5  ;;  %v10520_v16 = vunpack.i.h.bf16 %v10518_v52 }
 0x5c6   : > { %2894 = vxpose.xlu0.b32.cont [5/8] (short) (narrow) %v10519_v54, 16 }
 0x5cb   : > { %v10533_v63 = vpop.permute.xlu1 %10532 }
 0x5cc   : > { %3302 = vrot.lane.b32.xlu2 %v12944_v26, %s15061_s5  ;;  %v10534_v2 = vunpack.i.l.bf16 %v10533_v63  ;;  %v10535_v4 = vunpack.i.h.bf16 %v10533_v63 }
 0x5ce   : > { %2895 = vxpose.xlu0.b32.cont [6/8] (short) (narrow) %v10520_v16, 16  ;;  %v2977_v16 = vld [vmem:[%s15162_s7 + $0x20] sm:$0xff] }
 0x5d4   : > { %3304 = vrot.lane.b32.xlu2 %v12947_v32, %s15061_s5 }
 0x5dc   : > { %3306 = vrot.lane.b32.xlu2 %v12961_v56, %s15061_s5 }
 0x5e4   : > { %3576 = vrot.lane.b32.xlu2 %v12961_v56, %s15063_s3 }
 0x5ec   : > { %3570 = vrot.lane.b32.xlu2 %v12941_v23, %s15063_s3 }
 0x606   : > { %v10523_v51 = vpop.permute.xlu2 %10522 }
 0x607   : > { %v10524_v57 = vunpack.i.l.bf16 %v10523_v51  ;;  %v10525_v58 = vunpack.i.h.bf16 %v10523_v51 }
 0x609   : > { %2896 = vxpose.xlu0.b32.cont [7/8] (short) (narrow) %v10524_v57, 16 }
 0x60e   : > { %v10528_v46 = vpop.permute.xlu2 %10527 }
 0x60f   : > { %v10529_v60 = vunpack.i.l.bf16 %v10528_v46  ;;  %v10530_v25 = vunpack.i.h.bf16 %v10528_v46 }
 0x611   : > { %3267 = vxpose.xlu1.b32.start [1/8] (short) (narrow) %v10529_v60, 16  ;;  %2897 = vxpose.xlu0.b32.end [8/8] (short) (narrow) %v10525_v58, 16  ;;  %v2978_v60 = vld [vmem:[%s15162_s7 + $0x28] sm:$0xff] }
 0x616   : > { %v10538_v62 = vpop.permute.xlu2 %10537 }
 0x617   : > { %v10539_v8 = vunpack.i.l.bf16 %v10538_v62  ;;  %v10540_v53 = vunpack.i.h.bf16 %v10538_v62 }
 0x619   : > { %3268 = vxpose.xlu1.b32.cont [2/8] (short) (narrow) %v10530_v25, 16 }
 0x61e   : > { %v3301_v1 = vpop.permute.xlu2 %3300  ;;  %v10543_v12 = vpop.permute.xlu1 %10542 }
 0x61f   : > { %v10544_v15 = vunpack.i.l.bf16 %v10543_v12  ;;  %v10545_v14 = vunpack.i.h.bf16 %v10543_v12 }
 0x621   : > { %3269 = vxpose.xlu1.b32.cont [3/8] (short) (narrow) %v10534_v2, 16  ;;  %v2979_v2 = vld [vmem:[%s15162_s7 + $0x30] sm:$0xff] }
 0x626   : > { %v3303_v10 = vpop.permute.xlu2 %3302 }
 0x629   : > { %3270 = vxpose.xlu1.b32.cont [4/8] (short) (narrow) %v10535_v4, 16 }
 0x62e   : > { %v3305_v6 = vpop.permute.xlu2 %3304 }
 0x631   : > { %3271 = vxpose.xlu1.b32.cont [5/8] (short) (narrow) %v10539_v8, 16 }
 0x636   : > { %v3307_v9 = vpop.permute.xlu2 %3306 }
 0x639   : > { %3272 = vxpose.xlu1.b32.cont [6/8] (short) (narrow) %v10540_v53, 16 }
 0x63e   : > { %v3577_v13 = vpop.permute.xlu2 %3576 }
 0x63f   : > { %3598 = vmatpush.bf16.msrb.mxu1 %v3577_v13 }
 0x641   : > { %3273 = vxpose.xlu1.b32.cont [7/8] (short) (narrow) %v10544_v15, 16 }
 0x646   : > { %v3571_v27 = vpop.permute.xlu2 %3570 }
 0x649   : > { %3274 = vxpose.xlu1.b32.end [8/8] (short) (narrow) %v10545_v14, 16  ;;  %v9570_v14 = vld [vmem:[%s15162_s7 + $0x40] sm:$0xff] }
 0x67d   : > { %v2906_v17 = vpop.trf.xlu0 }
 0x67f   : > { %3574 = vrot.lane.b32.xlu0 %v12947_v32, %s15063_s3 }
 0x685   : > { %v2907_v18 = vpop.trf.xlu0 }
 0x686   : > { %v2922_v19 = vpack.c.bf16 %v2907_v18, %v2906_v17 }
 0x688   : > { %2943 = vmatpush.bf16.msra.mxu2 %v2922_v19 }
 0x68b   : > { %9558 = vmatmul.msk.bf16.vlgmr.msra.gmra.mxu2 %vm2923_vm9, %v12941_v23 }
 0x69b   : > { %9559 = vmatmul.msk.bf16.gmra.mxu2 %vm2923_vm9, %v12944_v26 }
 0x6a3   : > { %3572 = vrot.lane.b32.xlu1 %v12944_v26, %s15063_s3 }
 0x6ab   : > { %9560 = vmatmul.msk.bf16.gmra.mxu2 %vm2923_vm9, %v12947_v32 }
 0x6b5   : > { %v3283_v5 = vpop.trf.xlu1 }
 0x6bb   : > { %9561 = vmatmul.msk.bf16.gmra.mxu2 %vm2923_vm9, %v12961_v56 }
 0x6bd   : > { %v3284_v20 = vpop.trf.xlu1 }
 0x6be   : > { %v3299_v21 = vpack.c.bf16 %v3284_v20, %v3283_v5  ;;  %v9571_v20 = vld [vmem:[%s15162_s7 + $0x48] sm:$0xff] }
 0x6c0   : > { %3327 = vmatpush.bf16.msrb.mxu2 %v3299_v21 }
 0x6cb   : > { %9566 = vmatmul.msk.bf16.vlgmr.msrb.gmra.mxu2 %vm2923_vm9, %v3301_v1 }
 0x6db   : > { %9567 = vmatmul.msk.bf16.gmra.mxu2 %vm2923_vm9, %v3303_v10 }
 0x6eb   : > { %9568 = vmatmul.msk.bf16.gmra.mxu2 %vm2923_vm9, %v3305_v6 }
 0x6f1   : > { %v3575_v24 = vpop.permute.xlu0 %3574 }
 0x6f2   : > { %3599 = vmatpush.bf16.msrb.mxu1 %v3575_v24 }
 0x6fb   : > { %9569 = vmatmul.msk.bf16.gmra.mxu2 %vm2923_vm9, %v3307_v9  ;;  %v2980_v9 = vld [vmem:[%s15162_s7 + $0x38] sm:$0xff] }
 0x70e   : > { %v2945_v11 = vpop.f32.mrf.mxu2 }
 0x70f   : > { %v2965_v59 = vmul.f32 0.25, %v2945_v11 }
 0x711   : > { %v12986_v33 = vadd.f32 %v2973_v35, %v2965_v59  ;;  %v9572_v59 = vld [vmem:[%s15162_s7 + $0x50] sm:$0xff] }
 0x713   : > { %v2990_v48 = vsel %vm2989_vm10, %v12986_v33, -inf }
 0x714   : > { %2991 = vmax.xlane.f32.xlu2 %v2990_v48 }
 0x715   : > { %v3573_v28 = vpop.permute.xlu1 %3572 }
 0x716   : > { %v2947_v30 = vpop.f32.mrf.mxu2  ;;  %3600 = vmatpush.bf16.msrb.mxu1 %v3573_v28 }
 0x717   : > { %v2966_v37 = vmul.f32 0.25, %v2947_v30 }
 0x719   : > { %v12991_v40 = vadd.f32 %v2974_v31, %v2966_v37  ;;  %v9573_v37 = vld [vmem:[%s15162_s7 + $0x58] sm:$0xff] }
 0x71a   : > { %3601 = vmatpush.bf16.msrb.mxu1 %v3571_v27 }
 0x71b   : > { %v2993_v34 = vsel %vm2989_vm10, %v12991_v40, -inf }
 0x71c   : > { %2994 = vmax.xlane.f32.xlu1 %v2993_v34 }
 0x71e   : > { %v2950_v45 = vpop.f32.mrf.mxu2 }
 0x71f   : > { %v2967_v0 = vmul.f32 0.25, %v2950_v45 }
 0x721   : > { %v12996_v39 = vadd.f32 %v2975_v38, %v2967_v0  ;;  %v9574_v0 = vld [vmem:[%s15162_s7 + $0x60] sm:$0xff] }
 0x723   : > { %v2996_v41 = vsel %vm2989_vm10, %v12996_v39, -inf }
 0x724   : > { %2997 = vmax.xlane.f32.xlu2 %v2996_v41 }
 0x726   : > { %v2952_v44 = vpop.f32.mrf.mxu2 }
 0x727   : > { %v2968_v49 = vmul.f32 0.25, %v2952_v44 }
 0x729   : > { %v13001_v42 = vadd.f32 %v2976_v47, %v2968_v49 }
 0x72b   : > { %v2999_v52 = vsel %vm2989_vm10, %v13001_v42, -inf }
 0x72c   : > { %3000 = vmax.xlane.f32.xlu2 %v2999_v52  ;;  %v9575_v52 = vld [vmem:[%s15162_s7 + $0x68] sm:$0xff] }
 0x72e   : > { %v2955_v54 = vpop.f32.mrf.mxu2 }
 0x72f   : > { %v2969_v51 = vmul.f32 0.25, %v2955_v54 }
 0x731   : > { %v13006_v57 = vadd.f32 %v2977_v16, %v2969_v51 }
 0x733   : > { %v3002_v46 = vsel %vm2989_vm10, %v13006_v57, -inf }
 0x734   : > { %3003 = vmax.xlane.f32.xlu2 %v3002_v46 }
 0x736   : > { %v2957_v58 = vpop.f32.mrf.mxu2 }
 0x737   : > { %v2970_v62 = vmul.f32 0.25, %v2957_v58  ;;  %v9576_v58 = vld [vmem:[%s15162_s7 + $0x70] sm:$0xff] }
 0x739   : > { %v13011_v25 = vadd.f32 %v2978_v60, %v2970_v62 }
 0x73b   : > { %v3005_v63 = vsel %vm2989_vm10, %v13011_v25, -inf }
 0x73c   : > { %3006 = vmax.xlane.f32.xlu0 %v3005_v63 }
 0x73e   : > { %v2960_v1 = vpop.f32.mrf.mxu2 }
 0x73f   : > { %v2971_v10 = vmul.f32 0.25, %v2960_v1  ;;  %v9577_v1 = vld [vmem:[%s15162_s7 + $0x78] sm:$0xff]  ;;  %s15192_s7 = smov 32  }
 0x741   : > { %v13016_v4 = vadd.f32 %v2979_v2, %v2971_v10 }
 0x743   : > { %v3008_v6 = vsel %vm2989_vm10, %v13016_v4, -inf }
 0x744   : > { %3009 = vmax.xlane.f32.xlu0 %v3008_v6 }
 0x746   : > { %v2962_v8 = vpop.f32.mrf.mxu2 }
 0x747   : > { %v2972_v53 = vmul.f32 0.25, %v2962_v8 }
 0x749   : > { %v13021_v12 = vadd.f32 %v2980_v9, %v2972_v53 }
 0x74b   : > { %v3011_v13 = vsel %vm2989_vm10, %v13021_v12, -inf }
 0x74c   : > { %3012 = vmax.xlane.f32.xlu0 %v3011_v13 }
 0x74e   : > { %v3329_v15 = vpop.f32.mrf.mxu2 }
 0x74f   : > { %v3349_v17 = vmul.f32 0.25, %v3329_v15 }
 0x751   : > { %v13026_v18 = vadd.f32 %v9570_v14, %v3349_v17 }
 0x753   : > { %v3374_v19 = vsel %vm2989_vm10, %v13026_v18, -inf }
 0x754   : > { %3375 = vmax.xlane.f32.xlu2 %v3374_v19 }
 0x756   : > { %v3331_v5 = vpop.f32.mrf.mxu2 }
 0x757   : > { %v3350_v21 = vmul.f32 0.25, %v3331_v5 }
 0x759   : > { %v13031_v24 = vadd.f32 %v9571_v20, %v3350_v21 }
 0x75b   : > { %v3377_v11 = vsel %vm2989_vm10, %v13031_v24, -inf }
 0x75c   : > { %3378 = vmax.xlane.f32.xlu0 %v3377_v11 }
 0x75e   : > { %v3334_v35 = vpop.f32.mrf.mxu2 }
 0x75f   : > { %v3351_v48 = vmul.f32 0.25, %v3334_v35 }
 0x761   : > { %v13036_v28 = vadd.f32 %v9572_v59, %v3351_v48 }
 0x763   : > { %v3380_v30 = vsel %vm2989_vm10, %v13036_v28, -inf }
 0x764   : > { %3381 = vmax.xlane.f32.xlu2 %v3380_v30 }
 0x766   : > { %v3336_v31 = vpop.f32.mrf.mxu2 }
 0x767   : > { %v3352_v27 = vmul.f32 0.25, %v3336_v31 }
 0x769   : > { %v13041_v34 = vadd.f32 %v9573_v37, %v3352_v27 }
 0x76b   : > { %v3383_v45 = vsel %vm2989_vm10, %v13041_v34, -inf }
 0x76c   : > { %3384 = vmax.xlane.f32.xlu2 %v3383_v45 }
 0x76e   : > { %v3339_v38 = vpop.f32.mrf.mxu2 }
 0x76f   : > { %v3353_v41 = vmul.f32 0.25, %v3339_v38 }
 0x770   : > { %3196 = vrot.lane.b32.xlu0 %v12961_v56, %s15056_s11 }
 0x771   : > { %v13048_v44 = vadd.f32 %v9574_v0, %v3353_v41 }
 0x773   : > { %v3386_v47 = vsel %vm2989_vm10, %v13048_v44, -inf }
 0x774   : > { %3387 = vmax.xlane.f32.xlu2 %v3386_v47 }
 0x776   : > { %v3341_v49 = vpop.f32.mrf.mxu2 }
 0x777   : > { %v3354_v54 = vmul.f32 0.25, %v3341_v49 }
 0x779   : > { %v13053_v16 = vadd.f32 %v9575_v52, %v3354_v54 }
 0x77b   : > { %v3389_v51 = vsel %vm2989_vm10, %v13053_v16, -inf }
 0x77c   : > { %3390 = vmax.xlane.f32.xlu2 %v3389_v51 }
 0x77e   : > { %v3344_v46 = vpop.f32.mrf.mxu2 }
 0x77f   : > { %v3355_v60 = vmul.f32 0.25, %v3344_v46 }
 0x781   : > { %v13058_v56 = vadd.f32 %v9576_v58, %v3355_v60 }
 0x783   : > { %v3392_v62 = vsel %vm2989_vm10, %v13058_v56, -inf }
 0x784   : > { %3393 = vmax.xlane.f32.xlu2 %v3392_v62 }
 0x786   : > { %v3346_v63 = vpop.f32.mrf.mxu2 }
 0x787   : > { %v3356_v2 = vmul.f32 0.25, %v3346_v63  ;;  %v2992_v10 = vpop.xlane.xlu2 %2991 }
 0x788   : > { %v3014_v6 = vsub.f32 %v12986_v33, %v2992_v10 }
 0x789   : > { %v13064_v8 = vadd.f32 %v9577_v1, %v3356_v2 }
 0x78a   : > { %v3022_v53 = vmul.f32 1.442695, %v3014_v6 }
 0x78b   : > { %v3395_v9 = vsel %vm2989_vm10, %v13064_v8, -inf }
 0x78c   : > { %3396 = vmax.xlane.f32.xlu2 %v3395_v9  ;;  %10792 = vpow2.f32 %v3022_v53 }
 0x78f   : > { %v2995_v13 = vpop.xlane.xlu1 %2994 }
 0x790   : > { %v3015_v15 = vsub.f32 %v12991_v40, %v2995_v13 }
 0x792   : > { %v3024_v14 = vmul.f32 1.442695, %v3015_v15  ;;  %v13069_v17 = vpop.eup %10792 }
 0x793   : > { %v3038_v19 = vsel %vm2989_vm10, %v13069_v17, 0.0 }
 0x794   : > { %10794 = vpow2.f32 %v3024_v14 }
 0x797   : > { %v13077_v20 = vpop.xlane.xlu2 %2997 }
 0x79a   : > { %v13073_v5 = vpop.eup %10794  ;;  %3039 = vadd.xlane.f32.xlu0 %v3038_v19 }
 0x79b   : > { %v3041_v33 = vsel %vm2989_vm10, %v13073_v5, 0.0 }
 0x79c   : > { %3042 = vadd.xlane.f32.xlu1 %v3041_v33 }
 0x79f   : > { %v3001_v11 = vpop.xlane.xlu2 %3000 }
 0x7a0   : > { %v3017_v14 = vsub.f32 %v13001_v42, %v3001_v11  ;;  %v3016_v11 = vsub.f32 %v12996_v39, %v13077_v20 }
 0x7a7   : > { %v13083_v35 = vpop.xlane.xlu2 %3003 }
 0x7af   : > { %v13079_v21 = vpop.xlane.xlu0 %3006 }
 0x7b0   : > { %v3019_v39 = vsub.f32 %v13011_v25, %v13079_v21  ;;  %v3018_v25 = vsub.f32 %v13006_v57, %v13083_v35 }
 0x7b2   : > { %v3032_v20 = vmul.f32 1.442695, %v3019_v39 }
 0x7b7   : > { %v13081_v40 = vpop.xlane.xlu0 %3009 }
 0x7bf   : > { %v13085_v59 = vpop.xlane.xlu0 %3012 }
 0x7c7   : > { %v3376_v48 = vpop.xlane.xlu2 %3375 }
 0x7c8   : > { %v3398_v30 = vsub.f32 %v13026_v18, %v3376_v48 }
 0x7ca   : > { %v3406_v31 = vmul.f32 1.442695, %v3398_v30 }
 0x7cc   : > { %10796 = vpow2.f32 %v3406_v31  ;;  %v3026_v31 = vmul.f32 1.442695, %v3016_v11 }
 0x7cf   : > { %v3379_v37 = vpop.xlane.xlu0 %3378 }
 0x7d0   : > { %v3399_v27 = vsub.f32 %v13031_v24, %v3379_v37 }
 0x7d2   : > { %v13089_v45 = vpop.eup %10796  ;;  %v3408_v38 = vmul.f32 1.442695, %v3399_v27 }
 0x7d3   : > { %v3422_v0 = vsel %vm2989_vm10, %v13089_v45, 0.0 }
 0x7d4   : > { %10798 = vpow2.f32 %v3408_v38  ;;  %3423 = vadd.xlane.f32.xlu2 %v3422_v0 }
 0x7d7   : > { %v3382_v41 = vpop.xlane.xlu2 %3381 }
 0x7d8   : > { %v3400_v47 = vsub.f32 %v13036_v28, %v3382_v41 }
 0x7da   : > { %v13094_v49 = vpop.eup %10798  ;;  %v3410_v52 = vmul.f32 1.442695, %v3400_v47 }
 0x7db   : > { %v3425_v18 = vsel %vm2989_vm10, %v13094_v49, 0.0 }
 0x7dc   : > { %10800 = vpow2.f32 %v3410_v52  ;;  %3426 = vadd.xlane.f32.xlu2 %v3425_v18  ;;  %v3030_v18 = vmul.f32 1.442695, %v3018_v25 }
 0x7df   : > { %v3385_v24 = vpop.xlane.xlu2 %3384 }
 0x7e0   : > { %v3401_v54 = vsub.f32 %v13041_v34, %v3385_v24 }
 0x7e2   : > { %v13099_v51 = vpop.eup %10800  ;;  %v3412_v46 = vmul.f32 1.442695, %v3401_v54  ;;  %v3197_v58 = vpop.permute.xlu0 %3196 }
 0x7e3   : > { %3218 = vmatpush.bf16.msra.mxu3 %v3197_v58  ;;  %v3428_v60 = vsel %vm2989_vm10, %v13099_v51, 0.0 }
 0x7e4   : > { %10802 = vpow2.f32 %v3412_v46  ;;  %3429 = vadd.xlane.f32.xlu2 %v3428_v60 }
 0x7e7   : > { %v3388_v28 = vpop.xlane.xlu2 %3387 }
 0x7e8   : > { %v3402_v62 = vsub.f32 %v13048_v44, %v3388_v28 }
 0x7ea   : > { %v13104_v63 = vpop.eup %10802  ;;  %v3414_v1 = vmul.f32 1.442695, %v3402_v62 }
 0x7eb   : > { %v3431_v2 = vsel %vm2989_vm10, %v13104_v63, 0.0 }
 0x7ec   : > { %10804 = vpow2.f32 %v3414_v1  ;;  %3432 = vadd.xlane.f32.xlu1 %v3431_v2 }
 0x7ef   : > { %v3391_v34 = vpop.xlane.xlu2 %3390 }
 0x7f0   : > { %v3403_v10 = vsub.f32 %v13053_v16, %v3391_v34  ;;  %v3028_v16 = vmul.f32 1.442695, %v3017_v14 }
 0x7f2   : > { %v13109_v6 = vpop.eup %10804  ;;  %v3416_v9 = vmul.f32 1.442695, %v3403_v10 }
 0x7f3   : > { %v3434_v53 = vsel %vm2989_vm10, %v13109_v6, 0.0 }
 0x7f4   : > { %10806 = vpow2.f32 %v3416_v9  ;;  %3435 = vadd.xlane.f32.xlu2 %v3434_v53 }
 0x7f7   : > { %v3394_v44 = vpop.xlane.xlu2 %3393 }
 0x7f8   : > { %v3404_v13 = vsub.f32 %v13058_v56, %v3394_v44 }
 0x7fa   : > { %v13114_v15 = vpop.eup %10806  ;;  %v3418_v19 = vmul.f32 1.442695, %v3404_v13 }
 0x7fb   : > { %v3437_v33 = vsel %vm2989_vm10, %v13114_v15, 0.0 }
 0x7fc   : > { %10808 = vpow2.f32 %v3418_v19  ;;  %3438 = vadd.xlane.f32.xlu0 %v3437_v33 }
 0x7fd   : > { %10810 = vpow2.f32 %v3028_v16 }
 0x7fe   : > { %10812 = vpow2.f32 %v3026_v31 }
 0x7ff   : > { %v3397_v37 = vpop.xlane.xlu2 %3396 }
 0x800   : > { %v3405_v27 = vsub.f32 %v13064_v8, %v3397_v37 }
 0x802   : > { %v13119_v48 = vpop.eup %10808  ;;  %v3420_v41 = vmul.f32 1.442695, %v3405_v27 }
 0x803   : > { %v3440_v30 = vsel %vm2989_vm10, %v13119_v48, 0.0  ;;  %v13125_v56 = vpop.eup %10810 }
 0x804   : > { %3441 = vadd.xlane.f32.xlu2 %v3440_v30  ;;  %v3047_v42 = vsel %vm2989_vm10, %v13125_v56, 0.0  ;;  %v13138_v0 = vpop.eup %10812 }
 0x805   : > { %3194 = vrot.lane.b32.xlu1 %v12947_v32, %s15056_s11  ;;  %v3020_v32 = vsub.f32 %v13016_v4, %v13081_v40  ;;  %v3021_v40 = vsub.f32 %v13021_v12, %v13085_v59 }
 0x807   : > { %v3034_v38 = vmul.f32 1.442695, %v3020_v32  ;;  %v3036_v21 = vmul.f32 1.442695, %v3021_v40 }
 0x809   : > { %10814 = vpow2.f32 %v3034_v38 }
 0x80a   : > { %10816 = vpow2.f32 %v3420_v41 }
 0x80b   : > { %10818 = vpow2.f32 %v3032_v20 }
 0x80c   : > { %3048 = vadd.xlane.f32.xlu2 %v3047_v42  ;;  %10820 = vpow2.f32 %v3036_v21 }
 0x80d   : > { %10822 = vpow2.f32 %v3030_v18 }
 0x80f   : > { %v13168_v2 = vpop.xlane.xlu1 %3042 }
 0x810   : > { %3192 = vrot.lane.b32.xlu0 %v12944_v26, %s15056_s11  ;;  %v3044_v26 = vsel %vm2989_vm10, %v13138_v0, 0.0 }
 0x824   : > { %3190 = vrot.lane.b32.xlu2 %v12941_v23, %s15056_s11  ;;  %v13144_v23 = vpop.eup %10814  ;;  %s15170_s11 = sld [smem:[#allocation71_spill]] }
 0x825   : > { %v13146_v4 = vpop.eup %10816  ;;  %v3056_v8 = vsel %vm2989_vm10, %v13144_v23, 0.0 }
 0x826   : > { %v3443_v47 = vsel %vm2989_vm10, %v13146_v4, 0.0  ;;  %v13156_v52 = vpop.eup %10818 }
 0x827   : > { %v3053_v24 = vsel %vm2989_vm10, %v13156_v52, 0.0  ;;  %v13160_v54 = vpop.eup %10820 }
 0x828   : > { %v13162_v59 = vpop.eup %10822  ;;  %v3059_v46 = vsel %vm2989_vm10, %v13160_v54, 0.0 }
 0x829   : > { %v3050_v57 = vsel %vm2989_vm10, %v13162_v59, 0.0 }
 0x82f   : > { %3045 = vadd.xlane.f32.xlu1 %v3044_v26 }
 0x837   : > { %3057 = vadd.xlane.f32.xlu1 %v3056_v8 }
 0x83a   : > { %3444 = vadd.xlane.f32.xlu0 %v3443_v47  ;;  %v13172_v47 = vpop.xlane.xlu0 %3039 }
 0x842   : > { %3054 = vadd.xlane.f32.xlu0 %v3053_v24 }
 0x847   : > { %v3424_v12 = vpop.xlane.xlu2 %3423 }
 0x848   : > { %10824 = vrcp.f32 %v3424_v12  ;;  %v3457_v53 = vand.u32 2147483648, %v3424_v12  ;;  %vm3451_vm12 = vweird.f32 %v3424_v12  ;;  %v3455_v44 = vand.u32 2147483647, %v3424_v12 }
 0x84a   : > { %3060 = vadd.xlane.f32.xlu0 %v3059_v46  ;;  %v3458_v30 = vor.u32 1.1754944e-38, %v3457_v53  ;;  %vm3456_vm15 = vcmp.eq.f32.partialorder %v3455_v44, 8.507059e+37 }
 0x84d   : > { %3051 = vadd.xlane.f32.xlu2 %v3050_v57 }
 0x84e   : > { %v10825_v35 = vpop.eup %10824 }
 0x84f   : > { %v3447_v58 = vmul.f32 %v10825_v35, %v3424_v12  ;;  %v3427_v60 = vpop.xlane.xlu2 %3426  ;;  %vm3452_vm11 = vweird.f32 %v10825_v35 }
 0x850   : > { %10826 = vrcp.f32 %v3427_v60  ;;  %vm3453_vm13 = vmor %vm3451_vm12, %vm3452_vm11  ;;  %v3472_v14 = vand.u32 2147483648, %v3427_v60  ;;  %v3470_v33 = vand.u32 2147483647, %v3427_v60  ;;  %vm3466_vm2 = vweird.f32 %v3427_v60 }
 0x851   : > { %v3448_v28 = vsub.f32 1.0, %v3447_v58 }
 0x852   : > { %v3473_v31 = vor.u32 1.1754944e-38, %v3472_v14  ;;  %vm3471_vm4 = vcmp.eq.f32.partialorder %v3470_v33, 8.507059e+37 }
 0x853   : > { %v3449_v62 = vmul.f32 %v10825_v35, %v3448_v28 }
 0x855   : > { %v3450_v34 = vadd.f32 %v10825_v35, %v3449_v62 }
 0x856   : > { %v10827_v1 = vpop.eup %10826 }
 0x857   : > { %v3462_v10 = vmul.f32 %v10827_v1, %v3427_v60  ;;  %v3430_v9 = vpop.xlane.xlu2 %3429  ;;  %vm3467_vm14 = vweird.f32 %v10827_v1  ;;  %v3454_v16 = vsel %vm3453_vm13, %v10825_v35, %v3450_v34 }
 0x858   : > { %10828 = vrcp.f32 %v3430_v9  ;;  %vm3468_vm3 = vmor %vm3466_vm2, %vm3467_vm14  ;;  %v3459_v32 = vsel %vm3456_vm15, %v3458_v30, %v3454_v16  ;;  %v3487_v12 = vand.u32 2147483648, %v3430_v9  ;;  %vm3481_vm6 = vweird.f32 %v3430_v9 }
 0x859   : > { %v3463_v13 = vsub.f32 1.0, %v3462_v10  ;;  %v3460_v39 = vmul.f32 %v13089_v45, %v3459_v32 }
 0x85a   : > { %v3488_v28 = vor.u32 1.1754944e-38, %v3487_v12 }
 0x85b   : > { %v3464_v19 = vmul.f32 %v10827_v1, %v3463_v13 }
 0x85d   : > { %v3465_v42 = vadd.f32 %v10827_v1, %v3464_v19 }
 0x85e   : > { %v10829_v11 = vpop.eup %10828 }
 0x85f   : > { %v3477_v37 = vmul.f32 %v10829_v11, %v3430_v9  ;;  %v3433_v27 = vpop.xlane.xlu1 %3432  ;;  %v3469_v38 = vsel %vm3468_vm3, %v10827_v1, %v3465_v42  ;;  %vm3482_vm5 = vweird.f32 %v10829_v11  ;;  %vm3082_vm3 = vweird.f32 %v13168_v2 }
 0x860   : > { %10830 = vrcp.f32 %v3433_v27  ;;  %v3474_v41 = vsel %vm3471_vm4, %v3473_v31, %v3469_v38  ;;  %v3502_v46 = vand.u32 2147483648, %v3433_v27  ;;  %vm3483_vm7 = vmor %vm3481_vm6, %vm3482_vm5  ;;  %v3500_v60 = vand.u32 2147483647, %v3433_v27 }
 0x861   : > { %v3478_v26 = vsub.f32 1.0, %v3477_v37  ;;  %v3475_v20 = vmul.f32 %v13094_v49, %v3474_v41  ;;  %10832 = vrcp.f32 %v13168_v2  ;;  %v3485_v49 = vand.u32 2147483647, %v3430_v9 }
 0x862   : > { %10834 = vrcp.f32 %v13172_v47  ;;  %vm3496_vm11 = vweird.f32 %v3433_v27  ;;  %v3503_v9 = vor.u32 1.1754944e-38, %v3502_v46  ;;  %vm3501_vm14 = vcmp.eq.f32.partialorder %v3500_v60, 8.507059e+37 }
 0x863   : > { %v3479_v8 = vmul.f32 %v10829_v11, %v3478_v26  ;;  %v3566_v40 = vpack.c.bf16 %v3475_v20, %v3460_v39  ;;  %vm3486_vm12 = vcmp.eq.f32.partialorder %v3485_v49, 8.507059e+37  ;;  %v3088_v46 = vand.u32 2147483648, %v13168_v2 }
 0x865   : > { %9578 = vmatmul.msk.bf16.vlgmr.msrb.gmra.mxu1 %vm2989_vm10, %v3566_v40  ;;  %v3480_v24 = vadd.f32 %v10829_v11, %v3479_v8 }
 0x866   : > { %v10831_v25 = vpop.eup %10830 }
 0x867   : > { %v3492_v21 = vmul.f32 %v10831_v25, %v3433_v27  ;;  %v13177_v18 = vpop.xlane.xlu2 %3435  ;;  %v13180_v57 = vpop.eup %10832  ;;  %v3484_v58 = vsel %vm3483_vm7, %v10829_v11, %v3480_v24  ;;  %vm3497_vm8 = vweird.f32 %v10831_v25 }
 0x868   : > { %10836 = vrcp.f32 %v13177_v18  ;;  %v13182_v62 = vpop.eup %10834  ;;  %v3078_v10 = vmul.f32 %v13180_v57, %v13168_v2  ;;  %v3489_v53 = vsel %vm3486_vm12, %v3488_v28, %v3484_v58  ;;  %vm3498_vm13 = vmor %vm3496_vm11, %vm3497_vm8  ;;  %v3517_v8 = vand.u32 2147483648, %v13177_v18 }
 0x869   : > { %v3493_v45 = vsub.f32 1.0, %v3492_v21  ;;  %v3063_v33 = vmul.f32 %v13182_v62, %v13172_v47  ;;  %v3490_v30 = vmul.f32 %v13099_v51, %v3489_v53  ;;  %vm3511_vm2 = vweird.f32 %v13177_v18 }
 0x86a   : > { %v3079_v11 = vsub.f32 1.0, %v3078_v10  ;;  %v3515_v40 = vand.u32 2147483647, %v13177_v18  ;;  %vm3083_vm5 = vweird.f32 %v13180_v57  ;;  %vm3068_vm7 = vweird.f32 %v13182_v62 }
 0x86b   : > { %v3494_v35 = vmul.f32 %v10831_v25, %v3493_v45  ;;  %v3064_v37 = vsub.f32 1.0, %v3063_v33  ;;  %vm13214_vm12 = vmor %vm3082_vm3, %vm3083_vm5 }
 0x86c   : > { %v3080_v38 = vmul.f32 %v13180_v57, %v3079_v11  ;;  %vm3516_vm11 = vcmp.eq.f32.partialorder %v3515_v40, 8.507059e+37 }
 0x86d   : > { %v3495_v1 = vadd.f32 %v10831_v25, %v3494_v35  ;;  %v3065_v51 = vmul.f32 %v13182_v62, %v3064_v37  ;;  %v3086_v35 = vand.u32 2147483647, %v13168_v2 }
 0x86e   : > { %v10837_v34 = vpop.eup %10836  ;;  %v3081_v24 = vadd.f32 %v13180_v57, %v3080_v38 }
 0x86f   : > { %v3507_v44 = vmul.f32 %v10837_v34, %v13177_v18  ;;  %v3439_v13 = vpop.xlane.xlu0 %3438  ;;  %v3499_v14 = vsel %vm3498_vm13, %v10831_v25, %v3495_v1  ;;  %vm3512_vm15 = vweird.f32 %v10837_v34  ;;  %v3518_v18 = vor.u32 1.1754944e-38, %v3517_v8 }
 0x870   : > { %10838 = vrcp.f32 %v3439_v13  ;;  %v3504_v19 = vsel %vm3501_vm14, %v3503_v9, %v3499_v14  ;;  %v3532_v25 = vand.u32 2147483648, %v3439_v13  ;;  %vm13200_vm4 = vmor %vm3511_vm2, %vm3512_vm15  ;;  %v3530_v49 = vand.u32 2147483647, %v3439_v13 }
 0x871   : > { %v3508_v16 = vsub.f32 1.0, %v3507_v44  ;;  %v3505_v42 = vmul.f32 %v13104_v63, %v3504_v19  ;;  %vm3526_vm8 = vweird.f32 %v3439_v13  ;;  %v3066_v60 = vadd.f32 %v13182_v62, %v3065_v51 }
 0x872   : > { %vm3067_vm13 = vweird.f32 %v13172_v47  ;;  %v3073_v1 = vand.u32 2147483648, %v13172_v47  ;;  %v3533_v10 = vor.u32 1.1754944e-38, %v3532_v25  ;;  %vm3531_vm15 = vcmp.eq.f32.partialorder %v3530_v49, 8.507059e+37 }
 0x873   : > { %v3509_v31 = vmul.f32 %v10837_v34, %v3508_v16  ;;  %v3567_v32 = vpack.c.bf16 %v3505_v42, %v3490_v30  ;;  %v3071_v44 = vand.u32 2147483647, %v13172_v47  ;;  %v3085_v2 = vsel %vm13214_vm12, %v13180_v57, %v3081_v24  ;;  %vm3069_vm2 = vmor %vm3067_vm13, %vm3068_vm7 }
 0x874   : > { %v3089_v14 = vor.u32 1.1754944e-38, %v3088_v46  ;;  %v3070_v16 = vsel %vm3069_vm2, %v13182_v62, %v3066_v60  ;;  %vm3087_vm3 = vcmp.eq.f32.partialorder %v3086_v35, 8.507059e+37  ;;  %v3074_v42 = vor.u32 1.1754944e-38, %v3073_v1 }
 0x875   : > { %9579 = vmatmul.msk.bf16.gmra.mxu1 %vm2989_vm10, %v3567_v32  ;;  %v3510_v20 = vadd.f32 %v10837_v34, %v3509_v31 }
 0x876   : > { %v10839_v27 = vpop.eup %10838  ;;  %v3090_v11 = vsel %vm3087_vm3, %v3089_v14, %v3085_v2 }
 0x877   : > { %v3522_v41 = vmul.f32 %v10839_v27, %v3439_v13  ;;  %v3195_v26 = vpop.permute.xlu1 %3194  ;;  %v13193_v39 = vpop.xlane.xlu2 %3441  ;;  %v3514_v45 = vsel %vm13200_vm4, %v10837_v34, %v3510_v20  ;;  %vm3527_vm6 = vweird.f32 %v10839_v27  ;;  %vm3072_vm4 = vcmp.eq.f32.partialorder %v3071_v44, 8.507059e+37 }
 0x878   : > { %3219 = vmatpush.bf16.msra.mxu3 %v3195_v26  ;;  %v3519_v34 = vsel %vm3516_vm11, %v3518_v18, %v3514_v45  ;;  %vm3528_vm14 = vmor %vm3526_vm8, %vm3527_vm6  ;;  %v3075_v31 = vsel %vm3072_vm4, %v3074_v42, %v3070_v16  ;;  %v3091_v57 = vmul.f32 %v13073_v5, %v3090_v11  ;;  %vm3541_vm2 = vweird.f32 %v13193_v39 }
 0x879   : > { %v3523_v63 = vsub.f32 1.0, %v3522_v41  ;;  %v3520_v19 = vmul.f32 %v13109_v6, %v3519_v34  ;;  %v3076_v37 = vmul.f32 %v13069_v17, %v3075_v31 }
 0x87b   : > { %v3524_v12 = vmul.f32 %v10839_v27, %v3523_v63  ;;  %v3182_v6 = vpack.c.bf16 %v3091_v57, %v3076_v37 }
 0x87d   : > { %v3525_v58 = vadd.f32 %v10839_v27, %v3524_v12 }
 0x87f   : > { %v3049_v53 = vpop.xlane.xlu2 %3048  ;;  %v3529_v9 = vsel %vm3528_vm14, %v10839_v27, %v3525_v58 }
 0x880   : > { %v3534_v13 = vsel %vm3531_vm15, %v3533_v10, %v3529_v9  ;;  %10840 = vrcp.f32 %v3049_v53  ;;  %v3118_v51 = vand.u32 2147483648, %v3049_v53  ;;  %vm3112_vm6 = vweird.f32 %v3049_v53 }
 0x881   : > { %v3535_v33 = vmul.f32 %v13114_v15, %v3534_v13  ;;  %10842 = vrcp.f32 %v13193_v39  ;;  %v3116_v24 = vand.u32 2147483647, %v3049_v53  ;;  %v3547_v13 = vand.u32 2147483648, %v13193_v39 }
 0x882   : > { %v3193_v30 = vpop.permute.xlu0 %3192  ;;  %v3119_v18 = vor.u32 1.1754944e-38, %v3118_v51 }
 0x883   : > { %3220 = vmatpush.bf16.msra.mxu3 %v3193_v30  ;;  %v3568_v47 = vpack.c.bf16 %v3535_v33, %v3520_v19  ;;  %vm3117_vm13 = vcmp.eq.f32.partialorder %v3116_v24, 8.507059e+37  ;;  %v3548_v11 = vor.u32 1.1754944e-38, %v3547_v13 }
 0x885   : > { %9580 = vmatmul.msk.bf16.gmra.mxu1 %vm2989_vm10, %v3568_v47 }
 0x886   : > { %v10841_v15 = vpop.eup %10840 }
 0x887   : > { %v3191_v32 = vpop.permute.xlu2 %3190  ;;  %v3108_v62 = vmul.f32 %v10841_v15, %v3049_v53  ;;  %v13234_v41 = vpop.eup %10842  ;;  %vm3113_vm5 = vweird.f32 %v10841_v15 }
 0x888   : > { %3221 = vmatpush.bf16.msra.mxu3 %v3191_v32  ;;  %v3537_v5 = vmul.f32 %v13234_v41, %v13193_v39  ;;  %vm3114_vm8 = vmor %vm3112_vm6, %vm3113_vm5  ;;  %vm3542_vm15 = vweird.f32 %v13234_v41 }
 0x889   : > { %v3109_v38 = vsub.f32 1.0, %v3108_v62  ;;  %vm3543_vm4 = vmor %vm3541_vm2, %vm3542_vm15 }
 0x88a   : > { %v3538_v40 = vsub.f32 1.0, %v3537_v5 }
 0x88b   : > { %9562 = vmatmul.msk.bf16.vlgmr.msra.gmra.mxu3 %vm2989_vm10, %v3182_v6  ;;  %v3110_v26 = vmul.f32 %v10841_v15, %v3109_v38 }
 0x88c   : > { %v3539_v58 = vmul.f32 %v13234_v41, %v3538_v40 }
 0x88d   : > { %v3111_v8 = vadd.f32 %v10841_v15, %v3110_v26 }
 0x88e   : > { %v3540_v2 = vadd.f32 %v13234_v41, %v3539_v58 }
 0x88f   : > { %v3115_v49 = vsel %vm3114_vm8, %v10841_v15, %v3111_v8 }
 0x890   : > { %v3120_v28 = vsel %vm3117_vm13, %v3119_v18, %v3115_v49 }
 0x891   : > { %v3121_v44 = vmul.f32 %v13125_v56, %v3120_v28  ;;  %v3544_v56 = vsel %vm3543_vm4, %v13234_v41, %v3540_v2 }
 0x8a2   : > { %v3046_v27 = vpop.xlane.xlu1 %3045 }
 0x8a3   : > { %10844 = vrcp.f32 %v3046_v27  ;;  %v3103_v25 = vand.u32 2147483648, %v3046_v27  ;;  %v3101_v45 = vand.u32 2147483647, %v3046_v27  ;;  %vm3097_vm11 = vweird.f32 %v3046_v27 }
 0x8a5   : > { %v3104_v35 = vor.u32 1.1754944e-38, %v3103_v25  ;;  %vm3102_vm14 = vcmp.eq.f32.partialorder %v3101_v45, 8.507059e+37 }
 0x8a9   : > { %v10845_v20 = vpop.eup %10844 }
 0x8aa   : > { %v3093_v17 = vmul.f32 %v10845_v20, %v3046_v27  ;;  %vm3098_vm7 = vweird.f32 %v10845_v20  ;;  %v13254_v15 = vpop.xlane.xlu1 %3057 }
 0x8ab   : > { %vm3099_vm12 = vmor %vm3097_vm11, %vm3098_vm7 }
 0x8ac   : > { %v3094_v63 = vsub.f32 1.0, %v3093_v17 }
 0x8ad   : > { %v3445_v21 = vpop.xlane.xlu0 %3444 }
 0x8ae   : > { %v3095_v12 = vmul.f32 %v10845_v20, %v3094_v63  ;;  %10846 = vrcp.f32 %v3445_v21  ;;  %v3562_v33 = vand.u32 2147483648, %v3445_v21  ;;  %v3560_v30 = vand.u32 2147483647, %v3445_v21 }
 0x8af   : > { %vm3556_vm5 = vweird.f32 %v3445_v21 }
 0x8b0   : > { %v3096_v46 = vadd.f32 %v10845_v20, %v3095_v12  ;;  %v3563_v31 = vor.u32 1.1754944e-38, %v3562_v33  ;;  %vm3561_vm8 = vcmp.eq.f32.partialorder %v3560_v30, 8.507059e+37 }
 0x8b2   : > { %v3100_v60 = vsel %vm3099_vm12, %v10845_v20, %v3096_v46 }
 0x8b3   : > { %v3105_v1 = vsel %vm3102_vm14, %v3104_v35, %v3100_v60 }
 0x8b4   : > { %v10847_v34 = vpop.eup %10846  ;;  %v3106_v10 = vmul.f32 %v13138_v0, %v3105_v1  ;;  %v3545_v0 = vand.u32 2147483647, %v13193_v39 }
 0x8b5   : > { %v3552_v53 = vmul.f32 %v10847_v34, %v3445_v21  ;;  %v13240_v9 = vpop.xlane.xlu0 %3054  ;;  %vm3557_vm3 = vweird.f32 %v10847_v34 }
 0x8b6   : > { %10848 = vrcp.f32 %v13240_v9  ;;  %v3183_v19 = vpack.c.bf16 %v3121_v44, %v3106_v10  ;;  %vm3558_vm6 = vmor %vm3556_vm5, %vm3557_vm3  ;;  %vm3546_vm7 = vcmp.eq.f32.partialorder %v3545_v0, 8.507059e+37  ;;  %vm3142_vm12 = vweird.f32 %v13240_v9 }
 0x8b7   : > { %v3553_v14 = vsub.f32 1.0, %v3552_v53  ;;  %v3549_v39 = vsel %vm3546_vm7, %v3548_v11, %v3544_v56  ;;  %v3146_v25 = vand.u32 2147483647, %v13240_v9  ;;  %v3163_v0 = vand.u32 2147483648, %v13254_v15 }
 0x8b8   : > { %9563 = vmatmul.msk.bf16.gmra.mxu3 %vm2989_vm10, %v3183_v19  ;;  %v3550_v41 = vmul.f32 %v13119_v48, %v3549_v39 }
 0x8b9   : > { %v3554_v16 = vmul.f32 %v10847_v34, %v3553_v14  ;;  %vm3147_vm2 = vcmp.eq.f32.partialorder %v3146_v25, 8.507059e+37  ;;  %v3164_v56 = vor.u32 1.1754944e-38, %v3163_v0 }
 0x8bb   : > { %v3555_v42 = vadd.f32 %v10847_v34, %v3554_v16 }
 0x8bc   : > { %v10849_v47 = vpop.eup %10848 }
 0x8bd   : > { %v3138_v57 = vmul.f32 %v10849_v47, %v13240_v9  ;;  %v13252_v32 = vpop.xlane.xlu0 %3060  ;;  %v3559_v37 = vsel %vm3558_vm6, %v10847_v34, %v3555_v42  ;;  %vm3143_vm11 = vweird.f32 %v10849_v47 }
 0x8be   : > { %v3564_v6 = vsel %vm3561_vm8, %v3563_v31, %v3559_v37  ;;  %10850 = vrcp.f32 %v13252_v32  ;;  %vm3144_vm13 = vmor %vm3142_vm12, %vm3143_vm11  ;;  %v3178_v14 = vand.u32 2147483648, %v13252_v32  ;;  %vm3172_vm6 = vweird.f32 %v13252_v32 }
 0x8bf   : > { %v3565_v62 = vmul.f32 %v13146_v4, %v3564_v6  ;;  %v3139_v27 = vsub.f32 1.0, %v3138_v57  ;;  %v3148_v4 = vand.u32 2147483648, %v13240_v9  ;;  %v3176_v33 = vand.u32 2147483647, %v13252_v32 }
 0x8c0   : > { %v3052_v38 = vpop.xlane.xlu2 %3051  ;;  %vm3157_vm11 = vweird.f32 %v13254_v15  ;;  %v3179_v16 = vor.u32 1.1754944e-38, %v3178_v14 }
 0x8c1   : > { %10852 = vrcp.f32 %v3052_v38  ;;  %v3569_v26 = vpack.c.bf16 %v3565_v62, %v3550_v41  ;;  %v3140_v20 = vmul.f32 %v10849_v47, %v3139_v27  ;;  %v3133_v24 = vand.u32 2147483648, %v3052_v38 }
 0x8c2   : > { %10854 = vrcp.f32 %v13254_v15  ;;  %v3131_v45 = vand.u32 2147483647, %v3052_v38  ;;  %v3149_v46 = vor.u32 1.1754944e-38, %v3148_v4  ;;  %vm3127_vm15 = vweird.f32 %v3052_v38 }
 0x8c3   : > { %9581 = vmatmul.msk.bf16.gmra.mxu1 %vm2989_vm10, %v3569_v26  ;;  %v3141_v63 = vadd.f32 %v10849_v47, %v3140_v20  ;;  %v3134_v58 = vor.u32 1.1754944e-38, %v3133_v24  ;;  %v10130_v26 = vld [vmem:[%s15167_s28] sm:$0xff] }
 0x8c4   : > { %v10851_v5 = vpop.eup %10850  ;;  %vm3132_vm4 = vcmp.eq.f32.partialorder %v3131_v45, 8.507059e+37 }
 0x8c5   : > { %v3168_v40 = vmul.f32 %v10851_v5, %v13252_v32  ;;  %v3145_v49 = vsel %vm3144_vm13, %v10849_v47, %v3141_v63  ;;  %vm3173_vm5 = vweird.f32 %v10851_v5  ;;  %vm3177_vm13 = vcmp.eq.f32.partialorder %v3176_v33, 8.507059e+37 }
 0x8c6   : > { %v3150_v60 = vsel %vm3147_vm2, %v3149_v46, %v3145_v49  ;;  %vm3174_vm8 = vmor %vm3172_vm6, %vm3173_vm5 }
 0x8c7   : > { %v10853_v17 = vpop.eup %10852  ;;  %v3169_v18 = vsub.f32 1.0, %v3168_v40  ;;  %v3151_v9 = vmul.f32 %v13156_v52, %v3150_v60  ;;  %v3161_v52 = vand.u32 2147483647, %v13254_v15 }
 0x8c8   : > { %v10855_v8 = vpop.eup %10854  ;;  %v3123_v51 = vmul.f32 %v10853_v17, %v3052_v38  ;;  %vm3128_vm14 = vweird.f32 %v10853_v17 }
 0x8c9   : > { %v3153_v21 = vmul.f32 %v10855_v8, %v13254_v15  ;;  %vm3129_vm3 = vmor %vm3127_vm15, %vm3128_vm14  ;;  %v3170_v10 = vmul.f32 %v10851_v5, %v3169_v18  ;;  %vm3158_vm7 = vweird.f32 %v10855_v8  ;;  %vm3162_vm14 = vcmp.eq.f32.partialorder %v3161_v52, 8.507059e+37 }
 0x8ca   : > { %v3124_v48 = vsub.f32 1.0, %v3123_v51  ;;  %vm3159_vm12 = vmor %vm3157_vm11, %vm3158_vm7 }
 0x8cb   : > { %v3154_v28 = vsub.f32 1.0, %v3153_v21  ;;  %v3171_v13 = vadd.f32 %v10851_v5, %v3170_v10 }
 0x8cc   : > { %v3125_v12 = vmul.f32 %v10853_v17, %v3124_v48 }
 0x8cd   : > { %v3155_v44 = vmul.f32 %v10855_v8, %v3154_v28 }
 0x8ce   : > { %v3126_v35 = vadd.f32 %v10853_v17, %v3125_v12 }
 0x8cf   : > { %v3156_v19 = vadd.f32 %v10855_v8, %v3155_v44 }
 0x8d0   : > { %v3130_v1 = vsel %vm3129_vm3, %v10853_v17, %v3126_v35 }
 0x8d1   : > { %v3135_v34 = vsel %vm3132_vm4, %v3134_v58, %v3130_v1  ;;  %v3160_v30 = vsel %vm3159_vm12, %v10855_v8, %v3156_v19 }
 0x8d2   : > { %v3136_v53 = vmul.f32 %v13162_v59, %v3135_v34  ;;  %v3175_v59 = vsel %vm3174_vm8, %v10851_v5, %v3171_v13  ;;  %v3165_v11 = vsel %vm3162_vm14, %v3164_v56, %v3160_v30 }
 0x8d3   : > { %v3180_v42 = vsel %vm3177_vm13, %v3179_v16, %v3175_v59  ;;  %v3166_v57 = vmul.f32 %v13144_v23, %v3165_v11  ;;  %v10131_v23 = vld [vmem:[%s15167_s28 + $0x8] sm:$0xff]  ;;  %v10729_v59 = vld [vmem:[#allocation7] ss:$0 sm:$0xff] }
 0x8d4   : > { %v3184_v2 = vpack.c.bf16 %v3151_v9, %v3136_v53  ;;  %v3181_v47 = vmul.f32 %v13160_v54, %v3180_v42  ;;  %3701 = vmatpush.bf16.msrb.mxu0 %v10131_v23 }
 0x8d6   : > { %9564 = vmatmul.msk.bf16.gmra.mxu3 %vm2989_vm10, %v3184_v2  ;;  %v3185_v32 = vpack.c.bf16 %v3181_v47, %v3166_v57 }
 0x8d8   : > { %3702 = vmatpush.bf16.msrb.mxu0 %v10130_v26 }
 0x8e2   : > { %v3603_v31 = vpop.f32.mrf.mxu1 }
 0x8e6   : > { %9565 = vmatmul.msk.bf16.gmra.mxu3 %vm2989_vm10, %v3185_v32 }
 0x8ea   : > { %v3605_v39 = vpop.f32.mrf.mxu1 }
 0x8eb   : > { %v10546_v37 = vpack.i.bf16 %v3605_v39, %v3603_v31 }
 0x8ed   : > { %10547 = vrot.lane.b32.xlu1 %v10546_v37, %s15054_s10 }
 0x8f2   : > { %v3608_v6 = vpop.f32.mrf.mxu1 }
 0x8fa   : > { %v3610_v15 = vpop.f32.mrf.mxu1 }
 0x8fb   : > { %v10551_v62 = vpack.i.bf16 %v3610_v15, %v3608_v6 }
 0x8fd   : > { %10552 = vrot.lane.b32.xlu0 %v10551_v62, %s15054_s10 }
 0x902   : > { %v3613_v27 = vpop.f32.mrf.mxu1 }
 0x90a   : > { %v3615_v54 = vpop.f32.mrf.mxu1 }
 0x90b   : > { %v10556_v38 = vpack.i.bf16 %v3615_v54, %v3613_v27 }
 0x90d   : > { %10557 = vrot.lane.b32.xlu2 %v10556_v38, %s15054_s10 }
 0x90e   : > { %v3223_v17 = vpop.f32.mrf.mxu3 }
 0x916   : > { %v3225_v8 = vpop.f32.mrf.mxu3 }
 0x93b   : > { %v3228_v25 = vpop.f32.mrf.mxu3 }
 0x940   : > { %v3618_v41 = vpop.f32.mrf.mxu1 }
 0x943   : > { %v3230_v24 = vpop.f32.mrf.mxu3 }
 0x948   : > { %v3620_v20 = vpop.f32.mrf.mxu1 }
 0x949   : > { %v10561_v5 = vpack.i.bf16 %v3620_v20, %v3618_v41 }
 0x94b   : > { %10562 = vrot.lane.b32.xlu1 %v10561_v5, %s15054_s10  ;;  %s15169_s10 = sld [smem:[#allocation68_spill]] }
 0x959   : > { %v3233_v58 = vpop.f32.mrf.mxu3 }
 0x95f   : > { %v10548_v51 = vpop.permute.xlu1 %10547 }
 0x960   : > { %v10550_v63 = vunpack.i.h.bf16 %v10548_v51  ;;  %v10549_v4 = vunpack.i.l.bf16 %v10548_v51 }
 0x961   : > { %v3235_v34 = vpop.f32.mrf.mxu3 }
 0x962   : > { %v3655_v40 = vsel %vm2923_vm9, %v3223_v17, %v10549_v4  ;;  %v3656_v48 = vsel %vm2923_vm9, %v3225_v8, %v10550_v63 }
 0x963   : > { %v3667_v21 = vpack.c.bf16 %v3656_v48, %v3655_v40 }
 0x965   : > { %9590 = vmatmul.msk.bf16.vlgmr.msrb.gmra.mxu0 %vm2383_vm1, %v3667_v21 }
 0x967   : > { %v10558_v60 = vpop.permute.xlu2 %10557 }
 0x968   : > { %v10560_v28 = vunpack.i.h.bf16 %v10558_v60  ;;  %v10559_v1 = vunpack.i.l.bf16 %v10558_v60 }
 0x969   : > { %v3238_v44 = vpop.f32.mrf.mxu3 }
 0x96a   : > { %v3659_v10 = vsel %vm2923_vm9, %v3233_v58, %v10559_v1  ;;  %v3660_v53 = vsel %vm2923_vm9, %v3235_v34, %v10560_v28 }
 0x96b   : > { %v3669_v9 = vpack.c.bf16 %v3660_v53, %v3659_v10 }
 0x96f   : > { %v10553_v12 = vpop.permute.xlu0 %10552 }
 0x970   : > { %v10555_v45 = vunpack.i.h.bf16 %v10553_v12  ;;  %v10554_v49 = vunpack.i.l.bf16 %v10553_v12 }
 0x971   : > { %v3240_v19 = vpop.f32.mrf.mxu3 }
 0x972   : > { %v3657_v46 = vsel %vm2923_vm9, %v3228_v25, %v10554_v49  ;;  %v3658_v18 = vsel %vm2923_vm9, %v3230_v24, %v10555_v45 }
 0x973   : > { %v3668_v35 = vpack.c.bf16 %v3658_v18, %v3657_v46 }
 0x975   : > { %9591 = vmatmul.msk.bf16.gmra.mxu0 %vm2383_vm1, %v3668_v35 }
 0x985   : > { %9592 = vmatmul.msk.bf16.gmra.mxu0 %vm2383_vm1, %v3669_v9 }
 0x9bd   : > { %v10563_v2 = vpop.permute.xlu1 %10562 }
 0x9be   : > { %v10565_v13 = vunpack.i.h.bf16 %v10563_v2  ;;  %v10564_v14 = vunpack.i.l.bf16 %v10563_v2 }
 0x9c0   : > { %v3661_v33 = vsel %vm2923_vm9, %v3238_v44, %v10564_v14  ;;  %v3662_v0 = vsel %vm2923_vm9, %v3240_v19, %v10565_v13 }
 0x9c1   : > { %v3670_v52 = vpack.c.bf16 %v3662_v0, %v3661_v33 }
 0x9c3   : > { %9593 = vmatmul.msk.bf16.gmra.mxu0 %vm2383_vm1, %v3670_v52 }
 0x9e2   : > { %v3704_v16 = vpop.f32.mrf.mxu0 }
 0x9e3   : > { %v3724_v30 = vadd.f32 %v3704_v16, %v12785_v55 }
 0x9e5   : > { %v13297_v56 = vadd.f32 %v10729_v59, %v3724_v30 }
 0x9e7   : > { %v3746_v42 = vsel %vm2383_vm1, %v13297_v56, 0.0 }
 0x9e8   : > { %3747 = vadd.xlane.f32.xlu0 %v3746_v42 }
 0x9ea   : > { %v3706_v11 = vpop.f32.mrf.mxu0 }
 0x9eb   : > { %v3725_v47 = vadd.f32 %v3706_v11, %v12793_v7 }
 0x9ed   : > { %v13302_v31 = vadd.f32 %v10729_v59, %v3725_v47 }
 0x9ef   : > { %v3749_v57 = vsel %vm2383_vm1, %v13302_v31, 0.0 }
 0x9f0   : > { %3750 = vadd.xlane.f32.xlu1 %v3749_v57  ;;  %v10133_v57 = vld [vmem:[%s15168_s18 + $0x8] sm:$0xff] }
 0x9f1   : > { %3986 = vmatpush.bf16.msrb.mxu3 %v10133_v57 }
 0x9f2   : > { %v3709_v32 = vpop.f32.mrf.mxu0 }
 0x9f3   : > { %v3726_v39 = vadd.f32 %v3709_v32, %v12801_v22 }
 0x9f5   : > { %v13307_v37 = vadd.f32 %v10729_v59, %v3726_v39 }
 0x9f7   : > { %v3752_v55 = vsel %vm2383_vm1, %v13307_v37, 0.0 }
 0x9f8   : > { %3753 = vadd.xlane.f32.xlu2 %v3752_v55  ;;  %v10132_v55 = vld [vmem:[%s15168_s18] sm:$0xff] }
 0x9f9   : > { %3987 = vmatpush.bf16.msrb.mxu3 %v10132_v55 }
 0x9fa   : > { %v3711_v6 = vpop.f32.mrf.mxu0 }
 0x9fb   : > { %v3727_v15 = vadd.f32 %v3711_v6, %v12809_v36 }
 0x9fd   : > { %v13312_v62 = vadd.f32 %v10729_v59, %v3727_v15 }
 0x9ff   : > { %v3755_v7 = vsel %vm2383_vm1, %v13312_v62, 0.0 }
 0xa00   : > { %3756 = vadd.xlane.f32.xlu0 %v3755_v7 }
 0xa02   : > { %v3714_v27 = vpop.f32.mrf.mxu0 }
 0xa03   : > { %v3728_v54 = vadd.f32 %v3714_v27, %v12816_v50 }
 0xa05   : > { %v13317_v38 = vadd.f32 %v10729_v59, %v3728_v54 }
 0xa07   : > { %v3758_v22 = vsel %vm2383_vm1, %v13317_v38, 0.0 }
 0xa08   : > { %3759 = vadd.xlane.f32.xlu1 %v3758_v22 }
 0xa0a   : > { %v3716_v23 = vpop.f32.mrf.mxu0 }
 0xa0b   : > { %v3729_v41 = vadd.f32 %v3716_v23, %v12823_v61 }
 0xa0d   : > { %v13322_v26 = vadd.f32 %v10729_v59, %v3729_v41 }
 0xa0f   : > { %v3761_v36 = vsel %vm2383_vm1, %v13322_v26, 0.0 }
 0xa10   : > { %3762 = vadd.xlane.f32.xlu0 %v3761_v36 }
 0xa40   : > { %v3719_v20 = vpop.f32.mrf.mxu0 }
 0xa41   : > { %v3730_v5 = vadd.f32 %v3719_v20, %v12830_v3 }
 0xa43   : > { %v13327_v17 = vadd.f32 %v10729_v59, %v3730_v5 }
 0xa45   : > { %v3764_v50 = vsel %vm2383_vm1, %v13327_v17, 0.0 }
 0xa46   : > { %3765 = vadd.xlane.f32.xlu2 %v3764_v50 }
 0xa48   : > { %v3721_v63 = vpop.f32.mrf.mxu0 }
 0xa49   : > { %v3731_v40 = vadd.f32 %v3721_v63, %v12851_v29 }
 0xa4b   : > { %v13340_v21 = vadd.f32 %v10729_v59, %v3731_v40 }
 0xa4d   : > { %v3767_v49 = vsel %vm2383_vm1, %v13340_v21, 0.0 }
 0xa5b   : > { %v3748_v8 = vpop.xlane.xlu0 %3747 }
 0xa5c   : > { %v3770_v51 = vmul.f32 %v3748_v8, %v12721_v43 }
 0xa5e   : > { %v13333_v61 = vsub.f32 %v13297_v56, %v3770_v51 }
 0xa60   : > { %v3786_v4 = vmul.f32 %v13333_v61, %v13333_v61 }
 0xa62   : > { %v3794_v3 = vsel %vm2383_vm1, %v3786_v4, 0.0 }
 0xa63   : > { %v3751_v48 = vpop.xlane.xlu1 %3750  ;;  %3795 = vadd.xlane.f32.xlu1 %v3794_v3 }
 0xa64   : > { %v3771_v25 = vmul.f32 %v3751_v48, %v12721_v43 }
 0xa66   : > { %v13343_v24 = vsub.f32 %v13302_v31, %v3771_v25 }
 0xa68   : > { %v3787_v12 = vmul.f32 %v13343_v24, %v13343_v24 }
 0xa6a   : > { %v3797_v45 = vsel %vm2383_vm1, %v3787_v12, 0.0 }
 0xa6b   : > { %v3754_v29 = vpop.xlane.xlu2 %3753  ;;  %3798 = vadd.xlane.f32.xlu0 %v3797_v45  ;;  %3768 = vadd.xlane.f32.xlu1 %v3767_v49 }
 0xa6c   : > { %v3772_v46 = vmul.f32 %v3754_v29, %v12721_v43 }
 0xa6e   : > { %v13352_v18 = vsub.f32 %v13307_v37, %v3772_v46 }
 0xa70   : > { %v3788_v35 = vmul.f32 %v13352_v18, %v13352_v18 }
 0xa72   : > { %v3800_v58 = vsel %vm2383_vm1, %v3788_v35, 0.0 }
 0xa73   : > { %v3757_v60 = vpop.xlane.xlu0 %3756  ;;  %3801 = vadd.xlane.f32.xlu0 %v3800_v58 }
 0xa74   : > { %v3773_v28 = vmul.f32 %v3757_v60, %v12721_v43 }
 0xa76   : > { %v13359_v1 = vsub.f32 %v13312_v62, %v3773_v28  ;;  %v13399_v28 = vld [vmem:[#allocation6] ss:$0 sm:$0xff] }
 0xa78   : > { %v3789_v34 = vmul.f32 %v13359_v1, %v13359_v1 }
 0xa7a   : > { %v3803_v10 = vsel %vm2383_vm1, %v3789_v34, 0.0 }
 0xa7b   : > { %v3760_v53 = vpop.xlane.xlu1 %3759  ;;  %3804 = vadd.xlane.f32.xlu2 %v3803_v10 }
 0xa7c   : > { %v3774_v9 = vmul.f32 %v3760_v53, %v12721_v43 }
 0xa7e   : > { %v13366_v44 = vsub.f32 %v13317_v38, %v3774_v9 }
 0xa80   : > { %v3790_v2 = vmul.f32 %v13366_v44, %v13366_v44 }
 0xa82   : > { %v3806_v13 = vsel %vm2383_vm1, %v3790_v2, 0.0 }
 0xa83   : > { %v3763_v14 = vpop.xlane.xlu0 %3762  ;;  %3807 = vadd.xlane.f32.xlu1 %v3806_v13 }
 0xa84   : > { %v3775_v19 = vmul.f32 %v3763_v14, %v12721_v43  ;;  %v13403_v14 = vld [vmem:[#allocation4] ss:$0 sm:$0xff] }
 0xa86   : > { %v13373_v33 = vsub.f32 %v13322_v26, %v3775_v19 }
 0xa88   : > { %v3791_v0 = vmul.f32 %v13373_v33, %v13373_v33 }
 0xa8a   : > { %v3809_v52 = vsel %vm2383_vm1, %v3791_v0, 0.0 }
 0xa8b   : > { %3810 = vadd.xlane.f32.xlu0 %v3809_v52 }
 0xab9   : > { %v3766_v59 = vpop.xlane.xlu2 %3765 }
 0xaba   : > { %v3776_v16 = vmul.f32 %v3766_v59, %v12721_v43 }
 0xabc   : > { %v13380_v30 = vsub.f32 %v13327_v17, %v3776_v16 }
 0xabe   : > { %v3792_v42 = vmul.f32 %v13380_v30, %v13380_v30 }
 0xac0   : > { %v3812_v11 = vsel %vm2383_vm1, %v3792_v42, 0.0 }
 0xac1   : > { %3813 = vadd.xlane.f32.xlu2 %v3812_v11 }
 0xad6   : > { %v3796_v47 = vpop.xlane.xlu1 %3795 }
 0xad7   : > { %v3818_v32 = vmul.f32 %v3796_v47, %v12721_v43 }
 0xad9   : > { %v3826_v39 = vadd.f32 1e-05, %v3818_v32 }
 0xadb   : > { %10856 = vrsqrt.f32 %v3826_v39  ;;  %vm3840_vm2 = vweird.f32 %v3826_v39 }
 0xade   : > { %v3799_v6 = vpop.xlane.xlu0 %3798  ;;  %v3769_v15 = vpop.xlane.xlu1 %3768 }
 0xadf   : > { %v3819_v7 = vmul.f32 %v3799_v6, %v12721_v43  ;;  %v3777_v27 = vmul.f32 %v3769_v15, %v12721_v43 }
 0xae1   : > { %v10857_v54 = vpop.eup %10856  ;;  %v3827_v22 = vadd.f32 1e-05, %v3819_v7  ;;  %v13391_v23 = vsub.f32 %v13340_v21, %v3777_v27 }
 0xae2   : > { %v3835_v41 = vmul.f32 %v10857_v54, %v3826_v39  ;;  %vm3841_vm15 = vweird.f32 %v10857_v54 }
 0xae3   : > { %10858 = vrsqrt.f32 %v3827_v22  ;;  %v3793_v36 = vmul.f32 %v13391_v23, %v13391_v23  ;;  %vm3842_vm3 = vmor %vm3840_vm2, %vm3841_vm15  ;;  %vm3850_vm5 = vweird.f32 %v3827_v22 }
 0xae4   : > { %v3836_v20 = vmul.f32 %v10857_v54, %v3835_v41 }
 0xae5   : > { %v3815_v5 = vsel %vm2383_vm1, %v3793_v36, 0.0 }
 0xae6   : > { %v3837_v50 = vmul.f32 0.5, %v3836_v20  ;;  %v3802_v8 = vpop.xlane.xlu0 %3801  ;;  %3816 = vadd.xlane.f32.xlu1 %v3815_v5 }
 0xae7   : > { %v3820_v51 = vmul.f32 %v3802_v8, %v12721_v43 }
 0xae8   : > { %v3838_v63 = vsub.f32 1.5, %v3837_v50 }
 0xae9   : > { %v10859_v4 = vpop.eup %10858  ;;  %v3828_v40 = vadd.f32 1e-05, %v3820_v51 }
 0xaea   : > { %v3839_v3 = vmul.f32 %v10857_v54, %v3838_v63  ;;  %v3845_v48 = vmul.f32 %v10859_v4, %v3827_v22  ;;  %vm3851_vm4 = vweird.f32 %v10859_v4 }
 0xaeb   : > { %10860 = vrsqrt.f32 %v3828_v40  ;;  %vm3852_vm6 = vmor %vm3850_vm5, %vm3851_vm4  ;;  %vm3860_vm8 = vweird.f32 %v3828_v40 }
 0xaec   : > { %v3846_v25 = vmul.f32 %v10859_v4, %v3845_v48  ;;  %v3843_v12 = vsel %vm3842_vm3, %v10857_v54, %v3839_v3 }
 0xaed   : > { %v3914_v58 = vmul.f32 %v3843_v12, %v13333_v61 }
 0xaee   : > { %v3847_v45 = vmul.f32 0.5, %v3846_v25  ;;  %v3805_v49 = vpop.xlane.xlu2 %3804 }
 0xaef   : > { %v3821_v29 = vmul.f32 %v3805_v49, %v12721_v43  ;;  %v3925_v13 = vmul.f32 %v13399_v28, %v3914_v58 }
 0xaf0   : > { %v3848_v46 = vsub.f32 1.5, %v3847_v45 }
 0xaf1   : > { %v10861_v35 = vpop.eup %10860  ;;  %v3829_v60 = vadd.f32 1e-05, %v3821_v29  ;;  %v3936_v11 = vadd.f32 %v13403_v14, %v3925_v13 }
 0xaf2   : > { %v3849_v34 = vmul.f32 %v10859_v4, %v3848_v46  ;;  %v3855_v10 = vmul.f32 %v10861_v35, %v3828_v40  ;;  %vm3861_vm7 = vweird.f32 %v10861_v35 }
 0xaf3   : > { %10862 = vrsqrt.f32 %v3829_v60  ;;  %vm3862_vm11 = vmor %vm3860_vm8, %vm3861_vm7  ;;  %vm3870_vm13 = vweird.f32 %v3829_v60 }
 0xaf4   : > { %v3853_v53 = vsel %vm3852_vm6, %v10859_v4, %v3849_v34  ;;  %v3856_v9 = vmul.f32 %v10861_v35, %v3855_v10 }
 0xaf5   : > { %v3915_v2 = vmul.f32 %v3853_v53, %v13343_v24 }
 0xaf6   : > { %v3857_v19 = vmul.f32 0.5, %v3856_v9  ;;  %v3808_v0 = vpop.xlane.xlu1 %3807 }
 0xaf7   : > { %v3822_v61 = vmul.f32 %v3808_v0, %v12721_v43  ;;  %v3926_v52 = vmul.f32 %v13399_v28, %v3915_v2 }
 0xaf8   : > { %v3858_v59 = vsub.f32 1.5, %v3857_v19 }
 0xaf9   : > { %v10863_v16 = vpop.eup %10862  ;;  %v3830_v42 = vadd.f32 1e-05, %v3822_v61  ;;  %v3937_v47 = vadd.f32 %v13403_v14, %v3926_v52 }
 0xafa   : > { %v3859_v57 = vmul.f32 %v10861_v35, %v3858_v59  ;;  %v3865_v24 = vmul.f32 %v10863_v16, %v3829_v60  ;;  %vm3871_vm12 = vweird.f32 %v10863_v16 }
 0xafb   : > { %10864 = vrsqrt.f32 %v3830_v42  ;;  %v3948_v32 = vpack.c.bf16 %v3937_v47, %v3936_v11  ;;  %vm3872_vm14 = vmor %vm3870_vm13, %vm3871_vm12  ;;  %vm3880_vm2 = vweird.f32 %v3830_v42 }
 0xafc   : > { %v3866_v39 = vmul.f32 %v10863_v16, %v3865_v24  ;;  %v3863_v55 = vsel %vm3862_vm11, %v10861_v35, %v3859_v57 }
 0xafd   : > { %9602 = vmatmul.msk.bf16.vlgmr.msrb.gmra.mxu3 %vm2383_vm1, %v3948_v32  ;;  %v3916_v22 = vmul.f32 %v3863_v55, %v13352_v18 }
 0xafe   : > { %v3867_v6 = vmul.f32 0.5, %v3866_v39  ;;  %v3811_v15 = vpop.xlane.xlu0 %3810 }
 0xaff   : > { %v3823_v7 = vmul.f32 %v3811_v15, %v12721_v43  ;;  %v3927_v51 = vmul.f32 %v13399_v28, %v3916_v22 }
 0xb00   : > { %v3868_v27 = vsub.f32 1.5, %v3867_v6 }
 0xb01   : > { %v10865_v54 = vpop.eup %10864  ;;  %v3831_v41 = vadd.f32 1e-05, %v3823_v7  ;;  %v3938_v48 = vadd.f32 %v13403_v14, %v3927_v51 }
 0xb02   : > { %v3869_v36 = vmul.f32 %v10863_v16, %v3868_v27  ;;  %v3875_v20 = vmul.f32 %v10865_v54, %v3830_v42  ;;  %vm3881_vm15 = vweird.f32 %v10865_v54 }
 0xb03   : > { %10866 = vrsqrt.f32 %v3831_v41  ;;  %vm3882_vm3 = vmor %vm3880_vm2, %vm3881_vm15  ;;  %vm3890_vm5 = vweird.f32 %v3831_v41 }
 0xb04   : > { %v3873_v5 = vsel %vm3872_vm14, %v10863_v16, %v3869_v36  ;;  %v3876_v50 = vmul.f32 %v10865_v54, %v3875_v20 }
 0xb05   : > { %v3917_v8 = vmul.f32 %v3873_v5, %v13359_v1 }
 0xb06   : > { %v3877_v63 = vmul.f32 0.5, %v3876_v50 }
 0xb07   : > { %v3928_v4 = vmul.f32 %v13399_v28, %v3917_v8 }
 0xb08   : > { %v3878_v40 = vsub.f32 1.5, %v3877_v63  ;;  %v10141_v63 = vld [vmem:[%s15170_s11 + $0x38] sm:$0xff] }
 0xb09   : > { %v10867_v3 = vpop.eup %10866  ;;  %v3939_v18 = vadd.f32 %v13403_v14, %v3928_v4  ;;  %4397 = vmatpush.bf16.msra.mxu2 %v10141_v63 }
 0xb0a   : > { %v3879_v25 = vmul.f32 %v10865_v54, %v3878_v40  ;;  %v3885_v12 = vmul.f32 %v10867_v3, %v3831_v41  ;;  %vm3891_vm4 = vweird.f32 %v10867_v3 }
 0xb0b   : > { %v3949_v45 = vpack.c.bf16 %v3939_v18, %v3938_v48  ;;  %vm3892_vm6 = vmor %vm3890_vm5, %vm3891_vm4  ;;  %v10139_v18 = vld [vmem:[%s15170_s11 + $0x28] sm:$0xff] }
 0xb0c   : > { %v3886_v49 = vmul.f32 %v10867_v3, %v3885_v12  ;;  %v3883_v1 = vsel %vm3882_vm3, %v10865_v54, %v3879_v25 }
 0xb0d   : > { %9603 = vmatmul.msk.bf16.gmra.mxu3 %vm2383_vm1, %v3949_v45  ;;  %v3918_v35 = vmul.f32 %v3883_v1, %v13366_v44  ;;  %v10138_v45 = vld [vmem:[%s15170_s11 + $0x20] sm:$0xff] }
 0xb0e   : > { %v3887_v29 = vmul.f32 0.5, %v3886_v49 }
 0xb0f   : > { %v3929_v10 = vmul.f32 %v13399_v28, %v3918_v35 }
 0xb10   : > { %v3888_v46 = vsub.f32 1.5, %v3887_v29 }
 0xb11   : > { %v3940_v9 = vadd.f32 %v13403_v14, %v3929_v10 }
 0xb12   : > { %v3889_v58 = vmul.f32 %v10867_v3, %v3888_v46 }
 0xb14   : > { %v3893_v60 = vsel %vm3892_vm6, %v10867_v3, %v3889_v58 }
 0xb15   : > { %v3919_v34 = vmul.f32 %v3893_v60, %v13373_v33 }
 0xb17   : > { %v3930_v53 = vmul.f32 %v13399_v28, %v3919_v34  ;;  %v10137_v34 = vld [vmem:[%s15170_s11 + $0x18] sm:$0xff] }
 0xb19   : > { %v3941_v2 = vadd.f32 %v13403_v14, %v3930_v53 }
 0xb1b   : > { %v3950_v13 = vpack.c.bf16 %v3941_v2, %v3940_v9 }
 0xb1d   : > { %9604 = vmatmul.msk.bf16.gmra.mxu3 %vm2383_vm1, %v3950_v13 }
 0xb34   : > { %v3814_v19 = vpop.xlane.xlu2 %3813 }
 0xb35   : > { %v3824_v44 = vmul.f32 %v3814_v19, %v12721_v43 }
 0xb37   : > { %v3832_v0 = vadd.f32 1e-05, %v3824_v44  ;;  %v10136_v44 = vld [vmem:[%s15170_s11 + $0x10] sm:$0xff] }
 0xb39   : > { %10868 = vrsqrt.f32 %v3832_v0  ;;  %vm3900_vm8 = vweird.f32 %v3832_v0 }
 0xb3f   : > { %v10869_v61 = vpop.eup %10868 }
 0xb40   : > { %v3895_v52 = vmul.f32 %v10869_v61, %v3832_v0  ;;  %vm3901_vm7 = vweird.f32 %v10869_v61 }
 0xb41   : > { %vm3902_vm11 = vmor %vm3900_vm8, %vm3901_vm7 }
 0xb42   : > { %v3896_v59 = vmul.f32 %v10869_v61, %v3895_v52 }
 0xb44   : > { %v3897_v11 = vmul.f32 0.5, %v3896_v59 }
 0xb46   : > { %v3898_v47 = vsub.f32 1.5, %v3897_v11 }
 0xb48   : > { %v3899_v24 = vmul.f32 %v10869_v61, %v3898_v47 }
 0xb4a   : > { %v3903_v55 = vsel %vm3902_vm11, %v10869_v61, %v3899_v24  ;;  %v10135_v24 = vld [vmem:[%s15170_s11 + $0x8] sm:$0xff] }
 0xb4b   : > { %v3920_v7 = vmul.f32 %v3903_v55, %v13380_v30  ;;  %v13435_v30 = vld [vmem:[%s15169_s10] ss:$0 sm:$0xff]  ;;  %s15173_s10 = sld [smem:[#allocation70_spill]] }
 0xb4d   : > { %v3931_v41 = vmul.f32 %v13399_v28, %v3920_v7 }
 0xb4f   : > { %v3942_v20 = vadd.f32 %v13403_v14, %v3931_v41  ;;  %v10134_v41 = vld [vmem:[%s15170_s11] sm:$0xff] }
 0xb59   : > { %v3817_v33 = vpop.xlane.xlu1 %3816 }
 0xb5a   : > { %v3825_v16 = vmul.f32 %v3817_v33, %v12721_v43 }
 0xb5c   : > { %v3833_v42 = vadd.f32 1e-05, %v3825_v16 }
 0xb5e   : > { %10870 = vrsqrt.f32 %v3833_v42  ;;  %vm3910_vm13 = vweird.f32 %v3833_v42 }
 0xb64   : > { %v10871_v57 = vpop.eup %10870 }
 0xb65   : > { %v3905_v32 = vmul.f32 %v10871_v57, %v3833_v42  ;;  %vm3911_vm12 = vweird.f32 %v10871_v57 }
 0xb66   : > { %vm3912_vm14 = vmor %vm3910_vm13, %vm3911_vm12 }
 0xb67   : > { %v3906_v39 = vmul.f32 %v10871_v57, %v3905_v32 }
 0xb69   : > { %v3907_v6 = vmul.f32 0.5, %v3906_v39 }
 0xb6b   : > { %v3908_v15 = vsub.f32 1.5, %v3907_v6 }
 0xb6d   : > { %v3909_v27 = vmul.f32 %v10871_v57, %v3908_v15 }
 0xb6f   : > { %v3913_v54 = vsel %vm3912_vm14, %v10871_v57, %v3909_v27 }
 0xb70   : > { %v3921_v22 = vmul.f32 %v3913_v54, %v13391_v23 }
 0xb72   : > { %v3932_v36 = vmul.f32 %v13399_v28, %v3921_v22 }
 0xb74   : > { %v3943_v5 = vadd.f32 %v13403_v14, %v3932_v36  ;;  %v10140_v14 = vld [vmem:[%s15170_s11 + $0x30] sm:$0xff] }
 0xb75   : > { %4398 = vmatpush.bf16.msra.mxu2 %v10140_v14 }
 0xb76   : > { %v3951_v50 = vpack.c.bf16 %v3943_v5, %v3942_v20 }
 0xb78   : > { %9605 = vmatmul.msk.bf16.gmra.mxu3 %vm2383_vm1, %v3951_v50 }
 0xb79   : > { %4399 = vmatpush.bf16.msra.mxu2 %v10139_v18 }
 0xb7d   : > { %4400 = vmatpush.bf16.msra.mxu2 %v10138_v45 }
 0xb80   : > { %v3989_v8 = vpop.f32.mrf.mxu3 }
 0xb81   : > { %v13438_v51 = vadd.f32 %v13435_v30, %v3989_v8  ;;  %4401 = vmatpush.bf16.msra.mxu2 %v10137_v34 }
 0xb83   : > { %v13441_v23 = vmul.f32 0.70710677, %v13438_v51 }
 0xb85   : > { %v4041_v28 = vand.u32 2147483647, %v13441_v23  ;;  %4402 = vmatpush.bf16.msra.mxu2 %v10136_v44  ;;  %vm4025_vm11 = vcmp.ge.f32.partialorder %v13441_v23, 0.0 }
 0xb87   : > { %v4049_v4 = vmul.f32 0.3275911, %v4041_v28  ;;  %v4257_v11 = vsub.f32 0.0, %v4041_v28 }
 0xb88   : > { %v3991_v40 = vpop.f32.mrf.mxu3 }
 0xb89   : > { %v4057_v3 = vadd.f32 1.0, %v4049_v4  ;;  %v13447_v48 = vadd.f32 %v13435_v30, %v3991_v40  ;;  %4403 = vmatpush.bf16.msra.mxu2 %v10135_v24  ;;  %v4265_v15 = vmul.f32 %v4257_v11, %v4041_v28 }
 0xb8b   : > { %10872 = vrcp.f32 %v4057_v3  ;;  %v13451_v25 = vmul.f32 0.70710677, %v13447_v48  ;;  %v4076_v53 = vand.u32 2147483648, %v4057_v3  ;;  %v4074_v13 = vand.u32 2147483647, %v4057_v3 }
 0xb8c   : > { %vm4070_vm2 = vweird.f32 %v4057_v3 }
 0xb8d   : > { %v13454_v12 = vand.u32 2147483647, %v13451_v25  ;;  %v4077_v52 = vor.u32 1.1754944e-38, %v4076_v53  ;;  %vm4075_vm4 = vcmp.eq.f32.partialorder %v4074_v13, 8.507059e+37  ;;  %4404 = vmatpush.bf16.msra.mxu2 %v10134_v41 }
 0xb8f   : > { %v4050_v49 = vmul.f32 0.3275911, %v13454_v12  ;;  %v4258_v20 = vsub.f32 0.0, %v13454_v12 }
 0xb90   : > { %v3994_v1 = vpop.f32.mrf.mxu3 }
 0xb91   : > { %v10873_v29 = vpop.eup %10872  ;;  %v13459_v46 = vadd.f32 %v13435_v30, %v3994_v1  ;;  %v4058_v58 = vadd.f32 1.0, %v4050_v49  ;;  %v4266_v34 = vmul.f32 %v4258_v20, %v13454_v12 }
 0xb92   : > { %v4066_v35 = vmul.f32 %v10873_v29, %v4057_v3  ;;  %vm4071_vm15 = vweird.f32 %v10873_v29  ;;  %v4273_v3 = vmul.f32 1.442695, %v4265_v15  ;;  %v12016_v15 = vmov -1.0  }
 0xb93   : > { %v13462_v60 = vmul.f32 0.70710677, %v13459_v46  ;;  %10874 = vrcp.f32 %v4058_v58  ;;  %vm4072_vm3 = vmor %vm4070_vm2, %vm4071_vm15  ;;  %v4091_v7 = vand.u32 2147483648, %v4058_v58  ;;  %v4089_v54 = vand.u32 2147483647, %v4058_v58 }
 0xb94   : > { %v4067_v10 = vsub.f32 1.0, %v4066_v35  ;;  %vm4085_vm6 = vweird.f32 %v4058_v58 }
 0xb95   : > { %v13466_v9 = vand.u32 2147483647, %v13462_v60  ;;  %v4092_v14 = vor.u32 1.1754944e-38, %v4091_v7  ;;  %vm4090_vm8 = vcmp.eq.f32.partialorder %v4089_v54, 8.507059e+37  ;;  %v4033_v7 = vsel %vm4025_vm11, 1.0, %v12016_v15 }
 0xb96   : > { %v4068_v2 = vmul.f32 %v10873_v29, %v4067_v10 }
 0xb97   : > { %v4051_v19 = vmul.f32 0.3275911, %v13466_v9  ;;  %v4259_v11 = vsub.f32 0.0, %v13466_v9 }
 0xb98   : > { %v4069_v0 = vadd.f32 %v10873_v29, %v4068_v2  ;;  %v3996_v61 = vpop.f32.mrf.mxu3 }
 0xb99   : > { %v13470_v59 = vadd.f32 1.0, %v4051_v19  ;;  %v13473_v33 = vadd.f32 %v13435_v30, %v3996_v61  ;;  %v10875_v16 = vpop.eup %10874 }
 0xb9a   : > { %v4073_v42 = vsel %vm4072_vm3, %v10873_v29, %v4069_v0  ;;  %v4081_v57 = vmul.f32 %v10875_v16, %v4058_v58  ;;  %vm4086_vm5 = vweird.f32 %v10875_v16  ;;  %vm4026_vm3 = vcmp.ge.f32.partialorder %v13451_v25, 0.0 }
 0xb9b   : > { %v13475_v47 = vsel %vm4075_vm4, %v4077_v52, %v4073_v42  ;;  %10876 = vrcp.f32 %v13470_v59  ;;  %v13481_v55 = vmul.f32 0.70710677, %v13473_v33  ;;  %vm4087_vm7 = vmor %vm4085_vm6, %vm4086_vm5  ;;  %vm4100_vm13 = vweird.f32 %v13470_v59 }
 0xb9c   : > { %v4185_v32 = vmul.f32 1.0614054, %v13475_v47  ;;  %v4082_v39 = vsub.f32 1.0, %v4081_v57  ;;  %v4106_v19 = vand.u32 2147483648, %v13470_v59  ;;  %v4104_v52 = vand.u32 2147483647, %v13470_v59 }
 0xb9d   : > { %v13484_v22 = vand.u32 2147483647, %v13481_v55 }
 0xb9e   : > { %v4193_v6 = vadd.f32 -1.4531521, %v4185_v32  ;;  %v4083_v27 = vmul.f32 %v10875_v16, %v4082_v39  ;;  %v4275_v39 = vmul.f32 1.442695, %v4266_v34  ;;  %v4107_v41 = vor.u32 1.1754944e-38, %v4106_v19 }
 0xb9f   : > { %v4052_v63 = vmul.f32 0.3275911, %v13484_v22  ;;  %vm4105_vm15 = vcmp.eq.f32.partialorder %v4104_v52, 8.507059e+37 }
 0xba0   : > { %v4201_v36 = vmul.f32 %v4193_v6, %v13475_v47  ;;  %v3999_v5 = vpop.f32.mrf.mxu3  ;;  %v4084_v8 = vadd.f32 %v10875_v16, %v4083_v27 }
 0xba1   : > { %v10877_v50 = vpop.eup %10876  ;;  %v13491_v28 = vadd.f32 %v13435_v30, %v3999_v5  ;;  %v13494_v45 = vadd.f32 1.0, %v4052_v63 }
 0xba2   : > { %v4209_v4 = vadd.f32 1.4214138, %v4201_v36  ;;  %v4096_v40 = vmul.f32 %v10877_v50, %v13470_v59  ;;  %v4088_v18 = vsel %vm4087_vm7, %v10875_v16, %v4084_v8  ;;  %vm4101_vm12 = vweird.f32 %v10877_v50 }
 0xba3   : > { %v13497_v1 = vsel %vm4090_vm8, %v4092_v14, %v4088_v18  ;;  %v13500_v35 = vmul.f32 0.70710677, %v13491_v28  ;;  %10878 = vrcp.f32 %v13494_v45  ;;  %v13515_v16 = vmul.f32 0.5, %v13438_v51  ;;  %vm13522_vm14 = vmor %vm4100_vm13, %vm4101_vm12 }
 0xba4   : > { %v4217_v49 = vmul.f32 %v4209_v4, %v13475_v47  ;;  %v4097_v29 = vsub.f32 1.0, %v4096_v40  ;;  %v4186_v58 = vmul.f32 1.0614054, %v13497_v1  ;;  %10880 = vpow2.f32 %v4273_v3 }
 0xba5   : > { %v13507_v2 = vand.u32 2147483647, %v13500_v35  ;;  %v4267_v8 = vmul.f32 %v4259_v11, %v13466_v9  ;;  %v13547_v14 = vmul.f32 0.5, %v13447_v48  ;;  %v4260_v3 = vsub.f32 0.0, %v13484_v22 }
 0xba6   : > { %v4225_v10 = vadd.f32 -0.28449672, %v4217_v49  ;;  %v4098_v53 = vmul.f32 %v10877_v50, %v4097_v29  ;;  %v4194_v13 = vadd.f32 -1.4531521, %v4186_v58  ;;  %v4121_v49 = vand.u32 2147483648, %v13494_v45 }
 0xba7   : > { %v4053_v0 = vmul.f32 0.3275911, %v13507_v2  ;;  %v4119_v9 = vand.u32 2147483647, %v13494_v45  ;;  %v4277_v34 = vmul.f32 1.442695, %v4267_v8  ;;  %vm4115_vm4 = vweird.f32 %v13494_v45 }
 0xba8   : > { %v4233_v44 = vmul.f32 %v4225_v10, %v13475_v47  ;;  %v4001_v61 = vpop.f32.mrf.mxu3  ;;  %v4099_v12 = vadd.f32 %v10877_v50, %v4098_v53  ;;  %v4202_v42 = vmul.f32 %v4194_v13, %v13497_v1  ;;  %v4261_v25 = vsub.f32 0.0, %v13507_v2 }
 0xba9   : > { %v13520_v57 = vadd.f32 %v13435_v30, %v4001_v61  ;;  %v13526_v6 = vadd.f32 1.0, %v4053_v0  ;;  %v10879_v51 = vpop.eup %10878  ;;  %vm4120_vm6 = vcmp.eq.f32.partialorder %v4119_v9, 8.507059e+37 }
 0xbaa   : > { %v4241_v32 = vadd.f32 0.2548296, %v4233_v44  ;;  %v4103_v59 = vsel %vm13522_vm14, %v10877_v50, %v4099_v12  ;;  %v4210_v27 = vadd.f32 1.4214138, %v4202_v42  ;;  %v4111_v20 = vmul.f32 %v10879_v51, %v13494_v45  ;;  %v10881_v5 = vpop.eup %10880 }
 0xbab   : > { %v13534_v54 = vmul.f32 0.70710677, %v13520_v57  ;;  %10882 = vrcp.f32 %v13526_v6  ;;  %v13544_v63 = vsel %vm4105_vm15, %v4107_v41, %v4103_v59  ;;  %vm4116_vm2 = vweird.f32 %v10879_v51 }
 0xbac   : > { %v4249_v36 = vmul.f32 %v4241_v32, %v13475_v47  ;;  %v4218_v50 = vmul.f32 %v4210_v27, %v13497_v1  ;;  %10884 = vpow2.f32 %v4275_v39  ;;  %v4112_v47 = vsub.f32 1.0, %v4111_v20  ;;  %vm4117_vm5 = vmor %vm4115_vm4, %vm4116_vm2 }
 0xbad   : > { %v13542_v23 = vand.u32 2147483647, %v13534_v54  ;;  %v4187_v58 = vmul.f32 1.0614054, %v13544_v63  ;;  %v4122_v12 = vor.u32 1.1754944e-38, %v4121_v49  ;;  %v4268_v42 = vmul.f32 %v4260_v3, %v13484_v22 }
 0xbae   : > { %v4289_v4 = vmul.f32 %v10881_v5, %v4249_v36  ;;  %v4226_v40 = vadd.f32 -0.28449672, %v4218_v50  ;;  %v4113_v29 = vmul.f32 %v10879_v51, %v4112_v47  ;;  %v4134_v59 = vand.u32 2147483647, %v13526_v6 }
 0xbaf   : > { %v4054_v18 = vmul.f32 0.3275911, %v13542_v23  ;;  %v4195_v44 = vadd.f32 -1.4531521, %v4187_v58  ;;  %v4034_v27 = vsel %vm4026_vm3, 1.0, %v12016_v15  ;;  %v4136_v22 = vand.u32 2147483648, %v13526_v6 }
 0xbb0   : > { %v4234_v48 = vmul.f32 %v4226_v40, %v13497_v1  ;;  %v4297_v13 = vsub.f32 1.0, %v4289_v4  ;;  %v4114_v19 = vadd.f32 %v10879_v51, %v4113_v29  ;;  %vm4130_vm8 = vweird.f32 %v13526_v6 }
 0xbb1   : > { %v13556_v10 = vadd.f32 1.0, %v4054_v18  ;;  %v10883_v53 = vpop.eup %10882  ;;  %v4203_v24 = vmul.f32 %v4195_v44, %v13544_v63  ;;  %v4137_v49 = vor.u32 1.1754944e-38, %v4136_v22  ;;  %vm4135_vm12 = vcmp.eq.f32.partialorder %v4134_v59, 8.507059e+37 }
 0xbb2   : > { %v4242_v0 = vadd.f32 0.2548296, %v4234_v48  ;;  %v4126_v61 = vmul.f32 %v10883_v53, %v13526_v6  ;;  %v10885_v52 = vpop.eup %10884  ;;  %v4118_v11 = vsel %vm4117_vm5, %v10879_v51, %v4114_v19  ;;  %v4305_v51 = vmul.f32 %v4297_v13, %v4033_v7 }
 0xbb3   : > { %10886 = vrcp.f32 %v13556_v10  ;;  %v13565_v45 = vsel %vm4120_vm6, %v4122_v12, %v4118_v11  ;;  %v4211_v36 = vadd.f32 1.4214138, %v4203_v24  ;;  %vm4131_vm7 = vweird.f32 %v10883_v53 }
 0xbb4   : > { %v4250_v32 = vmul.f32 %v4242_v0, %v13497_v1  ;;  %v4127_v39 = vsub.f32 1.0, %v4126_v61  ;;  %v4188_v41 = vmul.f32 1.0614054, %v13565_v45  ;;  %10888 = vpow2.f32 %v4277_v34  ;;  %vm4132_vm11 = vmor %vm4130_vm8, %vm4131_vm7 }
 0xbb5   : > { %v4279_v1 = vmul.f32 1.442695, %v4268_v42  ;;  %v4219_v8 = vmul.f32 %v4211_v36, %v13544_v63  ;;  %v4313_v29 = vadd.f32 1.0, %v4305_v51  ;;  %v4149_v44 = vand.u32 2147483647, %v13556_v10 }
 0xbb6   : > { %v4290_v20 = vmul.f32 %v10885_v52, %v4250_v32  ;;  %v4128_v5 = vmul.f32 %v10883_v53, %v4127_v39  ;;  %v4196_v50 = vadd.f32 -1.4531521, %v4188_v41  ;;  %v4151_v0 = vand.u32 2147483648, %v13556_v10 }
 0xbb7   : > { %v4227_v7 = vadd.f32 -0.28449672, %v4219_v8  ;;  %v4269_v32 = vmul.f32 %v4261_v25, %v13507_v2  ;;  %vm4145_vm14 = vweird.f32 %v13556_v10  ;;  %10890 = vpow2.f32 %v4279_v1 }
 0xbb8   : > { %v4298_v47 = vsub.f32 1.0, %v4290_v20  ;;  %v4129_v40 = vadd.f32 %v10883_v53, %v4128_v5  ;;  %v4204_v18 = vmul.f32 %v4196_v50, %v13565_v45  ;;  %v4152_v22 = vor.u32 1.1754944e-38, %v4151_v0 }
 0xbb9   : > { %v10887_v4 = vpop.eup %10886  ;;  %v4235_v13 = vmul.f32 %v4227_v7, %v13544_v63  ;;  %vm4150_vm2 = vcmp.eq.f32.partialorder %v4149_v44, 8.507059e+37  ;;  %v4262_v2 = vsub.f32 0.0, %v13542_v23  ;;  %vm4027_vm3 = vcmp.ge.f32.partialorder %v13462_v60, 0.0 }
 0xbba   : > { %v4141_v3 = vmul.f32 %v10887_v4, %v13556_v10  ;;  %v4306_v9 = vmul.f32 %v4298_v47, %v4034_v27  ;;  %v4133_v58 = vsel %vm4132_vm11, %v10883_v53, %v4129_v40  ;;  %v4212_v34 = vadd.f32 1.4214138, %v4204_v18  ;;  %v10889_v12 = vpop.eup %10888 }
 0xbbb   : > { %v4138_v19 = vsel %vm4135_vm12, %v4137_v49, %v4133_v58  ;;  %v4243_v42 = vadd.f32 0.2548296, %v4235_v13  ;;  %vm4146_vm13 = vweird.f32 %v10887_v4  ;;  %v4321_v53 = vmul.f32 %v4313_v29, %v13515_v16 }
 0xbbc   : > { %v4142_v48 = vsub.f32 1.0, %v4141_v3  ;;  %v4314_v6 = vadd.f32 1.0, %v4306_v9  ;;  %v4189_v61 = vmul.f32 1.0614054, %v4138_v19  ;;  %v4220_v52 = vmul.f32 %v4212_v34, %v13565_v45  ;;  %vm4147_vm15 = vmor %vm4145_vm14, %vm4146_vm13 }
 0xbbd   : > { %v4251_v27 = vmul.f32 %v4243_v42, %v13544_v63  ;;  %v10891_v3 = vpop.eup %10890  ;;  %v4035_v18 = vsel %vm4027_vm3, 1.0, %v12016_v15  ;;  %vm4028_vm4 = vcmp.ge.f32.partialorder %v13481_v55, 0.0  ;;  %v4011_v55 = vmul.f32 0.5, %v13459_v46 }
 0xbbe   : > { %v4143_v11 = vmul.f32 %v10887_v4, %v4142_v48  ;;  %v4322_v24 = vmul.f32 %v4314_v6, %v13547_v14  ;;  %v4197_v39 = vadd.f32 -1.4531521, %v4189_v61  ;;  %v4228_v59 = vadd.f32 -0.28449672, %v4220_v52 }
 0xbbf   : > { %v4291_v5 = vmul.f32 %v10889_v12, %v4251_v27  ;;  %v4281_v14 = vmul.f32 1.442695, %v4269_v32  ;;  %v4036_v34 = vsel %vm4028_vm4, 1.0, %v12016_v15  ;;  %vm4029_vm5 = vcmp.ge.f32.partialorder %v13500_v35, 0.0 }
 0xbc0   : > { %v4144_v41 = vadd.f32 %v10887_v4, %v4143_v11  ;;  %v4345_v36 = vpack.c.bf16 %v4322_v24, %v4321_v53  ;;  %v4205_v51 = vmul.f32 %v4197_v39, %v4138_v19  ;;  %v4236_v20 = vmul.f32 %v4228_v59, %v13565_v45 }
 0xbc1   : > { %v4299_v10 = vsub.f32 1.0, %v4291_v5  ;;  %10892 = vpow2.f32 %v4281_v14  ;;  %vm4030_vm6 = vcmp.ge.f32.partialorder %v13534_v54, 0.0  ;;  %v4014_v35 = vmul.f32 0.5, %v13520_v57 }
 0xbc2   : > { %v4148_v16 = vsel %vm4147_vm15, %v10887_v4, %v4144_v41  ;;  %4405 = vmatmul.bf16.vlgmr.msra.gmra.mxu2 %v4345_v36  ;;  %v4213_v8 = vadd.f32 1.4214138, %v4205_v51  ;;  %v4244_v63 = vadd.f32 0.2548296, %v4236_v20  ;;  %v4270_v4 = vmul.f32 %v4262_v2, %v13542_v23 }
 0xbc3   : > { %v4153_v50 = vsel %vm4150_vm2, %v4152_v22, %v4148_v16  ;;  %v4307_v29 = vmul.f32 %v4299_v10, %v4035_v18  ;;  %v4012_v23 = vmul.f32 0.5, %v13473_v33  ;;  %v4037_v36 = vsel %vm4029_vm5, 1.0, %v12016_v15 }
 0xbc4   : > { %v4190_v1 = vmul.f32 1.0614054, %v4153_v50  ;;  %v4221_v47 = vmul.f32 %v4213_v8, %v4138_v19  ;;  %v4252_v25 = vmul.f32 %v4244_v63, %v13565_v45  ;;  %v4283_v13 = vmul.f32 1.442695, %v4270_v4 }
 0xbc5   : > { %v4315_v44 = vadd.f32 1.0, %v4307_v29  ;;  %v4038_v51 = vsel %vm4030_vm6, 1.0, %v12016_v15  ;;  %v4013_v16 = vmul.f32 0.5, %v13491_v28 }
 0xbc6   : > { %v4198_v40 = vadd.f32 -1.4531521, %v4190_v1  ;;  %v4229_v7 = vadd.f32 -0.28449672, %v4221_v47  ;;  %v4292_v49 = vmul.f32 %v10891_v3, %v4252_v25  ;;  %10894 = vpow2.f32 %v4283_v13 }
 0xbc7   : > { %v10893_v12 = vpop.eup %10892  ;;  %v4323_v53 = vmul.f32 %v4315_v44, %v4011_v55 }
 0xbc8   : > { %v4206_v9 = vmul.f32 %v4198_v40, %v4153_v50  ;;  %v4237_v60 = vmul.f32 %v4229_v7, %v4138_v19  ;;  %v4300_v58 = vsub.f32 1.0, %v4292_v49 }
 0xbca   : > { %v4214_v48 = vadd.f32 1.4214138, %v4206_v9  ;;  %v4245_v45 = vadd.f32 0.2548296, %v4237_v60  ;;  %v4308_v6 = vmul.f32 %v4300_v58, %v4036_v34 }
 0xbcc   : > { %v4222_v0 = vmul.f32 %v4214_v48, %v4153_v50  ;;  %v4253_v61 = vmul.f32 %v4245_v45, %v4138_v19  ;;  %v4316_v52 = vadd.f32 1.0, %v4308_v6  ;;  %v10895_v19 = vpop.eup %10894 }
 0xbce   : > { %v4230_v42 = vadd.f32 -0.28449672, %v4222_v0  ;;  %v4293_v11 = vmul.f32 %v10893_v12, %v4253_v61  ;;  %v4324_v24 = vmul.f32 %v4316_v52, %v4012_v23 }
 0xbd0   : > { %v4238_v32 = vmul.f32 %v4230_v42, %v4153_v50  ;;  %v4346_v39 = vpack.c.bf16 %v4324_v24, %v4323_v53  ;;  %v4301_v27 = vsub.f32 1.0, %v4293_v11 }
 0xbd2   : > { %v4246_v59 = vadd.f32 0.2548296, %v4238_v32  ;;  %4410 = vmatmul.bf16.gmra.mxu2 %v4346_v39  ;;  %v4309_v33 = vmul.f32 %v4301_v27, %v4037_v36 }
 0xbd4   : > { %v4254_v41 = vmul.f32 %v4246_v59, %v4153_v50  ;;  %v4317_v5 = vadd.f32 1.0, %v4309_v33 }
 0xbd6   : > { %v4294_v46 = vmul.f32 %v10895_v19, %v4254_v41  ;;  %v4325_v2 = vmul.f32 %v4317_v5, %v4013_v16 }
 0xbd8   : > { %v4302_v22 = vsub.f32 1.0, %v4294_v46 }
 0xbda   : > { %v4310_v20 = vmul.f32 %v4302_v22, %v4038_v51 }
 0xbdc   : > { %v4318_v14 = vadd.f32 1.0, %v4310_v20 }
 0xbde   : > { %v4326_v8 = vmul.f32 %v4318_v14, %v4014_v35 }
 0xbe0   : > { %v4347_v50 = vpack.c.bf16 %v4326_v8, %v4325_v2 }
 0xbe2   : > { %4415 = vmatmul.bf16.gmra.mxu2 %v4347_v50 }
 0xbfb   : > { %v4004_v63 = vpop.f32.mrf.mxu3 }
 0xbfc   : > { %v13604_v10 = vadd.f32 %v13435_v30, %v4004_v63 }
 0xbfe   : > { %v13607_v54 = vmul.f32 0.70710677, %v13604_v10 }
 0xc00   : > { %v4047_v1 = vand.u32 2147483647, %v13607_v54  ;;  %vm4031_vm3 = vcmp.ge.f32.partialorder %v13607_v54, 0.0 }
 0xc02   : > { %v4055_v47 = vmul.f32 0.3275911, %v4047_v1  ;;  %v4263_v44 = vsub.f32 0.0, %v4047_v1 }
 0xc03   : > { %v4006_v25 = vpop.f32.mrf.mxu3 }
 0xc04   : > { %v4063_v40 = vadd.f32 1.0, %v4055_v47  ;;  %v13611_v28 = vadd.f32 %v13435_v30, %v4006_v25  ;;  %v4271_v42 = vmul.f32 %v4263_v44, %v4047_v1 }
 0xc06   : > { %10896 = vrcp.f32 %v4063_v40  ;;  %v13614_v57 = vmul.f32 0.70710677, %v13611_v28  ;;  %v4166_v9 = vand.u32 2147483648, %v4063_v40  ;;  %v4164_v58 = vand.u32 2147483647, %v4063_v40 }
 0xc07   : > { %vm4160_vm8 = vweird.f32 %v4063_v40  ;;  %v4285_v59 = vmul.f32 1.442695, %v4271_v42  ;;  %v4016_v54 = vmul.f32 0.5, %v13611_v28 }
 0xc08   : > { %v4048_v3 = vand.u32 2147483647, %v13614_v57  ;;  %v4167_v30 = vor.u32 1.1754944e-38, %v4166_v9  ;;  %vm4165_vm12 = vcmp.eq.f32.partialorder %v4164_v58, 8.507059e+37  ;;  %vm4032_vm4 = vcmp.ge.f32.partialorder %v13614_v57, 0.0 }
 0xc09   : > { %v4015_v58 = vmul.f32 0.5, %v13604_v10 }
 0xc0a   : > { %v4056_v18 = vmul.f32 0.3275911, %v4048_v3  ;;  %v4264_v27 = vsub.f32 0.0, %v4048_v3 }
 0xc0c   : > { %v10897_v4 = vpop.eup %10896  ;;  %v4064_v49 = vadd.f32 1.0, %v4056_v18  ;;  %v4272_v22 = vmul.f32 %v4264_v27, %v4048_v3  ;;  %v4039_v3 = vsel %vm4031_vm3, 1.0, %v12016_v15 }
 0xc0d   : > { %v4156_v7 = vmul.f32 %v10897_v4, %v4063_v40  ;;  %vm4161_vm7 = vweird.f32 %v10897_v4 }
 0xc0e   : > { %10898 = vrcp.f32 %v4064_v49  ;;  %vm4162_vm11 = vmor %vm4160_vm8, %vm4161_vm7  ;;  %v4181_v12 = vand.u32 2147483648, %v4064_v49  ;;  %v4179_v52 = vand.u32 2147483647, %v4064_v49  ;;  %vm4175_vm14 = vweird.f32 %v4064_v49 }
 0xc0f   : > { %v4157_v29 = vsub.f32 1.0, %v4156_v7  ;;  %10900 = vpow2.f32 %v4285_v59  ;;  %v4287_v35 = vmul.f32 1.442695, %v4272_v22 }
 0xc10   : > { %v4182_v24 = vor.u32 1.1754944e-38, %v4181_v12  ;;  %vm4180_vm2 = vcmp.eq.f32.partialorder %v4179_v52, 8.507059e+37 }
 0xc11   : > { %v4158_v60 = vmul.f32 %v10897_v4, %v4157_v29  ;;  %10902 = vpow2.f32 %v4287_v35  ;;  %v4040_v29 = vsel %vm4032_vm4, 1.0, %v12016_v15 }
 0xc13   : > { %v4159_v48 = vadd.f32 %v10897_v4, %v4158_v60 }
 0xc14   : > { %v10899_v34 = vpop.eup %10898 }
 0xc15   : > { %v4163_v13 = vsel %vm4162_vm11, %v10897_v4, %v4159_v48  ;;  %v4171_v45 = vmul.f32 %v10899_v34, %v4064_v49  ;;  %vm4176_vm13 = vweird.f32 %v10899_v34  ;;  %v10901_v8 = vpop.eup %10900 }
 0xc16   : > { %v4168_v6 = vsel %vm4165_vm12, %v4167_v30, %v4163_v13  ;;  %vm4177_vm15 = vmor %vm4175_vm14, %vm4176_vm13 }
 0xc17   : > { %v4191_v0 = vmul.f32 1.0614054, %v4168_v6  ;;  %v4172_v61 = vsub.f32 1.0, %v4171_v45  ;;  %v10903_v18 = vpop.eup %10902  ;;  %v10733_v45 = vld [vmem:[%s15173_s10] ss:$0 sm:$0xff]  ;;  %s15174_s10 = sld [smem:[#allocation87_spill]] }
 0xc19   : > { %v4199_v55 = vadd.f32 -1.4531521, %v4191_v0  ;;  %v4173_v23 = vmul.f32 %v10899_v34, %v4172_v61 }
 0xc1b   : > { %v4207_v11 = vmul.f32 %v4199_v55, %v4168_v6  ;;  %v4174_v53 = vadd.f32 %v10899_v34, %v4173_v23 }
 0xc1d   : > { %v4215_v32 = vadd.f32 1.4214138, %v4207_v11  ;;  %v4178_v39 = vsel %vm4177_vm15, %v10899_v34, %v4174_v53 }
 0xc1e   : > { %v4183_v41 = vsel %vm4180_vm2, %v4182_v24, %v4178_v39 }
 0xc1f   : > { %v4223_v19 = vmul.f32 %v4215_v32, %v4168_v6  ;;  %v4192_v36 = vmul.f32 1.0614054, %v4183_v41 }
 0xc21   : > { %v4231_v46 = vadd.f32 -0.28449672, %v4223_v19  ;;  %v4200_v33 = vadd.f32 -1.4531521, %v4192_v36 }
 0xc23   : > { %v4239_v51 = vmul.f32 %v4231_v46, %v4168_v6  ;;  %v4208_v20 = vmul.f32 %v4200_v33, %v4183_v41 }
 0xc25   : > { %v4247_v5 = vadd.f32 0.2548296, %v4239_v51  ;;  %v4216_v16 = vadd.f32 1.4214138, %v4208_v20 }
 0xc27   : > { %v4255_v14 = vmul.f32 %v4247_v5, %v4168_v6  ;;  %v4224_v2 = vmul.f32 %v4216_v16, %v4183_v41 }
 0xc29   : > { %v4232_v50 = vadd.f32 -0.28449672, %v4224_v2  ;;  %v4295_v63 = vmul.f32 %v10901_v8, %v4255_v14 }
 0xc2b   : > { %v4240_v1 = vmul.f32 %v4232_v50, %v4183_v41  ;;  %v4303_v25 = vsub.f32 1.0, %v4295_v63 }
 0xc2d   : > { %v4248_v47 = vadd.f32 0.2548296, %v4240_v1  ;;  %v4311_v7 = vmul.f32 %v4303_v25, %v4039_v3 }
 0xc2f   : > { %v4256_v40 = vmul.f32 %v4248_v47, %v4183_v41  ;;  %v4319_v60 = vadd.f32 1.0, %v4311_v7 }
 0xc31   : > { %v4296_v4 = vmul.f32 %v10903_v18, %v4256_v40  ;;  %v4327_v30 = vmul.f32 %v4319_v60, %v4015_v58 }
 0xc33   : > { %v4304_v49 = vsub.f32 1.0, %v4296_v4 }
 0xc35   : > { %v4312_v9 = vmul.f32 %v4304_v49, %v4040_v29 }
 0xc37   : > { %v4320_v48 = vadd.f32 1.0, %v4312_v9 }
 0xc39   : > { %v4328_v34 = vmul.f32 %v4320_v48, %v4016_v54 }
 0xc3b   : > { %v4348_v13 = vpack.c.bf16 %v4328_v34, %v4327_v30 }
 0xc3d   : > { %4420 = vmatmul.bf16.gmra.mxu2 %v4348_v13 }
 0xc45   : > { %v4406_v6 = vpop.f32.mrf.mxu2 }
 0xc46   : > { %v4426_v57 = vadd.f32 %v4406_v6, %v13297_v56 }
 0xc48   : > { %v13625_v44 = vadd.f32 %v10733_v45, %v4426_v57 }
 0xc4a   : > { %v4448_v0 = vsel %vm2383_vm1, %v13625_v44, 0.0 }
 0xc4b   : > { %4449 = vadd.xlane.f32.xlu0 %v4448_v0 }
 0xc4d   : > { %v4408_v61 = vpop.f32.mrf.mxu2 }
 0xc4e   : > { %v4427_v10 = vadd.f32 %v4408_v61, %v13302_v31 }
 0xc50   : > { %v13630_v12 = vadd.f32 %v10733_v45, %v4427_v10 }
 0xc52   : > { %v4451_v28 = vsel %vm2383_vm1, %v13630_v12, 0.0 }
 0xc53   : > { %4452 = vadd.xlane.f32.xlu2 %v4451_v28 }
 0xc55   : > { %v4411_v55 = vpop.f32.mrf.mxu2 }
 0xc56   : > { %v4428_v23 = vadd.f32 %v4411_v55, %v13307_v37 }
 0xc58   : > { %v13635_v52 = vadd.f32 %v10733_v45, %v4428_v23 }
 0xc5a   : > { %v4454_v56 = vsel %vm2383_vm1, %v13635_v52, 0.0 }
 0xc5b   : > { %4455 = vadd.xlane.f32.xlu1 %v4454_v56 }
 0xc5d   : > { %v4413_v42 = vpop.f32.mrf.mxu2 }
 0xc5e   : > { %v4429_v11 = vadd.f32 %v4413_v42, %v13312_v62 }
 0xc60   : > { %v13640_v53 = vadd.f32 %v10733_v45, %v4429_v11  ;;  %v10143_v11 = vld [vmem:[%s15174_s10 + $0x8] sm:$0xff] }
 0xc61   : > { %4688 = vmatpush.bf16.msra.mxu1 %v10143_v11 }
 0xc62   : > { %v4457_v31 = vsel %vm2383_vm1, %v13640_v53, 0.0 }
 0xc63   : > { %4458 = vadd.xlane.f32.xlu0 %v4457_v31 }
 0xc65   : > { %v4416_v24 = vpop.f32.mrf.mxu2 }
 0xc66   : > { %v4430_v32 = vadd.f32 %v4416_v24, %v13317_v38 }
 0xc68   : > { %v13645_v39 = vadd.f32 %v10733_v45, %v4430_v32 }
 0xc6a   : > { %v4460_v37 = vsel %vm2383_vm1, %v13645_v39, 0.0 }
 0xc6b   : > { %4461 = vadd.xlane.f32.xlu2 %v4460_v37 }
 0xc6d   : > { %v4418_v59 = vpop.f32.mrf.mxu2 }
 0xc6e   : > { %v4431_v27 = vadd.f32 %v4418_v59, %v13322_v26 }
 0xc70   : > { %v13650_v41 = vadd.f32 %v10733_v45, %v4431_v27 }
 0xc72   : > { %v4463_v62 = vsel %vm2383_vm1, %v13650_v41, 0.0 }
 0xc73   : > { %4464 = vadd.xlane.f32.xlu1 %v4463_v62  ;;  %v10142_v62 = vld [vmem:[%s15174_s10] sm:$0xff]  ;;  %s15199_s10 = sld [smem:[#allocation91_spill]] }
 0xc74   : > { %4689 = vmatpush.bf16.msra.mxu1 %v10142_v62 }
 0xcbe   : > { %v4450_v19 = vpop.xlane.xlu0 %4449 }
 0xcbf   : > { %v4472_v36 = vmul.f32 %v4450_v19, %v12721_v43 }
 0xcc0   : > { %v4421_v46 = vpop.f32.mrf.mxu2 }
 0xcc1   : > { %v13656_v38 = vsub.f32 %v13625_v44, %v4472_v36  ;;  %v4432_v33 = vadd.f32 %v4421_v46, %v13327_v17 }
 0xcc3   : > { %v13659_v22 = vadd.f32 %v10733_v45, %v4432_v33  ;;  %v4488_v26 = vmul.f32 %v13656_v38, %v13656_v38 }
 0xcc5   : > { %v4496_v51 = vsel %vm2383_vm1, %v4488_v26, 0.0  ;;  %v4466_v20 = vsel %vm2383_vm1, %v13659_v22, 0.0 }
 0xcc6   : > { %4497 = vadd.xlane.f32.xlu0 %v4496_v51  ;;  %v4453_v5 = vpop.xlane.xlu2 %4452  ;;  %4467 = vadd.xlane.f32.xlu1 %v4466_v20 }
 0xcc7   : > { %v4473_v16 = vmul.f32 %v4453_v5, %v12721_v43 }
 0xcc8   : > { %v4423_v35 = vpop.f32.mrf.mxu2 }
 0xcc9   : > { %v13668_v14 = vsub.f32 %v13630_v12, %v4473_v16  ;;  %v4433_v17 = vadd.f32 %v4423_v35, %v13340_v21 }
 0xccb   : > { %v13671_v2 = vadd.f32 %v10733_v45, %v4433_v17  ;;  %v4489_v8 = vmul.f32 %v13668_v14, %v13668_v14 }
 0xccd   : > { %v4499_v50 = vsel %vm2383_vm1, %v4489_v8, 0.0  ;;  %v4469_v63 = vsel %vm2383_vm1, %v13671_v2, 0.0 }
 0xcce   : > { %4500 = vadd.xlane.f32.xlu2 %v4499_v50  ;;  %4470 = vadd.xlane.f32.xlu0 %v4469_v63  ;;  %v4456_v1 = vpop.xlane.xlu1 %4455 }
 0xccf   : > { %v4474_v47 = vmul.f32 %v4456_v1, %v12721_v43 }
 0xcd1   : > { %v13680_v25 = vsub.f32 %v13635_v52, %v4474_v47 }
 0xcd3   : > { %v4490_v21 = vmul.f32 %v13680_v25, %v13680_v25 }
 0xcd5   : > { %v4502_v40 = vsel %vm2383_vm1, %v4490_v21, 0.0 }
 0xcd6   : > { %v4459_v18 = vpop.xlane.xlu0 %4458  ;;  %4503 = vadd.xlane.f32.xlu2 %v4502_v40  ;;  %v13726_v40 = vld [vmem:[#allocation15] ss:$0 sm:$0xff] }
 0xcd7   : > { %v4475_v3 = vmul.f32 %v4459_v18, %v12721_v43 }
 0xcd9   : > { %v13687_v4 = vsub.f32 %v13640_v53, %v4475_v3 }
 0xcdb   : > { %v4491_v7 = vmul.f32 %v13687_v4, %v13687_v4 }
 0xcdd   : > { %v4505_v49 = vsel %vm2383_vm1, %v4491_v7, 0.0 }
 0xcde   : > { %v4462_v29 = vpop.xlane.xlu2 %4461  ;;  %4506 = vadd.xlane.f32.xlu1 %v4505_v49 }
 0xcdf   : > { %v4476_v9 = vmul.f32 %v4462_v29, %v12721_v43 }
 0xce1   : > { %v13694_v60 = vsub.f32 %v13645_v39, %v4476_v9 }
 0xce3   : > { %v4492_v58 = vmul.f32 %v13694_v60, %v13694_v60 }
 0xce5   : > { %v4508_v54 = vsel %vm2383_vm1, %v4492_v58, 0.0 }
 0xce6   : > { %4509 = vadd.xlane.f32.xlu0 %v4508_v54  ;;  %v4465_v48 = vpop.xlane.xlu1 %4464 }
 0xce7   : > { %v4477_v30 = vmul.f32 %v4465_v48, %v12721_v43 }
 0xce9   : > { %v13701_v34 = vsub.f32 %v13650_v41, %v4477_v30  ;;  %v13731_v30 = vld [vmem:[#allocation13] ss:$0 sm:$0xff] }
 0xceb   : > { %v4493_v13 = vmul.f32 %v13701_v34, %v13701_v34 }
 0xced   : > { %v4511_v45 = vsel %vm2383_vm1, %v4493_v13, 0.0 }
 0xcee   : > { %4512 = vadd.xlane.f32.xlu2 %v4511_v45 }
 0xd39   : > { %v4498_v6 = vpop.xlane.xlu0 %4497  ;;  %v4468_v57 = vpop.xlane.xlu1 %4467 }
 0xd3a   : > { %v4520_v0 = vmul.f32 %v4498_v6, %v12721_v43  ;;  %v4478_v61 = vmul.f32 %v4468_v57, %v12721_v43 }
 0xd3c   : > { %v4528_v10 = vadd.f32 1e-05, %v4520_v0  ;;  %v13709_v28 = vsub.f32 %v13659_v22, %v4478_v61 }
 0xd3e   : > { %10904 = vrsqrt.f32 %v4528_v10  ;;  %v4494_v55 = vmul.f32 %v13709_v28, %v13709_v28  ;;  %vm4542_vm6 = vweird.f32 %v4528_v10 }
 0xd40   : > { %v4514_v23 = vsel %vm2383_vm1, %v4494_v55, 0.0 }
 0xd41   : > { %v4501_v56 = vpop.xlane.xlu2 %4500  ;;  %v4471_v42 = vpop.xlane.xlu0 %4470  ;;  %4515 = vadd.xlane.f32.xlu1 %v4514_v23 }
 0xd42   : > { %v4521_v31 = vmul.f32 %v4501_v56, %v12721_v43  ;;  %v4479_v24 = vmul.f32 %v4471_v42, %v12721_v43 }
 0xd44   : > { %v10905_v32 = vpop.eup %10904  ;;  %v4529_v37 = vadd.f32 1e-05, %v4521_v31  ;;  %v13718_v59 = vsub.f32 %v13671_v2, %v4479_v24 }
 0xd45   : > { %v4537_v27 = vmul.f32 %v10905_v32, %v4528_v10  ;;  %vm4543_vm5 = vweird.f32 %v10905_v32 }
 0xd46   : > { %10906 = vrsqrt.f32 %v4529_v37  ;;  %v4495_v19 = vmul.f32 %v13718_v59, %v13718_v59  ;;  %vm4544_vm7 = vmor %vm4542_vm6, %vm4543_vm5  ;;  %vm4552_vm11 = vweird.f32 %v4529_v37 }
 0xd47   : > { %v4538_v36 = vmul.f32 %v10905_v32, %v4537_v27 }
 0xd48   : > { %v4517_v46 = vsel %vm2383_vm1, %v4495_v19, 0.0 }
 0xd49   : > { %v4539_v33 = vmul.f32 0.5, %v4538_v36  ;;  %4518 = vadd.xlane.f32.xlu0 %v4517_v46  ;;  %v4504_v26 = vpop.xlane.xlu2 %4503 }
 0xd4a   : > { %v4522_v20 = vmul.f32 %v4504_v26, %v12721_v43 }
 0xd4b   : > { %v4540_v51 = vsub.f32 1.5, %v4539_v33 }
 0xd4c   : > { %v10907_v5 = vpop.eup %10906  ;;  %v4530_v17 = vadd.f32 1e-05, %v4522_v20 }
 0xd4d   : > { %v4541_v16 = vmul.f32 %v10905_v32, %v4540_v51  ;;  %v4547_v35 = vmul.f32 %v10907_v5, %v4529_v37  ;;  %vm4553_vm8 = vweird.f32 %v10907_v5 }
 0xd4e   : > { %10908 = vrsqrt.f32 %v4530_v17  ;;  %vm4554_vm12 = vmor %vm4552_vm11, %vm4553_vm8  ;;  %vm4562_vm14 = vweird.f32 %v4530_v17 }
 0xd4f   : > { %v4548_v8 = vmul.f32 %v10907_v5, %v4547_v35  ;;  %v4545_v50 = vsel %vm4544_vm7, %v10905_v32, %v4541_v16 }
 0xd50   : > { %v4616_v18 = vmul.f32 %v4545_v50, %v13656_v38 }
 0xd51   : > { %v4549_v63 = vmul.f32 0.5, %v4548_v8  ;;  %v4507_v1 = vpop.xlane.xlu1 %4506 }
 0xd52   : > { %v4523_v21 = vmul.f32 %v4507_v1, %v12721_v43  ;;  %v4627_v58 = vmul.f32 %v13726_v40, %v4616_v18 }
 0xd53   : > { %v4550_v47 = vsub.f32 1.5, %v4549_v63 }
 0xd54   : > { %v10909_v3 = vpop.eup %10908  ;;  %v4531_v49 = vadd.f32 1e-05, %v4523_v21  ;;  %v4638_v0 = vadd.f32 %v13731_v30, %v4627_v58 }
 0xd55   : > { %v4551_v7 = vmul.f32 %v10907_v5, %v4550_v47  ;;  %v4557_v29 = vmul.f32 %v10909_v3, %v4530_v17  ;;  %vm4563_vm13 = vweird.f32 %v10909_v3 }
 0xd56   : > { %10910 = vrsqrt.f32 %v4531_v49  ;;  %vm4564_vm15 = vmor %vm4562_vm14, %vm4563_vm13  ;;  %vm4572_vm3 = vweird.f32 %v4531_v49 }
 0xd57   : > { %v4555_v9 = vsel %vm4554_vm12, %v10907_v5, %v4551_v7  ;;  %v4558_v48 = vmul.f32 %v10909_v3, %v4557_v29 }
 0xd58   : > { %v4617_v54 = vmul.f32 %v4555_v9, %v13668_v14 }
 0xd59   : > { %v4559_v45 = vmul.f32 0.5, %v4558_v48  ;;  %v4510_v6 = vpop.xlane.xlu0 %4509 }
 0xd5a   : > { %v4628_v13 = vmul.f32 %v13726_v40, %v4617_v54  ;;  %v4524_v38 = vmul.f32 %v4510_v6, %v12721_v43 }
 0xd5b   : > { %v4560_v57 = vsub.f32 1.5, %v4559_v45 }
 0xd5c   : > { %v4639_v61 = vadd.f32 %v13731_v30, %v4628_v13  ;;  %v10911_v10 = vpop.eup %10910  ;;  %v4532_v55 = vadd.f32 1e-05, %v4524_v38 }
 0xd5d   : > { %v4561_v23 = vmul.f32 %v10909_v3, %v4560_v57  ;;  %v4567_v56 = vmul.f32 %v10911_v10, %v4531_v49  ;;  %vm4573_vm2 = vweird.f32 %v10911_v10 }
 0xd5e   : > { %v4650_v14 = vpack.c.bf16 %v4639_v61, %v4638_v0  ;;  %10912 = vrsqrt.f32 %v4532_v55  ;;  %vm4574_vm4 = vmor %vm4572_vm3, %vm4573_vm2  ;;  %vm4582_vm6 = vweird.f32 %v4532_v55 }
 0xd5f   : > { %v4568_v42 = vmul.f32 %v10911_v10, %v4567_v56  ;;  %v4565_v11 = vsel %vm4564_vm15, %v10909_v3, %v4561_v23 }
 0xd60   : > { %9646 = vmatmul.msk.bf16.vlgmr.msra.gmra.mxu1 %vm2383_vm1, %v4650_v14  ;;  %v4618_v19 = vmul.f32 %v4565_v11, %v13680_v25 }
 0xd61   : > { %v4569_v31 = vmul.f32 0.5, %v4568_v42  ;;  %v4513_v24 = vpop.xlane.xlu2 %4512 }
 0xd62   : > { %v4525_v32 = vmul.f32 %v4513_v24, %v12721_v43  ;;  %v4629_v20 = vmul.f32 %v13726_v40, %v4618_v19 }
 0xd63   : > { %v4570_v37 = vsub.f32 1.5, %v4569_v31 }
 0xd64   : > { %v10913_v27 = vpop.eup %10912  ;;  %v4533_v62 = vadd.f32 1e-05, %v4525_v32  ;;  %v4640_v8 = vadd.f32 %v13731_v30, %v4629_v20 }
 0xd65   : > { %v4571_v36 = vmul.f32 %v10911_v10, %v4570_v37  ;;  %v4577_v46 = vmul.f32 %v10913_v27, %v4532_v55  ;;  %vm4583_vm5 = vweird.f32 %v10913_v27 }
 0xd66   : > { %10914 = vrsqrt.f32 %v4533_v62  ;;  %vm4584_vm7 = vmor %vm4582_vm6, %vm4583_vm5  ;;  %vm4592_vm11 = vweird.f32 %v4533_v62 }
 0xd67   : > { %v4575_v33 = vsel %vm4574_vm4, %v10911_v10, %v4571_v36  ;;  %v4578_v26 = vmul.f32 %v10913_v27, %v4577_v46 }
 0xd68   : > { %v4619_v51 = vmul.f32 %v4575_v33, %v13687_v4 }
 0xd69   : > { %v4579_v5 = vmul.f32 0.5, %v4578_v26 }
 0xd6a   : > { %v4630_v16 = vmul.f32 %v13726_v40, %v4619_v51 }
 0xd6b   : > { %v4580_v35 = vsub.f32 1.5, %v4579_v5  ;;  %v10736_v5 = vld [vmem:[#allocation21] ss:$0 sm:$0xff] }
 0xd6c   : > { %v10915_v17 = vpop.eup %10914  ;;  %v4641_v25 = vadd.f32 %v13731_v30, %v4630_v16 }
 0xd6d   : > { %v4581_v50 = vmul.f32 %v10913_v27, %v4580_v35  ;;  %v4587_v63 = vmul.f32 %v10915_v17, %v4533_v62  ;;  %vm4593_vm8 = vweird.f32 %v10915_v17 }
 0xd6e   : > { %v4651_v1 = vpack.c.bf16 %v4641_v25, %v4640_v8  ;;  %vm4594_vm12 = vmor %vm4592_vm11, %vm4593_vm8 }
 0xd6f   : > { %v4588_v47 = vmul.f32 %v10915_v17, %v4587_v63  ;;  %v4585_v4 = vsel %vm4584_vm7, %v10913_v27, %v4581_v50 }
 0xd70   : > { %9647 = vmatmul.msk.bf16.gmra.mxu1 %vm2383_vm1, %v4651_v1  ;;  %v4620_v3 = vmul.f32 %v4585_v4, %v13694_v60 }
 0xd71   : > { %v4589_v21 = vmul.f32 0.5, %v4588_v47 }
 0xd72   : > { %v4631_v9 = vmul.f32 %v13726_v40, %v4620_v3 }
 0xd73   : > { %v4590_v18 = vsub.f32 1.5, %v4589_v21 }
 0xd74   : > { %v4642_v54 = vadd.f32 %v13731_v30, %v4631_v9 }
 0xd75   : > { %v4591_v7 = vmul.f32 %v10915_v17, %v4590_v18 }
 0xd77   : > { %v4595_v49 = vsel %vm4594_vm12, %v10915_v17, %v4591_v7 }
 0xd78   : > { %v4621_v29 = vmul.f32 %v4595_v49, %v13701_v34 }
 0xd7a   : > { %v4632_v58 = vmul.f32 %v13726_v40, %v4621_v29 }
 0xd7c   : > { %v4643_v48 = vadd.f32 %v13731_v30, %v4632_v58 }
 0xd7e   : > { %v4652_v13 = vpack.c.bf16 %v4643_v48, %v4642_v54 }
 0xd80   : > { %9648 = vmatmul.msk.bf16.gmra.mxu1 %vm2383_vm1, %v4652_v13 }
 0xdb4   : > { %v4516_v45 = vpop.xlane.xlu1 %4515 }
 0xdb5   : > { %v4526_v60 = vmul.f32 %v4516_v45, %v12721_v43 }
 0xdb7   : > { %v4534_v6 = vadd.f32 1e-05, %v4526_v60 }
 0xdb9   : > { %10916 = vrsqrt.f32 %v4534_v6  ;;  %vm4602_vm14 = vweird.f32 %v4534_v6 }
 0xdbc   : > { %v4519_v38 = vpop.xlane.xlu0 %4518 }
 0xdbd   : > { %v4527_v57 = vmul.f32 %v4519_v38, %v12721_v43 }
 0xdbf   : > { %v10917_v34 = vpop.eup %10916  ;;  %v4535_v0 = vadd.f32 1e-05, %v4527_v57 }
 0xdc0   : > { %v4597_v61 = vmul.f32 %v10917_v34, %v4534_v6  ;;  %vm4603_vm13 = vweird.f32 %v10917_v34 }
 0xdc1   : > { %10918 = vrsqrt.f32 %v4535_v0  ;;  %vm4604_vm15 = vmor %vm4602_vm14, %vm4603_vm13  ;;  %vm4612_vm3 = vweird.f32 %v4535_v0 }
 0xdc2   : > { %v4598_v10 = vmul.f32 %v10917_v34, %v4597_v61 }
 0xdc4   : > { %v4599_v55 = vmul.f32 0.5, %v4598_v10 }
 0xdc6   : > { %v4600_v23 = vsub.f32 1.5, %v4599_v55 }
 0xdc7   : > { %v10919_v56 = vpop.eup %10918 }
 0xdc8   : > { %v4601_v14 = vmul.f32 %v10917_v34, %v4600_v23  ;;  %v4607_v42 = vmul.f32 %v10919_v56, %v4535_v0  ;;  %vm4613_vm2 = vweird.f32 %v10919_v56 }
 0xdc9   : > { %vm4614_vm4 = vmor %vm4612_vm3, %vm4613_vm2 }
 0xdca   : > { %v4608_v11 = vmul.f32 %v10919_v56, %v4607_v42  ;;  %v4605_v31 = vsel %vm4604_vm15, %v10917_v34, %v4601_v14 }
 0xdcb   : > { %v4622_v37 = vmul.f32 %v4605_v31, %v13709_v28 }
 0xdcc   : > { %v4609_v24 = vmul.f32 0.5, %v4608_v11 }
 0xdcd   : > { %v4633_v36 = vmul.f32 %v13726_v40, %v4622_v37 }
 0xdce   : > { %v4610_v32 = vsub.f32 1.5, %v4609_v24 }
 0xdcf   : > { %v4644_v33 = vadd.f32 %v13731_v30, %v4633_v36 }
 0xdd0   : > { %v4611_v27 = vmul.f32 %v10919_v56, %v4610_v32 }
 0xdd2   : > { %v4615_v62 = vsel %vm4614_vm4, %v10919_v56, %v4611_v27 }
 0xdd3   : > { %v4623_v19 = vmul.f32 %v4615_v62, %v13718_v59 }
 0xdd5   : > { %v4634_v46 = vmul.f32 %v13726_v40, %v4623_v19 }
 0xdd7   : > { %v4645_v26 = vadd.f32 %v13731_v30, %v4634_v46 }
 0xdd9   : > { %v4653_v51 = vpack.c.bf16 %v4645_v26, %v4644_v33 }
 0xddb   : > { %9649 = vmatmul.msk.bf16.gmra.mxu1 %vm2383_vm1, %v4653_v51 }
 0xddd   : > { %v4691_v20 = vpop.f32.mrf.mxu1 }
 0xdde   : > { %v4692_v16 = vadd.f32 %v10736_v5, %v4691_v20 }
 0xde5   : > { %v4693_v28 = vpop.f32.mrf.mxu1 }
 0xde6   : > { %v4694_v35 = vadd.f32 %v10736_v5, %v4693_v28 }
 0xde8   : > { %v10566_v17 = vpack.i.bf16 %v4694_v35, %v4692_v16  ;;  %v13762_v8 = vpack.c.bf16 %v4694_v35, %v4692_v16 }
 0xdea   : > { %5155 = vrot.lane.b32.xlu0 %v13762_v8, %s15061_s5  ;;  %10567 = vrot.lane.b32.xlu2 %v10566_v17, %s15059_s12 }
 0xded   : > { %v4696_v59 = vpop.f32.mrf.mxu1 }
 0xdee   : > { %v4697_v30 = vadd.f32 %v10736_v5, %v4696_v59 }
 0xdf2   : > { %10572 = vrot.lane.b32.xlu2 %v10566_v17, %s15065_s2 }
 0xdf5   : > { %v4698_v40 = vpop.f32.mrf.mxu1 }
 0xdf6   : > { %v4699_v25 = vadd.f32 %v10736_v5, %v4698_v40 }
 0xdf8   : > { %v10576_v50 = vpack.i.bf16 %v4699_v25, %v4697_v30  ;;  %v13774_v3 = vpack.c.bf16 %v4699_v25, %v4697_v30 }
 0xdfa   : > { %10577 = vrot.lane.b32.xlu1 %v10576_v50, %s15059_s12 }
 0xdfd   : > { %v4701_v63 = vpop.f32.mrf.mxu1 }
 0xdfe   : > { %v4702_v47 = vadd.f32 %v10736_v5, %v4701_v63 }
 0xe02   : > { %10582 = vrot.lane.b32.xlu1 %v10576_v50, %s15065_s2 }
 0xe05   : > { %v4703_v1 = vpop.f32.mrf.mxu1 }
 0xe06   : > { %v4704_v4 = vadd.f32 %v10736_v5, %v4703_v1 }
 0xe08   : > { %v10591_v21 = vpack.i.bf16 %v4704_v4, %v4702_v47  ;;  %v13770_v18 = vpack.c.bf16 %v4704_v4, %v4702_v47 }
 0xe0a   : > { %10592 = vrot.lane.b32.xlu2 %v10591_v21, %s15065_s2  ;;  %10587 = vrot.lane.b32.xlu0 %v10591_v21, %s15059_s12 }
 0xe12   : > { %5157 = vrot.lane.b32.xlu2 %v13774_v3, %s15061_s5 }
 0xe44   : > { %v10568_v48 = vpop.permute.xlu2 %10567 }
 0xe45   : > { %v10569_v13 = vunpack.i.l.bf16 %v10568_v48  ;;  %v10570_v45 = vunpack.i.h.bf16 %v10568_v48 }
 0xe4c   : > { %v10573_v57 = vpop.permute.xlu2 %10572 }
 0xe4d   : > { %v10574_v0 = vunpack.i.l.bf16 %v10573_v57  ;;  %v10575_v55 = vunpack.i.h.bf16 %v10573_v57 }
 0xe58   : > { %v4706_v7 = vpop.f32.mrf.mxu1 }
 0xe59   : > { %v4707_v29 = vadd.f32 %v10736_v5, %v4706_v7 }
 0xe5c   : > { %v5156_v38 = vpop.permute.xlu0 %5155 }
 0xe60   : > { %v4708_v49 = vpop.f32.mrf.mxu1 }
 0xe61   : > { %v4709_v9 = vadd.f32 %v10736_v5, %v4708_v49 }
 0xe63   : > { %v13778_v58 = vpack.c.bf16 %v4709_v9, %v4707_v29  ;;  %v10601_v54 = vpack.i.bf16 %v4709_v9, %v4707_v29 }
 0xe64   : > { %v10593_v14 = vpop.permute.xlu2 %10592 }
 0xe65   : > { %10602 = vrot.lane.b32.xlu1 %v10601_v54, %s15065_s2  ;;  %10597 = vrot.lane.b32.xlu0 %v10601_v54, %s15059_s12  ;;  %v10594_v24 = vunpack.i.l.bf16 %v10593_v14  ;;  %v10595_v37 = vunpack.i.h.bf16 %v10593_v14  ;;  %s15176_s12 = sld [smem:[#allocation76_spill]] }
 0xe66   : > { %5161 = vrot.lane.b32.xlu2 %v13778_v58, %s15061_s5  ;;  %s15181_s2 = sld [smem:[#allocation78_spill]] }
 0xe6b   : > { %v4829_v63 = vld [vmem:[%s15176_s12] sm:$0xff]  ;;  %v4830_v48 = vld [vmem:[%s15176_s12 + $0x8] sm:$0xff] }
 0xe6c   : > { %v10578_v60 = vpop.permute.xlu1 %10577  ;;  %v5158_v11 = vpop.permute.xlu2 %5157  ;;  %v9662_v7 = vld [vmem:[%s15176_s12 + $0x40] sm:$0xff] }
 0xe6d   : > { %5159 = vrot.lane.b32.xlu1 %v13770_v18, %s15061_s5  ;;  %v10579_v6 = vunpack.i.l.bf16 %v10578_v60  ;;  %v10580_v34 = vunpack.i.h.bf16 %v10578_v60  ;;  %s15179_s5 = smov 16  }
 0xe6e   : > { %5431 = vrot.lane.b32.xlu2 %v13778_v58, %s15063_s3 }
 0xe74   : > { %v10583_v23 = vpop.permute.xlu1 %10582 }
 0xe75   : > { %v10584_v42 = vunpack.i.l.bf16 %v10583_v23  ;;  %v10585_v31 = vunpack.i.h.bf16 %v10583_v23 }
 0xe76   : > { %5429 = vrot.lane.b32.xlu2 %v13770_v18, %s15063_s3 }
 0xe7c   : > { %v10588_v61 = vpop.permute.xlu0 %10587 }
 0xe7d   : > { %v10589_v10 = vunpack.i.l.bf16 %v10588_v61  ;;  %v10590_v56 = vunpack.i.h.bf16 %v10588_v61  ;;  %v9663_v61 = vld [vmem:[%s15176_s12 + $0x48] sm:$0xff] }
 0xe7e   : > { %5051 = vrot.lane.b32.xlu2 %v13778_v58, %s15175_s1 }
 0xe87   : > { %5122 = vxpose.xlu0.b32.start [1/8] (short) (narrow) %v10569_v13, 16 }
 0xe8f   : > { %5123 = vxpose.xlu0.b32.cont [2/8] (short) (narrow) %v10570_v45, 16 }
 0xe97   : > { %5124 = vxpose.xlu0.b32.cont [3/8] (short) (narrow) %v10579_v6, 16  ;;  %v4831_v6 = vld [vmem:[%s15176_s12 + $0x10] sm:$0xff] }
 0xe9f   : > { %5125 = vxpose.xlu0.b32.cont [4/8] (short) (narrow) %v10580_v34, 16 }
 0xea2   : > { %4747 = vxpose.xlu1.b32.start [1/8] (short) (narrow) %v10574_v0, 16 }
 0xea7   : > { %5126 = vxpose.xlu0.b32.cont [5/8] (short) (narrow) %v10589_v10, 16 }
 0xeaa   : > { %4748 = vxpose.xlu1.b32.cont [2/8] (short) (narrow) %v10575_v55, 16 }
 0xeaf   : > { %5127 = vxpose.xlu0.b32.cont [6/8] (short) (narrow) %v10590_v56, 16 }
 0xeb2   : > { %4749 = vxpose.xlu1.b32.cont [3/8] (short) (narrow) %v10584_v42, 16 }
 0xeba   : > { %4750 = vxpose.xlu1.b32.cont [4/8] (short) (narrow) %v10585_v31, 16 }
 0xec0   : > { %v5162_v32 = vpop.permute.xlu2 %5161 }
 0xec2   : > { %4751 = vxpose.xlu1.b32.cont [5/8] (short) (narrow) %v10594_v24, 16 }
 0xec8   : > { %v5432_v27 = vpop.permute.xlu2 %5431 }
 0xec9   : > { %5453 = vmatpush.bf16.msrb.mxu1 %v5432_v27  ;;  %v4832_v27 = vld [vmem:[%s15176_s12 + $0x18] sm:$0xff] }
 0xeca   : > { %4752 = vxpose.xlu1.b32.cont [6/8] (short) (narrow) %v10595_v37, 16 }
 0xed0   : > { %v5430_v62 = vpop.permute.xlu2 %5429 }
 0xed1   : > { %5454 = vmatpush.bf16.msrb.mxu1 %v5430_v62 }
 0xed7   : > { %v10598_v19 = vpop.permute.xlu0 %10597  ;;  %v10603_v36 = vpop.permute.xlu1 %10602 }
 0xed8   : > { %v10599_v46 = vunpack.i.l.bf16 %v10598_v19  ;;  %v5052_v33 = vpop.permute.xlu2 %5051  ;;  %v10604_v26 = vunpack.i.l.bf16 %v10603_v36  ;;  %v10600_v51 = vunpack.i.h.bf16 %v10598_v19  ;;  %v10605_v20 = vunpack.i.h.bf16 %v10603_v36 }
 0xed9   : > { %5073 = vmatpush.bf16.msra.mxu3 %v5052_v33 }
 0xeda   : > { %4753 = vxpose.xlu1.b32.cont [7/8] (short) (narrow) %v10604_v26, 16  ;;  %5128 = vxpose.xlu0.b32.cont [7/8] (short) (narrow) %v10599_v46, 16  ;;  %v4834_v46 = vld [vmem:[%s15176_s12 + $0x28] sm:$0xff] }
 0xedf   : > { %v5160_v5 = vpop.permute.xlu1 %5159 }
 0xee2   : > { %4754 = vxpose.xlu1.b32.end [8/8] (short) (narrow) %v10605_v20, 16  ;;  %5129 = vxpose.xlu0.b32.end [8/8] (short) (narrow) %v10600_v51, 16 }
 0xf3c   : > { %5425 = vrot.lane.b32.xlu1 %v13762_v8, %s15063_s3 }
 0xf4e   : > { %v4763_v28 = vpop.trf.xlu1  ;;  %v5138_v16 = vpop.trf.xlu0 }
 0xf50   : > { %5427 = vrot.lane.b32.xlu0 %v13774_v3, %s15063_s3  ;;  %s15180_s3 = sld [smem:[#allocation85_spill]] }
 0xf56   : > { %v4764_v35 = vpop.trf.xlu1  ;;  %v5139_v17 = vpop.trf.xlu0 }
 0xf57   : > { %v4779_v59 = vpack.c.bf16 %v4764_v35, %v4763_v28  ;;  %v5154_v40 = vpack.c.bf16 %v5139_v17, %v5138_v16 }
 0xf59   : > { %4799 = vmatpush.bf16.msra.mxu0 %v4779_v59  ;;  %5182 = vmatpush.bf16.msrb.mxu2 %v5154_v40  ;;  %v4833_v40 = vld [vmem:[%s15176_s12 + $0x20] sm:$0xff] }
 0xf5c   : > { %9650 = vmatmul.msk.bf16.vlgmr.msra.gmra.mxu0 %vm2923_vm9, %v13762_v8  ;;  %9658 = vmatmul.msk.bf16.vlgmr.msrb.gmra.mxu2 %vm2923_vm9, %v5156_v38 }
 0xf6c   : > { %9651 = vmatmul.msk.bf16.gmra.mxu0 %vm2923_vm9, %v13774_v3  ;;  %9659 = vmatmul.msk.bf16.gmra.mxu2 %vm2923_vm9, %v5158_v11  ;;  %v9664_v11 = vld [vmem:[%s15176_s12 + $0x50] sm:$0xff] }
 0xf7c   : > { %9652 = vmatmul.msk.bf16.gmra.mxu0 %vm2923_vm9, %v13770_v18  ;;  %9660 = vmatmul.msk.bf16.gmra.mxu2 %vm2923_vm9, %v5160_v5  ;;  %v9665_v5 = vld [vmem:[%s15176_s12 + $0x58] sm:$0xff] }
 0xf8c   : > { %9653 = vmatmul.msk.bf16.gmra.mxu0 %vm2923_vm9, %v13778_v58  ;;  %9661 = vmatmul.msk.bf16.gmra.mxu2 %vm2923_vm9, %v5162_v32 }
 0xfae   : > { %v5426_v25 = vpop.permute.xlu1 %5425 }
 0xfc2   : > { %v5428_v30 = vpop.permute.xlu0 %5427 }
 0xfc3   : > { %5455 = vmatpush.bf16.msrb.mxu1 %v5428_v30 }
 0xfc7   : > { %5456 = vmatpush.bf16.msrb.mxu1 %v5426_v25 }
 0xfd9   : > { %v4801_v50 = vpop.f32.mrf.mxu0 }
 0xfda   : > { %v4821_v1 = vmul.f32 0.25, %v4801_v50 }
 0xfdc   : > { %v13809_v47 = vadd.f32 %v4829_v63, %v4821_v1  ;;  %v4836_v63 = vld [vmem:[%s15176_s12 + $0x38] sm:$0xff] }
 0xfde   : > { %v4845_v4 = vsel %vm2989_vm10, %v13809_v47, -inf }
 0xfdf   : > { %4846 = vmax.xlane.f32.xlu0 %v4845_v4  ;;  %v5184_v21 = vpop.f32.mrf.mxu2 }
 0xfe0   : > { %v5204_v49 = vmul.f32 0.25, %v5184_v21 }
 0xfe1   : > { %v4803_v29 = vpop.f32.mrf.mxu0 }
 0xfe2   : > { %v13814_v9 = vadd.f32 %v9662_v7, %v5204_v49  ;;  %v4822_v58 = vmul.f32 0.25, %v4803_v29  ;;  %v9666_v49 = vld [vmem:[%s15176_s12 + $0x60] sm:$0xff] }
 0xfe4   : > { %v5229_v54 = vsel %vm2989_vm10, %v13814_v9, -inf  ;;  %v13819_v45 = vadd.f32 %v4830_v48, %v4822_v58 }
 0xfe5   : > { %5230 = vmax.xlane.f32.xlu2 %v5229_v54 }
 0xfe6   : > { %v4848_v34 = vsel %vm2989_vm10, %v13819_v45, -inf }
 0xfe7   : > { %v5186_v13 = vpop.f32.mrf.mxu2 }
 0xfe8   : > { %v5205_v57 = vmul.f32 0.25, %v5186_v13 }
 0xfe9   : > { %v4806_v60 = vpop.f32.mrf.mxu0 }
 0xfea   : > { %v4823_v38 = vmul.f32 0.25, %v4806_v60  ;;  %v13829_v55 = vadd.f32 %v9663_v61, %v5205_v57  ;;  %v9667_v60 = vld [vmem:[%s15176_s12 + $0x68] sm:$0xff] }
 0xfec   : > { %v13824_v0 = vadd.f32 %v4831_v6, %v4823_v38  ;;  %v5232_v42 = vsel %vm2989_vm10, %v13829_v55, -inf }
 0xfed   : > { %4849 = vmax.xlane.f32.xlu2 %v4848_v34  ;;  %v4835_v34 = vld [vmem:[%s15176_s12 + $0x30] sm:$0xff] }
 0xfee   : > { %v4851_v10 = vsel %vm2989_vm10, %v13824_v0, -inf }
 0xfef   : > { %4852 = vmax.xlane.f32.xlu1 %v4851_v10  ;;  %v5189_v23 = vpop.f32.mrf.mxu2 }
 0xff0   : > { %v5206_v14 = vmul.f32 0.25, %v5189_v23 }
 0xff1   : > { %v4808_v56 = vpop.f32.mrf.mxu0 }
 0xff2   : > { %v13834_v31 = vadd.f32 %v9664_v11, %v5206_v14  ;;  %v4824_v32 = vmul.f32 0.25, %v4808_v56  ;;  %v9668_v14 = vld [vmem:[%s15176_s12 + $0x70] sm:$0xff] }
 0xff4   : > { %v5235_v37 = vsel %vm2989_vm10, %v13834_v31, -inf  ;;  %v13839_v62 = vadd.f32 %v4832_v27, %v4824_v32 }
 0xff5   : > { %5233 = vmax.xlane.f32.xlu2 %v5232_v42 }
 0xff6   : > { %v4854_v51 = vsel %vm2989_vm10, %v13839_v62, -inf }
 0xff7   : > { %v5191_v19 = vpop.f32.mrf.mxu2 }
 0xff8   : > { %v5207_v26 = vmul.f32 0.25, %v5191_v19 }
 0xff9   : > { %v4811_v24 = vpop.f32.mrf.mxu0 }
 0xffa   : > { %v13849_v16 = vadd.f32 %v9665_v5, %v5207_v26  ;;  %v4825_v17 = vmul.f32 0.25, %v4811_v24 }
 0xffc   : > { %v5238_v59 = vsel %vm2989_vm10, %v13849_v16, -inf  ;;  %v13854_v25 = vadd.f32 %v4833_v40, %v4825_v17 }
 0xffd   : > { %5236 = vmax.xlane.f32.xlu2 %v5235_v37  ;;  %v9669_v37 = vld [vmem:[%s15176_s12 + $0x78] sm:$0xff] }
 0xffe   : > { %v4857_v21 = vsel %vm2989_vm10, %v13854_v25, -inf }
 0xfff   : > { %v5194_v30 = vpop.f32.mrf.mxu2 }
0x1000   : > { %v5208_v4 = vmul.f32 0.25, %v5194_v30 }
0x1001   : > { %v4813_v36 = vpop.f32.mrf.mxu0 }
0x1002   : > { %v4826_v33 = vmul.f32 0.25, %v4813_v36  ;;  %v13864_v58 = vadd.f32 %v9666_v49, %v5208_v4 }
0x1004   : > { %v13844_v20 = vadd.f32 %v4834_v46, %v4826_v33  ;;  %v5241_v13 = vsel %vm2989_vm10, %v13864_v58, -inf }
0x1005   : > { %4855 = vmax.xlane.f32.xlu2 %v4854_v51 }
0x1006   : > { %v4860_v28 = vsel %vm2989_vm10, %v13844_v20, -inf }
0x1007   : > { %4861 = vmax.xlane.f32.xlu0 %v4860_v28  ;;  %v5196_v54 = vpop.f32.mrf.mxu2 }
0x1008   : > { %v5209_v48 = vmul.f32 0.25, %v5196_v54 }
0x1009   : > { %v4816_v35 = vpop.f32.mrf.mxu0 }
0x100a   : > { %v13869_v6 = vadd.f32 %v9667_v60, %v5209_v48  ;;  %v4827_v38 = vmul.f32 0.25, %v4816_v35 }
0x100c   : > { %v5244_v57 = vsel %vm2989_vm10, %v13869_v6, -inf  ;;  %v13874_v10 = vadd.f32 %v4835_v34, %v4827_v38 }
0x100d   : > { %5239 = vmax.xlane.f32.xlu2 %v5238_v59 }
0x100e   : > { %v4863_v56 = vsel %vm2989_vm10, %v13874_v10, -inf }
0x100f   : > { %v5199_v61 = vpop.f32.mrf.mxu2 }
0x1010   : > { %v5210_v23 = vmul.f32 0.25, %v5199_v61 }
0x1011   : > { %v4818_v50 = vpop.f32.mrf.mxu0 }
0x1012   : > { %v4828_v1 = vmul.f32 0.25, %v4818_v50  ;;  %v13881_v42 = vadd.f32 %v9668_v14, %v5210_v23 }
0x1014   : > { %v13859_v7 = vadd.f32 %v4836_v63, %v4828_v1  ;;  %v5247_v32 = vsel %vm2989_vm10, %v13881_v42, -inf }
0x1015   : > { %4858 = vmax.xlane.f32.xlu2 %v4857_v21 }
0x1016   : > { %v4866_v29 = vsel %vm2989_vm10, %v13859_v7, -inf }
0x1017   : > { %4867 = vmax.xlane.f32.xlu0 %v4866_v29  ;;  %v5201_v11 = vpop.f32.mrf.mxu2 }
0x1018   : > { %v5211_v24 = vmul.f32 0.25, %v5201_v11 }
0x101a   : > { %v13886_v27 = vadd.f32 %v9669_v37, %v5211_v24 }
0x101d   : > { %5242 = vmax.xlane.f32.xlu2 %v5241_v13 }
0x1025   : > { %5245 = vmax.xlane.f32.xlu2 %v5244_v57 }
0x102b   : > { %5049 = vrot.lane.b32.xlu0 %v13770_v18, %s15175_s1  ;;  %v5250_v18 = vsel %vm2989_vm10, %v13886_v27, -inf }
0x102d   : > { %4864 = vmax.xlane.f32.xlu2 %v4863_v56 }
0x1035   : > { %5248 = vmax.xlane.f32.xlu2 %v5247_v32 }
0x103d   : > { %5251 = vmax.xlane.f32.xlu2 %v5250_v18 }
0x1052   : > { %v4847_v19 = vpop.xlane.xlu0 %4846 }
0x1053   : > { %v4869_v36 = vsub.f32 %v13809_v47, %v4847_v19 }
0x1055   : > { %v4877_v46 = vmul.f32 1.442695, %v4869_v36 }
0x1057   : > { %10920 = vpow2.f32 %v4877_v46 }
0x1058   : > { %v5231_v33 = vpop.xlane.xlu2 %5230 }
0x1059   : > { %v5253_v26 = vsub.f32 %v13814_v9, %v5231_v33 }
0x105b   : > { %v5261_v51 = vmul.f32 1.442695, %v5253_v26 }
0x105d   : > { %v13892_v5 = vpop.eup %10920  ;;  %10922 = vpow2.f32 %v5261_v51 }
0x105e   : > { %v4893_v28 = vsel %vm2989_vm10, %v13892_v5, 0.0 }
0x105f   : > { %4894 = vadd.xlane.f32.xlu1 %v4893_v28 }
0x1060   : > { %v4850_v35 = vpop.xlane.xlu2 %4849 }
0x1061   : > { %v4870_v17 = vsub.f32 %v13819_v45, %v4850_v35 }
0x1062   : > { %v4853_v59 = vpop.xlane.xlu1 %4852 }
0x1063   : > { %v13897_v40 = vpop.eup %10922  ;;  %v4879_v47 = vmul.f32 1.442695, %v4870_v17  ;;  %v4871_v30 = vsub.f32 %v13824_v0, %v4853_v59 }
0x1064   : > { %v5277_v9 = vsel %vm2989_vm10, %v13897_v40, 0.0 }
0x1065   : > { %10924 = vpow2.f32 %v4879_v47  ;;  %v4881_v50 = vmul.f32 1.442695, %v4871_v30  ;;  %5278 = vadd.xlane.f32.xlu2 %v5277_v9 }
0x1067   : > { %10926 = vpow2.f32 %v4881_v50 }
0x1068   : > { %v5234_v63 = vpop.xlane.xlu2 %5233 }
0x1069   : > { %v5254_v1 = vsub.f32 %v13829_v55, %v5234_v63 }
0x106b   : > { %v13903_v4 = vpop.eup %10924  ;;  %v5263_v21 = vmul.f32 1.442695, %v5254_v1 }
0x106c   : > { %v4896_v45 = vsel %vm2989_vm10, %v13903_v4, 0.0 }
0x106d   : > { %v13907_v49 = vpop.eup %10926  ;;  %10928 = vpow2.f32 %v5263_v21  ;;  %4897 = vadd.xlane.f32.xlu2 %v4896_v45 }
0x106e   : > { %v4899_v0 = vsel %vm2989_vm10, %v13907_v49, 0.0 }
0x106f   : > { %4900 = vadd.xlane.f32.xlu0 %v4899_v0 }
0x1070   : > { %v5237_v29 = vpop.xlane.xlu2 %5236 }
0x1071   : > { %v5255_v54 = vsub.f32 %v13834_v31, %v5237_v29 }
0x1073   : > { %v13912_v48 = vpop.eup %10928  ;;  %v5265_v55 = vmul.f32 1.442695, %v5255_v54 }
0x1074   : > { %v5280_v13 = vsel %vm2989_vm10, %v13912_v48, 0.0 }
0x1075   : > { %10930 = vpow2.f32 %v5265_v55  ;;  %5281 = vadd.xlane.f32.xlu2 %v5280_v13 }
0x1078   : > { %v4856_v60 = vpop.xlane.xlu2 %4855 }
0x1079   : > { %v4872_v38 = vsub.f32 %v13839_v62, %v4856_v60 }
0x107a   : > { %v13930_v37 = vpop.xlane.xlu0 %4861 }
0x107b   : > { %v13917_v57 = vpop.eup %10930  ;;  %v4883_v34 = vmul.f32 1.442695, %v4872_v38 }
0x107c   : > { %v5283_v61 = vsel %vm2989_vm10, %v13917_v57, 0.0 }
0x107d   : > { %10932 = vpow2.f32 %v4883_v34  ;;  %5284 = vadd.xlane.f32.xlu1 %v5283_v61 }
0x1080   : > { %v5240_v31 = vpop.xlane.xlu2 %5239 }
0x1081   : > { %v5256_v23 = vsub.f32 %v13849_v16, %v5240_v31 }
0x1083   : > { %v13922_v56 = vpop.eup %10932  ;;  %v5267_v14 = vmul.f32 1.442695, %v5256_v23 }
0x1084   : > { %v4902_v11 = vsel %vm2989_vm10, %v13922_v56, 0.0 }
0x1085   : > { %10934 = vpow2.f32 %v5267_v14  ;;  %4903 = vadd.xlane.f32.xlu1 %v4902_v11 }
0x1088   : > { %v4859_v62 = vpop.xlane.xlu2 %4858 }
0x108a   : > { %v4868_v36 = vpop.xlane.xlu0 %4867 }
0x108b   : > { %v13926_v24 = vpop.eup %10934 }
0x108c   : > { %v5286_v32 = vsel %vm2989_vm10, %v13926_v24, 0.0 }
0x108d   : > { %5287 = vadd.xlane.f32.xlu2 %v5286_v32 }
0x1090   : > { %v5243_v18 = vpop.xlane.xlu2 %5242 }
0x1091   : > { %v5257_v16 = vsub.f32 %v13864_v58, %v5243_v18 }
0x1093   : > { %v5269_v19 = vmul.f32 1.442695, %v5257_v16 }
0x1095   : > { %10936 = vpow2.f32 %v5269_v19 }
0x1098   : > { %v5246_v46 = vpop.xlane.xlu2 %5245 }
0x1099   : > { %v5258_v33 = vsub.f32 %v13869_v6, %v5246_v46 }
0x109b   : > { %v13934_v26 = vpop.eup %10936  ;;  %v5271_v51 = vmul.f32 1.442695, %v5258_v33 }
0x109c   : > { %v5289_v28 = vsel %vm2989_vm10, %v13934_v26, 0.0 }
0x109d   : > { %10938 = vpow2.f32 %v5271_v51  ;;  %5290 = vadd.xlane.f32.xlu2 %v5289_v28  ;;  %v5050_v35 = vpop.permute.xlu0 %5049 }
0x109e   : > { %5074 = vmatpush.bf16.msra.mxu3 %v5050_v35 }
0x10a0   : > { %v4865_v17 = vpop.xlane.xlu2 %4864 }
0x10a1   : > { %v4875_v59 = vsub.f32 %v13874_v10, %v4865_v17 }
0x10a3   : > { %v13939_v58 = vpop.eup %10938  ;;  %v4889_v47 = vmul.f32 1.442695, %v4875_v59 }
0x10a4   : > { %v5292_v30 = vsel %vm2989_vm10, %v13939_v58, 0.0 }
0x10a5   : > { %10940 = vpow2.f32 %v4889_v47  ;;  %5293 = vadd.xlane.f32.xlu2 %v5292_v30 }
0x10a8   : > { %v5249_v6 = vpop.xlane.xlu2 %5248 }
0x10a9   : > { %v5259_v0 = vsub.f32 %v13881_v42, %v5249_v6 }
0x10ab   : > { %v13943_v9 = vpop.eup %10940  ;;  %v5273_v29 = vmul.f32 1.442695, %v5259_v0 }
0x10ac   : > { %v4911_v50 = vsel %vm2989_vm10, %v13943_v9, 0.0 }
0x10ad   : > { %4912 = vadd.xlane.f32.xlu0 %v4911_v50 }
0x10b0   : > { %v5252_v63 = vpop.xlane.xlu2 %5251 }
0x10b1   : > { %v5260_v1 = vsub.f32 %v13886_v27, %v5252_v63  ;;  %v4873_v27 = vsub.f32 %v13854_v25, %v4859_v62 }
0x10b3   : > { %v5275_v21 = vmul.f32 1.442695, %v5260_v1  ;;  %v4885_v13 = vmul.f32 1.442695, %v4873_v27 }
0x10b5   : > { %10942 = vpow2.f32 %v5275_v21 }
0x10bb   : > { %v13948_v10 = vpop.eup %10942 }
0x10bc   : > { %v5298_v45 = vsel %vm2989_vm10, %v13948_v10, 0.0 }
0x10bd   : > { %5047 = vrot.lane.b32.xlu2 %v13774_v3, %s15175_s1  ;;  %5299 = vadd.xlane.f32.xlu1 %v5298_v45  ;;  %v4876_v3 = vsub.f32 %v13859_v7, %v4868_v36  ;;  %v4874_v7 = vsub.f32 %v13844_v20, %v13930_v37 }
0x10bf   : > { %v4891_v61 = vmul.f32 1.442695, %v4876_v3  ;;  %v4887_v46 = vmul.f32 1.442695, %v4874_v7 }
0x10d2   : > { %v13965_v23 = vpop.xlane.xlu1 %4894 }
0x10d6   : > { %5045 = vrot.lane.b32.xlu1 %v13762_v8, %s15175_s1 }
0x10d8   : > { %v5279_v54 = vpop.xlane.xlu2 %5278 }
0x10d9   : > { %10944 = vrcp.f32 %v5279_v54  ;;  %vm5306_vm6 = vweird.f32 %v5279_v54  ;;  %v5312_v16 = vand.u32 2147483648, %v5279_v54  ;;  %v5310_v51 = vand.u32 2147483647, %v5279_v54 }
0x10da   : > { %10946 = vpow2.f32 %v5273_v29 }
0x10db   : > { %10948 = vpow2.f32 %v4885_v13  ;;  %v5313_v59 = vor.u32 1.1754944e-38, %v5312_v16  ;;  %vm5311_vm11 = vcmp.eq.f32.partialorder %v5310_v51, 8.507059e+37 }
0x10df   : > { %v10945_v55 = vpop.eup %10944 }
0x10e0   : > { %v13958_v60 = vpop.xlane.xlu2 %4897  ;;  %v13960_v38 = vpop.eup %10946  ;;  %v5302_v34 = vmul.f32 %v10945_v55, %v5279_v54  ;;  %vm5307_vm5 = vweird.f32 %v10945_v55 }
0x10e1   : > { %v5295_v42 = vsel %vm2989_vm10, %v13960_v38, 0.0  ;;  %v13967_v25 = vpop.eup %10948  ;;  %vm13975_vm7 = vmor %vm5306_vm6, %vm5307_vm5 }
0x10e2   : > { %v5303_v8 = vsub.f32 1.0, %v5302_v34  ;;  %v4905_v11 = vsel %vm2989_vm10, %v13967_v25, 0.0 }
0x10e4   : > { %v5304_v14 = vmul.f32 %v10945_v55, %v5303_v8 }
0x10e6   : > { %5296 = vadd.xlane.f32.xlu2 %v5295_v42  ;;  %v5305_v32 = vadd.f32 %v10945_v55, %v5304_v14 }
0x10e8   : > { %v5282_v31 = vpop.xlane.xlu2 %5281  ;;  %v5309_v20 = vsel %vm13975_vm7, %v10945_v55, %v5305_v32 }
0x10e9   : > { %10950 = vrcp.f32 %v5282_v31  ;;  %v5327_v37 = vand.u32 2147483648, %v5282_v31  ;;  %v5325_v17 = vand.u32 2147483647, %v5282_v31  ;;  %vm5321_vm12 = vweird.f32 %v5282_v31 }
0x10ea   : > { %10952 = vpow2.f32 %v4891_v61  ;;  %v5314_v6 = vsel %vm5311_vm11, %v5313_v59, %v5309_v20 }
0x10eb   : > { %v5328_v50 = vor.u32 1.1754944e-38, %v5327_v37  ;;  %vm5326_vm14 = vcmp.eq.f32.partialorder %v5325_v17, 8.507059e+37  ;;  %v5315_v45 = vmul.f32 %v13897_v40, %v5314_v6 }
0x10ee   : > { %4906 = vadd.xlane.f32.xlu2 %v4905_v11 }
0x10ef   : > { %v10951_v62 = vpop.eup %10950 }
0x10f0   : > { %v5317_v18 = vmul.f32 %v10951_v62, %v5282_v31  ;;  %v5285_v19 = vpop.xlane.xlu1 %5284  ;;  %v13973_v36 = vpop.eup %10952  ;;  %vm5322_vm8 = vweird.f32 %v10951_v62 }
0x10f1   : > { %10954 = vrcp.f32 %v5285_v19  ;;  %v4914_v47 = vsel %vm2989_vm10, %v13973_v36, 0.0  ;;  %vm5323_vm13 = vmor %vm5321_vm12, %vm5322_vm8  ;;  %v5342_v40 = vand.u32 2147483648, %v5285_v19  ;;  %vm5336_vm2 = vweird.f32 %v5285_v19 }
0x10f2   : > { %v5318_v28 = vsub.f32 1.0, %v5317_v18  ;;  %10956 = vpow2.f32 %v4887_v46  ;;  %v5340_v31 = vand.u32 2147483647, %v5285_v19 }
0x10f3   : > { %v5343_v32 = vor.u32 1.1754944e-38, %v5342_v40 }
0x10f4   : > { %v5319_v35 = vmul.f32 %v10951_v62, %v5318_v28  ;;  %vm5341_vm6 = vcmp.eq.f32.partialorder %v5340_v31, 8.507059e+37 }
0x10f6   : > { %v5320_v30 = vadd.f32 %v10951_v62, %v5319_v35  ;;  %4915 = vadd.xlane.f32.xlu2 %v4914_v47 }
0x10f7   : > { %v10955_v21 = vpop.eup %10954 }
0x10f8   : > { %v5324_v63 = vsel %vm5323_vm13, %v10951_v62, %v5320_v30  ;;  %v13985_v29 = vpop.eup %10956  ;;  %v5332_v27 = vmul.f32 %v10955_v21, %v5285_v19  ;;  %vm5337_vm15 = vweird.f32 %v10955_v21 }
0x10f9   : > { %v5329_v1 = vsel %vm5326_vm14, %v5328_v50, %v5324_v63  ;;  %v4908_v55 = vsel %vm2989_vm10, %v13985_v29, 0.0  ;;  %vm5338_vm3 = vmor %vm5336_vm2, %vm5337_vm15 }
0x10fa   : > { %v5330_v0 = vmul.f32 %v13912_v48, %v5329_v1  ;;  %v5333_v34 = vsub.f32 1.0, %v5332_v27 }
0x10fc   : > { %v5421_v54 = vpack.c.bf16 %v5330_v0, %v5315_v45  ;;  %v5334_v3 = vmul.f32 %v10955_v21, %v5333_v34 }
0x10fe   : > { %9670 = vmatmul.msk.bf16.vlgmr.msrb.gmra.mxu1 %vm2989_vm10, %v5421_v54  ;;  %v5335_v61 = vadd.f32 %v10955_v21, %v5334_v3 }
0x1100   : > { %v5288_v13 = vpop.xlane.xlu2 %5287  ;;  %4909 = vadd.xlane.f32.xlu1 %v4908_v55  ;;  %v5339_v7 = vsel %vm5338_vm3, %v10955_v21, %v5335_v61 }
0x1101   : > { %10958 = vrcp.f32 %v5288_v13  ;;  %v5357_v11 = vand.u32 2147483648, %v5288_v13  ;;  %v5355_v62 = vand.u32 2147483647, %v5288_v13  ;;  %vm5351_vm5 = vweird.f32 %v5288_v13 }
0x1102   : > { %v5344_v33 = vsel %vm5341_vm6, %v5343_v32, %v5339_v7  ;;  %v4904_v32 = vpop.xlane.xlu1 %4903 }
0x1103   : > { %v5358_v16 = vor.u32 1.1754944e-38, %v5357_v11  ;;  %vm5356_vm8 = vcmp.eq.f32.partialorder %v5355_v62, 8.507059e+37  ;;  %v5345_v19 = vmul.f32 %v13917_v57, %v5344_v33 }
0x1107   : > { %v10959_v42 = vpop.eup %10958 }
0x1108   : > { %v5347_v8 = vmul.f32 %v10959_v42, %v5288_v13  ;;  %vm5352_vm4 = vweird.f32 %v10959_v42 }
0x1109   : > { %vm5353_vm7 = vmor %vm5351_vm5, %vm5352_vm4 }
0x110a   : > { %v5348_v48 = vsub.f32 1.0, %v5347_v8 }
0x110c   : > { %v5349_v14 = vmul.f32 %v10959_v42, %v5348_v48 }
0x110e   : > { %v5350_v18 = vadd.f32 %v10959_v42, %v5349_v14 }
0x1110   : > { %v5291_v46 = vpop.xlane.xlu2 %5290  ;;  %v5354_v51 = vsel %vm5353_vm7, %v10959_v42, %v5350_v18  ;;  %vm4937_vm7 = vweird.f32 %v13958_v60 }
0x1111   : > { %10960 = vrcp.f32 %v5291_v46  ;;  %v5359_v28 = vsel %vm5356_vm8, %v5358_v16, %v5354_v51  ;;  %v5372_v21 = vand.u32 2147483648, %v5291_v46  ;;  %vm5366_vm12 = vweird.f32 %v5291_v46  ;;  %v4901_v16 = vpop.xlane.xlu0 %4900 }
0x1112   : > { %v5360_v20 = vmul.f32 %v13926_v24, %v5359_v28  ;;  %v5370_v57 = vand.u32 2147483647, %v5291_v46  ;;  %v4943_v51 = vand.u32 2147483648, %v13958_v60 }
0x1113   : > { %v5373_v55 = vor.u32 1.1754944e-38, %v5372_v21 }
0x1114   : > { %v5422_v37 = vpack.c.bf16 %v5360_v20, %v5345_v19  ;;  %vm5371_vm15 = vcmp.eq.f32.partialorder %v5370_v57, 8.507059e+37  ;;  %v4941_v19 = vand.u32 2147483647, %v13958_v60 }
0x1116   : > { %9671 = vmatmul.msk.bf16.gmra.mxu1 %vm2989_vm10, %v5422_v37  ;;  %v4928_v37 = vand.u32 2147483648, %v13965_v23 }
0x1117   : > { %v10961_v35 = vpop.eup %10960 }
0x1118   : > { %v5362_v17 = vmul.f32 %v10961_v35, %v5291_v46  ;;  %v5294_v59 = vpop.xlane.xlu2 %5293  ;;  %vm5367_vm11 = vweird.f32 %v10961_v35 }
0x1119   : > { %10962 = vrcp.f32 %v5294_v59  ;;  %vm5368_vm13 = vmor %vm5366_vm12, %vm5367_vm11  ;;  %v5387_v24 = vand.u32 2147483648, %v5294_v59  ;;  %v5385_v54 = vand.u32 2147483647, %v5294_v59  ;;  %vm5381_vm2 = vweird.f32 %v5294_v59 }
0x111a   : > { %v5363_v47 = vsub.f32 1.0, %v5362_v17  ;;  %10964 = vrcp.f32 %v13958_v60  ;;  %vm4922_vm11 = vweird.f32 %v13965_v23 }
0x111b   : > { %v5388_v34 = vor.u32 1.1754944e-38, %v5387_v24  ;;  %vm5386_vm4 = vcmp.eq.f32.partialorder %v5385_v54, 8.507059e+37  ;;  %10966 = vrcp.f32 %v13965_v23 }
0x111c   : > { %v5364_v30 = vmul.f32 %v10961_v35, %v5363_v47  ;;  %10968 = vrcp.f32 %v4904_v32 }
0x111d   : > { %10970 = vrcp.f32 %v4901_v16 }
0x111e   : > { %v5365_v50 = vadd.f32 %v10961_v35, %v5364_v30  ;;  %v4944_v30 = vor.u32 1.1754944e-38, %v4943_v51 }
0x111f   : > { %v10963_v6 = vpop.eup %10962 }
0x1120   : > { %v5377_v63 = vmul.f32 %v10963_v6, %v5294_v59  ;;  %v5048_v1 = vpop.permute.xlu2 %5047  ;;  %vm5382_vm14 = vweird.f32 %v10963_v6  ;;  %v5369_v27 = vsel %vm5368_vm13, %v10961_v35, %v5365_v50  ;;  %v10965_v31 = vpop.eup %10964  ;;  %v4926_v35 = vand.u32 2147483647, %v13965_v23 }
0x1121   : > { %5075 = vmatpush.bf16.msra.mxu3 %v5048_v1  ;;  %vm5383_vm3 = vmor %vm5381_vm2, %vm5382_vm14  ;;  %v5374_v3 = vsel %vm5371_vm15, %v5373_v55, %v5369_v27  ;;  %v10967_v14 = vpop.eup %10966  ;;  %v4933_v11 = vmul.f32 %v10965_v31, %v13958_v60  ;;  %vm4938_vm5 = vweird.f32 %v10965_v31  ;;  %vm4942_vm13 = vcmp.eq.f32.partialorder %v4941_v19, 8.507059e+37 }
0x1122   : > { %v5378_v45 = vsub.f32 1.0, %v5377_v63  ;;  %v5375_v61 = vmul.f32 %v13934_v26, %v5374_v3  ;;  %v4918_v7 = vmul.f32 %v10967_v14, %v13965_v23  ;;  %vm4923_vm6 = vweird.f32 %v10967_v14  ;;  %vm4939_vm8 = vmor %vm4937_vm7, %vm4938_vm5 }
0x1123   : > { %v4934_v62 = vsub.f32 1.0, %v4933_v11  ;;  %vm4924_vm12 = vmor %vm4922_vm11, %vm4923_vm6  ;;  %v4929_v63 = vor.u32 1.1754944e-38, %v4928_v37  ;;  %vm4927_vm14 = vcmp.eq.f32.partialorder %v4926_v35, 8.507059e+37  ;;  %v4971_v3 = vand.u32 2147483647, %v4904_v32 }
0x1124   : > { %v5379_v0 = vmul.f32 %v10963_v6, %v5378_v45  ;;  %v4919_v18 = vsub.f32 1.0, %v4918_v7  ;;  %vm4952_vm5 = vweird.f32 %v4901_v16 }
0x1125   : > { %v4935_v46 = vmul.f32 %v10965_v31, %v4934_v62  ;;  %vm4972_vm7 = vcmp.eq.f32.partialorder %v4971_v3, 8.507059e+37 }
0x1126   : > { %v5380_v13 = vadd.f32 %v10963_v6, %v5379_v0  ;;  %v4920_v33 = vmul.f32 %v10967_v14, %v4919_v18 }
0x1127   : > { %v4936_v26 = vadd.f32 %v10965_v31, %v4935_v46 }
0x1128   : > { %v5384_v42 = vsel %vm5383_vm3, %v10963_v6, %v5380_v13  ;;  %v4921_v28 = vadd.f32 %v10967_v14, %v4920_v33  ;;  %v4973_v13 = vand.u32 2147483648, %v4904_v32  ;;  %vm4967_vm3 = vweird.f32 %v4904_v32 }
0x1129   : > { %v5389_v8 = vsel %vm5386_vm4, %v5388_v34, %v5384_v42  ;;  %v4940_v17 = vsel %vm4939_vm8, %v10965_v31, %v4936_v26  ;;  %v4958_v42 = vand.u32 2147483648, %v4901_v16 }
0x112a   : > { %v5390_v40 = vmul.f32 %v13939_v58, %v5389_v8  ;;  %v10969_v58 = vpop.eup %10968  ;;  %v4925_v6 = vsel %vm4924_vm12, %v10967_v14, %v4921_v28  ;;  %v4945_v1 = vsel %vm4942_vm13, %v4944_v30, %v4940_v17  ;;  %v4974_v8 = vor.u32 1.1754944e-38, %v4973_v13 }
0x112b   : > { %v10971_v20 = vpop.eup %10970  ;;  %v4963_v59 = vmul.f32 %v10969_v58, %v4904_v32  ;;  %v4930_v21 = vsel %vm4927_vm14, %v4929_v63, %v4925_v6  ;;  %v4946_v45 = vmul.f32 %v13903_v4, %v4945_v1  ;;  %vm4968_vm15 = vweird.f32 %v10969_v58 }
0x112c   : > { %v5423_v48 = vpack.c.bf16 %v5390_v40, %v5375_v61  ;;  %v4948_v50 = vmul.f32 %v10971_v20, %v4901_v16  ;;  %v4931_v24 = vmul.f32 %v13892_v5, %v4930_v21  ;;  %vm4953_vm2 = vweird.f32 %v10971_v20  ;;  %vm4969_vm4 = vmor %vm4967_vm3, %vm4968_vm15 }
0x112d   : > { %v4964_v60 = vsub.f32 1.0, %v4963_v59  ;;  %v4956_v5 = vand.u32 2147483647, %v4901_v16  ;;  %vm4954_vm6 = vmor %vm4952_vm5, %vm4953_vm2 }
0x112e   : > { %9672 = vmatmul.msk.bf16.gmra.mxu1 %vm2989_vm10, %v5423_v48  ;;  %v4949_v57 = vsub.f32 1.0, %v4948_v50  ;;  %v5037_v27 = vpack.c.bf16 %v4946_v45, %v4931_v24  ;;  %v4959_v48 = vor.u32 1.1754944e-38, %v4958_v42  ;;  %v14024_v24 = vpop.xlane.xlu0 %4912 }
0x112f   : > { %v4965_v23 = vmul.f32 %v10969_v58, %v4964_v60  ;;  %vm4957_vm8 = vcmp.eq.f32.partialorder %v4956_v5, 8.507059e+37 }
0x1130   : > { %v14006_v47 = vpop.xlane.xlu1 %5299  ;;  %v4950_v54 = vmul.f32 %v10971_v20, %v4949_v57 }
0x1131   : > { %v4966_v55 = vadd.f32 %v10969_v58, %v4965_v23  ;;  %10972 = vrcp.f32 %v14006_v47  ;;  %v5417_v51 = vand.u32 2147483648, %v14006_v47  ;;  %vm5411_vm12 = vweird.f32 %v14006_v47 }
0x1132   : > { %v4951_v34 = vadd.f32 %v10971_v20, %v4950_v54 }
0x1133   : > { %v4970_v4 = vsel %vm4969_vm4, %v10969_v58, %v4966_v55  ;;  %v5418_v17 = vor.u32 1.1754944e-38, %v5417_v51 }
0x1134   : > { %v4955_v61 = vsel %vm4954_vm6, %v10971_v20, %v4951_v34  ;;  %v4975_v31 = vsel %vm4972_vm7, %v4974_v8, %v4970_v4 }
0x1135   : > { %v4960_v14 = vsel %vm4957_vm8, %v4959_v48, %v4955_v61  ;;  %v4976_v7 = vmul.f32 %v13922_v56, %v4975_v31  ;;  %v5415_v56 = vand.u32 2147483647, %v14006_v47 }
0x1136   : > { %v4961_v62 = vmul.f32 %v13907_v49, %v4960_v14 }
0x1137   : > { %v10973_v40 = vpop.eup %10972  ;;  %vm5416_vm2 = vcmp.eq.f32.partialorder %v5415_v56, 8.507059e+37 }
0x1138   : > { %v5407_v11 = vmul.f32 %v10973_v40, %v14006_v47  ;;  %v5038_v16 = vpack.c.bf16 %v4976_v7, %v4961_v62  ;;  %vm5412_vm11 = vweird.f32 %v10973_v40 }
0x1139   : > { %vm5413_vm13 = vmor %vm5411_vm12, %vm5412_vm11 }
0x113a   : > { %v5408_v18 = vsub.f32 1.0, %v5407_v11 }
0x113c   : > { %v5409_v46 = vmul.f32 %v10973_v40, %v5408_v18 }
0x113e   : > { %v5410_v58 = vadd.f32 %v10973_v40, %v5409_v46 }
0x1140   : > { %v5414_v37 = vsel %vm5413_vm13, %v10973_v40, %v5410_v58 }
0x1141   : > { %v5419_v50 = vsel %vm5416_vm2, %v5418_v17, %v5414_v37 }
0x1142   : > { %v5420_v60 = vmul.f32 %v13948_v10, %v5419_v50 }
0x1148   : > { %v5046_v0 = vpop.permute.xlu1 %5045 }
0x1149   : > { %5076 = vmatpush.bf16.msra.mxu3 %v5046_v0 }
0x114c   : > { %9654 = vmatmul.msk.bf16.vlgmr.msra.gmra.mxu3 %vm2989_vm10, %v5037_v27 }
0x1159   : > { %v5297_v32 = vpop.xlane.xlu2 %5296 }
0x115a   : > { %10974 = vrcp.f32 %v5297_v32  ;;  %v5402_v20 = vand.u32 2147483648, %v5297_v32  ;;  %v5400_v35 = vand.u32 2147483647, %v5297_v32  ;;  %vm5396_vm15 = vweird.f32 %v5297_v32 }
0x115c   : > { %9655 = vmatmul.msk.bf16.gmra.mxu3 %vm2989_vm10, %v5038_v16  ;;  %v5403_v30 = vor.u32 1.1754944e-38, %v5402_v20  ;;  %vm5401_vm4 = vcmp.eq.f32.partialorder %v5400_v35, 8.507059e+37 }
0x1160   : > { %v10975_v33 = vpop.eup %10974 }
0x1161   : > { %v5392_v26 = vmul.f32 %v10975_v33, %v5297_v32  ;;  %v4907_v19 = vpop.xlane.xlu2 %4906  ;;  %vm5397_vm14 = vweird.f32 %v10975_v33 }
0x1162   : > { %10976 = vrcp.f32 %v4907_v19  ;;  %vm5398_vm3 = vmor %vm5396_vm15, %vm5397_vm14  ;;  %v4988_v3 = vand.u32 2147483648, %v4907_v19  ;;  %vm4982_vm6 = vweird.f32 %v4907_v19  ;;  %v4986_v42 = vand.u32 2147483647, %v4907_v19 }
0x1163   : > { %v5393_v28 = vsub.f32 1.0, %v5392_v26 }
0x1164   : > { %v4989_v14 = vor.u32 1.1754944e-38, %v4988_v3  ;;  %vm4987_vm11 = vcmp.eq.f32.partialorder %v4986_v42, 8.507059e+37 }
0x1165   : > { %v5394_v49 = vmul.f32 %v10975_v33, %v5393_v28 }
0x1167   : > { %v5395_v59 = vadd.f32 %v10975_v33, %v5394_v49 }
0x1168   : > { %v10977_v1 = vpop.eup %10976 }
0x1169   : > { %v5399_v6 = vsel %vm5398_vm3, %v10975_v33, %v5395_v59  ;;  %v4978_v57 = vmul.f32 %v10977_v1, %v4907_v19  ;;  %v14021_v45 = vpop.xlane.xlu2 %4915  ;;  %vm4983_vm5 = vweird.f32 %v10977_v1 }
0x116a   : > { %v5404_v63 = vsel %vm5401_vm4, %v5403_v30, %v5399_v6  ;;  %10978 = vrcp.f32 %v14021_v45  ;;  %vm4984_vm7 = vmor %vm4982_vm6, %vm4983_vm5  ;;  %v5033_v20 = vand.u32 2147483648, %v14021_v45  ;;  %vm5027_vm3 = vweird.f32 %v14021_v45 }
0x116b   : > { %v5405_v47 = vmul.f32 %v13960_v38, %v5404_v63  ;;  %v4979_v23 = vsub.f32 1.0, %v4978_v57  ;;  %v5031_v35 = vand.u32 2147483647, %v14021_v45  ;;  %vm5012_vm5 = vweird.f32 %v14024_v24 }
0x116c   : > { %v5034_v59 = vor.u32 1.1754944e-38, %v5033_v20 }
0x116d   : > { %v5424_v21 = vpack.c.bf16 %v5420_v60, %v5405_v47  ;;  %v4980_v54 = vmul.f32 %v10977_v1, %v4979_v23 }
0x116f   : > { %9673 = vmatmul.msk.bf16.gmra.mxu1 %vm2989_vm10, %v5424_v21  ;;  %v4981_v10 = vadd.f32 %v10977_v1, %v4980_v54  ;;  %v10145_v54 = vld [vmem:[%s15180_s3 + $0x8] sm:$0xff] }
0x1170   : > { %v10979_v27 = vpop.eup %10978  ;;  %5556 = vmatpush.bf16.msrb.mxu0 %v10145_v54 }
0x1171   : > { %v5023_v5 = vmul.f32 %v10979_v27, %v14021_v45  ;;  %v4985_v31 = vsel %vm4984_vm7, %v10977_v1, %v4981_v10  ;;  %vm5028_vm15 = vweird.f32 %v10979_v27  ;;  %vm5032_vm7 = vcmp.eq.f32.partialorder %v5031_v35, 8.507059e+37 }
0x1172   : > { %v4990_v32 = vsel %vm4987_vm11, %v4989_v14, %v4985_v31  ;;  %vm5029_vm4 = vmor %vm5027_vm3, %vm5028_vm15 }
0x1173   : > { %v4910_v0 = vpop.xlane.xlu1 %4909  ;;  %v5024_v11 = vsub.f32 1.0, %v5023_v5  ;;  %v4991_v51 = vmul.f32 %v13967_v25, %v4990_v32  ;;  %v5018_v25 = vand.u32 2147483648, %v14024_v24 }
0x1174   : > { %10980 = vrcp.f32 %v4910_v0  ;;  %v5003_v61 = vand.u32 2147483648, %v4910_v0  ;;  %v5001_v48 = vand.u32 2147483647, %v4910_v0  ;;  %vm4997_vm12 = vweird.f32 %v4910_v0 }
0x1175   : > { %10982 = vrcp.f32 %v14024_v24  ;;  %v5025_v58 = vmul.f32 %v10979_v27, %v5024_v11  ;;  %v5019_v6 = vor.u32 1.1754944e-38, %v5018_v25  ;;  %v10737_v25 = vld [vmem:[#allocation19] ss:$0 sm:$0xff] }
0x1176   : > { %v5004_v62 = vor.u32 1.1754944e-38, %v5003_v61  ;;  %vm5002_vm14 = vcmp.eq.f32.partialorder %v5001_v48, 8.507059e+37 }
0x1177   : > { %v5026_v49 = vadd.f32 %v10979_v27, %v5025_v58 }
0x1179   : > { %v5030_v17 = vsel %vm5029_vm4, %v10979_v27, %v5026_v49  ;;  %v10144_v27 = vld [vmem:[%s15180_s3] sm:$0xff]  ;;  %s15183_s3 = smov 96  }
0x117a   : > { %v10981_v38 = vpop.eup %10980  ;;  %v5035_v50 = vsel %vm5032_vm7, %v5034_v59, %v5030_v17  ;;  %5557 = vmatpush.bf16.msrb.mxu0 %v10144_v27 }
0x117b   : > { %v10983_v55 = vpop.eup %10982  ;;  %v4993_v13 = vmul.f32 %v10981_v38, %v4910_v0  ;;  %v5458_v34 = vpop.f32.mrf.mxu1  ;;  %vm4998_vm8 = vweird.f32 %v10981_v38  ;;  %v5036_v1 = vmul.f32 %v13973_v36, %v5035_v50 }
0x117c   : > { %v5008_v8 = vmul.f32 %v10983_v55, %v14024_v24  ;;  %vm4999_vm13 = vmor %vm4997_vm12, %vm4998_vm8  ;;  %vm5013_vm2 = vweird.f32 %v10983_v55 }
0x117d   : > { %v4994_v4 = vsub.f32 1.0, %v4993_v13  ;;  %vm5014_vm6 = vmor %vm5012_vm5, %vm5013_vm2 }
0x117e   : > { %v5009_v18 = vsub.f32 1.0, %v5008_v8 }
0x117f   : > { %v4995_v40 = vmul.f32 %v10981_v38, %v4994_v4 }
0x1180   : > { %v5010_v19 = vmul.f32 %v10983_v55, %v5009_v18 }
0x1181   : > { %v4996_v7 = vadd.f32 %v10981_v38, %v4995_v40 }
0x1182   : > { %v5011_v37 = vadd.f32 %v10983_v55, %v5010_v19 }
0x1183   : > { %v5460_v16 = vpop.f32.mrf.mxu1  ;;  %v5000_v46 = vsel %vm4999_vm13, %v10981_v38, %v4996_v7 }
0x1184   : > { %v10606_v33 = vpack.i.bf16 %v5460_v16, %v5458_v34  ;;  %v5005_v26 = vsel %vm5002_vm14, %v5004_v62, %v5000_v46  ;;  %v5015_v30 = vsel %vm5014_vm6, %v10983_v55, %v5011_v37 }
0x1185   : > { %v5006_v28 = vmul.f32 %v13985_v29, %v5005_v26  ;;  %v5016_v29 = vand.u32 2147483647, %v14024_v24 }
0x1186   : > { %10607 = vrot.lane.b32.xlu0 %v10606_v33, %s15179_s5 }
0x1187   : > { %v5039_v56 = vpack.c.bf16 %v5006_v28, %v4991_v51  ;;  %vm5017_vm8 = vcmp.eq.f32.partialorder %v5016_v29, 8.507059e+37 }
0x1188   : > { %v5020_v63 = vsel %vm5017_vm8, %v5019_v6, %v5015_v30 }
0x1189   : > { %9656 = vmatmul.msk.bf16.gmra.mxu3 %vm2989_vm10, %v5039_v56  ;;  %v5021_v60 = vmul.f32 %v13943_v9, %v5020_v63 }
0x118b   : > { %v5040_v21 = vpack.c.bf16 %v5036_v1, %v5021_v60 }
0x1193   : > { %v5463_v47 = vpop.f32.mrf.mxu1 }
0x1199   : > { %9657 = vmatmul.msk.bf16.gmra.mxu3 %vm2989_vm10, %v5040_v21 }
0x119b   : > { %v5465_v57 = vpop.f32.mrf.mxu1 }
0x119c   : > { %v10611_v45 = vpack.i.bf16 %v5465_v57, %v5463_v47 }
0x119e   : > { %10612 = vrot.lane.b32.xlu2 %v10611_v45, %s15179_s5 }
0x11ab   : > { %v5468_v24 = vpop.f32.mrf.mxu1 }
0x11b3   : > { %v5470_v23 = vpop.f32.mrf.mxu1 }
0x11b4   : > { %v10616_v0 = vpack.i.bf16 %v5470_v23, %v5468_v24 }
0x11b6   : > { %10617 = vrot.lane.b32.xlu0 %v10616_v0, %s15179_s5 }
0x11cf   : > { %v5078_v36 = vpop.f32.mrf.mxu3 }
0x11d7   : > { %v5080_v55 = vpop.f32.mrf.mxu3 }
0x11df   : > { %v5083_v8 = vpop.f32.mrf.mxu3 }
0x11e7   : > { %v5085_v31 = vpop.f32.mrf.mxu3 }
0x11ec   : > { %v5473_v38 = vpop.f32.mrf.mxu1 }
0x11f4   : > { %v5475_v9 = vpop.f32.mrf.mxu1 }
0x11f5   : > { %v10621_v10 = vpack.i.bf16 %v5475_v9, %v5473_v38 }
0x11f7   : > { %10622 = vrot.lane.b32.xlu0 %v10621_v10, %s15179_s5 }
0x11f8   : > { %v10608_v13 = vpop.permute.xlu0 %10607  ;;  %v10613_v61 = vpop.permute.xlu2 %10612 }
0x11f9   : > { %v10610_v34 = vunpack.i.h.bf16 %v10608_v13  ;;  %v10609_v3 = vunpack.i.l.bf16 %v10608_v13  ;;  %v10615_v40 = vunpack.i.h.bf16 %v10613_v61  ;;  %v10614_v48 = vunpack.i.l.bf16 %v10613_v61 }
0x11fb   : > { %v5511_v42 = vsel %vm2923_vm9, %v5080_v55, %v10610_v34  ;;  %v5510_v5 = vsel %vm2923_vm9, %v5078_v36, %v10609_v3  ;;  %v5512_v14 = vsel %vm2923_vm9, %v5083_v8, %v10614_v48  ;;  %v5513_v11 = vsel %vm2923_vm9, %v5085_v31, %v10615_v40 }
0x11fc   : > { %v5522_v4 = vpack.c.bf16 %v5511_v42, %v5510_v5  ;;  %v5523_v7 = vpack.c.bf16 %v5513_v11, %v5512_v14 }
0x11fe   : > { %9682 = vmatmul.msk.bf16.vlgmr.msrb.gmra.mxu0 %vm2383_vm1, %v5522_v4 }
0x120c   : > { %v5088_v62 = vpop.f32.mrf.mxu3 }
0x120e   : > { %9683 = vmatmul.msk.bf16.gmra.mxu0 %vm2383_vm1, %v5523_v7 }
0x1214   : > { %v5090_v46 = vpop.f32.mrf.mxu3 }
0x121c   : > { %v5093_v51 = vpop.f32.mrf.mxu3 }
0x1224   : > { %v5095_v49 = vpop.f32.mrf.mxu3 }
0x1228   : > { %v10618_v32 = vpop.permute.xlu0 %10617 }
0x1229   : > { %v10620_v18 = vunpack.i.h.bf16 %v10618_v32  ;;  %v10619_v16 = vunpack.i.l.bf16 %v10618_v32 }
0x122b   : > { %v5515_v33 = vsel %vm2923_vm9, %v5090_v46, %v10620_v18  ;;  %v5514_v26 = vsel %vm2923_vm9, %v5088_v62, %v10619_v16 }
0x122c   : > { %v5524_v58 = vpack.c.bf16 %v5515_v33, %v5514_v26 }
0x122e   : > { %9684 = vmatmul.msk.bf16.gmra.mxu0 %vm2383_vm1, %v5524_v58 }
0x1269   : > { %v10623_v28 = vpop.permute.xlu0 %10622 }
0x126a   : > { %v10625_v19 = vunpack.i.h.bf16 %v10623_v28  ;;  %v10624_v56 = vunpack.i.l.bf16 %v10623_v28 }
0x126c   : > { %v5517_v20 = vsel %vm2923_vm9, %v5095_v49, %v10625_v19  ;;  %v5516_v37 = vsel %vm2923_vm9, %v5093_v51, %v10624_v56 }
0x126d   : > { %v5525_v35 = vpack.c.bf16 %v5517_v20, %v5516_v37 }
0x126f   : > { %9685 = vmatmul.msk.bf16.gmra.mxu0 %vm2383_vm1, %v5525_v35 }
0x127b   : > { %v5559_v29 = vpop.f32.mrf.mxu0 }
0x127c   : > { %v5579_v17 = vadd.f32 %v5559_v29, %v13625_v44 }
0x127e   : > { %v14061_v59 = vadd.f32 %v10737_v25, %v5579_v17 }
0x1280   : > { %v5601_v30 = vsel %vm2383_vm1, %v14061_v59, 0.0 }
0x1281   : > { %5602 = vadd.xlane.f32.xlu2 %v5601_v30 }
0x1283   : > { %v5561_v6 = vpop.f32.mrf.mxu0 }
0x1284   : > { %v5580_v50 = vadd.f32 %v5561_v6, %v13630_v12 }
0x1286   : > { %v14066_v63 = vadd.f32 %v10737_v25, %v5580_v50 }
0x1288   : > { %v5604_v1 = vsel %vm2383_vm1, %v14066_v63, 0.0 }
0x1289   : > { %5605 = vadd.xlane.f32.xlu1 %v5604_v1  ;;  %v10147_v1 = vld [vmem:[%s15181_s2 + $0x8] sm:$0xff] }
0x128a   : > { %5841 = vmatpush.bf16.msrb.mxu3 %v10147_v1 }
0x128b   : > { %v5564_v47 = vpop.f32.mrf.mxu0 }
0x128c   : > { %v5581_v60 = vadd.f32 %v5564_v47, %v13635_v52 }
0x128e   : > { %v14071_v21 = vadd.f32 %v10737_v25, %v5581_v60 }
0x1290   : > { %v5607_v44 = vsel %vm2383_vm1, %v14071_v21, 0.0 }
0x1291   : > { %5608 = vadd.xlane.f32.xlu0 %v5607_v44 }
0x1293   : > { %v5566_v57 = vpop.f32.mrf.mxu0 }
0x1294   : > { %v5582_v45 = vadd.f32 %v5566_v57, %v13640_v53 }
0x1296   : > { %v14076_v24 = vadd.f32 %v10737_v25, %v5582_v45 }
0x1298   : > { %v5610_v12 = vsel %vm2383_vm1, %v14076_v24, 0.0 }
0x1299   : > { %5611 = vadd.xlane.f32.xlu1 %v5610_v12 }
0x12ab   : > { %v5569_v23 = vpop.f32.mrf.mxu0 }
0x12ac   : > { %v5583_v0 = vadd.f32 %v5569_v23, %v13645_v39  ;;  %v10146_v23 = vld [vmem:[%s15181_s2] sm:$0xff]  ;;  %s15182_s2 = sld [smem:[#allocation80_spill]] }
0x12ad   : > { %5842 = vmatpush.bf16.msrb.mxu3 %v10146_v23 }
0x12ae   : > { %v14081_v54 = vadd.f32 %v10737_v25, %v5583_v0 }
0x12b0   : > { %v5613_v52 = vsel %vm2383_vm1, %v14081_v54, 0.0 }
0x12b1   : > { %5614 = vadd.xlane.f32.xlu1 %v5613_v52 }
0x12b3   : > { %v5571_v27 = vpop.f32.mrf.mxu0 }
0x12b4   : > { %v5584_v36 = vadd.f32 %v5571_v27, %v13650_v41 }
0x12b6   : > { %v14086_v38 = vadd.f32 %v10737_v25, %v5584_v36 }
0x12b8   : > { %v5616_v53 = vsel %vm2383_vm1, %v14086_v38, 0.0 }
0x12b9   : > { %5617 = vadd.xlane.f32.xlu1 %v5616_v53 }
0x12ec   : > { %v5574_v10 = vpop.f32.mrf.mxu0 }
0x12ed   : > { %v5585_v34 = vadd.f32 %v5574_v10, %v13659_v22 }
0x12ef   : > { %v14099_v5 = vadd.f32 %v10737_v25, %v5585_v34 }
0x12f1   : > { %v5619_v22 = vsel %vm2383_vm1, %v14099_v5, 0.0 }
0x12f4   : > { %v5603_v55 = vpop.xlane.xlu2 %5602  ;;  %v5576_v8 = vpop.f32.mrf.mxu0 }
0x12f5   : > { %v5625_v9 = vmul.f32 %v5603_v55, %v12721_v43  ;;  %v5586_v40 = vadd.f32 %v5576_v8, %v13671_v2 }
0x12f7   : > { %v14092_v39 = vsub.f32 %v14061_v59, %v5625_v9  ;;  %v14111_v11 = vadd.f32 %v10737_v25, %v5586_v40 }
0x12f9   : > { %v5641_v13 = vmul.f32 %v14092_v39, %v14092_v39  ;;  %v5622_v32 = vsel %vm2383_vm1, %v14111_v11, 0.0 }
0x12fb   : > { %v5649_v41 = vsel %vm2383_vm1, %v5641_v13, 0.0 }
0x12fc   : > { %v5606_v3 = vpop.xlane.xlu1 %5605  ;;  %5650 = vadd.xlane.f32.xlu1 %v5649_v41 }
0x12fd   : > { %v5626_v42 = vmul.f32 %v5606_v3, %v12721_v43 }
0x12ff   : > { %v14102_v4 = vsub.f32 %v14066_v63, %v5626_v42 }
0x1301   : > { %v5642_v61 = vmul.f32 %v14102_v4, %v14102_v4 }
0x1303   : > { %v5652_v48 = vsel %vm2383_vm1, %v5642_v61, 0.0 }
0x1304   : > { %5653 = vadd.xlane.f32.xlu2 %v5652_v48  ;;  %v5609_v31 = vpop.xlane.xlu0 %5608  ;;  %5620 = vadd.xlane.f32.xlu1 %v5619_v22 }
0x1305   : > { %v5627_v14 = vmul.f32 %v5609_v31, %v12721_v43 }
0x1307   : > { %v14114_v7 = vsub.f32 %v14071_v21, %v5627_v14 }
0x1309   : > { %v5643_v62 = vmul.f32 %v14114_v7, %v14114_v7 }
0x130b   : > { %v5655_v2 = vsel %vm2383_vm1, %v5643_v62, 0.0 }
0x130c   : > { %5656 = vadd.xlane.f32.xlu0 %v5655_v2  ;;  %v5612_v18 = vpop.xlane.xlu1 %5611  ;;  %5623 = vadd.xlane.f32.xlu2 %v5622_v32 }
0x130d   : > { %v5628_v16 = vmul.f32 %v5612_v18, %v12721_v43  ;;  %v14162_v18 = vld [vmem:[#allocation18] ss:$0 sm:$0xff] }
0x130f   : > { %v14123_v46 = vsub.f32 %v14076_v24, %v5628_v16 }
0x1311   : > { %v5644_v33 = vmul.f32 %v14123_v46, %v14123_v46 }
0x1313   : > { %v5658_v26 = vsel %vm2383_vm1, %v5644_v33, 0.0 }
0x1314   : > { %5659 = vadd.xlane.f32.xlu1 %v5658_v26 }
0x1324   : > { %v5615_v58 = vpop.xlane.xlu1 %5614 }
0x1325   : > { %v5629_v51 = vmul.f32 %v5615_v58, %v12721_v43 }
0x1327   : > { %v14130_v28 = vsub.f32 %v14081_v54, %v5629_v51 }
0x1329   : > { %v5645_v19 = vmul.f32 %v14130_v28, %v14130_v28 }
0x132b   : > { %v5661_v56 = vsel %vm2383_vm1, %v5645_v19, 0.0 }
0x132c   : > { %v5618_v49 = vpop.xlane.xlu1 %5617  ;;  %5662 = vadd.xlane.f32.xlu2 %v5661_v56  ;;  %v14165_v56 = vld [vmem:[#allocation16] ss:$0 sm:$0xff] }
0x132d   : > { %v5630_v20 = vmul.f32 %v5618_v49, %v12721_v43 }
0x132f   : > { %v14137_v37 = vsub.f32 %v14086_v38, %v5630_v20 }
0x1331   : > { %v5646_v35 = vmul.f32 %v14137_v37, %v14137_v37 }
0x1333   : > { %v5664_v25 = vsel %vm2383_vm1, %v5646_v35, 0.0 }
0x1334   : > { %5665 = vadd.xlane.f32.xlu0 %v5664_v25 }
0x136f   : > { %v5651_v29 = vpop.xlane.xlu1 %5650 }
0x1370   : > { %v5673_v17 = vmul.f32 %v5651_v29, %v12721_v43 }
0x1372   : > { %v5681_v30 = vadd.f32 1e-05, %v5673_v17 }
0x1374   : > { %10984 = vrsqrt.f32 %v5681_v30  ;;  %vm5695_vm12 = vweird.f32 %v5681_v30 }
0x1377   : > { %v5654_v6 = vpop.xlane.xlu2 %5653  ;;  %v5621_v50 = vpop.xlane.xlu1 %5620 }
0x1378   : > { %v5674_v47 = vmul.f32 %v5654_v6, %v12721_v43  ;;  %v5631_v60 = vmul.f32 %v5621_v50, %v12721_v43 }
0x137a   : > { %v10985_v44 = vpop.eup %10984  ;;  %v5682_v57 = vadd.f32 1e-05, %v5674_v47  ;;  %v14147_v45 = vsub.f32 %v14099_v5, %v5631_v60 }
0x137b   : > { %v5690_v12 = vmul.f32 %v10985_v44, %v5681_v30  ;;  %vm5696_vm11 = vweird.f32 %v10985_v44 }
0x137c   : > { %10986 = vrsqrt.f32 %v5682_v57  ;;  %v5647_v0 = vmul.f32 %v14147_v45, %v14147_v45  ;;  %vm5697_vm13 = vmor %vm5695_vm12, %vm5696_vm11  ;;  %vm5705_vm15 = vweird.f32 %v5682_v57 }
0x137d   : > { %v5691_v52 = vmul.f32 %v10985_v44, %v5690_v12 }
0x137e   : > { %v5667_v27 = vsel %vm2383_vm1, %v5647_v0, 0.0 }
0x137f   : > { %v5692_v36 = vmul.f32 0.5, %v5691_v52  ;;  %v5657_v53 = vpop.xlane.xlu0 %5656  ;;  %5668 = vadd.xlane.f32.xlu1 %v5667_v27  ;;  %v5624_v55 = vpop.xlane.xlu2 %5623 }
0x1380   : > { %v5675_v9 = vmul.f32 %v5657_v53, %v12721_v43  ;;  %v5632_v10 = vmul.f32 %v5624_v55, %v12721_v43 }
0x1381   : > { %v5693_v13 = vsub.f32 1.5, %v5692_v36 }
0x1382   : > { %v10987_v34 = vpop.eup %10986  ;;  %v5683_v41 = vadd.f32 1e-05, %v5675_v9  ;;  %v14156_v3 = vsub.f32 %v14111_v11, %v5632_v10 }
0x1383   : > { %v5694_v42 = vmul.f32 %v10985_v44, %v5693_v13  ;;  %v5700_v8 = vmul.f32 %v10987_v34, %v5682_v57  ;;  %vm5706_vm14 = vweird.f32 %v10987_v34 }
0x1384   : > { %10988 = vrsqrt.f32 %v5683_v41  ;;  %v5648_v61 = vmul.f32 %v14156_v3, %v14156_v3  ;;  %vm5707_vm2 = vmor %vm5705_vm15, %vm5706_vm14  ;;  %vm5715_vm4 = vweird.f32 %v5683_v41 }
0x1385   : > { %v5701_v40 = vmul.f32 %v10987_v34, %v5700_v8  ;;  %v5698_v22 = vsel %vm5697_vm13, %v10985_v44, %v5694_v42 }
0x1386   : > { %v5670_v48 = vsel %vm2383_vm1, %v5648_v61, 0.0  ;;  %v5769_v16 = vmul.f32 %v5698_v22, %v14092_v39 }
0x1387   : > { %v5702_v31 = vmul.f32 0.5, %v5701_v40  ;;  %v5660_v14 = vpop.xlane.xlu1 %5659  ;;  %5671 = vadd.xlane.f32.xlu2 %v5670_v48 }
0x1388   : > { %v5676_v62 = vmul.f32 %v5660_v14, %v12721_v43  ;;  %v5780_v49 = vmul.f32 %v14162_v18, %v5769_v16 }
0x1389   : > { %v5703_v2 = vsub.f32 1.5, %v5702_v31 }
0x138a   : > { %v10989_v32 = vpop.eup %10988  ;;  %v5684_v33 = vadd.f32 1e-05, %v5676_v62  ;;  %v5791_v39 = vadd.f32 %v14165_v56, %v5780_v49 }
0x138b   : > { %v5704_v26 = vmul.f32 %v10987_v34, %v5703_v2  ;;  %v5710_v58 = vmul.f32 %v10989_v32, %v5683_v41  ;;  %vm5716_vm3 = vweird.f32 %v10989_v32 }
0x138c   : > { %10990 = vrsqrt.f32 %v5684_v33  ;;  %vm5717_vm5 = vmor %vm5715_vm4, %vm5716_vm3  ;;  %vm5725_vm7 = vweird.f32 %v5684_v33 }
0x138d   : > { %v5708_v51 = vsel %vm5707_vm2, %v10987_v34, %v5704_v26  ;;  %v5711_v19 = vmul.f32 %v10989_v32, %v5710_v58 }
0x138e   : > { %v5770_v20 = vmul.f32 %v5708_v51, %v14102_v4 }
0x138f   : > { %v5712_v35 = vmul.f32 0.5, %v5711_v19 }
0x1390   : > { %v5781_v25 = vmul.f32 %v14162_v18, %v5770_v20 }
0x1391   : > { %v5713_v29 = vsub.f32 1.5, %v5712_v35 }
0x1392   : > { %v10991_v17 = vpop.eup %10990  ;;  %v5792_v30 = vadd.f32 %v14165_v56, %v5781_v25 }
0x1393   : > { %v5714_v6 = vmul.f32 %v10989_v32, %v5713_v29  ;;  %v5720_v50 = vmul.f32 %v10991_v17, %v5684_v33  ;;  %vm5726_vm6 = vweird.f32 %v10991_v17 }
0x1394   : > { %v5803_v1 = vpack.c.bf16 %v5792_v30, %v5791_v39  ;;  %vm5727_vm8 = vmor %vm5725_vm7, %vm5726_vm6 }
0x1395   : > { %v5721_v47 = vmul.f32 %v10991_v17, %v5720_v50  ;;  %v5718_v60 = vsel %vm5717_vm5, %v10989_v32, %v5714_v6 }
0x1396   : > { %9694 = vmatmul.msk.bf16.vlgmr.msrb.gmra.mxu3 %vm2383_vm1, %v5803_v1  ;;  %v5771_v57 = vmul.f32 %v5718_v60, %v14114_v7 }
0x1397   : > { %v5722_v4 = vmul.f32 0.5, %v5721_v47 }
0x1398   : > { %v5782_v52 = vmul.f32 %v14162_v18, %v5771_v57 }
0x1399   : > { %v5723_v44 = vsub.f32 1.5, %v5722_v4 }
0x139a   : > { %v5793_v9 = vadd.f32 %v14165_v56, %v5782_v52 }
0x139b   : > { %v5724_v12 = vmul.f32 %v10991_v17, %v5723_v44 }
0x139d   : > { %v5728_v23 = vsel %vm5727_vm8, %v10991_v17, %v5724_v12 }
0x139e   : > { %v5772_v0 = vmul.f32 %v5728_v23, %v14123_v46 }
0x139f   : > { %v5663_v27 = vpop.xlane.xlu2 %5662 }
0x13a0   : > { %v5677_v36 = vmul.f32 %v5663_v27, %v12721_v43  ;;  %v5783_v53 = vmul.f32 %v14162_v18, %v5772_v0 }
0x13a2   : > { %v5685_v55 = vadd.f32 1e-05, %v5677_v36  ;;  %v5794_v10 = vadd.f32 %v14165_v56, %v5783_v53 }
0x13a4   : > { %10992 = vrsqrt.f32 %v5685_v55  ;;  %v5804_v7 = vpack.c.bf16 %v5794_v10, %v5793_v9  ;;  %vm5735_vm12 = vweird.f32 %v5685_v55 }
0x13a6   : > { %9695 = vmatmul.msk.bf16.gmra.mxu3 %vm2383_vm1, %v5804_v7  ;;  %v14197_v7 = vld [vmem:[#allocation10] ss:$0 sm:$0xff] }
0x13a7   : > { %v5666_v13 = vpop.xlane.xlu0 %5665 }
0x13a8   : > { %v5678_v34 = vmul.f32 %v5666_v13, %v12721_v43 }
0x13aa   : > { %v10993_v46 = vpop.eup %10992  ;;  %v5686_v41 = vadd.f32 1e-05, %v5678_v34 }
0x13ab   : > { %v5730_v42 = vmul.f32 %v10993_v46, %v5685_v55  ;;  %vm5736_vm11 = vweird.f32 %v10993_v46 }
0x13ac   : > { %10994 = vrsqrt.f32 %v5686_v41  ;;  %vm5737_vm13 = vmor %vm5735_vm12, %vm5736_vm11  ;;  %vm5745_vm15 = vweird.f32 %v5686_v41 }
0x13ad   : > { %v5731_v8 = vmul.f32 %v10993_v46, %v5730_v42 }
0x13af   : > { %v5732_v61 = vmul.f32 0.5, %v5731_v8  ;;  %v10155_v8 = vld [vmem:[%s15182_s2 + $0x38] sm:$0xff] }
0x13b0   : > { %6252 = vmatpush.bf16.msra.mxu2 %v10155_v8  ;;  %v10149_v8 = vld [vmem:[%s15182_s2 + $0x8] sm:$0xff] }
0x13b1   : > { %v5733_v40 = vsub.f32 1.5, %v5732_v61 }
0x13b2   : > { %v10995_v48 = vpop.eup %10994 }
0x13b3   : > { %v5734_v22 = vmul.f32 %v10993_v46, %v5733_v40  ;;  %v5740_v31 = vmul.f32 %v10995_v48, %v5686_v41  ;;  %vm5746_vm14 = vweird.f32 %v10995_v48 }
0x13b4   : > { %vm5747_vm2 = vmor %vm5745_vm15, %vm5746_vm14 }
0x13b5   : > { %v5741_v14 = vmul.f32 %v10995_v48, %v5740_v31  ;;  %v5738_v62 = vsel %vm5737_vm13, %v10993_v46, %v5734_v22 }
0x13b6   : > { %v5773_v16 = vmul.f32 %v5738_v62, %v14130_v28 }
0x13b7   : > { %v5742_v2 = vmul.f32 0.5, %v5741_v14 }
0x13b8   : > { %v5784_v51 = vmul.f32 %v14162_v18, %v5773_v16 }
0x13b9   : > { %v5743_v32 = vsub.f32 1.5, %v5742_v2 }
0x13ba   : > { %v5795_v49 = vadd.f32 %v14165_v56, %v5784_v51 }
0x13bb   : > { %v5744_v33 = vmul.f32 %v10995_v48, %v5743_v32 }
0x13bd   : > { %v5748_v26 = vsel %vm5747_vm2, %v10995_v48, %v5744_v33  ;;  %v10154_v48 = vld [vmem:[%s15182_s2 + $0x30] sm:$0xff]  ;;  %v10153_v33 = vld [vmem:[%s15182_s2 + $0x28] sm:$0xff] }
0x13be   : > { %v5774_v58 = vmul.f32 %v5748_v26, %v14137_v37  ;;  %6253 = vmatpush.bf16.msra.mxu2 %v10154_v48 }
0x13c0   : > { %v5785_v19 = vmul.f32 %v14162_v18, %v5774_v58 }
0x13c2   : > { %v5796_v20 = vadd.f32 %v14165_v56, %v5785_v19  ;;  %6254 = vmatpush.bf16.msra.mxu2 %v10153_v33 }
0x13c4   : > { %v5805_v35 = vpack.c.bf16 %v5796_v20, %v5795_v49 }
0x13c6   : > { %9696 = vmatmul.msk.bf16.gmra.mxu3 %vm2383_vm1, %v5805_v35  ;;  %v10152_v35 = vld [vmem:[%s15182_s2 + $0x20] sm:$0xff] }
0x13c7   : > { %6255 = vmatpush.bf16.msra.mxu2 %v10152_v35 }
0x13f2   : > { %v5669_v25 = vpop.xlane.xlu1 %5668 }
0x13f3   : > { %v5679_v28 = vmul.f32 %v5669_v25, %v12721_v43 }
0x13f5   : > { %v5687_v29 = vadd.f32 1e-05, %v5679_v28 }
0x13f7   : > { %10996 = vrsqrt.f32 %v5687_v29  ;;  %vm5755_vm4 = vweird.f32 %v5687_v29 }
0x13fa   : > { %v5672_v17 = vpop.xlane.xlu2 %5671 }
0x13fb   : > { %v5680_v39 = vmul.f32 %v5672_v17, %v12721_v43 }
0x13fd   : > { %v10997_v37 = vpop.eup %10996  ;;  %v5688_v30 = vadd.f32 1e-05, %v5680_v39 }
0x13fe   : > { %v5750_v6 = vmul.f32 %v10997_v37, %v5687_v29  ;;  %vm5756_vm3 = vweird.f32 %v10997_v37 }
0x13ff   : > { %10998 = vrsqrt.f32 %v5688_v30  ;;  %vm5757_vm5 = vmor %vm5755_vm4, %vm5756_vm3  ;;  %vm5765_vm7 = vweird.f32 %v5688_v30 }
0x1400   : > { %v5751_v50 = vmul.f32 %v10997_v37, %v5750_v6 }
0x1402   : > { %v5752_v1 = vmul.f32 0.5, %v5751_v50 }
0x1404   : > { %v5753_v47 = vsub.f32 1.5, %v5752_v1  ;;  %v10151_v1 = vld [vmem:[%s15182_s2 + $0x18] sm:$0xff] }
0x1405   : > { %v10999_v60 = vpop.eup %10998  ;;  %6256 = vmatpush.bf16.msra.mxu2 %v10151_v1 }
0x1406   : > { %v5754_v4 = vmul.f32 %v10997_v37, %v5753_v47  ;;  %v5760_v44 = vmul.f32 %v10999_v60, %v5688_v30  ;;  %vm5766_vm6 = vweird.f32 %v10999_v60 }
0x1407   : > { %vm5767_vm8 = vmor %vm5765_vm7, %vm5766_vm6 }
0x1408   : > { %v5761_v57 = vmul.f32 %v10999_v60, %v5760_v44  ;;  %v5758_v12 = vsel %vm5757_vm5, %v10997_v37, %v5754_v4 }
0x1409   : > { %v5775_v43 = vmul.f32 %v5758_v12, %v14147_v45 }
0x140a   : > { %v5762_v23 = vmul.f32 0.5, %v5761_v57 }
0x140b   : > { %v5786_v53 = vmul.f32 %v14162_v18, %v5775_v43 }
0x140c   : > { %v5763_v0 = vsub.f32 1.5, %v5762_v23 }
0x140d   : > { %v5797_v9 = vadd.f32 %v14165_v56, %v5786_v53 }
0x140e   : > { %v5764_v52 = vmul.f32 %v10999_v60, %v5763_v0 }
0x1410   : > { %v5768_v27 = vsel %vm5767_vm8, %v10999_v60, %v5764_v52  ;;  %v10150_v52 = vld [vmem:[%s15182_s2 + $0x10] sm:$0xff] }
0x1411   : > { %v5776_v36 = vmul.f32 %v5768_v27, %v14156_v3  ;;  %6257 = vmatpush.bf16.msra.mxu2 %v10150_v52 }
0x1413   : > { %v5787_v55 = vmul.f32 %v14162_v18, %v5776_v36 }
0x1415   : > { %v5798_v10 = vadd.f32 %v14165_v56, %v5787_v55  ;;  %6258 = vmatpush.bf16.msra.mxu2 %v10149_v8 }
0x1417   : > { %v5806_v13 = vpack.c.bf16 %v5798_v10, %v5797_v9 }
0x1419   : > { %v5844_v45 = vpop.f32.mrf.mxu3  ;;  %9697 = vmatmul.msk.bf16.gmra.mxu3 %vm2383_vm1, %v5806_v13 }
0x141a   : > { %v14201_v34 = vadd.f32 %v14197_v7, %v5844_v45 }
0x141c   : > { %v14204_v3 = vmul.f32 0.70710677, %v14201_v34 }
0x141e   : > { %v5896_v46 = vand.u32 2147483647, %v14204_v3 }
0x1420   : > { %v5904_v18 = vmul.f32 0.3275911, %v5896_v46  ;;  %v6112_v60 = vsub.f32 0.0, %v5896_v46 }
0x1421   : > { %v5846_v41 = vpop.f32.mrf.mxu3 }
0x1422   : > { %v5912_v42 = vadd.f32 1.0, %v5904_v18  ;;  %v14208_v56 = vadd.f32 %v14197_v7, %v5846_v41  ;;  %v6120_v36 = vmul.f32 %v6112_v60, %v5896_v46 }
0x1424   : > { %11000 = vrcp.f32 %v5912_v42  ;;  %v14212_v61 = vmul.f32 0.70710677, %v14208_v56  ;;  %v5931_v58 = vand.u32 2147483648, %v5912_v42  ;;  %v5929_v49 = vand.u32 2147483647, %v5912_v42 }
0x1425   : > { %vm5925_vm12 = vweird.f32 %v5912_v42  ;;  %v6128_v48 = vmul.f32 1.442695, %v6120_v36 }
0x1426   : > { %v14215_v40 = vand.u32 2147483647, %v14212_v61  ;;  %v5932_v29 = vor.u32 1.1754944e-38, %v5931_v58  ;;  %vm5930_vm14 = vcmp.eq.f32.partialorder %v5929_v49, 8.507059e+37  ;;  %v10148_v49 = vld [vmem:[%s15182_s2] sm:$0xff]  ;;  %s15070_s2 = smov 32  }
0x1427   : > { %6259 = vmatpush.bf16.msra.mxu2 %v10148_v49 }
0x1428   : > { %v5905_v22 = vmul.f32 0.3275911, %v14215_v40  ;;  %v6113_v9 = vsub.f32 0.0, %v14215_v40 }
0x1429   : > { %v5849_v31 = vpop.f32.mrf.mxu3 }
0x142a   : > { %v11001_v14 = vpop.eup %11000  ;;  %v14220_v62 = vadd.f32 %v14197_v7, %v5849_v31  ;;  %v5913_v32 = vadd.f32 1.0, %v5905_v22 }
0x142b   : > { %v5921_v2 = vmul.f32 %v11001_v14, %v5912_v42  ;;  %vm5926_vm11 = vweird.f32 %v11001_v14 }
0x142c   : > { %v14223_v16 = vmul.f32 0.70710677, %v14220_v62  ;;  %11002 = vrcp.f32 %v5913_v32  ;;  %vm5927_vm13 = vmor %vm5925_vm12, %vm5926_vm11  ;;  %v5946_v12 = vand.u32 2147483648, %v5913_v32  ;;  %v5944_v0 = vand.u32 2147483647, %v5913_v32 }
0x142d   : > { %v5922_v26 = vsub.f32 1.0, %v5921_v2  ;;  %vm5940_vm2 = vweird.f32 %v5913_v32  ;;  %v6121_v2 = vmul.f32 %v6113_v9, %v14215_v40  ;;  %vm5880_vm12 = vcmp.ge.f32.partialorder %v14204_v3, 0.0 }
0x142e   : > { %v14227_v51 = vand.u32 2147483647, %v14223_v16  ;;  %v5947_v45 = vor.u32 1.1754944e-38, %v5946_v12  ;;  %vm5945_vm4 = vcmp.eq.f32.partialorder %v5944_v0, 8.507059e+37 }
0x142f   : > { %v5923_v19 = vmul.f32 %v11001_v14, %v5922_v26 }
0x1430   : > { %v5906_v20 = vmul.f32 0.3275911, %v14227_v51 }
0x1431   : > { %v5924_v25 = vadd.f32 %v11001_v14, %v5923_v19  ;;  %v5851_v28 = vpop.f32.mrf.mxu3 }
0x1432   : > { %v14231_v17 = vadd.f32 1.0, %v5906_v20  ;;  %v14234_v39 = vadd.f32 %v14197_v7, %v5851_v28  ;;  %v11003_v37 = vpop.eup %11002 }
0x1433   : > { %v5928_v30 = vsel %vm5927_vm13, %v11001_v14, %v5924_v25  ;;  %v5936_v50 = vmul.f32 %v11003_v37, %v5913_v32  ;;  %vm5941_vm15 = vweird.f32 %v11003_v37 }
0x1434   : > { %v14236_v6 = vsel %vm5930_vm14, %v5932_v29, %v5928_v30  ;;  %11004 = vrcp.f32 %v14231_v17  ;;  %v14242_v44 = vmul.f32 0.70710677, %v14234_v39  ;;  %vm5942_vm3 = vmor %vm5940_vm2, %vm5941_vm15  ;;  %v5961_v32 = vand.u32 2147483648, %v14231_v17 }
0x1435   : > { %v6040_v47 = vmul.f32 1.0614054, %v14236_v6  ;;  %v5937_v4 = vsub.f32 1.0, %v5936_v50  ;;  %v5959_v58 = vand.u32 2147483647, %v14231_v17  ;;  %vm5955_vm6 = vweird.f32 %v14231_v17 }
0x1436   : > { %v14245_v43 = vand.u32 2147483647, %v14242_v44  ;;  %v5962_v40 = vor.u32 1.1754944e-38, %v5961_v32  ;;  %v6130_v29 = vmul.f32 1.442695, %v6121_v2  ;;  %vm5881_vm2 = vcmp.ge.f32.partialorder %v14212_v61, 0.0 }
0x1437   : > { %v6048_v57 = vadd.f32 -1.4531521, %v6040_v47  ;;  %v5938_v23 = vmul.f32 %v11003_v37, %v5937_v4  ;;  %vm5960_vm8 = vcmp.eq.f32.partialorder %v5959_v58, 8.507059e+37  ;;  %v6114_v47 = vsub.f32 0.0, %v14227_v51 }
0x1438   : > { %v5907_v10 = vmul.f32 0.3275911, %v14245_v43  ;;  %v6115_v58 = vsub.f32 0.0, %v14245_v43  ;;  %v5889_v3 = vsel %vm5881_vm2, 1.0, %v12016_v15 }
0x1439   : > { %v6056_v27 = vmul.f32 %v6048_v57, %v14236_v6  ;;  %v5939_v55 = vadd.f32 %v11003_v37, %v5938_v23  ;;  %v6122_v36 = vmul.f32 %v6114_v47, %v14227_v51 }
0x143a   : > { %v11005_v53 = vpop.eup %11004  ;;  %v14252_v42 = vadd.f32 1.0, %v5907_v10 }
0x143b   : > { %v6064_v13 = vadd.f32 1.4214138, %v6056_v27  ;;  %v5951_v18 = vmul.f32 %v11005_v53, %v14231_v17  ;;  %v5943_v41 = vsel %vm5942_vm3, %v11003_v37, %v5939_v55  ;;  %vm5956_vm5 = vweird.f32 %v11005_v53 }
0x143c   : > { %v5948_v22 = vsel %vm5945_vm4, %v5947_v45, %v5943_v41  ;;  %11006 = vrcp.f32 %v14252_v42  ;;  %vm5957_vm7 = vmor %vm5955_vm6, %vm5956_vm5  ;;  %v5974_v10 = vand.u32 2147483647, %v14252_v42  ;;  %vm5970_vm13 = vweird.f32 %v14252_v42 }
0x143d   : > { %v6072_v46 = vmul.f32 %v6064_v13, %v14236_v6  ;;  %v5952_v31 = vsub.f32 1.0, %v5951_v18  ;;  %v6041_v14 = vmul.f32 1.0614054, %v5948_v22  ;;  %11008 = vpow2.f32 %v6128_v48 }
0x143e   : > { %11010 = vpow2.f32 %v6130_v29  ;;  %v6132_v2 = vmul.f32 1.442695, %v6122_v36  ;;  %vm5975_vm15 = vcmp.eq.f32.partialorder %v5974_v10, 8.507059e+37  ;;  %vm5882_vm3 = vcmp.ge.f32.partialorder %v14223_v16, 0.0 }
0x143f   : > { %v6080_v33 = vadd.f32 -0.28449672, %v6072_v46  ;;  %v5953_v26 = vmul.f32 %v11005_v53, %v5952_v31  ;;  %v6049_v19 = vadd.f32 -1.4531521, %v6041_v14  ;;  %vm5883_vm5 = vcmp.ge.f32.partialorder %v14242_v44, 0.0 }
0x1440   : > { %11012 = vpow2.f32 %v6132_v2 }
0x1441   : > { %v6088_v20 = vmul.f32 %v6080_v33, %v14236_v6  ;;  %v5954_v35 = vadd.f32 %v11005_v53, %v5953_v26  ;;  %v6057_v25 = vmul.f32 %v6049_v19, %v5948_v22 }
0x1442   : > { %v11007_v30 = vpop.eup %11006 }
0x1443   : > { %v6096_v28 = vadd.f32 0.2548296, %v6088_v20  ;;  %v5958_v37 = vsel %vm5957_vm7, %v11005_v53, %v5954_v35  ;;  %v6065_v50 = vadd.f32 1.4214138, %v6057_v25  ;;  %v5966_v57 = vmul.f32 %v11007_v30, %v14252_v42  ;;  %v11009_v17 = vpop.eup %11008 }
0x1444   : > { %v5963_v1 = vsel %vm5960_vm8, %v5962_v40, %v5958_v37  ;;  %v5976_v53 = vand.u32 2147483648, %v14252_v42  ;;  %vm5971_vm11 = vweird.f32 %v11007_v30  ;;  %v11011_v31 = vpop.eup %11010  ;;  %v5888_v42 = vsel %vm5880_vm12, 1.0, %v12016_v15 }
0x1445   : > { %v6104_v60 = vmul.f32 %v6096_v28, %v14236_v6  ;;  %v6042_v4 = vmul.f32 1.0614054, %v5963_v1  ;;  %v6073_v12 = vmul.f32 %v6065_v50, %v5948_v22  ;;  %v5967_v0 = vsub.f32 1.0, %v5966_v57  ;;  %vm5972_vm14 = vmor %vm5970_vm13, %vm5971_vm11 }
0x1446   : > { %v5977_v46 = vor.u32 1.1754944e-38, %v5976_v53  ;;  %v11013_v36 = vpop.eup %11012 }
0x1447   : > { %v6050_v23 = vadd.f32 -1.4531521, %v6042_v4  ;;  %v6144_v52 = vmul.f32 %v11009_v17, %v6104_v60  ;;  %v6081_v27 = vadd.f32 -0.28449672, %v6073_v12  ;;  %v5968_v9 = vmul.f32 %v11007_v30, %v5967_v0 }
0x1448   : > { %v5864_v12 = vmul.f32 0.5, %v14201_v34  ;;  %v5865_v0 = vmul.f32 0.5, %v14208_v56 }
0x1449   : > { %v6058_v55 = vmul.f32 %v6050_v23, %v5963_v1  ;;  %v5854_v6 = vpop.f32.mrf.mxu3  ;;  %v6089_v13 = vmul.f32 %v6081_v27, %v5948_v22  ;;  %v5969_v41 = vadd.f32 %v11007_v30, %v5968_v9  ;;  %v6152_v8 = vsub.f32 1.0, %v6144_v52 }
0x144a   : > { %v14270_v45 = vadd.f32 %v14197_v7, %v5854_v6 }
0x144b   : > { %v6066_v18 = vadd.f32 1.4214138, %v6058_v55  ;;  %v6097_v51 = vadd.f32 0.2548296, %v6089_v13  ;;  %v5973_v32 = vsel %vm5972_vm14, %v11007_v30, %v5969_v41  ;;  %v6160_v35 = vmul.f32 %v6152_v8, %v5888_v42 }
0x144c   : > { %v14275_v48 = vmul.f32 0.70710677, %v14270_v45  ;;  %v5978_v26 = vsel %vm5975_vm15, %v5977_v46, %v5973_v32  ;;  %v6123_v30 = vmul.f32 %v6115_v58, %v14245_v43 }
0x144d   : > { %v6074_v14 = vmul.f32 %v6066_v18, %v5963_v1  ;;  %v6105_v33 = vmul.f32 %v6097_v51, %v5948_v22  ;;  %v6043_v20 = vmul.f32 1.0614054, %v5978_v26  ;;  %v6168_v57 = vadd.f32 1.0, %v6160_v35 }
0x144e   : > { %v14279_v19 = vand.u32 2147483647, %v14275_v48  ;;  %v6134_v27 = vmul.f32 1.442695, %v6123_v30  ;;  %vm5884_vm15 = vcmp.ge.f32.partialorder %v14275_v48, 0.0 }
0x144f   : > { %v6082_v49 = vadd.f32 -0.28449672, %v6074_v14  ;;  %v6145_v25 = vmul.f32 %v11011_v31, %v6105_v33  ;;  %v6051_v22 = vadd.f32 -1.4531521, %v6043_v20  ;;  %v6176_v55 = vmul.f32 %v6168_v57, %v5864_v12 }
0x1450   : > { %v5908_v40 = vmul.f32 0.3275911, %v14279_v19  ;;  %v5890_v14 = vsel %vm5882_vm3, 1.0, %v12016_v15  ;;  %v6116_v44 = vsub.f32 0.0, %v14279_v19 }
0x1451   : > { %v6090_v28 = vmul.f32 %v6082_v49, %v5963_v1  ;;  %v5856_v29 = vpop.f32.mrf.mxu3  ;;  %v6153_v37 = vsub.f32 1.0, %v6145_v25  ;;  %v6059_v4 = vmul.f32 %v6051_v22, %v5978_v26 }
0x1452   : > { %v5916_v50 = vadd.f32 1.0, %v5908_v40  ;;  %v14288_v47 = vadd.f32 %v14197_v7, %v5856_v29  ;;  %v5891_v29 = vsel %vm5883_vm5, 1.0, %v12016_v15 }
0x1453   : > { %v6098_v60 = vadd.f32 0.2548296, %v6090_v28  ;;  %v6161_v61 = vmul.f32 %v6153_v37, %v5889_v3  ;;  %v6067_v23 = vadd.f32 1.4214138, %v6059_v4  ;;  %v5867_v4 = vmul.f32 0.5, %v14234_v39 }
0x1454   : > { %11014 = vrcp.f32 %v5916_v50  ;;  %v14294_v43 = vmul.f32 0.70710677, %v14288_v47  ;;  %v5991_v2 = vand.u32 2147483648, %v5916_v50  ;;  %v5989_v58 = vand.u32 2147483647, %v5916_v50 }
0x1455   : > { %v6106_v17 = vmul.f32 %v6098_v60, %v5963_v1  ;;  %v6169_v52 = vadd.f32 1.0, %v6161_v61  ;;  %v6075_v53 = vmul.f32 %v6067_v23, %v5978_v26  ;;  %11016 = vpow2.f32 %v6134_v27 }
0x1456   : > { %v14297_v6 = vand.u32 2147483647, %v14294_v43  ;;  %vm5985_vm6 = vweird.f32 %v5916_v50  ;;  %v5992_v35 = vor.u32 1.1754944e-38, %v5991_v2  ;;  %vm5990_vm8 = vcmp.eq.f32.partialorder %v5989_v58, 8.507059e+37 }
0x1457   : > { %v6177_v9 = vmul.f32 %v6169_v52, %v5865_v0  ;;  %v6146_v10 = vmul.f32 %v11013_v36, %v6106_v17  ;;  %v6083_v13 = vadd.f32 -0.28449672, %v6075_v53  ;;  %v5866_v60 = vmul.f32 0.5, %v14220_v62 }
0x1458   : > { %v5909_v1 = vmul.f32 0.3275911, %v14297_v6  ;;  %v6124_v36 = vmul.f32 %v6116_v44, %v14279_v19  ;;  %vm5885_vm2 = vcmp.ge.f32.partialorder %v14294_v43, 0.0 }
0x1459   : > { %v6200_v34 = vpack.c.bf16 %v6177_v9, %v6176_v55  ;;  %v6091_v56 = vmul.f32 %v6083_v13, %v5978_v26  ;;  %v6154_v8 = vsub.f32 1.0, %v6146_v10 }
0x145a   : > { %v11015_v18 = vpop.eup %11014  ;;  %v5917_v51 = vadd.f32 1.0, %v5909_v1  ;;  %v6136_v13 = vmul.f32 1.442695, %v6124_v36 }
0x145b   : > { %v5981_v41 = vmul.f32 %v11015_v18, %v5916_v50  ;;  %6260 = vmatmul.bf16.vlgmr.msra.gmra.mxu2 %v6200_v34  ;;  %v6099_v46 = vadd.f32 0.2548296, %v6091_v56  ;;  %vm5986_vm4 = vweird.f32 %v11015_v18  ;;  %v11017_v42 = vpop.eup %11016  ;;  %v6162_v49 = vmul.f32 %v6154_v8, %v5890_v14 }
0x145c   : > { %11018 = vrcp.f32 %v5917_v51  ;;  %vm5987_vm7 = vmor %vm5985_vm6, %vm5986_vm4  ;;  %v6004_v17 = vand.u32 2147483647, %v5917_v51  ;;  %v6006_v23 = vand.u32 2147483648, %v5917_v51  ;;  %vm6000_vm12 = vweird.f32 %v5917_v51 }
0x145d   : > { %v5982_v31 = vsub.f32 1.0, %v5981_v41  ;;  %v6107_v32 = vmul.f32 %v6099_v46, %v5978_v26  ;;  %v6170_v22 = vadd.f32 1.0, %v6162_v49  ;;  %v6117_v34 = vsub.f32 0.0, %v14297_v6 }
0x145e   : > { %v6007_v9 = vor.u32 1.1754944e-38, %v6006_v23  ;;  %vm6005_vm14 = vcmp.eq.f32.partialorder %v6004_v17, 8.507059e+37  ;;  %11020 = vpow2.f32 %v6136_v13 }
0x145f   : > { %v5983_v33 = vmul.f32 %v11015_v18, %v5982_v31  ;;  %v6147_v16 = vmul.f32 %v11017_v42, %v6107_v32  ;;  %v6178_v12 = vmul.f32 %v6170_v22, %v5866_v60  ;;  %v6125_v19 = vmul.f32 %v6117_v34, %v14297_v6 }
0x1461   : > { %v5984_v20 = vadd.f32 %v11015_v18, %v5983_v33  ;;  %v6155_v25 = vsub.f32 1.0, %v6147_v16  ;;  %v6138_v2 = vmul.f32 1.442695, %v6125_v19 }
0x1462   : > { %v11019_v28 = vpop.eup %11018 }
0x1463   : > { %v5988_v40 = vsel %vm5987_vm7, %v11015_v18, %v5984_v20  ;;  %v6163_v37 = vmul.f32 %v6155_v25, %v5891_v29  ;;  %v5996_v3 = vmul.f32 %v11019_v28, %v5917_v51  ;;  %vm6001_vm11 = vweird.f32 %v11019_v28 }
0x1464   : > { %v5993_v26 = vsel %vm5990_vm8, %v5992_v35, %v5988_v40  ;;  %vm6002_vm13 = vmor %vm6000_vm12, %vm6001_vm11  ;;  %v11021_v33 = vpop.eup %11020  ;;  %11022 = vpow2.f32 %v6138_v2  ;;  %v5892_v40 = vsel %vm5884_vm15, 1.0, %v12016_v15  ;;  %v5893_v29 = vsel %vm5885_vm2, 1.0, %v12016_v15 }
0x1465   : > { %v6044_v30 = vmul.f32 1.0614054, %v5993_v26  ;;  %v6171_v50 = vadd.f32 1.0, %v6163_v37  ;;  %v5997_v61 = vsub.f32 1.0, %v5996_v3  ;;  %v5869_v3 = vmul.f32 0.5, %v14288_v47 }
0x1466   : > { %vm6329_vm15 = vcmask 785408  }
0x1467   : > { %v6052_v57 = vadd.f32 -1.4531521, %v6044_v30  ;;  %v6179_v0 = vmul.f32 %v6171_v50, %v5867_v4  ;;  %v5998_v27 = vmul.f32 %v11019_v28, %v5997_v61  ;;  %v5868_v30 = vmul.f32 0.5, %v14270_v45 }
0x1469   : > { %v6060_v52 = vmul.f32 %v6052_v57, %v5993_v26  ;;  %v5999_v55 = vadd.f32 %v11019_v28, %v5998_v27  ;;  %v6201_v62 = vpack.c.bf16 %v6179_v0, %v6178_v12 }
0x146a   : > { %v11023_v25 = vpop.eup %11022 }
0x146b   : > { %v6068_v53 = vadd.f32 1.4214138, %v6060_v52  ;;  %v6003_v39 = vsel %vm6002_vm13, %v11019_v28, %v5999_v55  ;;  %6265 = vmatmul.bf16.gmra.mxu2 %v6201_v62 }
0x146c   : > { %v6008_v18 = vsel %vm6005_vm14, %v6007_v9, %v6003_v39 }
0x146d   : > { %v6076_v10 = vmul.f32 %v6068_v53, %v5993_v26  ;;  %v6045_v56 = vmul.f32 1.0614054, %v6008_v18 }
0x146f   : > { %v6084_v1 = vadd.f32 -0.28449672, %v6076_v10  ;;  %v6053_v8 = vadd.f32 -1.4531521, %v6045_v56 }
0x1471   : > { %v6092_v41 = vmul.f32 %v6084_v1, %v5993_v26  ;;  %v6061_v51 = vmul.f32 %v6053_v8, %v6008_v18 }
0x1473   : > { %v6100_v46 = vadd.f32 0.2548296, %v6092_v41  ;;  %v6069_v14 = vadd.f32 1.4214138, %v6061_v51 }
0x1475   : > { %v6108_v31 = vmul.f32 %v6100_v46, %v5993_v26  ;;  %v6077_v32 = vmul.f32 %v6069_v14, %v6008_v18 }
0x1477   : > { %v6148_v58 = vmul.f32 %v11021_v33, %v6108_v31  ;;  %v6085_v42 = vadd.f32 -0.28449672, %v6077_v32 }
0x1479   : > { %v6093_v49 = vmul.f32 %v6085_v42, %v6008_v18  ;;  %v6156_v16 = vsub.f32 1.0, %v6148_v58 }
0x147b   : > { %v6101_v20 = vadd.f32 0.2548296, %v6093_v49  ;;  %v6164_v6 = vmul.f32 %v6156_v16, %v5892_v40 }
0x147d   : > { %v6109_v35 = vmul.f32 %v6101_v20, %v6008_v18  ;;  %v6172_v26 = vadd.f32 1.0, %v6164_v6 }
0x147f   : > { %v6149_v28 = vmul.f32 %v11023_v25, %v6109_v35  ;;  %v6180_v60 = vmul.f32 %v6172_v26, %v5868_v30 }
0x1481   : > { %v6157_v22 = vsub.f32 1.0, %v6149_v28 }
0x1483   : > { %v6165_v37 = vmul.f32 %v6157_v22, %v5893_v29 }
0x1485   : > { %v6173_v48 = vadd.f32 1.0, %v6165_v37 }
0x1487   : > { %v6181_v44 = vmul.f32 %v6173_v48, %v5869_v3 }
0x1489   : > { %v6202_v4 = vpack.c.bf16 %v6181_v44, %v6180_v60 }
0x148b   : > { %6270 = vmatmul.bf16.gmra.mxu2 %v6202_v4 }
0x149c   : > { %v5859_v50 = vpop.f32.mrf.mxu3 }
0x149d   : > { %v14317_v57 = vadd.f32 %v14197_v7, %v5859_v50 }
0x149f   : > { %v14320_v43 = vmul.f32 0.70710677, %v14317_v57 }
0x14a1   : > { %v5902_v61 = vand.u32 2147483647, %v14320_v43  ;;  %vm5886_vm13 = vcmp.ge.f32.partialorder %v14320_v43, 0.0 }
0x14a3   : > { %v5910_v12 = vmul.f32 0.3275911, %v5902_v61  ;;  %v6118_v41 = vsub.f32 0.0, %v5902_v61 }
0x14a4   : > { %v5861_v17 = vpop.f32.mrf.mxu3 }
0x14a5   : > { %v5918_v23 = vadd.f32 1.0, %v5910_v12  ;;  %v14324_v45 = vadd.f32 %v14197_v7, %v5861_v17  ;;  %v6126_v2 = vmul.f32 %v6118_v41, %v5902_v61 }
0x14a7   : > { %11024 = vrcp.f32 %v5918_v23  ;;  %v14327_v47 = vmul.f32 0.70710677, %v14324_v45  ;;  %v6021_v62 = vand.u32 2147483648, %v5918_v23  ;;  %v6019_v10 = vand.u32 2147483647, %v5918_v23 }
0x14a8   : > { %vm6015_vm4 = vweird.f32 %v5918_v23  ;;  %v6140_v16 = vmul.f32 1.442695, %v6126_v2 }
0x14a9   : > { %v5903_v0 = vand.u32 2147483647, %v14327_v47  ;;  %v6022_v7 = vor.u32 1.1754944e-38, %v6021_v62  ;;  %vm6020_vm6 = vcmp.eq.f32.partialorder %v6019_v10, 8.507059e+37  ;;  %vm5887_vm14 = vcmp.ge.f32.partialorder %v14327_v47, 0.0 }
0x14aa   : > { %v5871_v10 = vmul.f32 0.5, %v14324_v45 }
0x14ab   : > { %v5911_v52 = vmul.f32 0.3275911, %v5903_v0  ;;  %v6119_v35 = vsub.f32 0.0, %v5903_v0 }
0x14ad   : > { %v11025_v27 = vpop.eup %11024  ;;  %v5919_v53 = vadd.f32 1.0, %v5911_v52  ;;  %v6127_v22 = vmul.f32 %v6119_v35, %v5903_v0  ;;  %v5894_v52 = vsel %vm5886_vm13, 1.0, %v12016_v15 }
0x14ae   : > { %v6011_v36 = vmul.f32 %v11025_v27, %v5918_v23  ;;  %vm6016_vm3 = vweird.f32 %v11025_v27 }
0x14af   : > { %11026 = vrcp.f32 %v5919_v53  ;;  %vm6017_vm5 = vmor %vm6015_vm4, %vm6016_vm3  ;;  %v6036_v46 = vand.u32 2147483648, %v5919_v53  ;;  %v6034_v31 = vand.u32 2147483647, %v5919_v53  ;;  %vm6030_vm8 = vweird.f32 %v5919_v53 }
0x14b0   : > { %v6012_v55 = vsub.f32 1.0, %v6011_v36  ;;  %11028 = vpow2.f32 %v6140_v16  ;;  %v6142_v3 = vmul.f32 1.442695, %v6127_v22 }
0x14b1   : > { %v6037_v58 = vor.u32 1.1754944e-38, %v6036_v46  ;;  %vm6035_vm12 = vcmp.eq.f32.partialorder %v6034_v31, 8.507059e+37 }
0x14b2   : > { %v6013_v9 = vmul.f32 %v11025_v27, %v6012_v55  ;;  %11030 = vpow2.f32 %v6142_v3 }
0x14b4   : > { %v6014_v39 = vadd.f32 %v11025_v27, %v6013_v9  ;;  %v5870_v9 = vmul.f32 0.5, %v14317_v57 }
0x14b5   : > { %v11027_v13 = vpop.eup %11026 }
0x14b6   : > { %v6018_v18 = vsel %vm6017_vm5, %v11025_v27, %v6014_v39  ;;  %v6026_v1 = vmul.f32 %v11027_v13, %v5919_v53  ;;  %vm6031_vm7 = vweird.f32 %v11027_v13  ;;  %v11029_v60 = vpop.eup %11028  ;;  %v5895_v53 = vsel %vm5887_vm14, 1.0, %v12016_v15 }
0x14b7   : > { %v6023_v34 = vsel %vm6020_vm6, %v6022_v7, %v6018_v18  ;;  %vm6032_vm11 = vmor %vm6030_vm8, %vm6031_vm7 }
0x14b8   : > { %v6046_v56 = vmul.f32 1.0614054, %v6023_v34  ;;  %v6027_v8 = vsub.f32 1.0, %v6026_v1  ;;  %v11031_v23 = vpop.eup %11030 }
0x14ba   : > { %v6054_v19 = vadd.f32 -1.4531521, %v6046_v56  ;;  %v6028_v51 = vmul.f32 %v11027_v13, %v6027_v8  ;;  %v10741_v56 = vld [vmem:[#allocation12] ss:$0 sm:$0xff] }
0x14bc   : > { %v6062_v14 = vmul.f32 %v6054_v19, %v6023_v34  ;;  %v6029_v32 = vadd.f32 %v11027_v13, %v6028_v51 }
0x14be   : > { %v6070_v33 = vadd.f32 1.4214138, %v6062_v14  ;;  %v6033_v42 = vsel %vm6032_vm11, %v11027_v13, %v6029_v32 }
0x14bf   : > { %v6038_v20 = vsel %vm6035_vm12, %v6037_v58, %v6033_v42 }
0x14c0   : > { %v6078_v49 = vmul.f32 %v6070_v33, %v6023_v34  ;;  %v6047_v25 = vmul.f32 1.0614054, %v6038_v20 }
0x14c2   : > { %v6086_v40 = vadd.f32 -0.28449672, %v6078_v49  ;;  %v6055_v6 = vadd.f32 -1.4531521, %v6047_v25 }
0x14c4   : > { %v6094_v28 = vmul.f32 %v6086_v40, %v6023_v34  ;;  %v6063_v29 = vmul.f32 %v6055_v6, %v6038_v20 }
0x14c6   : > { %v6102_v26 = vadd.f32 0.2548296, %v6094_v28  ;;  %v6071_v37 = vadd.f32 1.4214138, %v6063_v29 }
0x14c8   : > { %v6110_v30 = vmul.f32 %v6102_v26, %v6023_v34  ;;  %v6079_v48 = vmul.f32 %v6071_v37, %v6038_v20  ;;  %v12018_v37 = vmov 128.0  }
0x14c9   : > { %11032 = vrcp.f32 %v12018_v37 }
0x14ca   : > { %v6150_v44 = vmul.f32 %v11029_v60, %v6110_v30  ;;  %v6087_v4 = vadd.f32 -0.28449672, %v6079_v48 }
0x14cc   : > { %v6095_v50 = vmul.f32 %v6087_v4, %v6038_v20  ;;  %v6158_v61 = vsub.f32 1.0, %v6150_v44 }
0x14ce   : > { %v6103_v12 = vadd.f32 0.2548296, %v6095_v50  ;;  %v6166_v0 = vmul.f32 %v6158_v61, %v5894_v52 }
0x14cf   : > { %v11033_v30 = vpop.eup %11032 }
0x14d0   : > { %v6111_v17 = vmul.f32 %v6103_v12, %v6038_v20  ;;  %v6174_v55 = vadd.f32 1.0, %v6166_v0  ;;  %v6339_v3 = vmul.f32 128.0, %v11033_v30  ;;  %vm6343_vm2 = vweird.f32 %v11033_v30 }
0x14d2   : > { %v6151_v27 = vmul.f32 %v11031_v23, %v6111_v17  ;;  %v6182_v39 = vmul.f32 %v6174_v55, %v5870_v9  ;;  %v6340_v48 = vsub.f32 1.0, %v6339_v3 }
0x14d4   : > { %v6159_v36 = vsub.f32 1.0, %v6151_v27  ;;  %v6341_v60 = vmul.f32 %v11033_v30, %v6340_v48 }
0x14d6   : > { %v6167_v62 = vmul.f32 %v6159_v36, %v5895_v53  ;;  %v6342_v44 = vadd.f32 %v11033_v30, %v6341_v60 }
0x14d8   : > { %v6175_v43 = vadd.f32 1.0, %v6167_v62 }
0x14da   : > { %v6183_v7 = vmul.f32 %v6175_v43, %v5871_v10 }
0x14dc   : > { %v6203_v13 = vpack.c.bf16 %v6183_v7, %v6182_v39 }
0x14de   : > { %v6261_v18 = vpop.f32.mrf.mxu2  ;;  %6275 = vmatmul.bf16.gmra.mxu2 %v6203_v13 }
0x14df   : > { %v6281_v16 = vadd.f32 %v6261_v18, %v14061_v59 }
0x14e6   : > { %v6263_v34 = vpop.f32.mrf.mxu2 }
0x14e7   : > { %v6282_v6 = vadd.f32 %v6263_v34, %v14066_v63  ;;  %v6344_v63 = vsel %vm6343_vm2, %v11033_v30, %v6342_v44 }
0x14ee   : > { %v6266_v1 = vpop.f32.mrf.mxu2 }
0x14ef   : > { %v6283_v47 = vadd.f32 %v6266_v1, %v14071_v21 }
0x14f1   : > { %v6295_v41 = vadd.f32 %v10741_v56, %v6283_v47 }
0x14f3   : > { %6303 = vrot.lane.b32.xlu0 %v6295_v41, %s15070_s2 }
0x14f6   : > { %v6268_v8 = vpop.f32.mrf.mxu2 }
0x14f7   : > { %v6284_v57 = vadd.f32 %v6268_v8, %v14076_v24 }
0x14f9   : > { %v6296_v19 = vadd.f32 %v10741_v56, %v6284_v57 }
0x14fb   : > { %6305 = vrot.lane.b32.xlu1 %v6296_v19, %s15070_s2  ;;  %s15184_s2 = sld [smem:[#allocation62_spill]] }
0x1501   : > { %v10163_v27 = vld [vmem:[%s15184_s2 + $0x38] sm:$0xff]  ;;  %v10162_v36 = vld [vmem:[%s15184_s2 + $0x30] sm:$0xff]  ;;  %v10161_v53 = vld [vmem:[%s15184_s2 + $0x28] sm:$0xff] }
0x1502   : > { %6456 = vmatpush.bf16.msra.mxu1 %v10163_v27  ;;  %v10160_v55 = vld [vmem:[%s15184_s2 + $0x20] sm:$0xff]  ;;  %v10159_v62 = vld [vmem:[%s15184_s2 + $0x18] sm:$0xff]  ;;  %v10158_v39 = vld [vmem:[%s15184_s2 + $0x10] sm:$0xff] }
0x1503   : > { %v10157_v7 = vld [vmem:[%s15184_s2 + $0x8] sm:$0xff]  ;;  %v10156_v34 = vld [vmem:[%s15184_s2] sm:$0xff]  ;;  %s15189_s2 = smov 48  }
0x1506   : > { %6457 = vmatpush.bf16.msra.mxu1 %v10162_v36 }
0x150a   : > { %6458 = vmatpush.bf16.msra.mxu1 %v10161_v53 }
0x150e   : > { %v6271_v45 = vpop.f32.mrf.mxu2  ;;  %6459 = vmatpush.bf16.msra.mxu1 %v10160_v55 }
0x150f   : > { %v6285_v46 = vadd.f32 %v6271_v45, %v14081_v54 }
0x1511   : > { %v6297_v51 = vadd.f32 %v10741_v56, %v6285_v46 }
0x1512   : > { %6460 = vmatpush.bf16.msra.mxu1 %v10159_v62 }
0x1513   : > { %6311 = vrot.lane.b32.xlu2 %v6297_v51, %s15175_s1 }
0x1516   : > { %v6273_v31 = vpop.f32.mrf.mxu2  ;;  %6461 = vmatpush.bf16.msra.mxu1 %v10158_v39 }
0x1517   : > { %v6286_v14 = vadd.f32 %v6273_v31, %v14086_v38  ;;  %v6293_v38 = vadd.f32 %v10741_v56, %v6281_v16 }
0x1519   : > { %v6298_v21 = vadd.f32 %v10741_v56, %v6286_v14 }
0x151a   : > { %6462 = vmatpush.bf16.msra.mxu1 %v10157_v7 }
0x151b   : > { %6313 = vrot.lane.b32.xlu0 %v6298_v21, %s15175_s1 }
0x151e   : > { %6463 = vmatpush.bf16.msra.mxu1 %v10156_v34 }
0x1561   : > { %v6276_v2 = vpop.f32.mrf.mxu2 }
0x1562   : > { %v6287_v32 = vadd.f32 %v6276_v2, %v14099_v5  ;;  %v10742_v2 = vld [vmem:[%s15185_s4] ss:$0 sm:$0xff]  ;;  %s15188_s4 = sld [smem:[#allocation97_spill]] }
0x1564   : > { %v6299_v33 = vadd.f32 %v10741_v56, %v6287_v32 }
0x1565   : > { %v6304_v54 = vpop.permute.xlu0 %6303 }
0x1566   : > { %6319 = vrot.lane.b32.xlu1 %v6299_v33, %s15183_s3  ;;  %v6325_v35 = vsel %vm2383_vm1, %v6293_v38, %v6304_v54 }
0x1569   : > { %v6278_v24 = vpop.f32.mrf.mxu2 }
0x156a   : > { %v6288_v58 = vadd.f32 %v6278_v24, %v14111_v11  ;;  %v6294_v11 = vadd.f32 %v10741_v56, %v6282_v6  ;;  %v12019_v6 = vmov 64.0  }
0x156c   : > { %v6300_v42 = vadd.f32 %v10741_v56, %v6288_v58  ;;  %v10743_v58 = vld [vmem:[%s15186_s6] ss:$0 sm:$0xff]  ;;  %s15187_s6 = sld [smem:[#allocation98_spill]] }
0x156d   : > { %v6306_v49 = vpop.permute.xlu1 %6305  ;;  %v6312_v20 = vpop.permute.xlu2 %6311 }
0x156e   : > { %6321 = vrot.lane.b32.xlu0 %v6300_v42, %s15183_s3  ;;  %v6327_v5 = vsel %vm2989_vm10, %v6325_v35, %v6312_v20  ;;  %v6326_v22 = vsel %vm2383_vm1, %v6294_v11, %v6306_v49 }
0x1572   : > { %v9780_v55 = vld [vmem:[%s15187_s6 + $0x20] sm:$0xf]  ;;  %v10169_v62 = vld [vmem:[%s15187_s6 + $0x24] sm:$0xf0]  ;;  %v9782_v39 = vld [vmem:[%s15187_s6 + $0x28] sm:$0xf0] }
0x1573   : > { %v10166_v34 = vld [vmem:[%s15187_s6 + $0x14] sm:$0xf] }
0x158d   : > { %v6314_v25 = vpop.permute.xlu0 %6313 }
0x158e   : > { %v6328_v29 = vsel %vm2989_vm10, %v6326_v22, %v6314_v25 }
0x15d8   : > { %v6320_v40 = vpop.permute.xlu1 %6319 }
0x15d9   : > { %v6330_v28 = vsel %vm6329_vm15, %v6327_v5, %v6320_v40 }
0x15da   : > { %6334 = vadd.xlane.f32.xlu2 %v6330_v28 }
0x15e0   : > { %v6322_v26 = vpop.permute.xlu0 %6321 }
0x15e1   : > { %v6331_v59 = vsel %vm6329_vm15, %v6328_v29, %v6322_v26 }
0x15e2   : > { %6336 = vadd.xlane.f32.xlu1 %v6331_v59 }
0x164d   : > { %v6335_v4 = vpop.xlane.xlu2 %6334 }
0x164e   : > { %v6345_v50 = vmul.f32 %v6344_v63, %v6335_v4 }
0x1650   : > { %v6347_v61 = vsub.f32 %v6330_v28, %v6345_v50 }
0x1652   : > { %v6349_v12 = vmul.f32 %v6347_v61, %v6347_v61 }
0x1654   : > { %6351 = vadd.xlane.f32.xlu0 %v6349_v12  ;;  %v9788_v12 = vld [vmem:[%s15187_s6 + $0x30] sm:$0xf] }
0x1655   : > { %v6337_v17 = vpop.xlane.xlu1 %6336 }
0x1656   : > { %v6346_v23 = vmul.f32 %v6344_v63, %v6337_v17  ;;  %v10171_v17 = vld [vmem:[%s15187_s6 + $0x34] sm:$0xf0] }
0x1658   : > { %v6348_v52 = vsub.f32 %v6331_v59, %v6346_v23  ;;  %v10170_v23 = vld [vmem:[%s15187_s6 + $0x34] sm:$0xf] }
0x165a   : > { %v6350_v0 = vmul.f32 %v6348_v52, %v6348_v52 }
0x165c   : > { %6353 = vadd.xlane.f32.xlu2 %v6350_v0  ;;  %v9790_v0 = vld [vmem:[%s15187_s6 + $0x38] sm:$0xf0] }
0x165d   : > { %v9793_v36 = vor.u32 %v10170_v23, %v9790_v0 }
0x165f   : > { %6609 = vmatpush.bf16.msra.mxu3 %v9793_v36 }
0x16c7   : > { %v6352_v9 = vpop.xlane.xlu0 %6351 }
0x16c8   : > { %v6355_v10 = vmul.f32 %v6352_v9, %v6344_v63  ;;  %v10168_v9 = vld [vmem:[%s15187_s6 + $0x24] sm:$0xf] }
0x16c9   : > { %v9785_v7 = vor.u32 %v10168_v9, %v9782_v39 }
0x16ca   : > { %v6357_v43 = vadd.f32 1e-05, %v6355_v10 }
0x16cb   : > { %6610 = vmatpush.bf16.msra.mxu3 %v9785_v7 }
0x16cc   : > { %11034 = vrsqrt.f32 %v6357_v43  ;;  %vm6365_vm4 = vweird.f32 %v6357_v43 }
0x16cf   : > { %v6354_v13 = vpop.xlane.xlu2 %6353 }
0x16d0   : > { %v6356_v18 = vmul.f32 %v6354_v13, %v6344_v63  ;;  %v9772_v13 = vld [vmem:[%s15187_s6 + $0x10] sm:$0xf] }
0x16d2   : > { %v11035_v1 = vpop.eup %11034  ;;  %v6358_v56 = vadd.f32 1e-05, %v6356_v18  ;;  %v10167_v18 = vld [vmem:[%s15187_s6 + $0x14] sm:$0xf0] }
0x16d3   : > { %v6360_v47 = vmul.f32 %v11035_v1, %v6357_v43  ;;  %vm6366_vm3 = vweird.f32 %v11035_v1  ;;  %v9781_v43 = vor.u32 %v10169_v62, %v9780_v55 }
0x16d4   : > { %11036 = vrsqrt.f32 %v6358_v56  ;;  %vm6367_vm5 = vmor %vm6365_vm4, %vm6366_vm3  ;;  %vm6375_vm7 = vweird.f32 %v6358_v56 }
0x16d5   : > { %v6361_v41 = vmul.f32 %v11035_v1, %v6360_v47  ;;  %11038 = vrcp.f32 %v12019_v6  ;;  %v9764_v47 = vld [vmem:[%s15187_s6] sm:$0xf] }
0x16d7   : > { %v6362_v8 = vmul.f32 0.5, %v6361_v41  ;;  %v10165_v41 = vld [vmem:[%s15187_s6 + $0x4] sm:$0xf0] }
0x16d9   : > { %v6363_v57 = vsub.f32 1.5, %v6362_v8 }
0x16da   : > { %v11037_v19 = vpop.eup %11036 }
0x16db   : > { %v6364_v45 = vmul.f32 %v11035_v1, %v6363_v57  ;;  %v6370_v46 = vmul.f32 %v11037_v19, %v6358_v56  ;;  %vm6376_vm6 = vweird.f32 %v11037_v19  ;;  %v11039_v28 = vpop.eup %11038  ;;  %v9774_v56 = vld [vmem:[%s15187_s6 + $0x18] sm:$0xf0]  ;;  %v10164_v57 = vld [vmem:[%s15187_s6 + $0x4] sm:$0xf] }
0x16dc   : > { %vm6377_vm8 = vmor %vm6375_vm7, %vm6376_vm6  ;;  %v6479_v11 = vmul.f32 64.0, %v11039_v28  ;;  %vm6483_vm11 = vweird.f32 %v11039_v28  ;;  %v9777_v8 = vor.u32 %v10166_v34, %v9774_v56 }
0x16dd   : > { %v6371_v51 = vmul.f32 %v11037_v19, %v6370_v46  ;;  %v6368_v31 = vsel %vm6367_vm5, %v11035_v1, %v6364_v45  ;;  %v9773_v1 = vor.u32 %v10167_v18, %v9772_v13 }
0x16de   : > { %v6379_v32 = vmul.f32 %v6368_v31, %v6347_v61  ;;  %v6480_v22 = vsub.f32 1.0, %v6479_v11  ;;  %6611 = vmatpush.bf16.msra.mxu3 %v9777_v8  ;;  %v10745_v11 = vld [vmem:[#allocation24] ss:$0 sm:$0xff] }
0x16df   : > { %v6372_v14 = vmul.f32 0.5, %v6371_v51  ;;  %v9765_v51 = vor.u32 %v10165_v41, %v9764_v47 }
0x16e0   : > { %v6384_v42 = vmul.f32 %v10742_v2, %v6379_v32  ;;  %v6481_v29 = vmul.f32 %v11039_v28, %v6480_v22 }
0x16e1   : > { %v6373_v21 = vsub.f32 1.5, %v6372_v14 }
0x16e2   : > { %v6389_v16 = vadd.f32 %v10743_v58, %v6384_v42  ;;  %v6482_v26 = vadd.f32 %v11039_v28, %v6481_v29 }
0x16e3   : > { %v6374_v33 = vmul.f32 %v11037_v19, %v6373_v21 }
0x16e4   : > { %v14372_v59 = vsel %vm6483_vm11, %v11039_v28, %v6482_v26 }
0x16e5   : > { %v6378_v24 = vsel %vm6377_vm8, %v11037_v19, %v6374_v33  ;;  %v9766_v19 = vld [vmem:[%s15187_s6 + $0x8] sm:$0xf0]  ;;  %s15191_s6 = sld [smem:[#allocation88_spill]] }
0x16e6   : > { %v6380_v54 = vmul.f32 %v6378_v24, %v6348_v52  ;;  %v9789_v52 = vor.u32 %v10171_v17, %v9788_v12  ;;  %v9769_v31 = vor.u32 %v10164_v57, %v9766_v19 }
0x16e8   : > { %v6385_v49 = vmul.f32 %v10742_v2, %v6380_v54  ;;  %6595 = vmatpush.bf16.msra.mxu0 %v9789_v52  ;;  %6612 = vmatpush.bf16.msra.mxu3 %v9769_v31 }
0x16ea   : > { %v6390_v38 = vadd.f32 %v10743_v58, %v6385_v49 }
0x16eb   : > { %v6681_v19 = vld [vmem:[%s15191_s6] sm:$0xff] }
0x16ec   : > { %v6407_v20 = vpack.c.bf16 %v6390_v38, %v6389_v16  ;;  %6596 = vmatpush.bf16.msra.mxu0 %v9781_v43 }
0x16ee   : > { %6464 = vmatmul.bf16.vlgmr.msra.gmra.mxu1 %v6407_v20 }
0x16f0   : > { %6597 = vmatpush.bf16.msra.mxu0 %v9773_v1 }
0x16f4   : > { %6598 = vmatpush.bf16.msra.mxu0 %v9765_v51 }
0x176b   : > { %v14364_v35 = vpop.f32.mrf.mxu1 }
0x176c   : > { %v6472_v5 = vsel %vm2989_vm10, %v14364_v35, 0.0 }
0x176d   : > { %6473 = vadd.xlane.f32.xlu1 %v6472_v5  ;;  %v10744_v5 = vld [vmem:[#allocation25] ss:$0 sm:$0xff] }
0x1773   : > { %v14368_v25 = vpop.f32.mrf.mxu1 }
0x1774   : > { %v6475_v40 = vsel %vm2989_vm10, %v14368_v25, 0.0 }
0x1775   : > { %6476 = vadd.xlane.f32.xlu0 %v6475_v40 }
0x17e0   : > { %v6474_v37 = vpop.xlane.xlu1 %6473 }
0x17e1   : > { %v6485_v30 = vmul.f32 %v14372_v59, %v6474_v37 }
0x17e3   : > { %v14376_v3 = vsub.f32 %v14364_v35, %v6485_v30 }
0x17e5   : > { %v6489_v48 = vmul.f32 %v14376_v3, %v14376_v3 }
0x17e7   : > { %v6491_v60 = vsel %vm2989_vm10, %v6489_v48, 0.0 }
0x17e8   : > { %6492 = vadd.xlane.f32.xlu2 %v6491_v60  ;;  %v6477_v44 = vpop.xlane.xlu0 %6476  ;;  %v6542_v60 = vld [vmem:[%s15188_s4] sm:$0x3]  ;;  %s15190_s4 = smov 112  }
0x17e9   : > { %v6486_v63 = vmul.f32 %v14372_v59, %v6477_v44  ;;  %v6544_v44 = vperm.slane %v6542_v60, 0 }
0x17eb   : > { %v14383_v4 = vsub.f32 %v14368_v25, %v6486_v63 }
0x17ed   : > { %v6490_v50 = vmul.f32 %v14383_v4, %v14383_v4 }
0x17ef   : > { %v6494_v61 = vsel %vm2989_vm10, %v6490_v50, 0.0 }
0x17f0   : > { %6495 = vadd.xlane.f32.xlu1 %v6494_v61 }
0x185b   : > { %v6493_v27 = vpop.xlane.xlu2 %6492 }
0x185c   : > { %v6497_v53 = vmul.f32 %v6493_v27, %v14372_v59 }
0x185e   : > { %v6499_v10 = vadd.f32 1e-05, %v6497_v53 }
0x1860   : > { %11040 = vrsqrt.f32 %v6499_v10  ;;  %vm6507_vm13 = vweird.f32 %v6499_v10 }
0x1863   : > { %v6496_v45 = vpop.xlane.xlu1 %6495 }
0x1864   : > { %v6498_v46 = vmul.f32 %v6496_v45, %v14372_v59 }
0x1866   : > { %v11041_v14 = vpop.eup %11040  ;;  %v6500_v21 = vadd.f32 1e-05, %v6498_v46 }
0x1867   : > { %v6502_v2 = vmul.f32 %v11041_v14, %v6499_v10  ;;  %vm6508_vm12 = vweird.f32 %v11041_v14 }
0x1868   : > { %11042 = vrsqrt.f32 %v6500_v21  ;;  %vm6509_vm14 = vmor %vm6507_vm13, %vm6508_vm12  ;;  %vm6517_vm2 = vweird.f32 %v6500_v21 }
0x1869   : > { %v6503_v32 = vmul.f32 %v11041_v14, %v6502_v2 }
0x186b   : > { %v6504_v33 = vmul.f32 0.5, %v6503_v32  ;;  %v6682_v32 = vld [vmem:[%s15191_s6 + $0x8] sm:$0xff] }
0x186d   : > { %v6505_v24 = vsub.f32 1.5, %v6504_v33 }
0x186e   : > { %v11043_v58 = vpop.eup %11042 }
0x186f   : > { %v6506_v42 = vmul.f32 %v11041_v14, %v6505_v24  ;;  %v6512_v54 = vmul.f32 %v11043_v58, %v6500_v21  ;;  %vm6518_vm15 = vweird.f32 %v11043_v58 }
0x1870   : > { %vm6519_vm3 = vmor %vm6517_vm2, %vm6518_vm15 }
0x1871   : > { %v6513_v49 = vmul.f32 %v11043_v58, %v6512_v54  ;;  %v6510_v16 = vsel %vm6509_vm14, %v11041_v14, %v6506_v42  ;;  %v9799_v14 = vld [vmem:[%s15191_s6 + $0x10] sm:$0xff] }
0x1872   : > { %v6521_v40 = vmul.f32 %v6510_v16, %v14376_v3  ;;  %v9800_v16 = vld [vmem:[%s15191_s6 + $0x18] sm:$0xff] }
0x1873   : > { %v6514_v38 = vmul.f32 0.5, %v6513_v49 }
0x1874   : > { %v6526_v22 = vmul.f32 %v10744_v5, %v6521_v40 }
0x1875   : > { %v6515_v20 = vsub.f32 1.5, %v6514_v38 }
0x1876   : > { %v6531_v37 = vadd.f32 %v10745_v11, %v6526_v22 }
0x1877   : > { %v6516_v6 = vmul.f32 %v11043_v58, %v6515_v20 }
0x1879   : > { %v6520_v28 = vsel %vm6519_vm3, %v11043_v58, %v6516_v6 }
0x187a   : > { %v6522_v29 = vmul.f32 %v6520_v28, %v14383_v4  ;;  %v6545_v4 = vperm.slane %v6542_v60, 1 }
0x187c   : > { %v6527_v26 = vmul.f32 %v10744_v5, %v6522_v29 }
0x187e   : > { %v6532_v30 = vadd.f32 %v10745_v11, %v6527_v26 }
0x1880   : > { %v6541_v48 = vpack.c.bf16 %v6532_v30, %v6531_v37 }
0x1882   : > { %9794 = vmatmul.msk.bf16.vlgmr.msra.gmra.mxu0 %vm2989_vm10, %v6541_v48  ;;  %9795 = vmatmul.msk.bf16.vlgmr.msra.gmra.mxu3 %vm2989_vm10, %v6541_v48 }
0x18ff   : > { %v6600_v63 = vpop.f32.mrf.mxu0 }
0x1900   : > { %v14411_v3 = vadd.f32 %v6600_v63, %v6544_v44 }
0x1902   : > { %6751 = vrot.lane.b32.xlu2 %v14411_v3, %s15189_s2 }
0x1905   : > { %v6614_v50 = vpop.f32.mrf.mxu3 }
0x1906   : > { %v6615_v52 = vadd.f32 %v6614_v50, %v6545_v4 }
0x1907   : > { %v6602_v61 = vpop.f32.mrf.mxu0 }
0x1908   : > { %v6603_v12 = vadd.f32 %v6602_v61, %v6544_v44 }
0x190a   : > { %6753 = vrot.lane.b32.xlu1 %v6603_v12, %s15189_s2  ;;  %v10626_v17 = vpack.i.bf16 %v6603_v12, %v14411_v3  ;;  %v14422_v36 = vpack.c.bf16 %v6603_v12, %v14411_v3 }
0x190c   : > { %10627 = vrot.lane.b32.xlu0 %v10626_v17, %s15175_s1 }
0x190d   : > { %v6616_v23 = vpop.f32.mrf.mxu3 }
0x190e   : > { %v6617_v0 = vadd.f32 %v6616_v23, %v6545_v4 }
0x1910   : > { %v14418_v27 = vpack.c.bf16 %v6617_v0, %v6615_v52 }
0x1912   : > { %6744 = vmatpush.bf16.msrb.mxu0 %v14418_v27 }
0x1914   : > { %6791 = vrot.lane.b32.xlu0 %v14422_v36, %s15190_s4 }
0x195c   : > { %v6752_v62 = vpop.permute.xlu2 %6751 }
0x197c   : > { %v6754_v43 = vpop.permute.xlu1 %6753 }
0x197e   : > { %v10628_v53 = vpop.permute.xlu0 %10627 }
0x197f   : > { %v10629_v55 = vunpack.i.l.bf16 %v10628_v53  ;;  %v10630_v10 = vunpack.i.h.bf16 %v10628_v53 }
0x1981   : > { %v10631_v9 = vpack.i.bf16 %v6752_v62, %v10629_v55  ;;  %v10633_v39 = vpack.i.bf16 %v6754_v43, %v10630_v10 }
0x1983   : > { %10632 = vxpose.xlu2.b32.start [1/2] (short) (narrow) %v10631_v9, 16 }
0x1986   : > { %v6792_v8 = vpop.permute.xlu0 %6791 }
0x198b   : > { %10634 = vxpose.xlu2.b32.end [2/2] (short) (narrow) %v10633_v39, 16 }
0x1a1c   : > { %v10635_v7 = vpop.trf.xlu2 }
0x1a1d   : > { %v10639_v13 = vunpack.i.h.bf16 %v10635_v7  ;;  %v10636_v18 = vunpack.i.l.bf16 %v10635_v7 }
0x1a24   : > { %v10640_v34 = vpop.trf.xlu2 }
0x1a25   : > { %v10644_v1 = vunpack.i.h.bf16 %v10640_v34  ;;  %v10641_v56 = vunpack.i.l.bf16 %v10640_v34 }
0x1a27   : > { %v6660_v47 = vpack.c.bf16 %v10641_v56, %v10636_v18  ;;  %v6789_v41 = vpack.c.bf16 %v10644_v1, %v10639_v13 }
0x1a29   : > { %6672 = vmatpush.bf16.msrb.mxu1 %v6660_v47  ;;  %6803 = vmatpush.bf16.msrb.mxu3 %v6789_v41 }
0x1a2c   : > { %9796 = vmatmul.msk.bf16.vlgmr.msrb.gmra.mxu1 %vm2923_vm9, %v14422_v36  ;;  %9798 = vmatmul.msk.bf16.vlgmr.msrb.gmra.mxu3 %vm2923_vm9, %v6792_v8 }
0x1aa9   : > { %v6674_v57 = vpop.f32.mrf.mxu1 }
0x1aaa   : > { %v6679_v45 = vmul.f32 0.25, %v6674_v57 }
0x1aac   : > { %v6683_v46 = vadd.f32 %v6681_v19, %v6679_v45 }
0x1aae   : > { %v6685_v51 = vsel %vm2923_vm9, %v6683_v46, -inf }
0x1aaf   : > { %v6805_v31 = vpop.f32.mrf.mxu3  ;;  %6686 = vmax.xlane.f32.xlu0 %v6685_v51 }
0x1ab0   : > { %v6810_v21 = vmul.f32 0.25, %v6805_v31 }
0x1ab1   : > { %v6676_v2 = vpop.f32.mrf.mxu1 }
0x1ab2   : > { %v6815_v33 = vadd.f32 %v9799_v14, %v6810_v21  ;;  %v6680_v24 = vmul.f32 0.25, %v6676_v2 }
0x1ab4   : > { %v6684_v58 = vadd.f32 %v6682_v32, %v6680_v24  ;;  %v6817_v42 = vsel %vm2923_vm9, %v6815_v33, -inf }
0x1ab6   : > { %v6688_v54 = vsel %vm2923_vm9, %v6684_v58, -inf }
0x1ab7   : > { %v6807_v49 = vpop.f32.mrf.mxu3  ;;  %6818 = vmax.xlane.f32.xlu0 %v6817_v42  ;;  %6689 = vmax.xlane.f32.xlu1 %v6688_v54 }
0x1ab8   : > { %v6811_v38 = vmul.f32 0.25, %v6807_v49 }
0x1aba   : > { %v6816_v20 = vadd.f32 %v9800_v16, %v6811_v38 }
0x1abc   : > { %v6820_v5 = vsel %vm2923_vm9, %v6816_v20, -inf }
0x1abd   : > { %6821 = vmax.xlane.f32.xlu2 %v6820_v5 }
0x1acb   : > { %6889 = vrot.lane.b32.xlu0 %v6603_v12, %s15192_s7 }
0x1ad0   : > { %6887 = vrot.lane.b32.xlu1 %v14411_v3, %s15192_s7 }
0x1ad3   : > { %7021 = vrot.lane.b32.xlu0 %v14411_v3, %s15179_s5 }
0x1ad5   : > { %7001 = vrot.lane.b32.xlu2 %v14418_v27, %s15183_s3 }
0x1ad8   : > { %7023 = vrot.lane.b32.xlu1 %v6603_v12, %s15179_s5 }
0x1adb   : > { %6867 = vrot.lane.b32.xlu0 %v14418_v27, %s15190_s4 }
0x1ae0   : > { %6926 = vrot.lane.b32.xlu1 %v14422_v36, %s15183_s3 }
0x1b22   : > { %v6687_v40 = vpop.xlane.xlu0 %6686 }
0x1b23   : > { %v6691_v6 = vsub.f32 %v6683_v46, %v6687_v40 }
0x1b25   : > { %v6693_v28 = vmul.f32 1.442695, %v6691_v6 }
0x1b27   : > { %11044 = vpow2.f32 %v6693_v28 }
0x1b2a   : > { %v6819_v11 = vpop.xlane.xlu0 %6818  ;;  %v6690_v22 = vpop.xlane.xlu1 %6689 }
0x1b2b   : > { %v6823_v29 = vsub.f32 %v6815_v33, %v6819_v11  ;;  %v6692_v26 = vsub.f32 %v6684_v58, %v6690_v22 }
0x1b2d   : > { %v14449_v37 = vpop.eup %11044  ;;  %v6825_v30 = vmul.f32 1.442695, %v6823_v29  ;;  %v6695_v48 = vmul.f32 1.442695, %v6692_v26 }
0x1b2e   : > { %v6697_v60 = vsel %vm2923_vm9, %v14449_v37, 0.0 }
0x1b2f   : > { %11046 = vpow2.f32 %v6825_v30  ;;  %6698 = vadd.xlane.f32.xlu1 %v6697_v60 }
0x1b30   : > { %11048 = vpow2.f32 %v6695_v48  ;;  %v6822_v44 = vpop.xlane.xlu2 %6821 }
0x1b31   : > { %v6824_v63 = vsub.f32 %v6816_v20, %v6822_v44 }
0x1b33   : > { %v6827_v3 = vmul.f32 1.442695, %v6824_v63 }
0x1b35   : > { %v14453_v50 = vpop.eup %11046  ;;  %11050 = vpow2.f32 %v6827_v3 }
0x1b36   : > { %v14455_v61 = vpop.eup %11048  ;;  %v6829_v12 = vsel %vm2923_vm9, %v14453_v50, 0.0 }
0x1b37   : > { %6830 = vadd.xlane.f32.xlu1 %v6829_v12  ;;  %v6700_v4 = vsel %vm2923_vm9, %v14455_v61, 0.0 }
0x1b38   : > { %6701 = vadd.xlane.f32.xlu0 %v6700_v4  ;;  %v7002_v17 = vpop.permute.xlu2 %7001 }
0x1b39   : > { %7014 = vmatpush.bf16.msra.mxu3 %v7002_v17 }
0x1b3b   : > { %v14461_v23 = vpop.eup %11050 }
0x1b3c   : > { %v6832_v0 = vsel %vm2923_vm9, %v14461_v23, 0.0 }
0x1b3d   : > { %v6890_v52 = vpop.permute.xlu0 %6889 }
0x1b40   : > { %6833 = vadd.xlane.f32.xlu0 %v6832_v0 }
0x1b42   : > { %v6888_v62 = vpop.permute.xlu1 %6887 }
0x1b45   : > { %v7022_v53 = vpop.permute.xlu0 %7021 }
0x1b4a   : > { %v7024_v9 = vpop.permute.xlu1 %7023 }
0x1b4d   : > { %v6868_v55 = vpop.permute.xlu0 %6867 }
0x1b4e   : > { %6880 = vmatpush.bf16.msra.mxu1 %v6868_v55 }
0x1b52   : > { %v14467_v10 = vpop.permute.xlu1 %6926 }
0x1b54   : > { %7060 = vrot.lane.b32.xlu0 %v14422_v36, %s15193_s9 }
0x1b71   : > { %6893 = vxpose.xlu1.b32.start [1/2] (short) (narrow) %v6888_v62, 16 }
0x1b76   : > { %7027 = vxpose.xlu0.b32.start [1/2] (short) (narrow) %v7022_v53, 16 }
0x1b79   : > { %6894 = vxpose.xlu1.b32.end [2/2] (short) (narrow) %v6890_v52, 16 }
0x1b7e   : > { %7028 = vxpose.xlu0.b32.end [2/2] (short) (narrow) %v7024_v9, 16 }
0x1ba2   : > { %v6699_v43 = vpop.xlane.xlu1 %6698 }
0x1ba3   : > { %11052 = vrcp.f32 %v6699_v43  ;;  %v6714_v19 = vand.u32 2147483648, %v6699_v43  ;;  %vm6708_vm5 = vweird.f32 %v6699_v43  ;;  %v6712_v46 = vand.u32 2147483647, %v6699_v43 }
0x1ba5   : > { %v6715_v33 = vor.u32 1.1754944e-38, %v6714_v19  ;;  %vm6713_vm8 = vcmp.eq.f32.partialorder %v6712_v46, 8.507059e+37 }
0x1ba9   : > { %v11053_v39 = vpop.eup %11052 }
0x1baa   : > { %v6704_v7 = vmul.f32 %v11053_v39, %v6699_v43  ;;  %v6831_v13 = vpop.xlane.xlu1 %6830  ;;  %vm6709_vm4 = vweird.f32 %v11053_v39 }
0x1bab   : > { %v6702_v18 = vpop.xlane.xlu0 %6701  ;;  %11054 = vrcp.f32 %v6831_v13  ;;  %vm6710_vm6 = vmor %vm6708_vm5, %vm6709_vm4  ;;  %vm6840_vm15 = vweird.f32 %v6831_v13  ;;  %v6846_v5 = vand.u32 2147483648, %v6831_v13  ;;  %v6844_v28 = vand.u32 2147483647, %v6831_v13 }
0x1bac   : > { %v6705_v34 = vsub.f32 1.0, %v6704_v7  ;;  %11056 = vrcp.f32 %v6702_v18  ;;  %v6727_v31 = vand.u32 2147483647, %v6702_v18  ;;  %v6729_v14 = vand.u32 2147483648, %v6702_v18 }
0x1bad   : > { %vm6723_vm11 = vweird.f32 %v6702_v18  ;;  %v6847_v60 = vor.u32 1.1754944e-38, %v6846_v5  ;;  %vm6845_vm4 = vcmp.eq.f32.partialorder %v6844_v28, 8.507059e+37 }
0x1bae   : > { %v6706_v1 = vmul.f32 %v11053_v39, %v6705_v34  ;;  %vm6728_vm13 = vcmp.eq.f32.partialorder %v6727_v31, 8.507059e+37  ;;  %v6730_v54 = vor.u32 1.1754944e-38, %v6729_v14 }
0x1bb0   : > { %v6707_v41 = vadd.f32 %v11053_v39, %v6706_v1 }
0x1bb1   : > { %v11055_v56 = vpop.eup %11054 }
0x1bb2   : > { %v11057_v36 = vpop.eup %11056  ;;  %v6836_v47 = vmul.f32 %v11055_v56, %v6831_v13  ;;  %v6711_v21 = vsel %vm6710_vm6, %v11053_v39, %v6707_v41  ;;  %vm6841_vm14 = vweird.f32 %v11055_v56 }
0x1bb3   : > { %v6719_v8 = vmul.f32 %v11057_v36, %v6702_v18  ;;  %v6834_v57 = vpop.xlane.xlu0 %6833  ;;  %vm6724_vm7 = vweird.f32 %v11057_v36  ;;  %v6716_v42 = vsel %vm6713_vm8, %v6715_v33, %v6711_v21  ;;  %vm6842_vm2 = vmor %vm6840_vm15, %vm6841_vm14  ;;  %v9803_v18 = vld [vmem:[%s15191_s6 + $0x20] sm:$0xff]  ;;  %v9808_v21 = vld [vmem:[%s15191_s6 + $0x38] sm:$0xff] }
0x1bb4   : > { %v6837_v45 = vsub.f32 1.0, %v6836_v47  ;;  %11058 = vrcp.f32 %v6834_v57  ;;  %vm6725_vm12 = vmor %vm6723_vm11, %vm6724_vm7  ;;  %v6717_v40 = vmul.f32 %v14449_v37, %v6716_v42  ;;  %v6859_v22 = vand.u32 2147483647, %v6834_v57 }
0x1bb5   : > { %v6720_v51 = vsub.f32 1.0, %v6719_v8  ;;  %v6861_v29 = vand.u32 2147483648, %v6834_v57  ;;  %vm6855_vm5 = vweird.f32 %v6834_v57 }
0x1bb6   : > { %v6838_v32 = vmul.f32 %v11055_v56, %v6837_v45  ;;  %vm6860_vm7 = vcmp.eq.f32.partialorder %v6859_v22, 8.507059e+37 }
0x1bb7   : > { %v6721_v2 = vmul.f32 %v11057_v36, %v6720_v51  ;;  %v6862_v37 = vor.u32 1.1754944e-38, %v6861_v29 }
0x1bb8   : > { %v6839_v16 = vadd.f32 %v11055_v56, %v6838_v32 }
0x1bb9   : > { %v6722_v24 = vadd.f32 %v11057_v36, %v6721_v2 }
0x1bba   : > { %v11059_v58 = vpop.eup %11058  ;;  %v6843_v30 = vsel %vm6842_vm2, %v11055_v56, %v6839_v16 }
0x1bbb   : > { %v6726_v49 = vsel %vm6725_vm12, %v11057_v36, %v6722_v24  ;;  %v6851_v38 = vmul.f32 %v11059_v58, %v6834_v57  ;;  %vm6856_vm3 = vweird.f32 %v11059_v58  ;;  %v6848_v63 = vsel %vm6845_vm4, %v6847_v60, %v6843_v30  ;;  %v9807_v36 = vld [vmem:[%s15191_s6 + $0x30] sm:$0xff]  ;;  %v9804_v57 = vld [vmem:[%s15191_s6 + $0x28] sm:$0xff]  ;;  %s15196_s6 = sld [smem:[#allocation96_spill]] }
0x1bbc   : > { %v6731_v20 = vsel %vm6728_vm13, %v6730_v54, %v6726_v49  ;;  %vm6857_vm6 = vmor %vm6855_vm5, %vm6856_vm3  ;;  %v6849_v12 = vmul.f32 %v14453_v50, %v6848_v63 }
0x1bbd   : > { %v6732_v6 = vmul.f32 %v14455_v61, %v6731_v20  ;;  %v6852_v11 = vsub.f32 1.0, %v6851_v38 }
0x1bbf   : > { %v6733_v26 = vpack.c.bf16 %v6732_v6, %v6717_v40  ;;  %v6853_v48 = vmul.f32 %v11059_v58, %v6852_v11 }
0x1bc1   : > { %v6854_v44 = vadd.f32 %v11059_v58, %v6853_v48  ;;  %9797 = vmatmul.msk.bf16.vlgmr.msrb.gmra.mxu0 %vm2923_vm9, %v6733_v26 }
0x1bc3   : > { %v6858_v3 = vsel %vm6857_vm6, %v11059_v58, %v6854_v44 }
0x1bc4   : > { %v6863_v61 = vsel %vm6860_vm7, %v6862_v37, %v6858_v3 }
0x1bc5   : > { %v6864_v4 = vmul.f32 %v14461_v23, %v6863_v61 }
0x1bc6   : > { %v7061_v52 = vpop.permute.xlu0 %7060 }
0x1bc7   : > { %v6865_v17 = vpack.c.bf16 %v6864_v4, %v6849_v12 }
0x1bc9   : > { %9801 = vmatmul.msk.bf16.vlgmr.msra.gmra.mxu1 %vm2923_vm9, %v6865_v17 }
0x1c15   : > { %v6909_v0 = vpop.trf.xlu1 }
0x1c1a   : > { %v7043_v53 = vpop.trf.xlu0 }
0x1c1d   : > { %v6910_v55 = vpop.trf.xlu1 }
0x1c1e   : > { %v6925_v62 = vpack.c.bf16 %v6910_v55, %v6909_v0 }
0x1c20   : > { %6938 = vmatpush.bf16.msra.mxu0 %v6925_v62 }
0x1c22   : > { %v7044_v9 = vpop.trf.xlu0 }
0x1c23   : > { %v7059_v43 = vpack.c.bf16 %v7044_v9, %v7043_v53  ;;  %9802 = vmatmul.msk.bf16.vlgmr.msra.gmra.mxu0 %vm2923_vm9, %v14467_v10 }
0x1c25   : > { %7072 = vmatpush.bf16.msrb.mxu1 %v7059_v43 }
0x1c28   : > { %9806 = vmatmul.msk.bf16.vlgmr.msrb.gmra.mxu1 %vm2923_vm9, %v7061_v52 }
0x1c3e   : > { %v14478_v50 = vpop.f32.mrf.mxu0 }
0x1c46   : > { %v6882_v23 = vpop.f32.mrf.mxu1  ;;  %v14480_v39 = vpop.f32.mrf.mxu0 }
0x1c4e   : > { %v6884_v7 = vpop.f32.mrf.mxu1 }
0x1c4f   : > { %v10645_v44 = vpack.i.bf16 %v6884_v7, %v6882_v23 }
0x1ca0   : > { %v6940_v13 = vpop.f32.mrf.mxu0 }
0x1ca1   : > { %v6945_v34 = vmul.f32 0.25, %v6940_v13 }
0x1ca3   : > { %v6950_v1 = vadd.f32 %v9803_v18, %v6945_v34 }
0x1ca5   : > { %v7074_v56 = vpop.f32.mrf.mxu1  ;;  %v6952_v47 = vsel %vm2923_vm9, %v6950_v1, -inf }
0x1ca6   : > { %v7079_v10 = vmul.f32 0.25, %v7074_v56  ;;  %6953 = vmax.xlane.f32.xlu0 %v6952_v47 }
0x1ca8   : > { %v7084_v41 = vadd.f32 %v9807_v36, %v7079_v10  ;;  %v6942_v8 = vpop.f32.mrf.mxu0 }
0x1ca9   : > { %v6946_v19 = vmul.f32 0.25, %v6942_v8 }
0x1caa   : > { %v7086_v45 = vsel %vm2923_vm9, %v7084_v41, -inf }
0x1cab   : > { %v6951_v46 = vadd.f32 %v9804_v57, %v6946_v19  ;;  %7087 = vmax.xlane.f32.xlu1 %v7086_v45 }
0x1cad   : > { %v7076_v51 = vpop.f32.mrf.mxu1  ;;  %v6955_v31 = vsel %vm2923_vm9, %v6951_v46, -inf }
0x1cae   : > { %v7080_v14 = vmul.f32 0.25, %v7076_v51  ;;  %6956 = vmax.xlane.f32.xlu2 %v6955_v31 }
0x1cb0   : > { %v7085_v2 = vadd.f32 %v9808_v21, %v7080_v14 }
0x1cb2   : > { %v7089_v32 = vsel %vm2923_vm9, %v7085_v2, -inf }
0x1cb6   : > { %7090 = vmax.xlane.f32.xlu2 %v7089_v32 }
0x1d19   : > { %v6954_v33 = vpop.xlane.xlu0 %6953 }
0x1d1a   : > { %v6958_v24 = vsub.f32 %v6950_v1, %v6954_v33 }
0x1d1c   : > { %v6960_v58 = vmul.f32 1.442695, %v6958_v24 }
0x1d1e   : > { %11060 = vpow2.f32 %v6960_v58  ;;  %v7088_v42 = vpop.xlane.xlu1 %7087 }
0x1d1f   : > { %v7092_v54 = vsub.f32 %v7084_v41, %v7088_v42 }
0x1d21   : > { %v7094_v49 = vmul.f32 1.442695, %v7092_v54  ;;  %v6957_v16 = vpop.xlane.xlu2 %6956 }
0x1d22   : > { %v6959_v20 = vsub.f32 %v6951_v46, %v6957_v16 }
0x1d23   : > { %11062 = vpow2.f32 %v7094_v49 }
0x1d24   : > { %v14490_v38 = vpop.eup %11060  ;;  %v6962_v40 = vmul.f32 1.442695, %v6959_v20 }
0x1d25   : > { %v6964_v5 = vsel %vm2923_vm9, %v14490_v38, 0.0 }
0x1d26   : > { %6965 = vadd.xlane.f32.xlu2 %v6964_v5  ;;  %11064 = vpow2.f32 %v6962_v40 }
0x1d29   : > { %v7091_v6 = vpop.xlane.xlu2 %7090  ;;  %v14494_v28 = vpop.eup %11062 }
0x1d2a   : > { %v7093_v11 = vsub.f32 %v7085_v2, %v7091_v6  ;;  %v7098_v22 = vsel %vm2923_vm9, %v14494_v28, 0.0 }
0x1d2c   : > { %v7096_v29 = vmul.f32 1.442695, %v7093_v11  ;;  %v11065_v26 = vpop.eup %11064 }
0x1d2d   : > { %v6967_v30 = vsel %vm2923_vm9, %v11065_v26, 0.0 }
0x1d2e   : > { %7099 = vadd.xlane.f32.xlu2 %v7098_v22  ;;  %11066 = vpow2.f32 %v7096_v29 }
0x1d34   : > { %v14499_v48 = vpop.eup %11066 }
0x1d35   : > { %v7101_v60 = vsel %vm2923_vm9, %v14499_v48, 0.0 }
0x1d36   : > { %6968 = vadd.xlane.f32.xlu2 %v6967_v30 }
0x1d3e   : > { %7102 = vadd.xlane.f32.xlu2 %v7101_v60 }
0x1d56   : > { %7135 = vrot.lane.b32.xlu2 %v14418_v27, %s15193_s9 }
0x1d5e   : > { %10646 = vrot.lane.b32.xlu2 %v10645_v44, %s15179_s5 }
0x1d99   : > { %v6966_v63 = vpop.xlane.xlu2 %6965 }
0x1d9a   : > { %11068 = vrcp.f32 %v6966_v63  ;;  %v6981_v43 = vand.u32 2147483648, %v6966_v63  ;;  %vm6975_vm11 = vweird.f32 %v6966_v63  ;;  %v6979_v23 = vand.u32 2147483647, %v6966_v63 }
0x1d9c   : > { %v6982_v36 = vor.u32 1.1754944e-38, %v6981_v43  ;;  %vm6980_vm14 = vcmp.eq.f32.partialorder %v6979_v23, 8.507059e+37 }
0x1da0   : > { %v11069_v3 = vpop.eup %11068 }
0x1da1   : > { %v7100_v37 = vpop.xlane.xlu2 %7099  ;;  %v6971_v61 = vmul.f32 %v11069_v3, %v6966_v63  ;;  %vm6976_vm8 = vweird.f32 %v11069_v3 }
0x1da2   : > { %11070 = vrcp.f32 %v7100_v37  ;;  %vm6977_vm12 = vmor %vm6975_vm11, %vm6976_vm8  ;;  %vm7109_vm5 = vweird.f32 %v7100_v37  ;;  %v7115_v51 = vand.u32 2147483648, %v7100_v37  ;;  %v7113_v2 = vand.u32 2147483647, %v7100_v37 }
0x1da3   : > { %v6972_v4 = vsub.f32 1.0, %v6971_v61  ;;  %v10173_v61 = vld [vmem:[%s15196_s6 + $0x8] sm:$0xff] }
0x1da4   : > { %v7116_v16 = vor.u32 1.1754944e-38, %v7115_v51  ;;  %vm7114_vm8 = vcmp.eq.f32.partialorder %v7113_v2, 8.507059e+37 }
0x1da5   : > { %v6973_v0 = vmul.f32 %v11069_v3, %v6972_v4 }
0x1da7   : > { %v6974_v62 = vadd.f32 %v11069_v3, %v6973_v0 }
0x1da8   : > { %v11071_v12 = vpop.eup %11070 }
0x1da9   : > { %v6969_v17 = vpop.xlane.xlu2 %6968  ;;  %v7105_v52 = vmul.f32 %v11071_v12, %v7100_v37  ;;  %v6978_v34 = vsel %vm6977_vm12, %v11069_v3, %v6974_v62  ;;  %vm7110_vm2 = vweird.f32 %v11071_v12 }
0x1daa   : > { %11072 = vrcp.f32 %v6969_v17  ;;  %v6996_v18 = vand.u32 2147483648, %v6969_v17  ;;  %v6994_v56 = vand.u32 2147483647, %v6969_v17  ;;  %vm6990_vm15 = vweird.f32 %v6969_v17  ;;  %vm14507_vm6 = vmor %vm7109_vm5, %vm7110_vm2 }
0x1dab   : > { %v7106_v55 = vsub.f32 1.0, %v7105_v52  ;;  %v6983_v41 = vsel %vm6980_vm14, %v6982_v36, %v6978_v34 }
0x1dac   : > { %v6997_v57 = vor.u32 1.1754944e-38, %v6996_v18  ;;  %vm6995_vm4 = vcmp.eq.f32.partialorder %v6994_v56, 8.507059e+37  ;;  %v6984_v14 = vmul.f32 %v14490_v38, %v6983_v41 }
0x1dad   : > { %v7107_v13 = vmul.f32 %v11071_v12, %v7106_v55 }
0x1daf   : > { %v7108_v8 = vadd.f32 %v11071_v12, %v7107_v13 }
0x1db0   : > { %v11073_v53 = vpop.eup %11072 }
0x1db1   : > { %v6986_v27 = vmul.f32 %v11073_v53, %v6969_v17  ;;  %v7103_v9 = vpop.xlane.xlu2 %7102  ;;  %vm6991_vm13 = vweird.f32 %v11073_v53  ;;  %v7112_v24 = vsel %vm14507_vm6, %v11071_v12, %v7108_v8 }
0x1db2   : > { %11074 = vrcp.f32 %v7103_v9  ;;  %vm6992_vm3 = vmor %vm6990_vm15, %vm6991_vm13  ;;  %v7130_v58 = vand.u32 2147483648, %v7103_v9  ;;  %v7128_v49 = vand.u32 2147483647, %v7103_v9  ;;  %vm7124_vm11 = vweird.f32 %v7103_v9 }
0x1db3   : > { %v6987_v7 = vsub.f32 1.0, %v6986_v27  ;;  %v7117_v38 = vsel %vm7114_vm8, %v7116_v16, %v7112_v24 }
0x1db4   : > { %v7131_v5 = vor.u32 1.1754944e-38, %v7130_v58  ;;  %vm7129_vm13 = vcmp.eq.f32.partialorder %v7128_v49, 8.507059e+37  ;;  %v7118_v11 = vmul.f32 %v14494_v28, %v7117_v38  ;;  %v10174_v28 = vld [vmem:[%s15196_s6 + $0x10] sm:$0xff] }
0x1db5   : > { %v6988_v1 = vmul.f32 %v11073_v53, %v6987_v7 }
0x1db7   : > { %v6989_v47 = vadd.f32 %v11073_v53, %v6988_v1  ;;  %v10746_v1 = vld [vmem:[#allocation30] ss:$0 sm:$0xff] }
0x1db8   : > { %v11075_v10 = vpop.eup %11074 }
0x1db9   : > { %v6993_v19 = vsel %vm6992_vm3, %v11073_v53, %v6989_v47  ;;  %v7120_v45 = vmul.f32 %v11075_v10, %v7103_v9  ;;  %v7136_v46 = vpop.permute.xlu2 %7135  ;;  %vm7125_vm7 = vweird.f32 %v11075_v10 }
0x1dba   : > { %v6998_v31 = vsel %vm6995_vm4, %v6997_v57, %v6993_v19  ;;  %7148 = vmatpush.bf16.msrb.mxu0 %v7136_v46  ;;  %vm7126_vm12 = vmor %vm7124_vm11, %vm7125_vm7 }
0x1dbb   : > { %v6999_v32 = vmul.f32 %v11065_v26, %v6998_v31  ;;  %v7121_v33 = vsub.f32 1.0, %v7120_v45  ;;  %v10175_v26 = vld [vmem:[%s15196_s6 + $0x18] sm:$0xff] }
0x1dbc   : > { %7225 = vmatpush.bf16.msrb.mxu3 %v10175_v26 }
0x1dbd   : > { %v7000_v42 = vpack.c.bf16 %v6999_v32, %v6984_v14  ;;  %v7122_v54 = vmul.f32 %v11075_v10, %v7121_v33 }
0x1dbf   : > { %v7123_v20 = vadd.f32 %v11075_v10, %v7122_v54  ;;  %9805 = vmatmul.msk.bf16.vlgmr.msra.gmra.mxu3 %vm2923_vm9, %v7000_v42 }
0x1dc0   : > { %7226 = vmatpush.bf16.msrb.mxu3 %v10174_v28 }
0x1dc1   : > { %v7127_v40 = vsel %vm7126_vm12, %v11075_v10, %v7123_v20  ;;  %v10647_v12 = vpop.permute.xlu2 %10646 }
0x1dc2   : > { %v7132_v6 = vsel %vm7129_vm13, %v7131_v5, %v7127_v40  ;;  %v10649_v17 = vunpack.i.h.bf16 %v10647_v12  ;;  %v10648_v52 = vunpack.i.l.bf16 %v10647_v12 }
0x1dc3   : > { %v7133_v22 = vmul.f32 %v14499_v48, %v7132_v6  ;;  %v10172_v48 = vld [vmem:[%s15196_s6] sm:$0xff]  ;;  %s15197_s6 = sld [smem:[#allocation90_spill]] }
0x1dc4   : > { %7227 = vmatpush.bf16.msrb.mxu3 %v10173_v61  ;;  %v7180_v62 = vsel %vm2923_vm9, %v14480_v39, %v10649_v17  ;;  %v7179_v27 = vsel %vm2923_vm9, %v14478_v50, %v10648_v52 }
0x1dc5   : > { %v7134_v29 = vpack.c.bf16 %v7133_v22, %v7118_v11 }
0x1dc7   : > { %9809 = vmatmul.msk.bf16.vlgmr.msrb.gmra.mxu0 %vm2923_vm9, %v7134_v29 }
0x1dc8   : > { %7228 = vmatpush.bf16.msrb.mxu3 %v10172_v48 }
0x1dc9   : > { %v9853_v2 = vld [vmem:[%s15197_s6 + $0x30] sm:$0xf]  ;;  %v10183_v32 = vld [vmem:[%s15197_s6 + $0x34] sm:$0xf0]  ;;  %v10182_v33 = vld [vmem:[%s15197_s6 + $0x34] sm:$0xf] }
0x1dca   : > { %v9854_v24 = vor.u32 %v10183_v32, %v9853_v2  ;;  %v9855_v58 = vld [vmem:[%s15197_s6 + $0x38] sm:$0xf0]  ;;  %v9845_v16 = vld [vmem:[%s15197_s6 + $0x20] sm:$0xf]  ;;  %v10181_v20 = vld [vmem:[%s15197_s6 + $0x24] sm:$0xf0] }
0x1dcb   : > { %v9858_v54 = vor.u32 %v10182_v33, %v9855_v58  ;;  %v10180_v38 = vld [vmem:[%s15197_s6 + $0x24] sm:$0xf]  ;;  %v9846_v40 = vor.u32 %v10181_v20, %v9845_v16  ;;  %v9847_v6 = vld [vmem:[%s15197_s6 + $0x28] sm:$0xf0]  ;;  %v9837_v22 = vld [vmem:[%s15197_s6 + $0x10] sm:$0xf] }
0x1dcc   : > { %7361 = vmatpush.bf16.msrb.mxu2 %v9854_v24  ;;  %v9850_v11 = vor.u32 %v10180_v38, %v9847_v6  ;;  %v10179_v29 = vld [vmem:[%s15197_s6 + $0x14] sm:$0xf0]  ;;  %v10178_v26 = vld [vmem:[%s15197_s6 + $0x14] sm:$0xf]  ;;  %v9831_v28 = vld [vmem:[%s15197_s6 + $0x8] sm:$0xf0] }
0x1dcd   : > { %7375 = vmatpush.bf16.msra.mxu1 %v9858_v54 }
0x1dd0   : > { %7362 = vmatpush.bf16.msrb.mxu2 %v9846_v40  ;;  %v10198_v40 = vld [vmem:[%s15199_s10 + $0x70] sm:$0xff] }
0x1dd1   : > { %7376 = vmatpush.bf16.msra.mxu1 %v9850_v11 }
0x1e42   : > { %v7016_v30 = vpop.f32.mrf.mxu3 }
0x1e44   : > { %v7150_v60 = vpop.f32.mrf.mxu0 }
0x1e4a   : > { %v7018_v44 = vpop.f32.mrf.mxu3 }
0x1e4b   : > { %v10650_v63 = vpack.i.bf16 %v7018_v44, %v7016_v30  ;;  %v9838_v30 = vor.u32 %v10179_v29, %v9837_v22  ;;  %v9829_v44 = vld [vmem:[%s15197_s6] sm:$0xf]  ;;  %v10191_v29 = vld [vmem:[%s15199_s10 + $0x38] sm:$0xff] }
0x1e4c   : > { %v7152_v37 = vpop.f32.mrf.mxu0  ;;  %7675 = vmatpush.bf16.msra.mxu0 %v10191_v29 }
0x1e4d   : > { %10651 = vrot.lane.b32.xlu2 %v10650_v63, %s15192_s7  ;;  %v10655_v3 = vpack.i.bf16 %v7152_v37, %v7150_v60  ;;  %v9839_v60 = vld [vmem:[%s15197_s6 + $0x18] sm:$0xf0]  ;;  %v10177_v63 = vld [vmem:[%s15197_s6 + $0x4] sm:$0xf0]  ;;  %7363 = vmatpush.bf16.msrb.mxu2 %v9838_v30 }
0x1e4e   : > { %v9842_v37 = vor.u32 %v10178_v26, %v9839_v60  ;;  %v9830_v12 = vor.u32 %v10177_v63, %v9829_v44  ;;  %v10197_v63 = vld [vmem:[%s15199_s10 + $0x68] sm:$0xff] }
0x1e50   : > { %7377 = vmatpush.bf16.msra.mxu1 %v9842_v37 }
0x1e51   : > { %7364 = vmatpush.bf16.msrb.mxu2 %v9830_v12 }
0x1e55   : > { %10656 = vrot.lane.b32.xlu2 %v10655_v3, %s15189_s2  ;;  %v10176_v3 = vld [vmem:[%s15197_s6 + $0x4] sm:$0xf]  ;;  %s15198_s6 = sld [smem:[#allocation89_spill]] }
0x1ea7   : > { %v10652_v4 = vpop.permute.xlu2 %10651 }
0x1ea8   : > { %v10654_v0 = vunpack.i.h.bf16 %v10652_v4  ;;  %v10653_v53 = vunpack.i.l.bf16 %v10652_v4  ;;  %v9834_v4 = vor.u32 %v10176_v3, %v9831_v28 }
0x1eaa   : > { %v7181_v23 = vsel %vm2383_vm1, %v7179_v27, %v10653_v53  ;;  %v7182_v7 = vsel %vm2383_vm1, %v7180_v62, %v10654_v0  ;;  %7378 = vmatpush.bf16.msra.mxu1 %v9834_v4 }
0x1eaf   : > { %v10657_v55 = vpop.permute.xlu2 %10656 }
0x1eb0   : > { %v10659_v9 = vunpack.i.h.bf16 %v10657_v55  ;;  %v10658_v43 = vunpack.i.l.bf16 %v10657_v55 }
0x1eb2   : > { %v7183_v13 = vsel %vm2339_vm0, %v7181_v23, %v10658_v43  ;;  %v7184_v18 = vsel %vm2339_vm0, %v7182_v7, %v10659_v9 }
0x1eb3   : > { %v7193_v34 = vpack.c.bf16 %v7184_v18, %v7183_v13 }
0x1eb5   : > { %9826 = vmatmul.msk.bf16.vlgmr.msrb.gmra.mxu3 %vm2989_vm10, %v7193_v34  ;;  %v10747_v34 = vld [vmem:[#allocation28] ss:$0 sm:$0xff] }
0x1f38   : > { %v7230_v56 = vpop.f32.mrf.mxu3 }
0x1f39   : > { %v7235_v39 = vadd.f32 %v7230_v56, %v14364_v35 }
0x1f3b   : > { %v14533_v36 = vadd.f32 %v10746_v1, %v7235_v39 }
0x1f3d   : > { %v7245_v50 = vsel %vm2989_vm10, %v14533_v36, 0.0 }
0x1f3e   : > { %7246 = vadd.xlane.f32.xlu1 %v7245_v50  ;;  %v10748_v50 = vld [vmem:[#allocation27] ss:$0 sm:$0xff] }
0x1f40   : > { %v7232_v47 = vpop.f32.mrf.mxu3 }
0x1f41   : > { %v7236_v10 = vadd.f32 %v7232_v47, %v14368_v25 }
0x1f43   : > { %v14538_v41 = vadd.f32 %v10746_v1, %v7236_v10 }
0x1f45   : > { %v7248_v8 = vsel %vm2989_vm10, %v14538_v41, 0.0 }
0x1f46   : > { %7249 = vadd.xlane.f32.xlu2 %v7248_v8 }
0x1fb1   : > { %v7247_v57 = vpop.xlane.xlu1 %7246 }
0x1fb2   : > { %v7251_v35 = vmul.f32 %v7247_v57, %v14372_v59 }
0x1fb4   : > { %v14544_v19 = vsub.f32 %v14533_v36, %v7251_v35 }
0x1fb6   : > { %v7255_v45 = vmul.f32 %v14544_v19, %v14544_v19 }
0x1fb8   : > { %v7257_v25 = vsel %vm2989_vm10, %v7255_v45, 0.0 }
0x1fb9   : > { %7258 = vadd.xlane.f32.xlu0 %v7257_v25  ;;  %v7250_v46 = vpop.xlane.xlu2 %7249  ;;  %v7308_v25 = vld [vmem:[%s15198_s6] sm:$0x3]  ;;  %s15208_s6 = sld [smem:[#allocation57_spill]] }
0x1fba   : > { %v7252_v51 = vmul.f32 %v7250_v46, %v14372_v59  ;;  %v7311_v46 = vperm.slane %v7308_v25, 1 }
0x1fbc   : > { %v14551_v31 = vsub.f32 %v14538_v41, %v7252_v51 }
0x1fbe   : > { %v7256_v14 = vmul.f32 %v14551_v31, %v14551_v31 }
0x1fc0   : > { %v7260_v21 = vsel %vm2989_vm10, %v7256_v14, 0.0 }
0x1fc1   : > { %7261 = vadd.xlane.f32.xlu1 %v7260_v21  ;;  %v7310_v21 = vperm.slane %v7308_v25, 0 }
0x202c   : > { %v7259_v42 = vpop.xlane.xlu0 %7258 }
0x202d   : > { %v7263_v49 = vmul.f32 %v7259_v42, %v14372_v59 }
0x202f   : > { %v7265_v5 = vadd.f32 1e-05, %v7263_v49  ;;  %v10199_v49 = vld [vmem:[%s15199_s10 + $0x78] sm:$0xff] }
0x2030   : > { %7689 = vmatpush.bf16.msra.mxu3 %v10199_v49 }
0x2031   : > { %11076 = vrsqrt.f32 %v7265_v5  ;;  %vm7273_vm15 = vweird.f32 %v7265_v5 }
0x2034   : > { %v7262_v61 = vpop.xlane.xlu1 %7261  ;;  %7690 = vmatpush.bf16.msra.mxu3 %v10198_v40 }
0x2035   : > { %v7264_v48 = vmul.f32 %v7262_v61, %v14372_v59  ;;  %v10190_v61 = vld [vmem:[%s15199_s10 + $0x30] sm:$0xff] }
0x2036   : > { %7676 = vmatpush.bf16.msra.mxu0 %v10190_v61 }
0x2037   : > { %v11077_v17 = vpop.eup %11076  ;;  %v7266_v52 = vadd.f32 1e-05, %v7264_v48 }
0x2038   : > { %v7268_v0 = vmul.f32 %v11077_v17, %v7265_v5  ;;  %vm7274_vm14 = vweird.f32 %v11077_v17  ;;  %7691 = vmatpush.bf16.msra.mxu3 %v10197_v63 }
0x2039   : > { %11078 = vrsqrt.f32 %v7266_v52  ;;  %vm7275_vm2 = vmor %vm7273_vm15, %vm7274_vm14  ;;  %vm7283_vm4 = vweird.f32 %v7266_v52 }
0x203a   : > { %v7269_v53 = vmul.f32 %v11077_v17, %v7268_v0 }
0x203c   : > { %v7270_v55 = vmul.f32 0.5, %v7269_v53 }
0x203e   : > { %v7271_v62 = vsub.f32 1.5, %v7270_v55 }
0x203f   : > { %v11079_v27 = vpop.eup %11078 }
0x2040   : > { %v7272_v9 = vmul.f32 %v11077_v17, %v7271_v62  ;;  %v7278_v43 = vmul.f32 %v11079_v27, %v7266_v52  ;;  %vm7284_vm3 = vweird.f32 %v11079_v27  ;;  %v10189_v62 = vld [vmem:[%s15199_s10 + $0x28] sm:$0xff] }
0x2041   : > { %vm7285_vm5 = vmor %vm7283_vm4, %vm7284_vm3  ;;  %7677 = vmatpush.bf16.msra.mxu0 %v10189_v62 }
0x2042   : > { %v7279_v23 = vmul.f32 %v11079_v27, %v7278_v43  ;;  %v7276_v7 = vsel %vm7275_vm2, %v11077_v17, %v7272_v9  ;;  %v10196_v17 = vld [vmem:[%s15199_s10 + $0x60] sm:$0xff] }
0x2043   : > { %v7287_v1 = vmul.f32 %v7276_v7, %v14544_v19  ;;  %7692 = vmatpush.bf16.msra.mxu3 %v10196_v17  ;;  %v10195_v7 = vld [vmem:[%s15199_s10 + $0x58] sm:$0xff] }
0x2044   : > { %v7280_v13 = vmul.f32 0.5, %v7279_v23 }
0x2045   : > { %v7292_v47 = vmul.f32 %v10747_v34, %v7287_v1 }
0x2046   : > { %v7281_v18 = vsub.f32 1.5, %v7280_v13 }
0x2047   : > { %v7297_v57 = vadd.f32 %v10748_v50, %v7292_v47  ;;  %7693 = vmatpush.bf16.msra.mxu3 %v10195_v7 }
0x2048   : > { %v7282_v56 = vmul.f32 %v11079_v27, %v7281_v18 }
0x204a   : > { %v7286_v39 = vsel %vm7285_vm5, %v11079_v27, %v7282_v56 }
0x204b   : > { %v7288_v10 = vmul.f32 %v7286_v39, %v14551_v31 }
0x204d   : > { %v7293_v8 = vmul.f32 %v10747_v34, %v7288_v10 }
0x204f   : > { %v7298_v35 = vadd.f32 %v10748_v50, %v7293_v8  ;;  %v10188_v50 = vld [vmem:[%s15199_s10 + $0x20] sm:$0xff] }
0x2050   : > { %7678 = vmatpush.bf16.msra.mxu0 %v10188_v50 }
0x2051   : > { %v7307_v45 = vpack.c.bf16 %v7298_v35, %v7297_v57 }
0x2053   : > { %9859 = vmatmul.msk.bf16.vlgmr.msrb.gmra.mxu2 %vm2989_vm10, %v7307_v45  ;;  %9860 = vmatmul.msk.bf16.vlgmr.msra.gmra.mxu1 %vm2989_vm10, %v7307_v45  ;;  %v10194_v45 = vld [vmem:[%s15199_s10 + $0x50] sm:$0xff] }
0x2054   : > { %7694 = vmatpush.bf16.msra.mxu3 %v10194_v45 }
0x20d0   : > { %v7380_v19 = vpop.f32.mrf.mxu1 }
0x20d1   : > { %v14579_v51 = vadd.f32 %v7380_v19, %v7311_v46 }
0x20d3   : > { %v14582_v14 = vmul.f32 0.70710677, %v14579_v51 }
0x20d5   : > { %v7402_v31 = vand.u32 2147483647, %v14582_v14 }
0x20d6   : > { %v7366_v2 = vpop.f32.mrf.mxu2 }
0x20d7   : > { %v7406_v32 = vmul.f32 0.3275911, %v7402_v31  ;;  %v14585_v33 = vadd.f32 %v7366_v2, %v7310_v21  ;;  %v7510_v52 = vsub.f32 0.0, %v7402_v31 }
0x20d8   : > { %v7382_v24 = vpop.f32.mrf.mxu1 }
0x20d9   : > { %v7410_v58 = vadd.f32 1.0, %v7406_v32  ;;  %v14588_v42 = vmul.f32 0.70710677, %v14585_v33  ;;  %v14590_v54 = vadd.f32 %v7382_v24, %v7311_v46  ;;  %v7514_v18 = vmul.f32 %v7510_v52, %v7402_v31  ;;  %v10187_v24 = vld [vmem:[%s15199_s10 + $0x18] sm:$0xff] }
0x20da   : > { %7679 = vmatpush.bf16.msra.mxu0 %v10187_v24 }
0x20db   : > { %11080 = vrcp.f32 %v7410_v58  ;;  %v14594_v16 = vand.u32 2147483647, %v14588_v42  ;;  %v14597_v20 = vmul.f32 0.70710677, %v14590_v54  ;;  %v7439_v48 = vand.u32 2147483648, %v7410_v58 }
0x20dc   : > { %v7437_v4 = vand.u32 2147483647, %v7410_v58  ;;  %vm7433_vm7 = vweird.f32 %v7410_v58  ;;  %v7519_v25 = vmul.f32 1.442695, %v7514_v18  ;;  %v10185_v18 = vld [vmem:[%s15199_s10 + $0x8] sm:$0xff] }
0x20dd   : > { %v7405_v38 = vmul.f32 0.3275911, %v14594_v16  ;;  %v14602_v6 = vand.u32 2147483647, %v14597_v20  ;;  %v7440_v27 = vor.u32 1.1754944e-38, %v7439_v48  ;;  %v7509_v35 = vsub.f32 0.0, %v14594_v16 }
0x20de   : > { %v7368_v5 = vpop.f32.mrf.mxu2  ;;  %vm7438_vm11 = vcmp.eq.f32.partialorder %v7437_v4, 8.507059e+37 }
0x20df   : > { %v14604_v11 = vadd.f32 %v7368_v5, %v7310_v21  ;;  %v14606_v22 = vadd.f32 1.0, %v7405_v38  ;;  %v7408_v30 = vmul.f32 0.3275911, %v14602_v6  ;;  %v7512_v63 = vsub.f32 0.0, %v14602_v6 }
0x20e1   : > { %v11081_v26 = vpop.eup %11080  ;;  %v14611_v60 = vmul.f32 0.70710677, %v14604_v11  ;;  %11082 = vrcp.f32 %v14606_v22  ;;  %v14615_v37 = vadd.f32 1.0, %v7408_v30  ;;  %v7424_v39 = vand.u32 2147483648, %v14606_v22 }
0x20e2   : > { %v7429_v44 = vmul.f32 %v11081_v26, %v7410_v58  ;;  %vm7434_vm6 = vweird.f32 %v11081_v26  ;;  %v7422_v10 = vand.u32 2147483647, %v14606_v22  ;;  %vm7418_vm13 = vweird.f32 %v14606_v22 }
0x20e3   : > { %v14618_v28 = vand.u32 2147483647, %v14611_v60  ;;  %11084 = vrcp.f32 %v14615_v37  ;;  %vm7435_vm8 = vmor %vm7433_vm7, %vm7434_vm6  ;;  %v7425_v31 = vor.u32 1.1754944e-38, %v7424_v39  ;;  %v7467_v2 = vand.u32 2147483647, %v14615_v37 }
0x20e4   : > { %v7430_v3 = vsub.f32 1.0, %v7429_v44  ;;  %v7469_v32 = vand.u32 2147483648, %v14615_v37  ;;  %vm7423_vm15 = vcmp.eq.f32.partialorder %v7422_v10, 8.507059e+37  ;;  %vm7463_vm3 = vweird.f32 %v14615_v37  ;;  %v10184_v10 = vld [vmem:[%s15199_s10] sm:$0xff] }
0x20e5   : > { %v7407_v0 = vmul.f32 0.3275911, %v14618_v28  ;;  %vm7468_vm5 = vcmp.eq.f32.partialorder %v7467_v2, 8.507059e+37  ;;  %v7516_v50 = vmul.f32 %v7512_v63, %v14602_v6 }
0x20e6   : > { %v7431_v12 = vmul.f32 %v11081_v26, %v7430_v3  ;;  %v7470_v61 = vor.u32 1.1754944e-38, %v7469_v32 }
0x20e7   : > { %v11083_v53 = vpop.eup %11082  ;;  %v14626_v43 = vadd.f32 1.0, %v7407_v0 }
0x20e8   : > { %v7432_v55 = vadd.f32 %v11081_v26, %v7431_v12  ;;  %v7414_v9 = vmul.f32 %v11083_v53, %v14606_v22  ;;  %vm7419_vm12 = vweird.f32 %v11083_v53  ;;  %v7513_v22 = vmul.f32 %v7509_v35, %v14594_v16  ;;  %v10186_v16 = vld [vmem:[%s15199_s10 + $0x10] sm:$0xff] }
0x20e9   : > { %11086 = vrcp.f32 %v14626_v43  ;;  %v11085_v1 = vpop.eup %11084  ;;  %vm7420_vm14 = vmor %vm7418_vm13, %vm7419_vm12  ;;  %v7452_v17 = vand.u32 2147483647, %v14626_v43  ;;  %v7454_v52 = vand.u32 2147483648, %v14626_v43  ;;  %7680 = vmatpush.bf16.msra.mxu0 %v10186_v16  ;;  %vm7448_vm7 = vweird.f32 %v14626_v43 }
0x20ea   : > { %v7436_v23 = vsel %vm7435_vm8, %v11081_v26, %v7432_v55  ;;  %v7415_v34 = vsub.f32 1.0, %v7414_v9  ;;  %v7459_v8 = vmul.f32 %v11085_v1, %v14615_v37  ;;  %vm7464_vm2 = vweird.f32 %v11085_v1  ;;  %v10193_v26 = vld [vmem:[%s15199_s10 + $0x48] sm:$0xff]  ;;  %v10192_v55 = vld [vmem:[%s15199_s10 + $0x40] sm:$0xff] }
0x20eb   : > { %v14629_v13 = vsel %vm7438_vm11, %v7440_v27, %v7436_v23  ;;  %vm7465_vm4 = vmor %vm7463_vm3, %vm7464_vm2  ;;  %7695 = vmatpush.bf16.msra.mxu3 %v10193_v26  ;;  %v7517_v23 = vmul.f32 1.442695, %v7513_v22  ;;  %11088 = vpow2.f32 %v7519_v25  ;;  %vm7453_vm11 = vcmp.eq.f32.partialorder %v7452_v17, 8.507059e+37 }
0x20ec   : > { %v7474_v56 = vmul.f32 1.0614054, %v14629_v13  ;;  %v7416_v47 = vmul.f32 %v11083_v53, %v7415_v34  ;;  %v7460_v19 = vsub.f32 1.0, %v7459_v8  ;;  %vm7394_vm12 = vcmp.ge.f32.partialorder %v14582_v14, 0.0 }
0x20ed   : > { %7681 = vmatpush.bf16.msra.mxu0 %v10185_v18  ;;  %11090 = vpow2.f32 %v7517_v23  ;;  %vm7396_vm13 = vcmp.ge.f32.partialorder %v14597_v20, 0.0  ;;  %v7386_v20 = vmul.f32 0.5, %v14579_v51  ;;  %v7388_v18 = vmul.f32 0.5, %v14590_v54 }
0x20ee   : > { %v7478_v57 = vadd.f32 -1.4531521, %v7474_v56  ;;  %v7417_v46 = vadd.f32 %v11083_v53, %v7416_v47  ;;  %v7461_v38 = vmul.f32 %v11085_v1, %v7460_v19  ;;  %v7455_v56 = vor.u32 1.1754944e-38, %v7454_v52 }
0x20ef   : > { %v11087_v58 = vpop.eup %11086  ;;  %7696 = vmatpush.bf16.msra.mxu3 %v10192_v55  ;;  %v7400_v14 = vsel %vm7396_vm13, 1.0, %v12016_v15 }
0x20f0   : > { %v7482_v21 = vmul.f32 %v7478_v57, %v14629_v13  ;;  %v7421_v49 = vsel %vm7420_vm14, %v11083_v53, %v7417_v46  ;;  %v7444_v29 = vmul.f32 %v11087_v58, %v14626_v43  ;;  %v7462_v44 = vadd.f32 %v11085_v1, %v7461_v38 }
0x20f1   : > { %v14644_v40 = vsel %vm7423_vm15, %v7425_v31, %v7421_v49  ;;  %vm7449_vm6 = vweird.f32 %v11087_v58  ;;  %v7511_v43 = vsub.f32 0.0, %v14618_v28  ;;  %7682 = vmatpush.bf16.msra.mxu0 %v10184_v10  ;;  %v11089_v2 = vpop.eup %11088  ;;  %vm7393_vm14 = vcmp.ge.f32.partialorder %v14588_v42, 0.0 }
0x20f2   : > { %v7486_v5 = vadd.f32 1.4214138, %v7482_v21  ;;  %v7473_v30 = vmul.f32 1.0614054, %v14644_v40  ;;  %v7445_v48 = vsub.f32 1.0, %v7444_v29  ;;  %v7466_v4 = vsel %vm7465_vm4, %v11085_v1, %v7462_v44  ;;  %vm7450_vm8 = vmor %vm7448_vm7, %vm7449_vm6 }
0x20f3   : > { %v7471_v37 = vsel %vm7468_vm5, %v7470_v61, %v7466_v4  ;;  %v7523_v21 = vmul.f32 1.442695, %v7516_v50  ;;  %v7515_v24 = vmul.f32 %v7511_v43, %v14618_v28  ;;  %v11091_v44 = vpop.eup %11090  ;;  %vm7395_vm15 = vcmp.ge.f32.partialorder %v14611_v60, 0.0 }
0x20f4   : > { %v7490_v3 = vmul.f32 %v7486_v5, %v14629_v13  ;;  %v7477_v12 = vadd.f32 -1.4531521, %v7473_v30  ;;  %v7446_v53 = vmul.f32 %v11087_v58, %v7445_v48  ;;  %v7476_v27 = vmul.f32 1.0614054, %v7471_v37 }
0x20f5   : > { %11092 = vpow2.f32 %v7523_v21  ;;  %v7521_v26 = vmul.f32 1.442695, %v7515_v24 }
0x20f6   : > { %v7494_v0 = vadd.f32 -0.28449672, %v7490_v3  ;;  %v7481_v62 = vmul.f32 %v7477_v12, %v14644_v40  ;;  %v7447_v7 = vadd.f32 %v11087_v58, %v7446_v53  ;;  %v7480_v1 = vadd.f32 -1.4531521, %v7476_v27 }
0x20f7   : > { %11094 = vpow2.f32 %v7521_v26  ;;  %v7398_v12 = vsel %vm7394_vm12, 1.0, %v12016_v15 }
0x20f8   : > { %v7498_v9 = vmul.f32 %v7494_v0, %v14629_v13  ;;  %v7485_v34 = vadd.f32 1.4214138, %v7481_v62  ;;  %v7451_v47 = vsel %vm7450_vm8, %v11087_v58, %v7447_v7  ;;  %v7484_v57 = vmul.f32 %v7480_v1, %v7471_v37 }
0x20f9   : > { %v7456_v35 = vsel %vm7453_vm11, %v7455_v56, %v7451_v47 }
0x20fa   : > { %v7502_v39 = vadd.f32 0.2548296, %v7498_v9  ;;  %v7489_v8 = vmul.f32 %v7485_v34, %v14644_v40  ;;  %v7475_v45 = vmul.f32 1.0614054, %v7456_v35  ;;  %v7488_v19 = vadd.f32 1.4214138, %v7484_v57 }
0x20fb   : > { %v11093_v28 = vpop.eup %11092  ;;  %v7387_v57 = vmul.f32 0.5, %v14604_v11 }
0x20fc   : > { %v7506_v25 = vmul.f32 %v7502_v39, %v14629_v13  ;;  %v7493_v46 = vadd.f32 -0.28449672, %v7489_v8  ;;  %v7479_v31 = vadd.f32 -1.4531521, %v7475_v45  ;;  %v7492_v32 = vmul.f32 %v7488_v19, %v7471_v37 }
0x20fd   : > { %v11095_v62 = vpop.eup %11094  ;;  %v7399_v39 = vsel %vm7395_vm15, 1.0, %v12016_v15  ;;  %v7385_v8 = vmul.f32 0.5, %v14585_v33 }
0x20fe   : > { %v7497_v6 = vmul.f32 %v7493_v46, %v14644_v40  ;;  %v7483_v58 = vmul.f32 %v7479_v31, %v7456_v35  ;;  %v7526_v49 = vmul.f32 %v11089_v2, %v7506_v25  ;;  %v7496_v5 = vadd.f32 -0.28449672, %v7492_v32  ;;  %v10749_v46 = vld [vmem:[#allocation22] ss:$0 sm:$0xff] }
0x2100   : > { %v7501_v38 = vadd.f32 0.2548296, %v7497_v6  ;;  %v7487_v22 = vadd.f32 1.4214138, %v7483_v58  ;;  %v7500_v29 = vmul.f32 %v7496_v5, %v7471_v37  ;;  %v7530_v63 = vsub.f32 1.0, %v7526_v49 }
0x2102   : > { %v7505_v13 = vmul.f32 %v7501_v38, %v14644_v40  ;;  %v7491_v30 = vmul.f32 %v7487_v22, %v7456_v35  ;;  %v7504_v3 = vadd.f32 0.2548296, %v7500_v29  ;;  %v7534_v17 = vmul.f32 %v7530_v63, %v7398_v12  ;;  %v10206_v63 = vld [vmem:[%s12354_s8 + $0x34] sm:$0xf]  ;;  %v10204_v12 = vld [vmem:[%s12354_s8 + $0x24] sm:$0xf] }
0x2104   : > { %v7525_v61 = vmul.f32 %v11091_v44, %v7505_v13  ;;  %v7495_v48 = vadd.f32 -0.28449672, %v7491_v30  ;;  %v7508_v16 = vmul.f32 %v7504_v3, %v7471_v37  ;;  %v7538_v27 = vadd.f32 1.0, %v7534_v17  ;;  %v9951_v30 = vld [vmem:[%s12354_s8 + $0x30] sm:$0xf] }
0x2105   : > { %v7397_v37 = vsel %vm7393_vm14, 1.0, %v12016_v15  ;;  %v10207_v44 = vld [vmem:[%s12354_s8 + $0x34] sm:$0xf0] }
0x2106   : > { %v7499_v4 = vmul.f32 %v7495_v48, %v7456_v35  ;;  %v7528_v40 = vmul.f32 %v11093_v28, %v7508_v16  ;;  %v7529_v52 = vsub.f32 1.0, %v7525_v61  ;;  %v7542_v1 = vmul.f32 %v7538_v27, %v7386_v20  ;;  %v9953_v61 = vld [vmem:[%s12354_s8 + $0x38] sm:$0xf0]  ;;  %v9943_v16 = vld [vmem:[%s12354_s8 + $0x20] sm:$0xf] }
0x2107   : > { %v9952_v3 = vor.u32 %v10207_v44, %v9951_v30  ;;  %v9956_v48 = vor.u32 %v10206_v63, %v9953_v61  ;;  %v10205_v28 = vld [vmem:[%s12354_s8 + $0x24] sm:$0xf0]  ;;  %v10202_v27 = vld [vmem:[%s12354_s8 + $0x14] sm:$0xf]  ;;  %v10200_v20 = vld [vmem:[%s12354_s8 + $0x4] sm:$0xf] }
0x2108   : > { %v7503_v0 = vadd.f32 0.2548296, %v7499_v4  ;;  %v7532_v53 = vsub.f32 1.0, %v7528_v40  ;;  %v7533_v23 = vmul.f32 %v7529_v52, %v7397_v37  ;;  %v9944_v17 = vor.u32 %v10205_v28, %v9943_v16  ;;  %v9945_v40 = vld [vmem:[%s12354_s8 + $0x28] sm:$0xf0] }
0x2109   : > { %7829 = vmatpush.bf16.msra.mxu2 %v9952_v3  ;;  %7843 = vmatpush.bf16.msrb.mxu1 %v9956_v48  ;;  %v9937_v37 = vld [vmem:[%s12354_s8 + $0x18] sm:$0xf0] }
0x210a   : > { %v7507_v55 = vmul.f32 %v7503_v0, %v7456_v35  ;;  %v7536_v9 = vmul.f32 %v7532_v53, %v7400_v14  ;;  %v7537_v50 = vadd.f32 1.0, %v7533_v23  ;;  %v9948_v0 = vor.u32 %v10204_v12, %v9945_v40  ;;  %v9935_v14 = vld [vmem:[%s12354_s8 + $0x10] sm:$0xf]  ;;  %v9927_v23 = vld [vmem:[%s12354_s8] sm:$0xf] }
0x210c   : > { %v7527_v7 = vmul.f32 %v11095_v62, %v7507_v55  ;;  %v7540_v42 = vadd.f32 1.0, %v7536_v9  ;;  %v7541_v60 = vmul.f32 %v7537_v50, %v7385_v8  ;;  %v10203_v55 = vld [vmem:[%s12354_s8 + $0x14] sm:$0xf0]  ;;  %v9940_v9 = vor.u32 %v10202_v27, %v9937_v37 }
0x210d   : > { %7830 = vmatpush.bf16.msra.mxu2 %v9944_v17  ;;  %7844 = vmatpush.bf16.msrb.mxu1 %v9948_v0  ;;  %v9936_v62 = vor.u32 %v10203_v55, %v9935_v14 }
0x210e   : > { %v7531_v34 = vsub.f32 1.0, %v7527_v7  ;;  %v7544_v56 = vmul.f32 %v7540_v42, %v7388_v18  ;;  %v10201_v7 = vld [vmem:[%s12354_s8 + $0x4] sm:$0xf0]  ;;  %v9929_v42 = vld [vmem:[%s12354_s8 + $0x8] sm:$0xf0] }
0x210f   : > { %v9928_v18 = vor.u32 %v10201_v7, %v9927_v23 }
0x2110   : > { %v7535_v47 = vmul.f32 %v7531_v34, %v7399_v39  ;;  %v7578_v10 = vpack.c.bf16 %v7544_v56, %v7542_v1  ;;  %v9932_v34 = vor.u32 %v10200_v20, %v9929_v42 }
0x2111   : > { %7831 = vmatpush.bf16.msra.mxu2 %v9936_v62  ;;  %7845 = vmatpush.bf16.msrb.mxu1 %v9940_v9 }
0x2112   : > { %v7539_v35 = vadd.f32 1.0, %v7535_v47  ;;  %7697 = vmatmul.bf16.vlgmr.msra.gmra.mxu3 %v7578_v10 }
0x2114   : > { %v7543_v43 = vmul.f32 %v7539_v35, %v7387_v57 }
0x2115   : > { %7832 = vmatpush.bf16.msra.mxu2 %v9928_v18  ;;  %7846 = vmatpush.bf16.msrb.mxu1 %v9932_v34 }
0x2116   : > { %v7577_v51 = vpack.c.bf16 %v7543_v43, %v7541_v60 }
0x2118   : > { %7683 = vmatmul.bf16.vlgmr.msra.gmra.mxu0 %v7577_v51 }
0x2195   : > { %v7684_v54 = vpop.f32.mrf.mxu0  ;;  %v7698_v45 = vpop.f32.mrf.mxu3 }
0x2196   : > { %v7699_v25 = vadd.f32 %v7698_v45, %v7684_v54 }
0x2198   : > { %v7703_v19 = vadd.f32 %v7699_v25, %v14533_v36 }
0x219a   : > { %v14682_v21 = vadd.f32 %v10749_v46, %v7703_v19 }
0x219c   : > { %v7713_v31 = vsel %vm2989_vm10, %v14682_v21, 0.0 }
0x219d   : > { %v7686_v33 = vpop.f32.mrf.mxu0  ;;  %v7700_v2 = vpop.f32.mrf.mxu3  ;;  %7714 = vadd.xlane.f32.xlu0 %v7713_v31 }
0x219e   : > { %v7701_v11 = vadd.f32 %v7700_v2, %v7686_v33  ;;  %v10751_v2 = vld [vmem:[#allocation33] ss:$0 sm:$0xff] }
0x21a0   : > { %v7704_v6 = vadd.f32 %v7701_v11, %v14538_v41 }
0x21a2   : > { %v14687_v32 = vadd.f32 %v10749_v46, %v7704_v6  ;;  %v10750_v46 = vld [vmem:[#allocation34] ss:$0 sm:$0xff] }
0x21a4   : > { %v7716_v24 = vsel %vm2989_vm10, %v14687_v32, 0.0 }
0x21a5   : > { %7717 = vadd.xlane.f32.xlu1 %v7716_v24 }
0x2210   : > { %v7715_v36 = vpop.xlane.xlu0 %7714 }
0x2211   : > { %v7719_v58 = vmul.f32 %v7715_v36, %v14372_v59 }
0x2213   : > { %v14693_v49 = vsub.f32 %v14682_v21, %v7719_v58 }
0x2215   : > { %v7723_v38 = vmul.f32 %v14693_v49, %v14693_v49 }
0x2217   : > { %v7725_v41 = vsel %vm2989_vm10, %v7723_v38, 0.0 }
0x2218   : > { %7726 = vadd.xlane.f32.xlu0 %v7725_v41  ;;  %v7718_v5 = vpop.xlane.xlu1 %7717 }
0x2219   : > { %v7720_v22 = vmul.f32 %v7718_v5, %v14372_v59  ;;  %v7776_v5 = vld [vmem:[%s12349_s20] sm:$0x3] }
0x221a   : > { %v7778_v44 = vperm.slane %v7776_v5, 0 }
0x221b   : > { %v14700_v13 = vsub.f32 %v14687_v32, %v7720_v22  ;;  %v7779_v22 = vperm.slane %v7776_v5, 1 }
0x221d   : > { %v7724_v29 = vmul.f32 %v14700_v13, %v14700_v13 }
0x221f   : > { %v7728_v26 = vsel %vm2989_vm10, %v7724_v29, 0.0 }
0x2220   : > { %7729 = vadd.xlane.f32.xlu1 %v7728_v26 }
0x228b   : > { %v7727_v4 = vpop.xlane.xlu0 %7726 }
0x228c   : > { %v7731_v52 = vmul.f32 %v7727_v4, %v14372_v59 }
0x228e   : > { %v7733_v53 = vadd.f32 1e-05, %v7731_v52 }
0x2290   : > { %11096 = vrsqrt.f32 %v7733_v53  ;;  %vm7741_vm3 = vweird.f32 %v7733_v53 }
0x2293   : > { %v7730_v1 = vpop.xlane.xlu1 %7729 }
0x2294   : > { %v7732_v56 = vmul.f32 %v7730_v1, %v14372_v59 }
0x2296   : > { %v11097_v39 = vpop.eup %11096  ;;  %v7734_v50 = vadd.f32 1e-05, %v7732_v56 }
0x2297   : > { %v7736_v47 = vmul.f32 %v11097_v39, %v7733_v53  ;;  %vm7742_vm2 = vweird.f32 %v11097_v39 }
0x2298   : > { %11098 = vrsqrt.f32 %v7734_v50  ;;  %vm7743_vm4 = vmor %vm7741_vm3, %vm7742_vm2  ;;  %vm7751_vm6 = vweird.f32 %v7734_v50 }
0x2299   : > { %v7737_v10 = vmul.f32 %v11097_v39, %v7736_v47 }
0x229b   : > { %v7738_v8 = vmul.f32 0.5, %v7737_v10 }
0x229d   : > { %v7739_v57 = vsub.f32 1.5, %v7738_v8 }
0x229e   : > { %v11099_v35 = vpop.eup %11098 }
0x229f   : > { %v7740_v60 = vmul.f32 %v11097_v39, %v7739_v57  ;;  %v7746_v43 = vmul.f32 %v11099_v35, %v7734_v50  ;;  %vm7752_vm5 = vweird.f32 %v11099_v35 }
0x22a0   : > { %vm7753_vm7 = vmor %vm7751_vm6, %vm7752_vm5 }
0x22a1   : > { %v7747_v51 = vmul.f32 %v11099_v35, %v7746_v43  ;;  %v7744_v54 = vsel %vm7743_vm4, %v11097_v39, %v7740_v60 }
0x22a2   : > { %v7755_v19 = vmul.f32 %v7744_v54, %v14693_v49 }
0x22a3   : > { %v7748_v45 = vmul.f32 0.5, %v7747_v51 }
0x22a4   : > { %v7760_v11 = vmul.f32 %v10750_v46, %v7755_v19 }
0x22a5   : > { %v7749_v25 = vsub.f32 1.5, %v7748_v45 }
0x22a6   : > { %v7765_v36 = vadd.f32 %v10751_v2, %v7760_v11 }
0x22a7   : > { %v7750_v31 = vmul.f32 %v11099_v35, %v7749_v25 }
0x22a9   : > { %v7754_v33 = vsel %vm7753_vm7, %v11099_v35, %v7750_v31 }
0x22aa   : > { %v7756_v6 = vmul.f32 %v7754_v33, %v14700_v13 }
0x22ac   : > { %v7761_v24 = vmul.f32 %v10750_v46, %v7756_v6 }
0x22ae   : > { %v7766_v58 = vadd.f32 %v10751_v2, %v7761_v24 }
0x22b0   : > { %v7775_v38 = vpack.c.bf16 %v7766_v58, %v7765_v36 }
0x22b2   : > { %9957 = vmatmul.msk.bf16.vlgmr.msra.gmra.mxu2 %vm2989_vm10, %v7775_v38  ;;  %9958 = vmatmul.msk.bf16.vlgmr.msrb.gmra.mxu1 %vm2989_vm10, %v7775_v38 }
0x232f   : > { %v7848_v41 = vpop.f32.mrf.mxu1 }
0x2330   : > { %v7849_v26 = vadd.f32 %v7848_v41, %v7779_v22 }
0x2335   : > { %v7834_v49 = vpop.f32.mrf.mxu2 }
0x2336   : > { %v7835_v3 = vadd.f32 %v7834_v49, %v7778_v44 }
0x2337   : > { %v7850_v29 = vpop.f32.mrf.mxu1 }
0x2338   : > { %v7851_v30 = vadd.f32 %v7850_v29, %v7779_v22 }
0x233a   : > { %v14728_v63 = vpack.c.bf16 %v7851_v30, %v7849_v26 }
0x233c   : > { %7978 = vmatpush.bf16.msra.mxu1 %v14728_v63 }
0x233d   : > { %v7836_v13 = vpop.f32.mrf.mxu2 }
0x233e   : > { %v7837_v61 = vadd.f32 %v7836_v13, %v7778_v44 }
0x2340   : > { %v10670_v48 = vpack.i.bf16 %v7837_v61, %v7835_v3  ;;  %v7853_v16 = vpack.c.bf16 %v7837_v61, %v7835_v3 }
0x2342   : > { %10671 = vrot.lane.b32.xlu2 %v10670_v48, %s15192_s7  ;;  %10666 = vrot.lane.b32.xlu1 %v10670_v48, %s15189_s2 }
0x2343   : > { %10661 = vrot.lane.b32.xlu0 %v10670_v48, %s15175_s1  ;;  %s15200_s1 = sld [smem:[#allocation99_spill]] }
0x2349   : > { %v9962_v19 = vld [vmem:[%s15200_s1 + $0x10] sm:$0xff]  ;;  %v7915_v6 = vld [vmem:[%s15200_s1] sm:$0xff]  ;;  %v9963_v58 = vld [vmem:[%s15200_s1 + $0x18] sm:$0xff] }
0x234a   : > { %8294 = vrot.lane.b32.xlu2 %v7853_v16, %s15193_s9  ;;  %8025 = vrot.lane.b32.xlu1 %v7853_v16, %s15190_s4  ;;  %v7916_v26 = vld [vmem:[%s15200_s1 + $0x8] sm:$0xff] }
0x234b   : > { %10676 = vrot.lane.b32.xlu0 %v10670_v48, %s15179_s5  ;;  %v9970_v48 = vld [vmem:[%s15200_s1 + $0x30] sm:$0xff] }
0x2352   : > { %8160 = vrot.lane.b32.xlu1 %v7853_v16, %s15183_s3 }
0x239c   : > { %v10672_v52 = vpop.permute.xlu2 %10671 }
0x239d   : > { %v10673_v55 = vunpack.i.l.bf16 %v10672_v52  ;;  %v10674_v23 = vunpack.i.h.bf16 %v10672_v52 }
0x23a4   : > { %v8295_v25 = vpop.permute.xlu2 %8294 }
0x23b4   : > { %v10667_v28 = vpop.permute.xlu1 %10666 }
0x23b5   : > { %v10668_v12 = vunpack.i.l.bf16 %v10667_v28  ;;  %v10662_v4 = vpop.permute.xlu0 %10661  ;;  %v10669_v0 = vunpack.i.h.bf16 %v10667_v28  ;;  %v9971_v28 = vld [vmem:[%s15200_s1 + $0x38] sm:$0xff] }
0x23b6   : > { %v10663_v17 = vunpack.i.l.bf16 %v10662_v4  ;;  %v10664_v53 = vunpack.i.h.bf16 %v10662_v4 }
0x23b8   : > { %v10680_v40 = vpack.i.bf16 %v10668_v12, %v10663_v17  ;;  %v10682_v27 = vpack.i.bf16 %v10669_v0, %v10664_v53 }
0x23ba   : > { %10681 = vxpose.xlu0.b32.start [1/2] (short) (narrow) %v10680_v40, 16 }
0x23bc   : > { %v8026_v20 = vpop.permute.xlu1 %8025 }
0x23bd   : > { %v10677_v14 = vpop.permute.xlu0 %10676 }
0x23be   : > { %v10678_v62 = vunpack.i.l.bf16 %v10677_v14  ;;  %v10679_v9 = vunpack.i.h.bf16 %v10677_v14  ;;  %v9966_v14 = vld [vmem:[%s15200_s1 + $0x20] sm:$0xff] }
0x23c0   : > { %v10694_v37 = vpack.i.bf16 %v10678_v62, %v10673_v55  ;;  %v10696_v7 = vpack.i.bf16 %v10679_v9, %v10674_v23  ;;  %v9967_v9 = vld [vmem:[%s15200_s1 + $0x28] sm:$0xff] }
0x23c2   : > { %10683 = vxpose.xlu0.b32.end [2/2] (short) (narrow) %v10682_v27, 16  ;;  %10695 = vxpose.xlu1.b32.start [1/2] (short) (narrow) %v10694_v37, 16 }
0x23c4   : > { %v8161_v18 = vpop.permute.xlu1 %8160 }
0x23ca   : > { %10697 = vxpose.xlu1.b32.end [2/2] (short) (narrow) %v10696_v7, 16 }
0x245e   : > { %v10684_v42 = vpop.trf.xlu0 }
0x245f   : > { %v10688_v34 = vunpack.i.h.bf16 %v10684_v42  ;;  %v10685_v1 = vunpack.i.l.bf16 %v10684_v42 }
0x2466   : > { %v10689_v56 = vpop.trf.xlu0  ;;  %v10698_v39 = vpop.trf.xlu1 }
0x2467   : > { %v10693_v50 = vunpack.i.h.bf16 %v10689_v56  ;;  %v10690_v47 = vunpack.i.l.bf16 %v10689_v56  ;;  %v10702_v57 = vunpack.i.h.bf16 %v10698_v39  ;;  %v10699_v35 = vunpack.i.l.bf16 %v10698_v39 }
0x2469   : > { %v7894_v10 = vpack.c.bf16 %v10690_v47, %v10685_v1  ;;  %v8023_v8 = vpack.c.bf16 %v10693_v50, %v10688_v34 }
0x246b   : > { %7906 = vmatpush.bf16.msrb.mxu2 %v7894_v10  ;;  %8037 = vmatpush.bf16.msrb.mxu0 %v8023_v8 }
0x246e   : > { %9961 = vmatmul.msk.bf16.vlgmr.msrb.gmra.mxu0 %vm2923_vm9, %v8026_v20  ;;  %9959 = vmatmul.msk.bf16.vlgmr.msrb.gmra.mxu2 %vm2923_vm9, %v7853_v16  ;;  %v10703_v60 = vpop.trf.xlu1 }
0x246f   : > { %v10707_v43 = vunpack.i.h.bf16 %v10703_v60  ;;  %v10704_v51 = vunpack.i.l.bf16 %v10703_v60 }
0x2471   : > { %v8159_v54 = vpack.c.bf16 %v10704_v51, %v10699_v35  ;;  %v8293_v45 = vpack.c.bf16 %v10707_v43, %v10702_v57 }
0x2473   : > { %8172 = vmatpush.bf16.msra.mxu2 %v8159_v54  ;;  %8306 = vmatpush.bf16.msra.mxu0 %v8293_v45 }
0x247e   : > { %9965 = vmatmul.msk.bf16.vlgmr.msra.gmra.mxu2 %vm2923_vm9, %v8161_v18  ;;  %9969 = vmatmul.msk.bf16.vlgmr.msra.gmra.mxu0 %vm2923_vm9, %v8295_v25 }
0x24eb   : > { %v8039_v46 = vpop.f32.mrf.mxu0 }
0x24ec   : > { %v8044_v31 = vmul.f32 0.25, %v8039_v46 }
0x24ee   : > { %v8049_v33 = vadd.f32 %v9962_v19, %v8044_v31 }
0x24f0   : > { %v8051_v2 = vsel %vm2923_vm9, %v8049_v33, -inf }
0x24f1   : > { %8052 = vmax.xlane.f32.xlu2 %v8051_v2  ;;  %v7908_v11 = vpop.f32.mrf.mxu2 }
0x24f2   : > { %v7913_v24 = vmul.f32 0.25, %v7908_v11 }
0x24f3   : > { %v8041_v36 = vpop.f32.mrf.mxu0 }
0x24f4   : > { %v7917_v38 = vadd.f32 %v7915_v6, %v7913_v24  ;;  %v8045_v41 = vmul.f32 0.25, %v8041_v36 }
0x24f6   : > { %v8050_v5 = vadd.f32 %v9963_v58, %v8045_v41  ;;  %v7919_v49 = vsel %vm2923_vm9, %v7917_v38, -inf }
0x24f8   : > { %v8054_v22 = vsel %vm2923_vm9, %v8050_v5, -inf }
0x24f9   : > { %8055 = vmax.xlane.f32.xlu0 %v8054_v22  ;;  %7920 = vmax.xlane.f32.xlu2 %v7919_v49  ;;  %v7910_v29 = vpop.f32.mrf.mxu2 }
0x24fa   : > { %v7914_v30 = vmul.f32 0.25, %v7910_v29 }
0x24fb   : > { %v8308_v44 = vpop.f32.mrf.mxu0 }
0x24fc   : > { %v7918_v13 = vadd.f32 %v7916_v26, %v7914_v30  ;;  %v8313_v3 = vmul.f32 0.25, %v8308_v44 }
0x24fe   : > { %v7922_v61 = vsel %vm2923_vm9, %v7918_v13, -inf  ;;  %v8318_v12 = vadd.f32 %v9970_v48, %v8313_v3 }
0x2500   : > { %v8320_v53 = vsel %vm2923_vm9, %v8318_v12, -inf }
0x2501   : > { %7923 = vmax.xlane.f32.xlu2 %v7922_v61  ;;  %v8174_v17 = vpop.f32.mrf.mxu2 }
0x2502   : > { %v8179_v52 = vmul.f32 0.25, %v8174_v17 }
0x2503   : > { %v8310_v16 = vpop.f32.mrf.mxu0 }
0x2504   : > { %v8314_v4 = vmul.f32 0.25, %v8310_v16  ;;  %v8184_v55 = vadd.f32 %v9966_v14, %v8179_v52 }
0x2506   : > { %v8319_v40 = vadd.f32 %v9971_v28, %v8314_v4  ;;  %v8186_v62 = vsel %vm2923_vm9, %v8184_v55, -inf }
0x2508   : > { %v8323_v0 = vsel %vm2923_vm9, %v8319_v40, -inf }
0x2509   : > { %8324 = vmax.xlane.f32.xlu1 %v8323_v0  ;;  %8321 = vmax.xlane.f32.xlu2 %v8320_v53  ;;  %v8176_v27 = vpop.f32.mrf.mxu2 }
0x250a   : > { %v8180_v37 = vmul.f32 0.25, %v8176_v27 }
0x250c   : > { %v8185_v23 = vadd.f32 %v9967_v9, %v8180_v37 }
0x250e   : > { %v8189_v7 = vsel %vm2923_vm9, %v8185_v23, -inf }
0x2511   : > { %8187 = vmax.xlane.f32.xlu2 %v8186_v62 }
0x2529   : > { %8101 = vrot.lane.b32.xlu2 %v14728_v63, %s15190_s4  ;;  %s15209_s4 = sld [smem:[#allocation56_spill]] }
0x2552   : > { %8190 = vmax.xlane.f32.xlu2 %v8189_v7 }
0x2564   : > { %v8053_v20 = vpop.xlane.xlu2 %8052 }
0x2565   : > { %v8057_v18 = vsub.f32 %v8049_v33, %v8053_v20 }
0x2567   : > { %v8059_v42 = vmul.f32 1.442695, %v8057_v18 }
0x2569   : > { %11100 = vpow2.f32 %v8059_v42 }
0x256c   : > { %v7921_v34 = vpop.xlane.xlu2 %7920  ;;  %v8056_v1 = vpop.xlane.xlu0 %8055 }
0x256d   : > { %v7925_v56 = vsub.f32 %v7917_v38, %v7921_v34  ;;  %v8058_v47 = vsub.f32 %v8050_v5, %v8056_v1 }
0x256f   : > { %v14760_v39 = vpop.eup %11100  ;;  %v7927_v50 = vmul.f32 1.442695, %v7925_v56  ;;  %v8061_v8 = vmul.f32 1.442695, %v8058_v47 }
0x2570   : > { %v8063_v10 = vsel %vm2923_vm9, %v14760_v39, 0.0 }
0x2571   : > { %8064 = vadd.xlane.f32.xlu2 %v8063_v10  ;;  %11102 = vpow2.f32 %v7927_v50 }
0x2572   : > { %11104 = vpow2.f32 %v8061_v8 }
0x2574   : > { %v7924_v57 = vpop.xlane.xlu2 %7923 }
0x2575   : > { %v7926_v60 = vsub.f32 %v7918_v13, %v7924_v57 }
0x2577   : > { %v14764_v35 = vpop.eup %11102  ;;  %v7929_v51 = vmul.f32 1.442695, %v7926_v60 }
0x2578   : > { %v7931_v43 = vsel %vm2923_vm9, %v14764_v35, 0.0  ;;  %v14768_v45 = vpop.eup %11104 }
0x2579   : > { %7932 = vadd.xlane.f32.xlu2 %v7931_v43  ;;  %11106 = vpow2.f32 %v7929_v51  ;;  %v8066_v46 = vsel %vm2923_vm9, %v14768_v45, 0.0 }
0x257c   : > { %v8322_v54 = vpop.xlane.xlu2 %8321  ;;  %v8325_v33 = vpop.xlane.xlu1 %8324 }
0x257d   : > { %v8326_v25 = vsub.f32 %v8318_v12, %v8322_v54  ;;  %v8327_v24 = vsub.f32 %v8319_v40, %v8325_v33 }
0x257f   : > { %v8328_v19 = vmul.f32 1.442695, %v8326_v25  ;;  %v14772_v11 = vpop.eup %11106  ;;  %v8330_v58 = vmul.f32 1.442695, %v8327_v24 }
0x2580   : > { %v7934_v36 = vsel %vm2923_vm9, %v14772_v11, 0.0 }
0x2581   : > { %8067 = vadd.xlane.f32.xlu2 %v8066_v46  ;;  %11108 = vpow2.f32 %v8328_v19 }
0x2584   : > { %v8188_v31 = vpop.xlane.xlu2 %8187 }
0x2585   : > { %v8192_v2 = vsub.f32 %v8184_v55, %v8188_v31 }
0x2587   : > { %v8194_v6 = vmul.f32 1.442695, %v8192_v2  ;;  %v14776_v41 = vpop.eup %11108 }
0x2588   : > { %v8332_v49 = vsel %vm2923_vm9, %v14776_v41, 0.0 }
0x2589   : > { %11110 = vpow2.f32 %v8194_v6  ;;  %7935 = vadd.xlane.f32.xlu2 %v7934_v36 }
0x258a   : > { %11112 = vpow2.f32 %v8330_v58 }
0x258c   : > { %v8102_v38 = vpop.permute.xlu2 %8101 }
0x258d   : > { %8114 = vmatpush.bf16.msrb.mxu3 %v8102_v38 }
0x258f   : > { %v14778_v5 = vpop.eup %11110 }
0x2590   : > { %v8198_v22 = vsel %vm2923_vm9, %v14778_v5, 0.0  ;;  %v14784_v29 = vpop.eup %11112 }
0x2591   : > { %8199 = vadd.xlane.f32.xlu0 %v8198_v22  ;;  %8333 = vadd.xlane.f32.xlu2 %v8332_v49  ;;  %v8335_v26 = vsel %vm2923_vm9, %v14784_v29, 0.0 }
0x2599   : > { %8336 = vadd.xlane.f32.xlu2 %v8335_v26 }
0x25b1   : > { %8369 = vrot.lane.b32.xlu2 %v14728_v63, %s15193_s9  ;;  %s15203_s9 = sld [smem:[#allocation101_spill]] }
0x25c5   : > { %v8191_v30 = vpop.xlane.xlu2 %8190 }
0x25c6   : > { %v8193_v44 = vsub.f32 %v8185_v23, %v8191_v30 }
0x25c8   : > { %v8196_v13 = vmul.f32 1.442695, %v8193_v44 }
0x25ca   : > { %11114 = vpow2.f32 %v8196_v13 }
0x25d0   : > { %v14790_v3 = vpop.eup %11114 }
0x25d1   : > { %v8201_v61 = vsel %vm2923_vm9, %v14790_v3, 0.0 }
0x25d2   : > { %8202 = vadd.xlane.f32.xlu0 %v8201_v61 }
0x25e4   : > { %v8065_v48 = vpop.xlane.xlu2 %8064 }
0x25e5   : > { %11116 = vrcp.f32 %v8065_v48  ;;  %v8080_v37 = vand.u32 2147483648, %v8065_v48  ;;  %vm8074_vm11 = vweird.f32 %v8065_v48 }
0x25e6   : > { %8235 = vrot.lane.b32.xlu0 %v14728_v63, %s15183_s3  ;;  %v8078_v63 = vand.u32 2147483647, %v8065_v48  ;;  %s15206_s3 = sld [smem:[#allocation59_spill]] }
0x25e7   : > { %v8081_v34 = vor.u32 1.1754944e-38, %v8080_v37 }
0x25e8   : > { %vm8079_vm14 = vcmp.eq.f32.partialorder %v8078_v63, 8.507059e+37 }
0x25eb   : > { %v11117_v28 = vpop.eup %11116 }
0x25ec   : > { %v7933_v16 = vpop.xlane.xlu2 %7932  ;;  %v8070_v12 = vmul.f32 %v11117_v28, %v8065_v48  ;;  %vm8075_vm8 = vweird.f32 %v11117_v28 }
0x25ed   : > { %11118 = vrcp.f32 %v7933_v16  ;;  %vm8076_vm12 = vmor %vm8074_vm11, %vm8075_vm8  ;;  %vm7942_vm5 = vweird.f32 %v7933_v16  ;;  %v7946_v43 = vand.u32 2147483647, %v7933_v16  ;;  %v7948_v51 = vand.u32 2147483648, %v7933_v16 }
0x25ee   : > { %v8071_v17 = vsub.f32 1.0, %v8070_v12 }
0x25ef   : > { %v7949_v58 = vor.u32 1.1754944e-38, %v7948_v51  ;;  %vm7947_vm8 = vcmp.eq.f32.partialorder %v7946_v43, 8.507059e+37 }
0x25f0   : > { %v8072_v0 = vmul.f32 %v11117_v28, %v8071_v17 }
0x25f2   : > { %v8073_v55 = vadd.f32 %v11117_v28, %v8072_v0 }
0x25f3   : > { %v11119_v4 = vpop.eup %11118 }
0x25f4   : > { %v8068_v40 = vpop.xlane.xlu2 %8067  ;;  %v7938_v52 = vmul.f32 %v11119_v4, %v7933_v16  ;;  %v8077_v20 = vsel %vm8076_vm12, %v11117_v28, %v8073_v55  ;;  %vm7943_vm2 = vweird.f32 %v11119_v4 }
0x25f5   : > { %11120 = vrcp.f32 %v8068_v40  ;;  %v8095_v7 = vand.u32 2147483648, %v8068_v40  ;;  %v8093_v42 = vand.u32 2147483647, %v8068_v40  ;;  %vm8089_vm15 = vweird.f32 %v8068_v40  ;;  %vm14797_vm6 = vmor %vm7942_vm5, %vm7943_vm2 }
0x25f6   : > { %v7939_v14 = vsub.f32 1.0, %v7938_v52  ;;  %v8082_v50 = vsel %vm8079_vm14, %v8081_v34, %v8077_v20 }
0x25f7   : > { %v8096_v10 = vor.u32 1.1754944e-38, %v8095_v7  ;;  %vm8094_vm4 = vcmp.eq.f32.partialorder %v8093_v42, 8.507059e+37  ;;  %v8083_v25 = vmul.f32 %v14760_v39, %v8082_v50 }
0x25f8   : > { %v7940_v23 = vmul.f32 %v11119_v4, %v7939_v14 }
0x25fa   : > { %v7941_v47 = vadd.f32 %v11119_v4, %v7940_v23 }
0x25fb   : > { %v11121_v53 = vpop.eup %11120 }
0x25fc   : > { %v8085_v62 = vmul.f32 %v11121_v53, %v8068_v40  ;;  %v7936_v27 = vpop.xlane.xlu2 %7935  ;;  %vm8090_vm13 = vweird.f32 %v11121_v53  ;;  %v7945_v33 = vsel %vm14797_vm6, %v11119_v4, %v7941_v47 }
0x25fd   : > { %11122 = vrcp.f32 %v7936_v27  ;;  %vm8091_vm3 = vmor %vm8089_vm15, %vm8090_vm13  ;;  %v7963_v2 = vand.u32 2147483648, %v7936_v27  ;;  %v7961_v36 = vand.u32 2147483647, %v7936_v27  ;;  %vm7957_vm11 = vweird.f32 %v7936_v27 }
0x25fe   : > { %v8086_v9 = vsub.f32 1.0, %v8085_v62  ;;  %v7950_v39 = vsel %vm7947_vm8, %v7949_v58, %v7945_v33 }
0x25ff   : > { %v7964_v22 = vor.u32 1.1754944e-38, %v7963_v2  ;;  %vm7962_vm13 = vcmp.eq.f32.partialorder %v7961_v36, 8.507059e+37  ;;  %v7951_v13 = vmul.f32 %v14764_v35, %v7950_v39 }
0x2600   : > { %v8087_v18 = vmul.f32 %v11121_v53, %v8086_v9 }
0x2602   : > { %v8088_v1 = vadd.f32 %v11121_v53, %v8087_v18 }
0x2603   : > { %v11123_v56 = vpop.eup %11122 }
0x2604   : > { %v8092_v8 = vsel %vm8091_vm3, %v11121_v53, %v8088_v1  ;;  %v7953_v57 = vmul.f32 %v11123_v56, %v7936_v27  ;;  %v8334_v60 = vpop.xlane.xlu2 %8333  ;;  %vm7958_vm7 = vweird.f32 %v11123_v56  ;;  %v8200_v42 = vpop.xlane.xlu0 %8199 }
0x2605   : > { %v8097_v54 = vsel %vm8094_vm4, %v8096_v10, %v8092_v8  ;;  %11124 = vrcp.f32 %v8334_v60  ;;  %vm7959_vm12 = vmor %vm7957_vm11, %vm7958_vm7  ;;  %v8349_v52 = vand.u32 2147483648, %v8334_v60  ;;  %vm8343_vm15 = vweird.f32 %v8334_v60 }
0x2606   : > { %v8098_v19 = vmul.f32 %v14768_v45, %v8097_v54  ;;  %v7954_v31 = vsub.f32 1.0, %v7953_v57  ;;  %v8347_v0 = vand.u32 2147483647, %v8334_v60  ;;  %vm8209_vm11 = vweird.f32 %v8200_v42 }
0x2607   : > { %v8350_v62 = vor.u32 1.1754944e-38, %v8349_v52 }
0x2608   : > { %v8099_v6 = vpack.c.bf16 %v8098_v19, %v8083_v25  ;;  %v7955_v24 = vmul.f32 %v11123_v56, %v7954_v31  ;;  %vm8348_vm4 = vcmp.eq.f32.partialorder %v8347_v0, 8.507059e+37 }
0x260a   : > { %v7956_v38 = vadd.f32 %v11123_v56, %v7955_v24  ;;  %9964 = vmatmul.msk.bf16.vlgmr.msrb.gmra.mxu3 %vm2923_vm9, %v8099_v6 }
0x260b   : > { %v11125_v45 = vpop.eup %11124 }
0x260c   : > { %v7960_v49 = vsel %vm7959_vm12, %v11123_v56, %v7956_v38  ;;  %v8337_v26 = vpop.xlane.xlu2 %8336  ;;  %v8339_v44 = vmul.f32 %v11125_v45, %v8334_v60  ;;  %vm8344_vm14 = vweird.f32 %v11125_v45  ;;  %v8215_v60 = vand.u32 2147483648, %v8200_v42 }
0x260d   : > { %v7965_v30 = vsel %vm7962_vm13, %v7964_v22, %v7960_v49  ;;  %11126 = vrcp.f32 %v8337_v26  ;;  %vm8345_vm2 = vmor %vm8343_vm15, %vm8344_vm14  ;;  %v8364_v35 = vand.u32 2147483648, %v8337_v26  ;;  %v8362_v55 = vand.u32 2147483647, %v8337_v26 }
0x260e   : > { %v7966_v61 = vmul.f32 %v14772_v11, %v7965_v30  ;;  %v8340_v48 = vsub.f32 1.0, %v8339_v44  ;;  %vm8358_vm5 = vweird.f32 %v8337_v26  ;;  %11128 = vrcp.f32 %v8200_v42 }
0x260f   : > { %v8365_v63 = vor.u32 1.1754944e-38, %v8364_v35  ;;  %vm8363_vm7 = vcmp.eq.f32.partialorder %v8362_v55, 8.507059e+37  ;;  %v8216_v46 = vor.u32 1.1754944e-38, %v8215_v60 }
0x2610   : > { %v7967_v16 = vpack.c.bf16 %v7966_v61, %v7951_v13  ;;  %v8341_v28 = vmul.f32 %v11125_v45, %v8340_v48  ;;  %v10211_v48 = vld [vmem:[%s12344_s27 + $0x18] sm:$0xff] }
0x2611   : > { %8459 = vmatpush.bf16.msrb.mxu2 %v10211_v48  ;;  %v10212_v48 = vld [vmem:[%s15203_s9 + $0x4] sm:$0xf] }
0x2612   : > { %9960 = vmatmul.msk.bf16.vlgmr.msra.gmra.mxu1 %vm2923_vm9, %v7967_v16  ;;  %v8342_v17 = vadd.f32 %v11125_v45, %v8341_v28  ;;  %v10210_v16 = vld [vmem:[%s12344_s27 + $0x10] sm:$0xff]  ;;  %v10209_v28 = vld [vmem:[%s12344_s27 + $0x8] sm:$0xff] }
0x2613   : > { %v11127_v12 = vpop.eup %11126 }
0x2614   : > { %v8370_v4 = vpop.permute.xlu2 %8369  ;;  %v8354_v40 = vmul.f32 %v11127_v12, %v8337_v26  ;;  %v8346_v14 = vsel %vm8345_vm2, %v11125_v45, %v8342_v17  ;;  %vm8359_vm3 = vweird.f32 %v11127_v12  ;;  %v11129_v34 = vpop.eup %11128 }
0x2615   : > { %8382 = vmatpush.bf16.msra.mxu3 %v8370_v4  ;;  %v8351_v37 = vsel %vm8348_vm4, %v8350_v62, %v8346_v14  ;;  %vm8360_vm6 = vmor %vm8358_vm5, %vm8359_vm3  ;;  %v8205_v1 = vmul.f32 %v11129_v34, %v8200_v42  ;;  %vm8210_vm8 = vweird.f32 %v11129_v34  ;;  %8460 = vmatpush.bf16.msrb.mxu2 %v10210_v16 }
0x2616   : > { %v8355_v53 = vsub.f32 1.0, %v8354_v40  ;;  %v8352_v7 = vmul.f32 %v14776_v41, %v8351_v37  ;;  %v8213_v41 = vand.u32 2147483647, %v8200_v42  ;;  %vm8211_vm12 = vmor %vm8209_vm11, %vm8210_vm8 }
0x2617   : > { %v8206_v56 = vsub.f32 1.0, %v8205_v1 }
0x2618   : > { %v8356_v11 = vmul.f32 %v11127_v12, %v8355_v53  ;;  %vm8214_vm14 = vcmp.eq.f32.partialorder %v8213_v41, 8.507059e+37 }
0x2619   : > { %v8207_v47 = vmul.f32 %v11129_v34, %v8206_v56  ;;  %8461 = vmatpush.bf16.msrb.mxu2 %v10209_v28  ;;  %v9994_v28 = vld [vmem:[%s15203_s9 + $0x8] sm:$0xf0] }
0x261a   : > { %v8357_v27 = vadd.f32 %v11127_v12, %v8356_v11 }
0x261b   : > { %v8208_v8 = vadd.f32 %v11129_v34, %v8207_v47 }
0x261c   : > { %v8361_v9 = vsel %vm8360_vm6, %v11127_v12, %v8357_v27  ;;  %v10208_v12 = vld [vmem:[%s12344_s27] sm:$0xff] }
0x261d   : > { %v8366_v23 = vsel %vm8363_vm7, %v8365_v63, %v8361_v9  ;;  %v8212_v51 = vsel %vm8211_vm12, %v11129_v34, %v8208_v8  ;;  %8462 = vmatpush.bf16.msrb.mxu2 %v10208_v12  ;;  %v9997_v12 = vor.u32 %v10212_v48, %v9994_v28 }
0x261e   : > { %v8367_v20 = vmul.f32 %v14784_v29, %v8366_v23  ;;  %v8217_v31 = vsel %vm8214_vm14, %v8216_v46, %v8212_v51  ;;  %v10218_v46 = vld [vmem:[%s15203_s9 + $0x34] sm:$0xf] }
0x261f   : > { %v8218_v24 = vmul.f32 %v14778_v5, %v8217_v31  ;;  %v10018_v31 = vld [vmem:[%s15203_s9 + $0x38] sm:$0xf0] }
0x2620   : > { %v8368_v18 = vpack.c.bf16 %v8367_v20, %v8352_v7  ;;  %v10752_v7 = vld [vmem:[#allocation39] ss:$0 sm:$0xff] }
0x2622   : > { %9972 = vmatmul.msk.bf16.vlgmr.msra.gmra.mxu3 %vm2923_vm9, %v8368_v18 }
0x2645   : > { %v8203_v50 = vpop.xlane.xlu0 %8202 }
0x2646   : > { %11130 = vrcp.f32 %v8203_v50  ;;  %v8230_v29 = vand.u32 2147483648, %v8203_v50  ;;  %v8228_v25 = vand.u32 2147483647, %v8203_v50  ;;  %vm8224_vm15 = vweird.f32 %v8203_v50 }
0x2648   : > { %v8231_v33 = vor.u32 1.1754944e-38, %v8230_v29  ;;  %vm8229_vm3 = vcmp.eq.f32.partialorder %v8228_v25, 8.507059e+37  ;;  %v10219_v25 = vld [vmem:[%s15203_s9 + $0x34] sm:$0xf0] }
0x264c   : > { %v11131_v10 = vpop.eup %11130 }
0x264d   : > { %v8220_v57 = vmul.f32 %v11131_v10, %v8203_v50  ;;  %vm8225_vm13 = vweird.f32 %v11131_v10 }
0x264e   : > { %vm8226_vm2 = vmor %vm8224_vm15, %vm8225_vm13 }
0x264f   : > { %v8221_v43 = vsub.f32 1.0, %v8220_v57 }
0x2651   : > { %v8222_v54 = vmul.f32 %v11131_v10, %v8221_v43 }
0x2653   : > { %v8223_v19 = vadd.f32 %v11131_v10, %v8222_v54  ;;  %v10016_v54 = vld [vmem:[%s15203_s9 + $0x30] sm:$0xf] }
0x2655   : > { %v8227_v2 = vsel %vm8226_vm2, %v11131_v10, %v8223_v19  ;;  %v10017_v19 = vor.u32 %v10219_v25, %v10016_v54 }
0x2656   : > { %v8232_v6 = vsel %vm8229_vm3, %v8231_v33, %v8227_v2  ;;  %v10021_v33 = vor.u32 %v10218_v46, %v10018_v31  ;;  %v10008_v2 = vld [vmem:[%s15203_s9 + $0x20] sm:$0xf] }
0x2657   : > { %v8233_v36 = vmul.f32 %v14790_v3, %v8232_v6  ;;  %v10217_v6 = vld [vmem:[%s15203_s9 + $0x24] sm:$0xf0] }
0x2658   : > { %v8236_v58 = vpop.permute.xlu0 %8235  ;;  %8609 = vmatpush.bf16.msrb.mxu0 %v10021_v33 }
0x2659   : > { %v8234_v38 = vpack.c.bf16 %v8233_v36, %v8218_v24  ;;  %8248 = vmatpush.bf16.msrb.mxu1 %v8236_v58  ;;  %v10216_v24 = vld [vmem:[%s15203_s9 + $0x24] sm:$0xf]  ;;  %v10009_v36 = vor.u32 %v10217_v6, %v10008_v2  ;;  %v10010_v58 = vld [vmem:[%s15203_s9 + $0x28] sm:$0xf0] }
0x265c   : > { %9968 = vmatmul.msk.bf16.vlgmr.msrb.gmra.mxu1 %vm2923_vm9, %v8234_v38 }
0x265d   : > { %8595 = vmatpush.bf16.msra.mxu1 %v10017_v19 }
0x2661   : > { %8596 = vmatpush.bf16.msra.mxu1 %v10009_v36 }
0x268d   : > { %v8116_v39 = vpop.f32.mrf.mxu3 }
0x268f   : > { %v7980_v49 = vpop.f32.mrf.mxu1 }
0x2695   : > { %v8118_v22 = vpop.f32.mrf.mxu3 }
0x2696   : > { %v10708_v45 = vpack.i.bf16 %v8118_v22, %v8116_v39  ;;  %v10013_v39 = vor.u32 %v10216_v24, %v10010_v58 }
0x2697   : > { %v7982_v26 = vpop.f32.mrf.mxu1 }
0x2698   : > { %10709 = vrot.lane.b32.xlu1 %v10708_v45, %s15179_s5  ;;  %8610 = vmatpush.bf16.msrb.mxu0 %v10013_v39  ;;  %v10000_v45 = vld [vmem:[%s15203_s9 + $0x10] sm:$0xf]  ;;  %s15205_s5 = sld [smem:[#allocation103_spill]] }
0x269e   : > { %v10235_v39 = vld [vmem:[%s15205_s5 + $0x78] sm:$0xff]  ;;  %v10233_v28 = vld [vmem:[%s15205_s5 + $0x68] sm:$0xff] }
0x269f   : > { %8923 = vmatpush.bf16.msra.mxu2 %v10235_v39 }
0x26a5   : > { %v8384_v5 = vpop.f32.mrf.mxu3 }
0x26ad   : > { %v8386_v13 = vpop.f32.mrf.mxu3 }
0x26ae   : > { %v10718_v61 = vpack.i.bf16 %v8386_v13, %v8384_v5  ;;  %v9992_v13 = vld [vmem:[%s15203_s9] sm:$0xf] }
0x26d9   : > { %v8250_v30 = vpop.f32.mrf.mxu1 }
0x26e1   : > { %v8252_v44 = vpop.f32.mrf.mxu1 }
0x26e2   : > { %v10713_v3 = vpack.i.bf16 %v8252_v44, %v8250_v30  ;;  %v10002_v44 = vld [vmem:[%s15203_s9 + $0x18] sm:$0xf0] }
0x26e4   : > { %10714 = vrot.lane.b32.xlu2 %v10713_v3, %s15192_s7  ;;  %s15207_s7 = sld [smem:[#allocation55_spill]] }
0x26ec   : > { %10719 = vrot.lane.b32.xlu2 %v10718_v61, %s15189_s2  ;;  %v10213_v61 = vld [vmem:[%s15203_s9 + $0x4] sm:$0xf0]  ;;  %s15204_s2 = sld [smem:[#allocation100_spill]] }
0x26ed   : > { %v9993_v16 = vor.u32 %v10213_v61, %v9992_v13 }
0x270a   : > { %v10710_v17 = vpop.permute.xlu1 %10709 }
0x270b   : > { %v10712_v40 = vunpack.i.h.bf16 %v10710_v17  ;;  %v10711_v52 = vunpack.i.l.bf16 %v10710_v17 }
0x270d   : > { %v8413_v14 = vsel %vm2923_vm9, %v7980_v49, %v10711_v52  ;;  %v8414_v11 = vsel %vm2923_vm9, %v7982_v26, %v10712_v40  ;;  %v10215_v49 = vld [vmem:[%s15203_s9 + $0x14] sm:$0xf0]  ;;  %v10214_v26 = vld [vmem:[%s15203_s9 + $0x14] sm:$0xf] }
0x270e   : > { %v10001_v5 = vor.u32 %v10215_v49, %v10000_v45  ;;  %v10005_v3 = vor.u32 %v10214_v26, %v10002_v44  ;;  %v10226_v49 = vld [vmem:[%s15205_s5 + $0x30] sm:$0xff] }
0x270f   : > { %v10234_v26 = vld [vmem:[%s15205_s5 + $0x70] sm:$0xff] }
0x2710   : > { %8597 = vmatpush.bf16.msra.mxu1 %v10001_v5  ;;  %8611 = vmatpush.bf16.msrb.mxu0 %v10005_v3 }
0x2711   : > { %8924 = vmatpush.bf16.msra.mxu2 %v10234_v26 }
0x2714   : > { %8598 = vmatpush.bf16.msra.mxu1 %v9993_v16  ;;  %8612 = vmatpush.bf16.msrb.mxu0 %v9997_v12  ;;  %v10225_v16 = vld [vmem:[%s15205_s5 + $0x28] sm:$0xff] }
0x2715   : > { %8925 = vmatpush.bf16.msra.mxu2 %v10233_v28 }
0x273e   : > { %v10715_v4 = vpop.permute.xlu2 %10714 }
0x273f   : > { %v10717_v0 = vunpack.i.h.bf16 %v10715_v4  ;;  %v10716_v53 = vunpack.i.l.bf16 %v10715_v4 }
0x2741   : > { %v8416_v27 = vsel %vm2383_vm1, %v8414_v11, %v10717_v0  ;;  %v8415_v37 = vsel %vm2383_vm1, %v8413_v14, %v10716_v53 }
0x2746   : > { %v10720_v35 = vpop.permute.xlu2 %10719 }
0x2747   : > { %v10722_v55 = vunpack.i.h.bf16 %v10720_v35  ;;  %v10721_v62 = vunpack.i.l.bf16 %v10720_v35 }
0x2749   : > { %v8417_v63 = vsel %vm2339_vm0, %v8415_v37, %v10721_v62  ;;  %v8418_v9 = vsel %vm2339_vm0, %v8416_v27, %v10722_v55 }
0x274a   : > { %v8427_v23 = vpack.c.bf16 %v8418_v9, %v8417_v63 }
0x274c   : > { %9989 = vmatmul.msk.bf16.vlgmr.msrb.gmra.mxu2 %vm2989_vm10, %v8427_v23  ;;  %v10753_v23 = vld [vmem:[#allocation37] ss:$0 sm:$0xff] }
0x27cf   : > { %v8464_v20 = vpop.f32.mrf.mxu2 }
0x27d0   : > { %v8469_v18 = vadd.f32 %v8464_v20, %v14682_v21 }
0x27d2   : > { %v14829_v42 = vadd.f32 %v10752_v7, %v8469_v18 }
0x27d4   : > { %v8479_v34 = vsel %vm2989_vm10, %v14829_v42, 0.0 }
0x27d5   : > { %8480 = vadd.xlane.f32.xlu0 %v8479_v34  ;;  %v10754_v34 = vld [vmem:[#allocation36] ss:$0 sm:$0xff] }
0x27d7   : > { %v8466_v1 = vpop.f32.mrf.mxu2 }
0x27d8   : > { %v8470_v56 = vadd.f32 %v8466_v1, %v14687_v32 }
0x27da   : > { %v14834_v50 = vadd.f32 %v10752_v7, %v8470_v56 }
0x27dc   : > { %v8482_v47 = vsel %vm2989_vm10, %v14834_v50, 0.0 }
0x27dd   : > { %8483 = vadd.xlane.f32.xlu2 %v8482_v47 }
0x2848   : > { %v8481_v10 = vpop.xlane.xlu0 %8480 }
0x2849   : > { %v8485_v21 = vmul.f32 %v8481_v10, %v14372_v59 }
0x284b   : > { %v14840_v8 = vsub.f32 %v14829_v42, %v8485_v21 }
0x284d   : > { %v8489_v57 = vmul.f32 %v14840_v8, %v14840_v8 }
0x284f   : > { %v8491_v32 = vsel %vm2989_vm10, %v8489_v57, 0.0 }
0x2850   : > { %8492 = vadd.xlane.f32.xlu1 %v8491_v32  ;;  %v8484_v60 = vpop.xlane.xlu2 %8483  ;;  %v8542_v32 = vld [vmem:[%s15204_s2] sm:$0x3]  ;;  %s15210_s2 = sld [smem:[#allocation58_spill]] }
0x2851   : > { %v8486_v41 = vmul.f32 %v8484_v60, %v14372_v59  ;;  %v8544_v60 = vperm.slane %v8542_v32, 0 }
0x2853   : > { %v14847_v43 = vsub.f32 %v14834_v50, %v8486_v41  ;;  %v8545_v41 = vperm.slane %v8542_v32, 1 }
0x2855   : > { %v8490_v29 = vmul.f32 %v14847_v43, %v14847_v43 }
0x2857   : > { %v8494_v51 = vsel %vm2989_vm10, %v8490_v29, 0.0 }
0x2858   : > { %8495 = vadd.xlane.f32.xlu0 %v8494_v51 }
0x28c3   : > { %v8493_v38 = vpop.xlane.xlu1 %8492 }
0x28c4   : > { %v8497_v22 = vmul.f32 %v8493_v38, %v14372_v59  ;;  %v10227_v38 = vld [vmem:[%s15205_s5 + $0x38] sm:$0xff] }
0x28c5   : > { %8909 = vmatpush.bf16.msrb.mxu3 %v10227_v38 }
0x28c6   : > { %v8499_v30 = vadd.f32 1e-05, %v8497_v22 }
0x28c8   : > { %11132 = vrsqrt.f32 %v8499_v30  ;;  %vm8507_vm1 = vweird.f32 %v8499_v30 }
0x28c9   : > { %8910 = vmatpush.bf16.msrb.mxu3 %v10226_v49 }
0x28cb   : > { %v8496_v4 = vpop.xlane.xlu0 %8495 }
0x28cc   : > { %v8498_v17 = vmul.f32 %v8496_v4, %v14372_v59 }
0x28cd   : > { %8911 = vmatpush.bf16.msrb.mxu3 %v10225_v16 }
0x28ce   : > { %v11133_v40 = vpop.eup %11132  ;;  %v8500_v52 = vadd.f32 1e-05, %v8498_v17 }
0x28cf   : > { %v8502_v0 = vmul.f32 %v11133_v40, %v8499_v30  ;;  %vm8508_vm0 = vweird.f32 %v11133_v40 }
0x28d0   : > { %11134 = vrsqrt.f32 %v8500_v52  ;;  %vm8509_vm9 = vmor %vm8507_vm1, %vm8508_vm0  ;;  %vm8517_vm5 = vweird.f32 %v8500_v52 }
0x28d1   : > { %v8503_v53 = vmul.f32 %v11133_v40, %v8502_v0 }
0x28d3   : > { %v8504_v35 = vmul.f32 0.5, %v8503_v53 }
0x28d5   : > { %v8505_v14 = vsub.f32 1.5, %v8504_v35 }
0x28d6   : > { %v11135_v11 = vpop.eup %11134 }
0x28d7   : > { %v8506_v55 = vmul.f32 %v11133_v40, %v8505_v14  ;;  %v8512_v62 = vmul.f32 %v11135_v11, %v8500_v52  ;;  %vm8518_vm4 = vweird.f32 %v11135_v11 }
0x28d8   : > { %vm8519_vm6 = vmor %vm8517_vm5, %vm8518_vm4 }
0x28d9   : > { %v8513_v27 = vmul.f32 %v11135_v11, %v8512_v62  ;;  %v8510_v37 = vsel %vm8509_vm9, %v11133_v40, %v8506_v55 }
0x28da   : > { %v8521_v7 = vmul.f32 %v8510_v37, %v14840_v8  ;;  %v10232_v37 = vld [vmem:[%s15205_s5 + $0x60] sm:$0xff] }
0x28db   : > { %v8514_v63 = vmul.f32 0.5, %v8513_v27  ;;  %v10224_v27 = vld [vmem:[%s15205_s5 + $0x20] sm:$0xff]  ;;  %8926 = vmatpush.bf16.msra.mxu2 %v10232_v37 }
0x28dc   : > { %v8526_v1 = vmul.f32 %v10753_v23, %v8521_v7  ;;  %8912 = vmatpush.bf16.msrb.mxu3 %v10224_v27  ;;  %v10228_v27 = vld [vmem:[%s15205_s5 + $0x40] sm:$0xff] }
0x28dd   : > { %v8515_v9 = vsub.f32 1.5, %v8514_v63 }
0x28de   : > { %v8531_v10 = vadd.f32 %v10754_v34, %v8526_v1 }
0x28df   : > { %v8516_v20 = vmul.f32 %v11135_v11, %v8515_v9 }
0x28e1   : > { %v8520_v18 = vsel %vm8519_vm6, %v11135_v11, %v8516_v20 }
0x28e2   : > { %v8522_v56 = vmul.f32 %v8520_v18, %v14847_v43 }
0x28e4   : > { %v8527_v47 = vmul.f32 %v10753_v23, %v8522_v56  ;;  %v10223_v56 = vld [vmem:[%s15205_s5 + $0x18] sm:$0xff] }
0x28e5   : > { %8913 = vmatpush.bf16.msrb.mxu3 %v10223_v56 }
0x28e6   : > { %v8532_v21 = vadd.f32 %v10754_v34, %v8527_v47  ;;  %v10231_v47 = vld [vmem:[%s15205_s5 + $0x58] sm:$0xff] }
0x28e7   : > { %8927 = vmatpush.bf16.msra.mxu2 %v10231_v47 }
0x28e8   : > { %v8541_v57 = vpack.c.bf16 %v8532_v21, %v8531_v10 }
0x28ea   : > { %10022 = vmatmul.msk.bf16.vlgmr.msra.gmra.mxu1 %vm2989_vm10, %v8541_v57  ;;  %10023 = vmatmul.msk.bf16.vlgmr.msrb.gmra.mxu0 %vm2989_vm10, %v8541_v57 }
0x2967   : > { %v8600_v8 = vpop.f32.mrf.mxu1  ;;  %v8614_v29 = vpop.f32.mrf.mxu0 }
0x2968   : > { %v14875_v51 = vadd.f32 %v8600_v8, %v8544_v60  ;;  %v14877_v54 = vadd.f32 %v8614_v29, %v8545_v41 }
0x296a   : > { %v14880_v43 = vmul.f32 0.70710677, %v14875_v51  ;;  %v14883_v25 = vmul.f32 0.70710677, %v14877_v54 }
0x296c   : > { %v8635_v46 = vand.u32 2147483647, %v14880_v43  ;;  %v14887_v19 = vand.u32 2147483647, %v14883_v25 }
0x296e   : > { %v8639_v31 = vmul.f32 0.3275911, %v8635_v46  ;;  %v8640_v33 = vmul.f32 0.3275911, %v14887_v19  ;;  %v8743_v40 = vsub.f32 0.0, %v8635_v46  ;;  %v8744_v52 = vsub.f32 0.0, %v14887_v19 }
0x296f   : > { %v8602_v2 = vpop.f32.mrf.mxu1  ;;  %v8616_v6 = vpop.f32.mrf.mxu0 }
0x2970   : > { %v8643_v24 = vadd.f32 1.0, %v8639_v31  ;;  %v14890_v36 = vadd.f32 1.0, %v8640_v33  ;;  %v14892_v58 = vadd.f32 %v8602_v2, %v8544_v60  ;;  %v14896_v22 = vadd.f32 %v8616_v6, %v8545_v41  ;;  %v10222_v6 = vld [vmem:[%s15205_s5 + $0x10] sm:$0xff] }
0x2971   : > { %v8747_v34 = vmul.f32 %v8743_v40, %v8635_v46  ;;  %v8748_v57 = vmul.f32 %v8744_v52, %v14887_v19  ;;  %8914 = vmatpush.bf16.msrb.mxu3 %v10222_v6 }
0x2972   : > { %11136 = vrcp.f32 %v8643_v24  ;;  %v14900_v45 = vmul.f32 0.70710677, %v14892_v58  ;;  %v14905_v30 = vmul.f32 0.70710677, %v14896_v22  ;;  %v8656_v53 = vand.u32 2147483647, %v8643_v24 }
0x2973   : > { %11138 = vrcp.f32 %v14890_v36  ;;  %v8658_v35 = vand.u32 2147483648, %v8643_v24  ;;  %v8673_v62 = vand.u32 2147483648, %v14890_v36  ;;  %v8671_v9 = vand.u32 2147483647, %v14890_v36 }
0x2974   : > { %v14908_v5 = vand.u32 2147483647, %v14900_v45  ;;  %v14911_v3 = vand.u32 2147483647, %v14905_v30  ;;  %vm8652_vm11 = vweird.f32 %v8643_v24  ;;  %vm8667_vm13 = vweird.f32 %v14890_v36 }
0x2975   : > { %v8659_v7 = vor.u32 1.1754944e-38, %v8658_v35  ;;  %vm8657_vm14 = vcmp.eq.f32.partialorder %v8656_v53, 8.507059e+37  ;;  %v8674_v1 = vor.u32 1.1754944e-38, %v8673_v62  ;;  %vm8672_vm2 = vcmp.eq.f32.partialorder %v8671_v9, 8.507059e+37  ;;  %v10220_v62 = vld [vmem:[%s15205_s5] sm:$0xff] }
0x2976   : > { %v8641_v48 = vmul.f32 0.3275911, %v14908_v5  ;;  %v8642_v4 = vmul.f32 0.3275911, %v14911_v3  ;;  %v8751_v33 = vmul.f32 1.442695, %v8747_v34 }
0x2977   : > { %v8753_v19 = vmul.f32 1.442695, %v8748_v57  ;;  %v8745_v53 = vsub.f32 0.0, %v14908_v5 }
0x2978   : > { %v11137_v44 = vpop.eup %11136  ;;  %v14919_v0 = vadd.f32 1.0, %v8641_v48  ;;  %v14921_v11 = vadd.f32 1.0, %v8642_v4  ;;  %v10221_v4 = vld [vmem:[%s15205_s5 + $0x8] sm:$0xff] }
0x2979   : > { %v11139_v13 = vpop.eup %11138  ;;  %v8648_v61 = vmul.f32 %v11137_v44, %v8643_v24  ;;  %vm8653_vm7 = vweird.f32 %v11137_v44  ;;  %v10230_v24 = vld [vmem:[%s15205_s5 + $0x50] sm:$0xff]  ;;  %8915 = vmatpush.bf16.msrb.mxu3 %v10221_v4 }
0x297a   : > { %v8663_v12 = vmul.f32 %v11139_v13, %v14890_v36  ;;  %11140 = vrcp.f32 %v14919_v0  ;;  %vm8668_vm8 = vweird.f32 %v11139_v13  ;;  %vm8654_vm12 = vmor %vm8652_vm11, %vm8653_vm7  ;;  %v8686_v49 = vand.u32 2147483647, %v14919_v0  ;;  %8928 = vmatpush.bf16.msra.mxu2 %v10230_v24 }
0x297b   : > { %v8649_v17 = vsub.f32 1.0, %v8648_v61  ;;  %11142 = vrcp.f32 %v14921_v11  ;;  %vm8669_vm15 = vmor %vm8667_vm13, %vm8668_vm8  ;;  %v8688_v26 = vand.u32 2147483648, %v14919_v0  ;;  %v8703_v48 = vand.u32 2147483648, %v14921_v11 }
0x297c   : > { %v8664_v14 = vsub.f32 1.0, %v8663_v12  ;;  %v8701_v12 = vand.u32 2147483647, %v14921_v11  ;;  %vm8682_vm1 = vweird.f32 %v14919_v0  ;;  %vm8697_vm4 = vweird.f32 %v14921_v11 }
0x297d   : > { %v8650_v55 = vmul.f32 %v11137_v44, %v8649_v17  ;;  %v10229_v17 = vld [vmem:[%s15205_s5 + $0x48] sm:$0xff]  ;;  %vm8687_vm5 = vcmp.eq.f32.partialorder %v8686_v49, 8.507059e+37  ;;  %8916 = vmatpush.bf16.msrb.mxu3 %v10220_v62  ;;  %11144 = vpow2.f32 %v8751_v33  ;;  %vm8627_vm8 = vcmp.ge.f32.partialorder %v14880_v43, 0.0 }
0x297e   : > { %v8665_v63 = vmul.f32 %v11139_v13, %v8664_v14  ;;  %v8689_v14 = vor.u32 1.1754944e-38, %v8688_v26  ;;  %8929 = vmatpush.bf16.msra.mxu2 %v10229_v17  ;;  %vm8702_vm7 = vcmp.eq.f32.partialorder %v8701_v12, 8.507059e+37  ;;  %11146 = vpow2.f32 %v8753_v19 }
0x297f   : > { %v8651_v23 = vadd.f32 %v11137_v44, %v8650_v55  ;;  %vm8628_vm11 = vcmp.ge.f32.partialorder %v14883_v25, 0.0  ;;  %v8631_v17 = vsel %vm8627_vm8, 1.0, %v12016_v15  ;;  %vm8630_vm13 = vcmp.ge.f32.partialorder %v14905_v30, 0.0 }
0x2980   : > { %v8666_v20 = vadd.f32 %v11139_v13, %v8665_v63  ;;  %v11141_v32 = vpop.eup %11140  ;;  %v8622_v30 = vmul.f32 0.5, %v14896_v22 }
0x2981   : > { %v8655_v18 = vsel %vm8654_vm12, %v11137_v44, %v8651_v23  ;;  %v11143_v8 = vpop.eup %11142  ;;  %v8678_v46 = vmul.f32 %v11141_v32, %v14919_v0  ;;  %vm8683_vm3 = vweird.f32 %v11141_v32  ;;  %v8704_v0 = vor.u32 1.1754944e-38, %v8703_v48 }
0x2982   : > { %v14932_v10 = vsel %vm8657_vm14, %v8659_v7, %v8655_v18  ;;  %v8670_v21 = vsel %vm8669_vm15, %v11139_v13, %v8666_v20  ;;  %v8693_v2 = vmul.f32 %v11143_v8, %v14921_v11  ;;  %vm8698_vm0 = vweird.f32 %v11143_v8  ;;  %vm8684_vm9 = vmor %vm8682_vm1, %vm8683_vm3  ;;  %8930 = vmatpush.bf16.msra.mxu2 %v10228_v27 }
0x2983   : > { %v8707_v60 = vmul.f32 1.0614054, %v14932_v10  ;;  %v14936_v41 = vsel %vm8672_vm2, %v8674_v1, %v8670_v21  ;;  %v8679_v38 = vsub.f32 1.0, %v8678_v46  ;;  %vm8699_vm6 = vmor %vm8697_vm4, %vm8698_vm0  ;;  %v8746_v11 = vsub.f32 0.0, %v14911_v3  ;;  %v11145_v26 = vpop.eup %11144 }
0x2984   : > { %v8708_v29 = vmul.f32 1.0614054, %v14936_v41  ;;  %v8694_v44 = vsub.f32 1.0, %v8693_v2  ;;  %vm8629_vm12 = vcmp.ge.f32.partialorder %v14900_v45, 0.0  ;;  %vm9118_vm4 = vcmask 57344  }
0x2985   : > { %v8711_v31 = vadd.f32 -1.4531521, %v8707_v60  ;;  %v8680_v61 = vmul.f32 %v11141_v32, %v8679_v38  ;;  %v8750_v46 = vmul.f32 %v8746_v11, %v14911_v3  ;;  %v8633_v25 = vsel %vm8629_vm12, 1.0, %v12016_v15 }
0x2986   : > { %v8712_v36 = vadd.f32 -1.4531521, %v8708_v29  ;;  %v8695_v28 = vmul.f32 %v11143_v8, %v8694_v44  ;;  %v11147_v44 = vpop.eup %11146 }
0x2987   : > { %v8715_v39 = vmul.f32 %v8711_v31, %v14932_v10  ;;  %v8681_v52 = vadd.f32 %v11141_v32, %v8680_v61  ;;  %v8757_v49 = vmul.f32 1.442695, %v8750_v46 }
0x2988   : > { %v8716_v13 = vmul.f32 %v8712_v36, %v14936_v41  ;;  %v8696_v55 = vadd.f32 %v11143_v8, %v8695_v28 }
0x2989   : > { %v8719_v16 = vadd.f32 1.4214138, %v8715_v39  ;;  %v8685_v63 = vsel %vm8684_vm9, %v11141_v32, %v8681_v52  ;;  %v8749_v32 = vmul.f32 %v8745_v53, %v14908_v5 }
0x298a   : > { %v8720_v40 = vadd.f32 1.4214138, %v8716_v13  ;;  %v8690_v23 = vsel %vm8687_vm5, %v8689_v14, %v8685_v63  ;;  %v8700_v7 = vsel %vm8699_vm6, %v11143_v8, %v8696_v55 }
0x298b   : > { %v8723_v35 = vmul.f32 %v8719_v16, %v14932_v10  ;;  %v8709_v18 = vmul.f32 1.0614054, %v8690_v23  ;;  %v8705_v34 = vsel %vm8702_vm7, %v8704_v0, %v8700_v7  ;;  %v8755_v36 = vmul.f32 1.442695, %v8749_v32 }
0x298c   : > { %v8724_v37 = vmul.f32 %v8720_v40, %v14936_v41  ;;  %v8710_v56 = vmul.f32 1.0614054, %v8705_v34  ;;  %v8634_v0 = vsel %vm8630_vm13, 1.0, %v12016_v15  ;;  %v8619_v7 = vmul.f32 0.5, %v14875_v51  ;;  %v10755_v51 = vld [vmem:[#allocation31] ss:$0 sm:$0xff] }
0x298d   : > { %v8727_v9 = vadd.f32 -0.28449672, %v8723_v35  ;;  %v8713_v21 = vadd.f32 -1.4531521, %v8709_v18  ;;  %11148 = vpow2.f32 %v8755_v36  ;;  %v8632_v35 = vsel %vm8628_vm11, 1.0, %v12016_v15 }
0x298e   : > { %v8728_v20 = vadd.f32 -0.28449672, %v8724_v37  ;;  %v8714_v60 = vadd.f32 -1.4531521, %v8710_v56  ;;  %11150 = vpow2.f32 %v8757_v49  ;;  %v8620_v18 = vmul.f32 0.5, %v14877_v54 }
0x298f   : > { %v8731_v1 = vmul.f32 %v8727_v9, %v14932_v10  ;;  %v8717_v29 = vmul.f32 %v8713_v21, %v8690_v23 }
0x2990   : > { %v8732_v47 = vmul.f32 %v8728_v20, %v14936_v41  ;;  %v8718_v31 = vmul.f32 %v8714_v60, %v8705_v34  ;;  %v8621_v20 = vmul.f32 0.5, %v14892_v58 }
0x2991   : > { %v8735_v57 = vadd.f32 0.2548296, %v8731_v1  ;;  %v8721_v6 = vadd.f32 1.4214138, %v8717_v29 }
0x2992   : > { %v8736_v8 = vadd.f32 0.2548296, %v8732_v47  ;;  %v8722_v38 = vadd.f32 1.4214138, %v8718_v31 }
0x2993   : > { %v8739_v2 = vmul.f32 %v8735_v57, %v14932_v10  ;;  %v8725_v39 = vmul.f32 %v8721_v6, %v8690_v23  ;;  %v11149_v4 = vpop.eup %11148 }
0x2994   : > { %v8740_v24 = vmul.f32 %v8736_v8, %v14936_v41  ;;  %v8726_v33 = vmul.f32 %v8722_v38, %v8705_v34  ;;  %v11151_v52 = vpop.eup %11150 }
0x2995   : > { %v8759_v5 = vmul.f32 %v11145_v26, %v8739_v2  ;;  %v8729_v13 = vadd.f32 -0.28449672, %v8725_v39 }
0x2996   : > { %v8760_v61 = vmul.f32 %v11147_v44, %v8740_v24  ;;  %v8730_v19 = vadd.f32 -0.28449672, %v8726_v33 }
0x2997   : > { %v8733_v48 = vmul.f32 %v8729_v13, %v8690_v23  ;;  %v8763_v10 = vsub.f32 1.0, %v8759_v5 }
0x2998   : > { %v8734_v3 = vmul.f32 %v8730_v19, %v8705_v34  ;;  %v8764_v41 = vsub.f32 1.0, %v8760_v61 }
0x2999   : > { %v8737_v16 = vadd.f32 0.2548296, %v8733_v48  ;;  %v8767_v53 = vmul.f32 %v8763_v10, %v8631_v17 }
0x299a   : > { %v8738_v28 = vadd.f32 0.2548296, %v8734_v3  ;;  %v8768_v55 = vmul.f32 %v8764_v41, %v8632_v35  ;;  %v10239_v41 = vld [vmem:[%s15206_s3 + $0x18] sm:$0xff] }
0x299b   : > { %v8741_v12 = vmul.f32 %v8737_v16, %v8690_v23  ;;  %v8771_v37 = vadd.f32 1.0, %v8767_v53  ;;  %9059 = vmatpush.bf16.msrb.mxu1 %v10239_v41 }
0x299c   : > { %v8742_v40 = vmul.f32 %v8738_v28, %v8705_v34  ;;  %v8772_v9 = vadd.f32 1.0, %v8768_v55  ;;  %v10236_v55 = vld [vmem:[%s15206_s3] sm:$0xff] }
0x299d   : > { %v8761_v14 = vmul.f32 %v11149_v4, %v8741_v12  ;;  %v8775_v11 = vmul.f32 %v8771_v37, %v8619_v7  ;;  %v10238_v12 = vld [vmem:[%s15206_s3 + $0x10] sm:$0xff] }
0x299e   : > { %v8762_v43 = vmul.f32 %v11151_v52, %v8742_v40  ;;  %v8776_v56 = vmul.f32 %v8772_v9, %v8620_v18  ;;  %v10237_v40 = vld [vmem:[%s15206_s3 + $0x8] sm:$0xff] }
0x299f   : > { %v8765_v62 = vsub.f32 1.0, %v8761_v14  ;;  %9060 = vmatpush.bf16.msrb.mxu1 %v10238_v12  ;;  %v10241_v18 = vld [vmem:[%s15207_s7 + $0x8] sm:$0xff] }
0x29a0   : > { %v8766_v27 = vsub.f32 1.0, %v8762_v43 }
0x29a1   : > { %v8769_v63 = vmul.f32 %v8765_v62, %v8633_v25  ;;  %v12020_v62 = vmov 16.0   ;;  %v10243_v25 = vld [vmem:[%s15207_s7 + $0x18] sm:$0xff] }
0x29a2   : > { %v8770_v23 = vmul.f32 %v8766_v27, %v8634_v0  ;;  %v10756_v27 = vld [vmem:[%s15208_s6] ss:$0 sm:$0xff]  ;;  %9109 = vmatpush.bf16.msra.mxu0 %v10243_v25  ;;  %v10242_v0 = vld [vmem:[%s15207_s7 + $0x10] sm:$0xff]  ;;  %s15211_s6 = sld [smem:[#allocation54_spill]] }
0x29a3   : > { %v8773_v45 = vadd.f32 1.0, %v8769_v63  ;;  %9061 = vmatpush.bf16.msrb.mxu1 %v10237_v40 }
0x29a4   : > { %v8774_v34 = vadd.f32 1.0, %v8770_v23  ;;  %v10757_v23 = vld [vmem:[%s15209_s4] ss:$0 sm:$0xff]  ;;  %s2297_s4 = scalar_lea.vmem %s12359_s24, %s15213_s0 }
0x29a5   : > { %v8777_v1 = vmul.f32 %v8773_v45, %v8621_v20 }
0x29a6   : > { %v8778_v47 = vmul.f32 %v8774_v34, %v8622_v30  ;;  %9110 = vmatpush.bf16.msra.mxu0 %v10242_v0 }
0x29a7   : > { %v8811_v21 = vpack.c.bf16 %v8777_v1, %v8775_v11  ;;  %9062 = vmatpush.bf16.msrb.mxu1 %v10236_v55 }
0x29a8   : > { %v8812_v57 = vpack.c.bf16 %v8778_v47, %v8776_v56 }
0x29a9   : > { %8917 = vmatmul.bf16.vlgmr.msrb.gmra.mxu3 %v8811_v21 }
0x29aa   : > { %8931 = vmatmul.bf16.vlgmr.msra.gmra.mxu2 %v8812_v57  ;;  %9111 = vmatpush.bf16.msra.mxu0 %v10241_v18 }
0x2a2c   : > { %v8918_v15 = vpop.f32.mrf.mxu3 }
0x2a2d   : > { %v8932_v32 = vpop.f32.mrf.mxu2 }
0x2a2e   : > { %v8933_v60 = vadd.f32 %v8932_v32, %v8918_v15 }
0x2a30   : > { %v8937_v58 = vadd.f32 %v8933_v60, %v14829_v42 }
0x2a32   : > { %v8943_v8 = vadd.f32 %v10755_v51, %v8937_v58 }
0x2a34   : > { %v8947_v54 = vsel %vm2989_vm10, %v8943_v8, 0.0  ;;  %v8920_v29 = vpop.f32.mrf.mxu3 }
0x2a35   : > { %v8934_v22 = vpop.f32.mrf.mxu2  ;;  %8948 = vadd.xlane.f32.xlu2 %v8947_v54 }
0x2a36   : > { %v8935_v46 = vadd.f32 %v8934_v22, %v8920_v29 }
0x2a38   : > { %v8938_v31 = vadd.f32 %v8935_v46, %v14834_v50 }
0x2a3a   : > { %v8944_v2 = vadd.f32 %v10755_v51, %v8938_v31 }
0x2a3c   : > { %v8950_v6 = vsel %vm2989_vm10, %v8944_v2, 0.0 }
0x2a3d   : > { %8951 = vadd.xlane.f32.xlu1 %v8950_v6  ;;  %v10240_v6 = vld [vmem:[%s15207_s7] sm:$0xff] }
0x2a3e   : > { %9112 = vmatpush.bf16.msra.mxu0 %v10240_v6 }
0x2aa8   : > { %v8949_v24 = vpop.xlane.xlu2 %8948 }
0x2aa9   : > { %v8953_v36 = vmul.f32 %v8949_v24, %v14372_v59  ;;  %v9027_v24 = vld [vmem:[%s15210_s2] sm:$0x1] }
0x2aab   : > { %v8955_v38 = vsub.f32 %v8943_v8, %v8953_v36 }
0x2aad   : > { %v8957_v39 = vmul.f32 %v8955_v38, %v8955_v38 }
0x2aaf   : > { %v8959_v42 = vsel %vm2989_vm10, %v8957_v39, 0.0 }
0x2ab0   : > { %8960 = vadd.xlane.f32.xlu0 %v8959_v42  ;;  %v8952_v49 = vpop.xlane.xlu1 %8951 }
0x2ab1   : > { %v8954_v26 = vmul.f32 %v8952_v49, %v14372_v59  ;;  %v9077_v49 = vld [vmem:[%s15211_s6] sm:$0x1] }
0x2ab3   : > { %v8956_v33 = vsub.f32 %v8944_v2, %v8954_v26 }
0x2ab5   : > { %v8958_v44 = vmul.f32 %v8956_v33, %v8956_v33 }
0x2ab7   : > { %v8962_v50 = vsel %vm2989_vm10, %v8958_v44, 0.0 }
0x2ab8   : > { %8963 = vadd.xlane.f32.xlu2 %v8962_v50 }
0x2b23   : > { %v8961_v5 = vpop.xlane.xlu0 %8960 }
0x2b24   : > { %v8965_v13 = vmul.f32 %v8961_v5, %v14372_v59 }
0x2b26   : > { %v8967_v61 = vadd.f32 1e-05, %v8965_v13 }
0x2b28   : > { %11152 = vrsqrt.f32 %v8967_v61  ;;  %vm8975_vm15 = vweird.f32 %v8967_v61 }
0x2b2b   : > { %v8964_v19 = vpop.xlane.xlu2 %8963 }
0x2b2c   : > { %v8966_v48 = vmul.f32 %v8964_v19, %v14372_v59 }
0x2b2e   : > { %v11153_v3 = vpop.eup %11152  ;;  %v8968_v10 = vadd.f32 1e-05, %v8966_v48 }
0x2b2f   : > { %v8970_v16 = vmul.f32 %v11153_v3, %v8967_v61  ;;  %vm8976_vm14 = vweird.f32 %v11153_v3 }
0x2b30   : > { %11154 = vrsqrt.f32 %v8968_v10  ;;  %vm8977_vm2 = vmor %vm8975_vm15, %vm8976_vm14  ;;  %vm8985_vm0 = vweird.f32 %v8968_v10 }
0x2b31   : > { %v8971_v28 = vmul.f32 %v11153_v3, %v8970_v16  ;;  %11156 = vrcp.f32 %v12020_v62 }
0x2b33   : > { %v8972_v4 = vmul.f32 0.5, %v8971_v28 }
0x2b35   : > { %v8973_v17 = vsub.f32 1.5, %v8972_v4 }
0x2b36   : > { %v11155_v52 = vpop.eup %11154 }
0x2b37   : > { %v8974_v53 = vmul.f32 %v11153_v3, %v8973_v17  ;;  %v8980_v59 = vmul.f32 %v11155_v52, %v8968_v10  ;;  %vm8986_vm3 = vweird.f32 %v11155_v52  ;;  %v11157_v20 = vpop.eup %11156 }
0x2b38   : > { %vm8987_vm1 = vmor %vm8985_vm0, %vm8986_vm3  ;;  %v9011_v1 = vmul.f32 16.0, %v11157_v20  ;;  %vm9015_vm9 = vweird.f32 %v11157_v20 }
0x2b39   : > { %v8978_v35 = vsel %vm8977_vm2, %v11153_v3, %v8974_v53  ;;  %v8981_v14 = vmul.f32 %v11155_v52, %v8980_v59 }
0x2b3a   : > { %v8989_v37 = vmul.f32 %v8978_v35, %v8955_v38  ;;  %v9012_v57 = vsub.f32 1.0, %v9011_v1 }
0x2b3b   : > { %v8982_v43 = vmul.f32 0.5, %v8981_v14 }
0x2b3c   : > { %v8994_v7 = vmul.f32 %v10756_v27, %v8989_v37  ;;  %v9013_v60 = vmul.f32 %v11157_v20, %v9012_v57 }
0x2b3d   : > { %v8983_v63 = vsub.f32 1.5, %v8982_v43 }
0x2b3e   : > { %v8999_v34 = vadd.f32 %v10757_v23, %v8994_v7  ;;  %v9014_v8 = vadd.f32 %v11157_v20, %v9013_v60 }
0x2b3f   : > { %v8984_v9 = vmul.f32 %v11155_v52, %v8983_v63 }
0x2b40   : > { %v9001_v47 = vsel %vm2989_vm10, %v8999_v34, 0.0  ;;  %v9016_v22 = vsel %vm9015_vm9, %v11157_v20, %v9014_v8 }
0x2b41   : > { %v8988_v45 = vsel %vm8987_vm1, %v11155_v52, %v8984_v9 }
0x2b42   : > { %v8990_v30 = vmul.f32 %v8988_v45, %v8956_v33 }
0x2b44   : > { %v8995_v11 = vmul.f32 %v10756_v27, %v8990_v30 }
0x2b46   : > { %v9000_v56 = vadd.f32 %v10757_v23, %v8995_v11 }
0x2b48   : > { %v9002_v21 = vsel %vm2989_vm10, %v9000_v56, 0.0 }
0x2b49   : > { %v9003_v15 = vadd.f32 %v9002_v21, %v9001_v47 }
0x2b4b   : > { %v9004_v32 = vrot.slane %v9003_v15, 4 }
0x2b4d   : > { %v9005_v51 = vadd.f32 %v9004_v32, %v9003_v15 }
0x2b4f   : > { %v9006_v58 = vrot.slane %v9005_v51, 2 }
0x2b51   : > { %v9007_v54 = vadd.f32 %v9006_v58, %v9005_v51 }
0x2b53   : > { %v9008_v29 = vrot.slane %v9007_v54, 1 }
0x2b55   : > { %v9009_v46 = vadd.f32 %v9008_v29, %v9007_v54 }
0x2b57   : > { %v9017_v31 = vmul.f32 %v9016_v22, %v9009_v46 }
0x2b59   : > { %v9026_v2 = vpack.c.bf16 %v9017_v31, %v9017_v31 }
0x2b5b   : > { %10104 = vmatmul.msk.bf16.vlgmr.msrb.gmra.mxu1 %vm2989_vm10, %v9026_v2 }
0x2bd8   : > { %v9064_v36 = vpop.f32.mrf.mxu1 }
0x2bd9   : > { %v9065_v38 = vadd.f32 %v9064_v36, %v9027_v24 }
0x2bdb   : > { %v9076_v39 = vpack.c.bf16 %v9065_v38, %v9065_v38 }
0x2bdd   : > { %10121 = vmatmul.msk.bf16.vlgmr.msra.gmra.mxu0 %vm2989_vm10, %v9076_v39 }
0x2be0   : > { %v9066_v42 = vpop.f32.mrf.mxu1 }
0x2c5a   : > { %v9114_v26 = vpop.f32.mrf.mxu0 }
0x2c5b   : > { %v9115_v33 = vadd.f32 %v9114_v26, %v9077_v49 }
0x2c5d   : > { %9119 = vst.msk [vmem:[%s2297_s4] sm:$0x1] %vm9118_vm4, %v9115_v33 }
0x2c62   : > { %v9116_v44 = vpop.f32.mrf.mxu0 }
0x2c63 PF: > { %s156_s15 = sadd.s32 1, %s11916_s15  }
0x2c64   : > { %p153_p3 = scmp.ge.s32.totalorder %s156_s15, 4  }
0x2c66   :  { %155 = sbr.rel (!%p153_p3) target bundleno = 138 (0x8a), region = 489 }
0x2c6b   :  { %9137 = vsyncpa [#allocation3], 1 }
0x2c6c   :  { %9139 = vsyncpa [#allocation3 + $0x1], 1 }
0x2c6d   :  { %9140 = vsyncpa [#allocation5], 1 }
0x2c6e   :  { %9141 = vsyncpa [#allocation8], 1 }
0x2c6f   :  { %9142 = vsyncpa [#allocation11], 1 }
0x2c70   :  { %9143 = vsyncpa [#allocation14], 1 }
0x2c71   :  { %9144 = vsyncpa [#allocation17], 1 }
0x2c72   :  { %9145 = vsyncpa [#allocation20], 1 }
0x2c73   :  { %9146 = vsyncpa [#allocation23], 1 }
0x2c74   :  { %9147 = vsyncpa [#allocation26], 1 }
0x2c75   :  { %9148 = vsyncpa [#allocation29], 1 }
0x2c76   :  { %9149 = vsyncpa [#allocation32], 1 }
0x2c77   :  { %9150 = vsyncpa [#allocation35], 1 }
0x2c78   :  { %9151 = vsyncpa [#allocation38], 1 }

</bundles_post_ra>
